<compile_context>
chip_gen: v7x
topology: tpu7x:2x2x1
jax: 0.10.0
libtpu: 0.0.40
codegen_flags: <defaults>
</compile_context>

<pallas_src>
from functools import partial

import jax
import jax.numpy as jnp
import numpy as np
from jax.experimental import pallas as pl
from jax.experimental.pallas import tpu as pltpu

EPS = 1e-5


def recsys_kernel(u_ref, f_ref, fmask_ref, useatt_ref,
                  item_ref, tag_ref, feat_ref,
                  w1a_ref, w1b_ref, b1_ref, g1_ref, be1_ref,
                  w2a_ref, w2b_ref, b2_ref, g2_ref, be2_ref,
                  wou_ref, wof_ref, bo_ref,
                  out_ref,
                  uvec_sc, h1_sc, h2_sc, sum1_sc, sq1_sc, sum2_sc, sq2_sc,
                  *, num_valid, tile_m, num_follow):
    f32 = jnp.float32
    bf16 = jnp.bfloat16
    inv_n = 1.0 / num_valid                     # static (trace-time) constant

    p = pl.program_id(0)                        # pass: 0=attn+fc1, 1=BN1+fc2, 2=BN2+head
    t = pl.program_id(1)                        # batch tile
    row0 = pl.multiple_of(t * tile_m, tile_m)   # tile offset into whole-batch scratch

    # Row mask: 1.0 for real batch rows, 0.0 for batch padding (kept out of the
    # train-mode BatchNorm statistics).
    gidx = jax.lax.broadcasted_iota(jnp.int32, (tile_m, 1), 0) + t * tile_m
    rmask = (gidx < num_valid).astype(f32)

    @pl.when(jnp.logical_and(p == 0, t == 0))
    def _init_stats():
        sum1_sc[...] = jnp.zeros_like(sum1_sc)
        sq1_sc[...] = jnp.zeros_like(sq1_sc)
        sum2_sc[...] = jnp.zeros_like(sum2_sc)
        sq2_sc[...] = jnp.zeros_like(sq2_sc)

    # ---------------- pass 0: user attention + fc1 (+ BN1 partial sums) -----
    @pl.when(p == 0)
    def _pass0():
        u = u_ref[...]                                          # (TM,128) f32
        use_attn = useatt_ref[...]                              # (TM,1)   f32

        # softmax(dim=0) over [self; valid follows].  Per-follow unrolled loop
        # keeps intermediates at (TM,128)/(TM,1) -> low vreg pressure; the
        # f_emb tile is bf16 in VMEM and upcast per slice (math stays f32).
        score_u = jnp.sum(u * u, axis=-1, keepdims=True)        # (TM,1)
        scores = []
        m = score_u
        for j in range(num_follow):
            fj = f_ref[:, j * 128:(j + 1) * 128].astype(f32)    # aligned lane slice
            s_j = jnp.sum(fj * u, axis=-1, keepdims=True)
            s_j = jnp.where(fmask_ref[:, j:j + 1] > 0.0, s_j, -1e30)
            scores.append(s_j)
            m = jnp.maximum(m, s_j)
        p_u = jnp.exp(score_u - m)
        weights = []
        denom = p_u
        for s_j in scores:
            w_j = jnp.exp(s_j - m)                              # masked -> underflows to 0
            weights.append(w_j)
            denom = denom + w_j
        inv = pl.reciprocal(denom, approx=True)                 # EUP slot, VALU stays free
        acc = (p_u * inv) * u
        for j in range(num_follow):
            fj = f_ref[:, j * 128:(j + 1) * 128].astype(f32)
            acc = acc + (weights[j] * inv) * fj
        user_vec = jnp.where(use_attn > 0.0, acc, u)            # (TM,128) f32
        uvec_sc[pl.ds(row0, tile_m), :] = user_vec

        # item_vector pre-activation: fc1(cat([tag, item])) + item
        # (bf16 MXU operands, f32 accumulation).
        item_vec = item_ref[...]                                # (TM,256) f32
        h1 = (jnp.dot(tag_ref[...], w1a_ref[...], preferred_element_type=f32)
              + jnp.dot(item_vec.astype(bf16), w1b_ref[...], preferred_element_type=f32)
              + b1_ref[...] + item_vec)                         # (TM,256) f32
        h1_sc[pl.ds(row0, tile_m), :] = h1
        h1m = h1 * rmask                                        # pad rows excluded
        sum1_sc[...] += jnp.sum(h1m, axis=0, keepdims=True)
        sq1_sc[...] += jnp.sum(h1m * h1, axis=0, keepdims=True)

    # ---------------- pass 1: BN1 + ReLU + fc2 (+ BN2 partial sums) ---------
    @pl.when(p == 1)
    def _pass1():
        mu1 = sum1_sc[...] * inv_n                              # full-batch stats
        var1 = jnp.maximum(sq1_sc[...] * inv_n - mu1 * mu1, 0.0)
        h1 = h1_sc[pl.ds(row0, tile_m), :]
        item_vector = jnp.maximum(
            (h1 - mu1) * jax.lax.rsqrt(var1 + EPS) * g1_ref[...] + be1_ref[...], 0.0)
        user_vec = uvec_sc[pl.ds(row0, tile_m), :]
        h2 = (jnp.dot(user_vec.astype(bf16), w2a_ref[...], preferred_element_type=f32)
              + jnp.dot(item_vector.astype(bf16), w2b_ref[...], preferred_element_type=f32)
              + b2_ref[...] + user_vec)                         # (TM,128) f32
        h2_sc[pl.ds(row0, tile_m), :] = h2
        h2m = h2 * rmask
        sum2_sc[...] += jnp.sum(h2m, axis=0, keepdims=True)
        sq2_sc[...] += jnp.sum(h2m * h2, axis=0, keepdims=True)

    # ---------------- pass 2: BN2 + ReLU + output head ----------------------
    @pl.when(p == 2)
    def _pass2():
        mu2 = sum2_sc[...] * inv_n
        var2 = jnp.maximum(sq2_sc[...] * inv_n - mu2 * mu2, 0.0)
        h2 = h2_sc[pl.ds(row0, tile_m), :]
        iuv = jnp.maximum(
            (h2 - mu2) * jax.lax.rsqrt(var2 + EPS) * g2_ref[...] + be2_ref[...], 0.0)
        # N=1 output matmul as VPU multiply + lane reduction (no MXU push/pop).
        out_ref[...] = (jnp.sum(iuv * wou_ref[...] + feat_ref[...] * wof_ref[...],
                                axis=-1, keepdims=True) + bo_ref[...])      # (TM,1)


def prepare_params(W1, b1, g1, be1, W2, b2, g2, be2, Wout, bo):
    """One-time (model-load) preprocessing, OUTSIDE the per-request hot path:
    split fc weights at the concat boundaries, cast matmul weights to bf16,
    lane-pad the 3-wide feature slice of the output weight."""
    bf16 = jnp.bfloat16
    W1a = W1[:768].astype(bf16)                 # tag part of fc1          (768,256)
    W1b = W1[768:].astype(bf16)                 # item part of fc1         (256,256)
    W2a = W2[:128].astype(bf16)                 # user part of fc2         (128,128)
    W2b = W2[128:].astype(bf16)                 # item_vector part of fc2  (256,128)
    wo_u = Wout[:128, 0][None, :]                                         # (1,128)
    wo_f = jnp.zeros((1, 128), jnp.float32).at[0, :Wout.shape[0] - 128].set(Wout[128:, 0])
    return (W1a, W1b, b1, g1, be1, W2a, W2b, b2, g2, be2, wo_u, wo_f, bo)


def recsys_forward(params, u_emb, f_emb, f_mask, use_attn, item_vec, tag_vec,
                   feature_item, tile_m=128):
    """Per-request hot path (jit this).  tile_m: 128 on v5e, 256 on v6e/v7x."""
    assert tile_m % 8 == 0
    (W1a, W1b, b1, g1, be1, W2a, W2b, b2, g2, be2, wo_u, wo_f, bo) = params
    B, F = f_emb.shape[0], f_emb.shape[1]
    nt = (B + tile_m - 1) // tile_m
    Bp = nt * tile_m
    pad = Bp - B

    def padb(x):
        if pad == 0:
            return x
        return jnp.pad(x, [(0, pad)] + [(0, 0)] * (x.ndim - 1))

    bf16 = jnp.bfloat16
    feat_pad = jnp.zeros((B, 128), jnp.float32).at[:, :feature_item.shape[1]].set(feature_item)

    # bf16 transport for the two big activation inputs; f_emb flattened so the
    # kernel uses aligned 128-lane slices.
    act_args = (padb(u_emb),
                padb(f_emb.astype(bf16).reshape(B, F * 128)),
                padb(f_mask),
                padb(use_attn),
                padb(item_vec),
                padb(tag_vec.astype(bf16)),
                padb(feat_pad))
    w_args = (W1a, W1b, b1, g1, be1, W2a, W2b, b2, g2, be2, wo_u, wo_f, bo)

    last = nt - 1

    def row_p0(p, t):            # batch-tiled inputs consumed only in pass 0
        return jnp.where(p == 0, t, last)   # stick at last block -> no re-DMA in passes 1/2

    def row_p2(p, t):            # batch-tiled input consumed only in pass 2
        return jnp.where(p == 2, t, 0)

    in_specs = [
        pl.BlockSpec((tile_m, 128), lambda p, t: (row_p0(p, t), 0)),       # u_emb
        pl.BlockSpec((tile_m, F * 128), lambda p, t: (row_p0(p, t), 0)),   # f_emb (flat, bf16)
        pl.BlockSpec((tile_m, F), lambda p, t: (row_p0(p, t), 0)),         # f_mask
        pl.BlockSpec((tile_m, 1), lambda p, t: (row_p0(p, t), 0)),         # use_attn
        pl.BlockSpec((tile_m, 256), lambda p, t: (row_p0(p, t), 0)),       # item_vec
        pl.BlockSpec((tile_m, 768), lambda p, t: (row_p0(p, t), 0)),       # tag (bf16)
        pl.BlockSpec((tile_m, 128), lambda p, t: (row_p2(p, t), 0)),       # feat_pad
    ] + [
        # Weights: constant block index -> DMA'd once, VMEM-resident all grid.
        pl.BlockSpec(w.shape, lambda p, t: (0, 0)) for w in w_args
    ]
    out_spec = pl.BlockSpec((tile_m, 1), lambda p, t: (jnp.where(p == 2, t, 0), 0))

    flops = int(2 * Bp * (768 * 256 + 256 * 256 + 128 * 128 + 256 * 128)
                + 6 * Bp * F * 128)
    bytes_accessed = int(sum(int(np.prod(a.shape)) * a.dtype.itemsize
                             for a in act_args + w_args) + Bp * 4)
    cost = pl.CostEstimate(flops=flops, transcendentals=int(Bp * (F + 2)),
                           bytes_accessed=bytes_accessed)

    out = pl.pallas_call(
        partial(recsys_kernel, num_valid=B, tile_m=tile_m, num_follow=F),
        out_shape=jax.ShapeDtypeStruct((Bp, 1), jnp.float32),
        grid_spec=pltpu.PrefetchScalarGridSpec(
            num_scalar_prefetch=0,
            grid=(3, nt),                       # (pass, batch tile)
            in_specs=in_specs,
            out_specs=out_spec,
            scratch_shapes=[
                pltpu.VMEM((Bp, 128), jnp.float32),   # user_vec   (pass0 -> pass1)
                pltpu.VMEM((Bp, 256), jnp.float32),   # h1         (pass0 -> pass1)
                pltpu.VMEM((Bp, 128), jnp.float32),   # h2         (pass1 -> pass2)
                pltpu.VMEM((1, 256), jnp.float32),    # BN1 sum
                pltpu.VMEM((1, 256), jnp.float32),    # BN1 sum-of-squares
                pltpu.VMEM((1, 128), jnp.float32),    # BN2 sum
                pltpu.VMEM((1, 128), jnp.float32),    # BN2 sum-of-squares
            ]),
        cost_estimate=cost,
        # Both axes "arbitrary": passes are ordered and BN stats accumulate
        # sequentially across batch tiles (full-batch semantics preserved).
        compiler_params=pltpu.CompilerParams(
            dimension_semantics=("arbitrary", "arbitrary"),
            vmem_limit_bytes=32 * 1024 * 1024),   # keep <=32 MiB (v7x has 64 MiB phys)
    )(*act_args, *w_args)
    return out[:B]


def reference(params, u_emb, f_emb, f_mask, use_attn, item_vec, tag_vec, feature_item):
    """Plain-JAX forward mirroring the module semantics (bf16 matmul operands /
    bf16-transported f_emb with f32 math — same quantization as the kernel)."""
    (W1a, W1b, b1, g1, be1, W2a, W2b, b2, g2, be2, wo_u, wo_f, bo) = params
    bf16, f32 = jnp.bfloat16, jnp.float32

    f = f_emb.astype(bf16).astype(f32)
    score_u = jnp.sum(u_emb * u_emb, axis=-1, keepdims=True)
    score_f = jnp.sum(f * u_emb[:, None, :], axis=-1)
    masked_f = jnp.where(f_mask > 0.0, score_f, -1e30)
    m = jnp.maximum(jnp.max(masked_f, axis=-1, keepdims=True), score_u)
    p_u = jnp.exp(score_u - m)
    p_f = jnp.exp(masked_f - m)
    inv = 1.0 / (p_u + jnp.sum(p_f, axis=-1, keepdims=True))
    attn_out = (p_u * inv) * u_emb + jnp.sum((p_f * inv)[:, :, None] * f, axis=1)
    user_vec = jnp.where(use_attn > 0.0, attn_out, u_emb)

    h1 = (jnp.dot(tag_vec.astype(bf16), W1a, preferred_element_type=f32)
          + jnp.dot(item_vec.astype(bf16), W1b, preferred_element_type=f32)
          + b1 + item_vec)
    mu1 = h1.mean(0, keepdims=True)
    v1 = ((h1 - mu1) ** 2).mean(0, keepdims=True)
    iv = jnp.maximum((h1 - mu1) / jnp.sqrt(v1 + EPS) * g1 + be1, 0.0)

    h2 = (jnp.dot(user_vec.astype(bf16), W2a, preferred_element_type=f32)
          + jnp.dot(iv.astype(bf16), W2b, preferred_element_type=f32)
          + b2 + user_vec)
    mu2 = h2.mean(0, keepdims=True)
    v2 = ((h2 - mu2) ** 2).mean(0, keepdims=True)
    iuv = jnp.maximum((h2 - mu2) / jnp.sqrt(v2 + EPS) * g2 + be2, 0.0)

    feat_pad = jnp.zeros((u_emb.shape[0], 128), f32).at[:, :feature_item.shape[1]].set(feature_item)
    return jnp.sum(iuv * wo_u + feat_pad * wo_f, axis=-1, keepdims=True) + bo


if __name__ == "__main__":
    # Serving-style batch (review: batch >=128 so the batch-tile grid and the
    # MXU M dimension are exercised); B is not a tile multiple so the pad /
    # row-mask path is covered too.
    B, F_MAX = 200, 8
    NUM_USERS, NUM_ITEMS = 64, 32
    TILE_M = 128            # 128 for v5e; use 256 on v6e/v7x to fill the MXU M dim

    key = jax.random.PRNGKey(0)
    ks = jax.random.split(key, 14)

    # ---- deterministic "parameters" (module __init__ shapes; stored as (in,out)) ----
    user_table = jax.random.normal(ks[0], (NUM_USERS, 128), jnp.float32) * 0.05
    item_table = jax.random.normal(ks[1], (NUM_ITEMS, 256), jnp.float32) * 0.05
    W1 = jax.random.normal(ks[2], (1024, 256), jnp.float32) / 32.0       # fc1
    b1 = jax.random.normal(ks[3], (1, 256), jnp.float32) * 0.01
    W2 = jax.random.normal(ks[4], (384, 128), jnp.float32) / 20.0        # fc2
    b2 = jax.random.normal(ks[5], (1, 128), jnp.float32) * 0.01
    Wout = jax.random.normal(ks[6], (131, 1), jnp.float32) * 0.08        # output
    bo = jax.random.normal(ks[7], (1, 1), jnp.float32) * 0.01
    g1, be1 = jnp.ones((1, 256), jnp.float32), jnp.zeros((1, 256), jnp.float32)
    g2, be2 = jnp.ones((1, 128), jnp.float32), jnp.zeros((1, 128), jnp.float32)

    # One-time weight preprocessing (bf16 casts + splits) — outside the hot path.
    params = prepare_params(W1, b1, g1, be1, W2, b2, g2, be2, Wout, bo)

    # ---- example inputs ----
    user_id = jax.random.randint(ks[8], (B,), 0, NUM_USERS)
    item_id = jax.random.randint(ks[9], (B,), 0, NUM_ITEMS)
    follow_counts = jax.random.randint(ks[10], (B,), 0, F_MAX + 1)       # both branches
    user_follow = jax.random.randint(ks[11], (B, F_MAX), 0, NUM_USERS)
    feature_item = jax.random.normal(ks[12], (B, 3), jnp.float32)
    # TODO(synk): stands in for BertModel('bert-base-chinese') pooler_output.
    tag_features = jax.random.normal(ks[13], (B, 768), jnp.float32)

    # ---- glue: embedding gathers + follow mask (ragged list -> padded ids + mask) ----
    u_emb = user_table[user_id]                               # (B, 128)
    f_emb = user_table[user_follow]                           # (B, F, 128)
    f_mask = (jnp.arange(F_MAX)[None, :] < follow_counts[:, None]).astype(jnp.float32)
    use_attn = (follow_counts > 1).astype(jnp.float32)[:, None]
    item_vec = item_table[item_id]                            # (B, 256)

    fwd = jax.jit(recsys_forward, static_argnames=("tile_m",))
    logits = jax.block_until_ready(
        fwd(params, u_emb, f_emb, f_mask, use_attn, item_vec, tag_features,
            feature_item, tile_m=TILE_M))
    ref = jax.block_until_ready(
        reference(params, u_emb, f_emb, f_mask, use_attn, item_vec, tag_features,
                  feature_item))

    assert logits.shape == (B, 1)
    np.testing.assert_allclose(np.asarray(logits), np.asarray(ref), rtol=5e-3, atol=5e-3)
    print("KERNEL_OK")
</pallas_src>

<mosaic_0001>
module attributes {stable_mosaic.version = 11 : i64} {
  func.func @recsys_kernel(%arg0: i32, %arg1: i32, %arg2: memref<128x128xf32, #tpu.memory_space<vmem>>, %arg3: memref<128x1024xbf16, #tpu.memory_space<vmem>>, %arg4: memref<128x8xf32, #tpu.memory_space<vmem>>, %arg5: memref<128x1xf32, #tpu.memory_space<vmem>>, %arg6: memref<128x256xf32, #tpu.memory_space<vmem>>, %arg7: memref<128x768xbf16, #tpu.memory_space<vmem>>, %arg8: memref<128x128xf32, #tpu.memory_space<vmem>>, %arg9: memref<768x256xbf16, #tpu.memory_space<vmem>>, %arg10: memref<256x256xbf16, #tpu.memory_space<vmem>>, %arg11: memref<1x256xf32, #tpu.memory_space<vmem>>, %arg12: memref<1x256xf32, #tpu.memory_space<vmem>>, %arg13: memref<1x256xf32, #tpu.memory_space<vmem>>, %arg14: memref<128x128xbf16, #tpu.memory_space<vmem>>, %arg15: memref<256x128xbf16, #tpu.memory_space<vmem>>, %arg16: memref<1x128xf32, #tpu.memory_space<vmem>>, %arg17: memref<1x128xf32, #tpu.memory_space<vmem>>, %arg18: memref<1x128xf32, #tpu.memory_space<vmem>>, %arg19: memref<1x128xf32, #tpu.memory_space<vmem>>, %arg20: memref<1x128xf32, #tpu.memory_space<vmem>>, %arg21: memref<1x1xf32, #tpu.memory_space<vmem>>, %arg22: memref<128x1xf32, #tpu.memory_space<vmem>>, %arg23: memref<256x128xf32, #tpu.memory_space<vmem>>, %arg24: memref<256x256xf32, #tpu.memory_space<vmem>>, %arg25: memref<256x128xf32, #tpu.memory_space<vmem>>, %arg26: memref<1x256xf32, #tpu.memory_space<vmem>>, %arg27: memref<1x256xf32, #tpu.memory_space<vmem>>, %arg28: memref<1x128xf32, #tpu.memory_space<vmem>>, %arg29: memref<1x128xf32, #tpu.memory_space<vmem>>) attributes {dimension_semantics = [#tpu.dimension_semantics<arbitrary>, #tpu.dimension_semantics<arbitrary>], iteration_bounds = array<i64: 3, 2>, scalar_prefetch = 0 : i64, scratch_operands = 7 : i64, tpu.core_type = #tpu.core_type<tc>, window_params = [{transform_indices = @transform_0, window_bounds = array<i64: 128, 128>}, {transform_indices = @transform_1, window_bounds = array<i64: 128, 1024>}, {transform_indices = @transform_2, window_bounds = array<i64: 128, 8>}, {transform_indices = @transform_3, window_bounds = array<i64: 128, 1>}, {transform_indices = @transform_4, window_bounds = array<i64: 128, 256>}, {transform_indices = @transform_5, window_bounds = array<i64: 128, 768>}, {transform_indices = @transform_6, window_bounds = array<i64: 128, 128>}, {pipeline_mode = #tpu.pipeline_mode<synchronous>, transform_indices = @transform_7, window_bounds = array<i64: 768, 256>}, {pipeline_mode = #tpu.pipeline_mode<synchronous>, transform_indices = @transform_8, window_bounds = array<i64: 256, 256>}, {pipeline_mode = #tpu.pipeline_mode<synchronous>, transform_indices = @transform_9, window_bounds = array<i64: 1, 256>}, {pipeline_mode = #tpu.pipeline_mode<synchronous>, transform_indices = @transform_10, window_bounds = array<i64: 1, 256>}, {pipeline_mode = #tpu.pipeline_mode<synchronous>, transform_indices = @transform_11, window_bounds = array<i64: 1, 256>}, {pipeline_mode = #tpu.pipeline_mode<synchronous>, transform_indices = @transform_12, window_bounds = array<i64: 128, 128>}, {pipeline_mode = #tpu.pipeline_mode<synchronous>, transform_indices = @transform_13, window_bounds = array<i64: 256, 128>}, {pipeline_mode = #tpu.pipeline_mode<synchronous>, transform_indices = @transform_14, window_bounds = array<i64: 1, 128>}, {pipeline_mode = #tpu.pipeline_mode<synchronous>, transform_indices = @transform_15, window_bounds = array<i64: 1, 128>}, {pipeline_mode = #tpu.pipeline_mode<synchronous>, transform_indices = @transform_16, window_bounds = array<i64: 1, 128>}, {pipeline_mode = #tpu.pipeline_mode<synchronous>, transform_indices = @transform_17, window_bounds = array<i64: 1, 128>}, {pipeline_mode = #tpu.pipeline_mode<synchronous>, transform_indices = @transform_18, window_bounds = array<i64: 1, 128>}, {pipeline_mode = #tpu.pipeline_mode<synchronous>, transform_indices = @transform_19, window_bounds = array<i64: 1, 1>}, {transform_indices = @transform_20, window_bounds = array<i64: 128, 1>}]} {
    %c128_i32 = arith.constant 128 : i32
    %0 = arith.muli %arg1, %c128_i32 : i32
    %1 = tpu.assume_multiple %0, 128 : i32
    %2 = tpu.iota {dimensions = array<i32: 0>} : vector<128x1xi32>
    %c128_i32_0 = arith.constant 128 : i32
    %3 = arith.muli %arg1, %c128_i32_0 : i32
    %4 = vector.broadcast %3 : i32 to vector<128x1xi32>
    %5 = arith.addi %2, %4 : vector<128x1xi32>
    %c200_i32 = arith.constant 200 : i32
    %6 = vector.broadcast %c200_i32 : i32 to vector<128x1xi32>
    %7 = arith.cmpi slt, %5, %6 : vector<128x1xi32>
    %8 = arith.extui %7 : vector<128x1xi1> to vector<128x1xi32>
    %9 = arith.sitofp %8 : vector<128x1xi32> to vector<128x1xf32>
    %c0_i32 = arith.constant 0 : i32
    %10 = arith.cmpi eq, %arg0, %c0_i32 : i32
    %c0_i32_1 = arith.constant 0 : i32
    %11 = arith.cmpi eq, %arg1, %c0_i32_1 : i32
    %12 = arith.andi %10, %11 : i1
    %13 = arith.extui %12 : i1 to i32
    %c0_i32_2 = arith.constant 0 : i32
    %14 = arith.cmpi ne, %13, %c0_i32_2 : i32
    scf.if %14 {
      %cst = arith.constant 0.000000e+00 : f32
      %24 = vector.broadcast %cst : f32 to vector<1x256xf32>
      %c0 = arith.constant 0 : index
      %c0_7 = arith.constant 0 : index
      %25 = vector.load %arg26[%c0, %c0_7] : memref<1x256xf32, #tpu.memory_space<vmem>>, vector<1x256xf32>
      tpu.vector_store %arg26[%c0, %c0_7], %24 {strides = array<i32>} : memref<1x256xf32, #tpu.memory_space<vmem>>, vector<1x256xf32>,
      %cst_8 = arith.constant 0.000000e+00 : f32
      %26 = vector.broadcast %cst_8 : f32 to vector<1x256xf32>
      %c0_9 = arith.constant 0 : index
      %c0_10 = arith.constant 0 : index
      %27 = vector.load %arg27[%c0_9, %c0_10] : memref<1x256xf32, #tpu.memory_space<vmem>>, vector<1x256xf32>
      tpu.vector_store %arg27[%c0_9, %c0_10], %26 {strides = array<i32>} : memref<1x256xf32, #tpu.memory_space<vmem>>, vector<1x256xf32>,
      %cst_11 = arith.constant 0.000000e+00 : f32
      %28 = vector.broadcast %cst_11 : f32 to vector<1x128xf32>
      %c0_12 = arith.constant 0 : index
      %c0_13 = arith.constant 0 : index
      %29 = vector.load %arg28[%c0_12, %c0_13] : memref<1x128xf32, #tpu.memory_space<vmem>>, vector<1x128xf32>
      tpu.vector_store %arg28[%c0_12, %c0_13], %28 {strides = array<i32>} : memref<1x128xf32, #tpu.memory_space<vmem>>, vector<1x128xf32>,
      %cst_14 = arith.constant 0.000000e+00 : f32
      %30 = vector.broadcast %cst_14 : f32 to vector<1x128xf32>
      %c0_15 = arith.constant 0 : index
      %c0_16 = arith.constant 0 : index
      %31 = vector.load %arg29[%c0_15, %c0_16] : memref<1x128xf32, #tpu.memory_space<vmem>>, vector<1x128xf32>
      tpu.vector_store %arg29[%c0_15, %c0_16], %30 {strides = array<i32>} : memref<1x128xf32, #tpu.memory_space<vmem>>, vector<1x128xf32>,
    } else {
    }
    %c0_i32_3 = arith.constant 0 : i32
    %15 = arith.cmpi eq, %arg0, %c0_i32_3 : i32
    %16 = arith.extui %15 : i1 to i32
    %c0_i32_4 = arith.constant 0 : i32
    %17 = arith.cmpi ne, %16, %c0_i32_4 : i32
    scf.if %17 {
      %c0 = arith.constant 0 : index
      %c0_7 = arith.constant 0 : index
      %24 = vector.load %arg2[%c0, %c0_7] : memref<128x128xf32, #tpu.memory_space<vmem>>, vector<128x128xf32>
      %c0_8 = arith.constant 0 : index
      %c0_9 = arith.constant 0 : index
      %25 = vector.load %arg5[%c0_8, %c0_9] : memref<128x1xf32, #tpu.memory_space<vmem>>, vector<128x1xf32>
      %26 = arith.mulf %24, %24 : vector<128x128xf32>
      %cst = arith.constant dense<0.000000e+00> : vector<128xf32>
      %27 = vector.multi_reduction <add>, %26, %cst [1] : vector<128x128xf32> to vector<128xf32>
      %28 = vector.shape_cast %27 : vector<128xf32> to vector<128x1xf32>
      %c0_10 = arith.constant 0 : index
      %c0_11 = arith.constant 0 : index
      %29 = vector.load %arg3[%c0_10, %c0_11] : memref<128x1024xbf16, #tpu.memory_space<vmem>>, vector<128x128xbf16>
      %30 = arith.extf %29 : vector<128x128xbf16> to vector<128x128xf32>
      %31 = arith.mulf %30, %24 : vector<128x128xf32>
      %cst_12 = arith.constant dense<0.000000e+00> : vector<128xf32>
      %32 = vector.multi_reduction <add>, %31, %cst_12 [1] : vector<128x128xf32> to vector<128xf32>
      %33 = vector.shape_cast %32 : vector<128xf32> to vector<128x1xf32>
      %c0_13 = arith.constant 0 : index
      %c0_14 = arith.constant 0 : index
      %34 = vector.load %arg4[%c0_13, %c0_14] : memref<128x8xf32, #tpu.memory_space<vmem>>, vector<128x1xf32>
      %cst_15 = arith.constant 0.000000e+00 : f32
      %35 = vector.broadcast %cst_15 : f32 to vector<128x1xf32>
      %36 = arith.cmpf ogt, %34, %35 : vector<128x1xf32>
      %cst_16 = arith.constant -1.000000e+30 : f32
      %37 = vector.broadcast %cst_16 : f32 to vector<128x1xf32>
      %38 = arith.select %36, %33, %37 : vector<128x1xi1>, vector<128x1xf32>
      %39 = arith.maximumf %28, %38 : vector<128x1xf32>
      %c0_17 = arith.constant 0 : index
      %c128 = arith.constant 128 : index
      %40 = vector.load %arg3[%c0_17, %c128] : memref<128x1024xbf16, #tpu.memory_space<vmem>>, vector<128x128xbf16>
      %41 = arith.extf %40 : vector<128x128xbf16> to vector<128x128xf32>
      %42 = arith.mulf %41, %24 : vector<128x128xf32>
      %cst_18 = arith.constant dense<0.000000e+00> : vector<128xf32>
      %43 = vector.multi_reduction <add>, %42, %cst_18 [1] : vector<128x128xf32> to vector<128xf32>
      %44 = vector.shape_cast %43 : vector<128xf32> to vector<128x1xf32>
      %c0_19 = arith.constant 0 : index
      %c1 = arith.constant 1 : index
      %45 = vector.load %arg4[%c0_19, %c1] : memref<128x8xf32, #tpu.memory_space<vmem>>, vector<128x1xf32>
      %cst_20 = arith.constant 0.000000e+00 : f32
      %46 = vector.broadcast %cst_20 : f32 to vector<128x1xf32>
      %47 = arith.cmpf ogt, %45, %46 : vector<128x1xf32>
      %cst_21 = arith.constant -1.000000e+30 : f32
      %48 = vector.broadcast %cst_21 : f32 to vector<128x1xf32>
      %49 = arith.select %47, %44, %48 : vector<128x1xi1>, vector<128x1xf32>
      %50 = arith.maximumf %39, %49 : vector<128x1xf32>
      %c0_22 = arith.constant 0 : index
      %c256 = arith.constant 256 : index
      %51 = vector.load %arg3[%c0_22, %c256] : memref<128x1024xbf16, #tpu.memory_space<vmem>>, vector<128x128xbf16>
      %52 = arith.extf %51 : vector<128x128xbf16> to vector<128x128xf32>
      %53 = arith.mulf %52, %24 : vector<128x128xf32>
      %cst_23 = arith.constant dense<0.000000e+00> : vector<128xf32>
      %54 = vector.multi_reduction <add>, %53, %cst_23 [1] : vector<128x128xf32> to vector<128xf32>
      %55 = vector.shape_cast %54 : vector<128xf32> to vector<128x1xf32>
      %c0_24 = arith.constant 0 : index
      %c2 = arith.constant 2 : index
      %56 = vector.load %arg4[%c0_24, %c2] : memref<128x8xf32, #tpu.memory_space<vmem>>, vector<128x1xf32>
      %cst_25 = arith.constant 0.000000e+00 : f32
      %57 = vector.broadcast %cst_25 : f32 to vector<128x1xf32>
      %58 = arith.cmpf ogt, %56, %57 : vector<128x1xf32>
      %cst_26 = arith.constant -1.000000e+30 : f32
      %59 = vector.broadcast %cst_26 : f32 to vector<128x1xf32>
      %60 = arith.select %58, %55, %59 : vector<128x1xi1>, vector<128x1xf32>
      %61 = arith.maximumf %50, %60 : vector<128x1xf32>
      %c0_27 = arith.constant 0 : index
      %c384 = arith.constant 384 : index
      %62 = vector.load %arg3[%c0_27, %c384] : memref<128x1024xbf16, #tpu.memory_space<vmem>>, vector<128x128xbf16>
      %63 = arith.extf %62 : vector<128x128xbf16> to vector<128x128xf32>
      %64 = arith.mulf %63, %24 : vector<128x128xf32>
      %cst_28 = arith.constant dense<0.000000e+00> : vector<128xf32>
      %65 = vector.multi_reduction <add>, %64, %cst_28 [1] : vector<128x128xf32> to vector<128xf32>
      %66 = vector.shape_cast %65 : vector<128xf32> to vector<128x1xf32>
      %c0_29 = arith.constant 0 : index
      %c3 = arith.constant 3 : index
      %67 = vector.load %arg4[%c0_29, %c3] : memref<128x8xf32, #tpu.memory_space<vmem>>, vector<128x1xf32>
      %cst_30 = arith.constant 0.000000e+00 : f32
      %68 = vector.broadcast %cst_30 : f32 to vector<128x1xf32>
      %69 = arith.cmpf ogt, %67, %68 : vector<128x1xf32>
      %cst_31 = arith.constant -1.000000e+30 : f32
      %70 = vector.broadcast %cst_31 : f32 to vector<128x1xf32>
      %71 = arith.select %69, %66, %70 : vector<128x1xi1>, vector<128x1xf32>
      %72 = arith.maximumf %61, %71 : vector<128x1xf32>
      %c0_32 = arith.constant 0 : index
      %c512 = arith.constant 512 : index
      %73 = vector.load %arg3[%c0_32, %c512] : memref<128x1024xbf16, #tpu.memory_space<vmem>>, vector<128x128xbf16>
      %74 = arith.extf %73 : vector<128x128xbf16> to vector<128x128xf32>
      %75 = arith.mulf %74, %24 : vector<128x128xf32>
      %cst_33 = arith.constant dense<0.000000e+00> : vector<128xf32>
      %76 = vector.multi_reduction <add>, %75, %cst_33 [1] : vector<128x128xf32> to vector<128xf32>
      %77 = vector.shape_cast %76 : vector<128xf32> to vector<128x1xf32>
      %c0_34 = arith.constant 0 : index
      %c4 = arith.constant 4 : index
      %78 = vector.load %arg4[%c0_34, %c4] : memref<128x8xf32, #tpu.memory_space<vmem>>, vector<128x1xf32>
      %cst_35 = arith.constant 0.000000e+00 : f32
      %79 = vector.broadcast %cst_35 : f32 to vector<128x1xf32>
      %80 = arith.cmpf ogt, %78, %79 : vector<128x1xf32>
      %cst_36 = arith.constant -1.000000e+30 : f32
      %81 = vector.broadcast %cst_36 : f32 to vector<128x1xf32>
      %82 = arith.select %80, %77, %81 : vector<128x1xi1>, vector<128x1xf32>
      %83 = arith.maximumf %72, %82 : vector<128x1xf32>
      %c0_37 = arith.constant 0 : index
      %c640 = arith.constant 640 : index
      %84 = vector.load %arg3[%c0_37, %c640] : memref<128x1024xbf16, #tpu.memory_space<vmem>>, vector<128x128xbf16>
      %85 = arith.extf %84 : vector<128x128xbf16> to vector<128x128xf32>
      %86 = arith.mulf %85, %24 : vector<128x128xf32>
      %cst_38 = arith.constant dense<0.000000e+00> : vector<128xf32>
      %87 = vector.multi_reduction <add>, %86, %cst_38 [1] : vector<128x128xf32> to vector<128xf32>
      %88 = vector.shape_cast %87 : vector<128xf32> to vector<128x1xf32>
      %c0_39 = arith.constant 0 : index
      %c5 = arith.constant 5 : index
      %89 = vector.load %arg4[%c0_39, %c5] : memref<128x8xf32, #tpu.memory_space<vmem>>, vector<128x1xf32>
      %cst_40 = arith.constant 0.000000e+00 : f32
      %90 = vector.broadcast %cst_40 : f32 to vector<128x1xf32>
      %91 = arith.cmpf ogt, %89, %90 : vector<128x1xf32>
      %cst_41 = arith.constant -1.000000e+30 : f32
      %92 = vector.broadcast %cst_41 : f32 to vector<128x1xf32>
      %93 = arith.select %91, %88, %92 : vector<128x1xi1>, vector<128x1xf32>
      %94 = arith.maximumf %83, %93 : vector<128x1xf32>
      %c0_42 = arith.constant 0 : index
      %c768 = arith.constant 768 : index
      %95 = vector.load %arg3[%c0_42, %c768] : memref<128x1024xbf16, #tpu.memory_space<vmem>>, vector<128x128xbf16>
      %96 = arith.extf %95 : vector<128x128xbf16> to vector<128x128xf32>
      %97 = arith.mulf %96, %24 : vector<128x128xf32>
      %cst_43 = arith.constant dense<0.000000e+00> : vector<128xf32>
      %98 = vector.multi_reduction <add>, %97, %cst_43 [1] : vector<128x128xf32> to vector<128xf32>
      %99 = vector.shape_cast %98 : vector<128xf32> to vector<128x1xf32>
      %c0_44 = arith.constant 0 : index
      %c6 = arith.constant 6 : index
      %100 = vector.load %arg4[%c0_44, %c6] : memref<128x8xf32, #tpu.memory_space<vmem>>, vector<128x1xf32>
      %cst_45 = arith.constant 0.000000e+00 : f32
      %101 = vector.broadcast %cst_45 : f32 to vector<128x1xf32>
      %102 = arith.cmpf ogt, %100, %101 : vector<128x1xf32>
      %cst_46 = arith.constant -1.000000e+30 : f32
      %103 = vector.broadcast %cst_46 : f32 to vector<128x1xf32>
      %104 = arith.select %102, %99, %103 : vector<128x1xi1>, vector<128x1xf32>
      %105 = arith.maximumf %94, %104 : vector<128x1xf32>
      %c0_47 = arith.constant 0 : index
      %c896 = arith.constant 896 : index
      %106 = vector.load %arg3[%c0_47, %c896] : memref<128x1024xbf16, #tpu.memory_space<vmem>>, vector<128x128xbf16>
      %107 = arith.extf %106 : vector<128x128xbf16> to vector<128x128xf32>
      %108 = arith.mulf %107, %24 : vector<128x128xf32>
      %cst_48 = arith.constant dense<0.000000e+00> : vector<128xf32>
      %109 = vector.multi_reduction <add>, %108, %cst_48 [1] : vector<128x128xf32> to vector<128xf32>
      %110 = vector.shape_cast %109 : vector<128xf32> to vector<128x1xf32>
      %c0_49 = arith.constant 0 : index
      %c7 = arith.constant 7 : index
      %111 = vector.load %arg4[%c0_49, %c7] : memref<128x8xf32, #tpu.memory_space<vmem>>, vector<128x1xf32>
      %cst_50 = arith.constant 0.000000e+00 : f32
      %112 = vector.broadcast %cst_50 : f32 to vector<128x1xf32>
      %113 = arith.cmpf ogt, %111, %112 : vector<128x1xf32>
      %cst_51 = arith.constant -1.000000e+30 : f32
      %114 = vector.broadcast %cst_51 : f32 to vector<128x1xf32>
      %115 = arith.select %113, %110, %114 : vector<128x1xi1>, vector<128x1xf32>
      %116 = arith.maximumf %105, %115 : vector<128x1xf32>
      %117 = arith.subf %28, %116 : vector<128x1xf32>
      %118 = math.exp %117 : vector<128x1xf32>
      %119 = arith.subf %38, %116 : vector<128x1xf32>
      %120 = math.exp %119 : vector<128x1xf32>
      %121 = arith.addf %118, %120 : vector<128x1xf32>
      %122 = arith.subf %49, %116 : vector<128x1xf32>
      %123 = math.exp %122 : vector<128x1xf32>
      %124 = arith.addf %121, %123 : vector<128x1xf32>
      %125 = arith.subf %60, %116 : vector<128x1xf32>
      %126 = math.exp %125 : vector<128x1xf32>
      %127 = arith.addf %124, %126 : vector<128x1xf32>
      %128 = arith.subf %71, %116 : vector<128x1xf32>
      %129 = math.exp %128 : vector<128x1xf32>
      %130 = arith.addf %127, %129 : vector<128x1xf32>
      %131 = arith.subf %82, %116 : vector<128x1xf32>
      %132 = math.exp %131 : vector<128x1xf32>
      %133 = arith.addf %130, %132 : vector<128x1xf32>
      %134 = arith.subf %93, %116 : vector<128x1xf32>
      %135 = math.exp %134 : vector<128x1xf32>
      %136 = arith.addf %133, %135 : vector<128x1xf32>
      %137 = arith.subf %104, %116 : vector<128x1xf32>
      %138 = math.exp %137 : vector<128x1xf32>
      %139 = arith.addf %136, %138 : vector<128x1xf32>
      %140 = arith.subf %115, %116 : vector<128x1xf32>
      %141 = math.exp %140 : vector<128x1xf32>
      %142 = arith.addf %139, %141 : vector<128x1xf32>
      %143 = tpu.reciprocal %142 {approx = true} : vector<128x1xf32> -> vector<128x1xf32>
      %144 = arith.mulf %118, %143 : vector<128x1xf32>
      %145 = vector.broadcast %144 : vector<128x1xf32> to vector<128x128xf32>
      %146 = arith.mulf %145, %24 : vector<128x128xf32>
      %c0_52 = arith.constant 0 : index
      %c0_53 = arith.constant 0 : index
      %147 = vector.load %arg3[%c0_52, %c0_53] : memref<128x1024xbf16, #tpu.memory_space<vmem>>, vector<128x128xbf16>
      %148 = arith.extf %147 : vector<128x128xbf16> to vector<128x128xf32>
      %149 = arith.mulf %120, %143 : vector<128x1xf32>
      %150 = vector.broadcast %149 : vector<128x1xf32> to vector<128x128xf32>
      %151 = arith.mulf %150, %148 : vector<128x128xf32>
      %152 = arith.addf %146, %151 : vector<128x128xf32>
      %c0_54 = arith.constant 0 : index
      %c128_55 = arith.constant 128 : index
      %153 = vector.load %arg3[%c0_54, %c128_55] : memref<128x1024xbf16, #tpu.memory_space<vmem>>, vector<128x128xbf16>
      %154 = arith.extf %153 : vector<128x128xbf16> to vector<128x128xf32>
      %155 = arith.mulf %123, %143 : vector<128x1xf32>
      %156 = vector.broadcast %155 : vector<128x1xf32> to vector<128x128xf32>
      %157 = arith.mulf %156, %154 : vector<128x128xf32>
      %158 = arith.addf %152, %157 : vector<128x128xf32>
      %c0_56 = arith.constant 0 : index
      %c256_57 = arith.constant 256 : index
      %159 = vector.load %arg3[%c0_56, %c256_57] : memref<128x1024xbf16, #tpu.memory_space<vmem>>, vector<128x128xbf16>
      %160 = arith.extf %159 : vector<128x128xbf16> to vector<128x128xf32>
      %161 = arith.mulf %126, %143 : vector<128x1xf32>
      %162 = vector.broadcast %161 : vector<128x1xf32> to vector<128x128xf32>
      %163 = arith.mulf %162, %160 : vector<128x128xf32>
      %164 = arith.addf %158, %163 : vector<128x128xf32>
      %c0_58 = arith.constant 0 : index
      %c384_59 = arith.constant 384 : index
      %165 = vector.load %arg3[%c0_58, %c384_59] : memref<128x1024xbf16, #tpu.memory_space<vmem>>, vector<128x128xbf16>
      %166 = arith.extf %165 : vector<128x128xbf16> to vector<128x128xf32>
      %167 = arith.mulf %129, %143 : vector<128x1xf32>
      %168 = vector.broadcast %167 : vector<128x1xf32> to vector<128x128xf32>
      %169 = arith.mulf %168, %166 : vector<128x128xf32>
      %170 = arith.addf %164, %169 : vector<128x128xf32>
      %c0_60 = arith.constant 0 : index
      %c512_61 = arith.constant 512 : index
      %171 = vector.load %arg3[%c0_60, %c512_61] : memref<128x1024xbf16, #tpu.memory_space<vmem>>, vector<128x128xbf16>
      %172 = arith.extf %171 : vector<128x128xbf16> to vector<128x128xf32>
      %173 = arith.mulf %132, %143 : vector<128x1xf32>
      %174 = vector.broadcast %173 : vector<128x1xf32> to vector<128x128xf32>
      %175 = arith.mulf %174, %172 : vector<128x128xf32>
      %176 = arith.addf %170, %175 : vector<128x128xf32>
      %c0_62 = arith.constant 0 : index
      %c640_63 = arith.constant 640 : index
      %177 = vector.load %arg3[%c0_62, %c640_63] : memref<128x1024xbf16, #tpu.memory_space<vmem>>, vector<128x128xbf16>
      %178 = arith.extf %177 : vector<128x128xbf16> to vector<128x128xf32>
      %179 = arith.mulf %135, %143 : vector<128x1xf32>
      %180 = vector.broadcast %179 : vector<128x1xf32> to vector<128x128xf32>
      %181 = arith.mulf %180, %178 : vector<128x128xf32>
      %182 = arith.addf %176, %181 : vector<128x128xf32>
      %c0_64 = arith.constant 0 : index
      %c768_65 = arith.constant 768 : index
      %183 = vector.load %arg3[%c0_64, %c768_65] : memref<128x1024xbf16, #tpu.memory_space<vmem>>, vector<128x128xbf16>
      %184 = arith.extf %183 : vector<128x128xbf16> to vector<128x128xf32>
      %185 = arith.mulf %138, %143 : vector<128x1xf32>
      %186 = vector.broadcast %185 : vector<128x1xf32> to vector<128x128xf32>
      %187 = arith.mulf %186, %184 : vector<128x128xf32>
      %188 = arith.addf %182, %187 : vector<128x128xf32>
      %c0_66 = arith.constant 0 : index
      %c896_67 = arith.constant 896 : index
      %189 = vector.load %arg3[%c0_66, %c896_67] : memref<128x1024xbf16, #tpu.memory_space<vmem>>, vector<128x128xbf16>
      %190 = arith.extf %189 : vector<128x128xbf16> to vector<128x128xf32>
      %191 = arith.mulf %141, %143 : vector<128x1xf32>
      %192 = vector.broadcast %191 : vector<128x1xf32> to vector<128x128xf32>
      %193 = arith.mulf %192, %190 : vector<128x128xf32>
      %194 = arith.addf %188, %193 : vector<128x128xf32>
      %cst_68 = arith.constant 0.000000e+00 : f32
      %195 = vector.broadcast %cst_68 : f32 to vector<128x1xf32>
      %196 = arith.cmpf ogt, %25, %195 : vector<128x1xf32>
      %197 = vector.shape_cast %196 : vector<128x1xi1> to vector<128x1xi1>
      %198 = vector.broadcast %197 : vector<128x1xi1> to vector<128x128xi1>
      %199 = arith.select %198, %194, %24 : vector<128x128xi1>, vector<128x128xf32>
      %200 = arith.index_cast %1 : i32 to index
      %c0_69 = arith.constant 0 : index
      %201 = vector.load %arg23[%200, %c0_69] : memref<256x128xf32, #tpu.memory_space<vmem>>, vector<128x128xf32>
      tpu.vector_store %arg23[%200, %c0_69], %199 {strides = array<i32>} : memref<256x128xf32, #tpu.memory_space<vmem>>, vector<128x128xf32>,
      %c0_70 = arith.constant 0 : index
      %c0_71 = arith.constant 0 : index
      %202 = vector.load %arg6[%c0_70, %c0_71] : memref<128x256xf32, #tpu.memory_space<vmem>>, vector<128x256xf32>
      %c0_72 = arith.constant 0 : index
      %c0_73 = arith.constant 0 : index
      %203 = vector.load %arg7[%c0_72, %c0_73] : memref<128x768xbf16, #tpu.memory_space<vmem>>, vector<128x768xbf16>
      %c0_74 = arith.constant 0 : index
      %c0_75 = arith.constant 0 : index
      %204 = vector.load %arg9[%c0_74, %c0_75] : memref<768x256xbf16, #tpu.memory_space<vmem>>, vector<768x256xbf16>
      %cst_76 = arith.constant dense<0.000000e+00> : vector<128x256xf32>
      %205 = tpu.matmul %203, %204, %cst_76 {dimension_numbers = #tpu.dot_dimension_numbers<[1], [0], [0], [1], [0, 0, 1, 1], [], []>} : vector<128x768xbf16>, vector<768x256xbf16>, vector<128x256xf32> -> vector<128x256xf32>
      %206 = arith.truncf %202 : vector<128x256xf32> to vector<128x256xbf16>
      %c0_77 = arith.constant 0 : index
      %c0_78 = arith.constant 0 : index
      %207 = vector.load %arg10[%c0_77, %c0_78] : memref<256x256xbf16, #tpu.memory_space<vmem>>, vector<256x256xbf16>
      %cst_79 = arith.constant dense<0.000000e+00> : vector<128x256xf32>
      %208 = tpu.matmul %206, %207, %cst_79 {dimension_numbers = #tpu.dot_dimension_numbers<[1], [0], [0], [1], [0, 0, 1, 1], [], []>} : vector<128x256xbf16>, vector<256x256xbf16>, vector<128x256xf32> -> vector<128x256xf32>
      %209 = arith.addf %205, %208 : vector<128x256xf32>
      %c0_80 = arith.constant 0 : index
      %c0_81 = arith.constant 0 : index
      %210 = vector.load %arg11[%c0_80, %c0_81] : memref<1x256xf32, #tpu.memory_space<vmem>>, vector<1x256xf32>
      %211 = vector.broadcast %210 : vector<1x256xf32> to vector<128x256xf32>
      %212 = arith.addf %209, %211 : vector<128x256xf32>
      %213 = arith.addf %212, %202 : vector<128x256xf32>
      %214 = arith.index_cast %1 : i32 to index
      %c0_82 = arith.constant 0 : index
      %215 = vector.load %arg24[%214, %c0_82] : memref<256x256xf32, #tpu.memory_space<vmem>>, vector<128x256xf32>
      tpu.vector_store %arg24[%214, %c0_82], %213 {strides = array<i32>} : memref<256x256xf32, #tpu.memory_space<vmem>>, vector<128x256xf32>,
      %216 = vector.broadcast %9 : vector<128x1xf32> to vector<128x256xf32>
      %217 = arith.mulf %213, %216 : vector<128x256xf32>
      %c0_83 = arith.constant 0 : index
      %c0_84 = arith.constant 0 : index
      %218 = vector.load %arg26[%c0_83, %c0_84] : memref<1x256xf32, #tpu.memory_space<vmem>>, vector<1x256xf32>
      %cst_85 = arith.constant dense<0.000000e+00> : vector<256xf32>
      %219 = vector.multi_reduction <add>, %217, %cst_85 [0] : vector<128x256xf32> to vector<256xf32>
      %220 = vector.shape_cast %219 : vector<256xf32> to vector<1x256xf32>
      %221 = arith.addf %218, %220 : vector<1x256xf32>
      %c0_86 = arith.constant 0 : index
      %c0_87 = arith.constant 0 : index
      %222 = vector.load %arg26[%c0_86, %c0_87] : memref<1x256xf32, #tpu.memory_space<vmem>>, vector<1x256xf32>
      tpu.vector_store %arg26[%c0_86, %c0_87], %221 {strides = array<i32>} : memref<1x256xf32, #tpu.memory_space<vmem>>, vector<1x256xf32>,
      %c0_88 = arith.constant 0 : index
      %c0_89 = arith.constant 0 : index
      %223 = vector.load %arg27[%c0_88, %c0_89] : memref<1x256xf32, #tpu.memory_space<vmem>>, vector<1x256xf32>
      %224 = arith.mulf %217, %213 : vector<128x256xf32>
      %cst_90 = arith.constant dense<0.000000e+00> : vector<256xf32>
      %225 = vector.multi_reduction <add>, %224, %cst_90 [0] : vector<128x256xf32> to vector<256xf32>
      %226 = vector.shape_cast %225 : vector<256xf32> to vector<1x256xf32>
      %227 = arith.addf %223, %226 : vector<1x256xf32>
      %c0_91 = arith.constant 0 : index
      %c0_92 = arith.constant 0 : index
      %228 = vector.load %arg27[%c0_91, %c0_92] : memref<1x256xf32, #tpu.memory_space<vmem>>, vector<1x256xf32>
      tpu.vector_store %arg27[%c0_91, %c0_92], %227 {strides = array<i32>} : memref<1x256xf32, #tpu.memory_space<vmem>>, vector<1x256xf32>,
    } else {
    }
    %c1_i32 = arith.constant 1 : i32
    %18 = arith.cmpi eq, %arg0, %c1_i32 : i32
    %19 = arith.extui %18 : i1 to i32
    %c0_i32_5 = arith.constant 0 : i32
    %20 = arith.cmpi ne, %19, %c0_i32_5 : i32
    scf.if %20 {
      %c0 = arith.constant 0 : index
      %c0_7 = arith.constant 0 : index
      %24 = vector.load %arg26[%c0, %c0_7] : memref<1x256xf32, #tpu.memory_space<vmem>>, vector<1x256xf32>
      %cst = arith.constant 5.000000e-03 : f32
      %25 = vector.broadcast %cst : f32 to vector<1x256xf32>
      %26 = arith.mulf %24, %25 : vector<1x256xf32>
      %c0_8 = arith.constant 0 : index
      %c0_9 = arith.constant 0 : index
      %27 = vector.load %arg27[%c0_8, %c0_9] : memref<1x256xf32, #tpu.memory_space<vmem>>, vector<1x256xf32>
      %cst_10 = arith.constant 5.000000e-03 : f32
      %28 = vector.broadcast %cst_10 : f32 to vector<1x256xf32>
      %29 = arith.mulf %27, %28 : vector<1x256xf32>
      %30 = arith.mulf %26, %26 : vector<1x256xf32>
      %31 = arith.subf %29, %30 : vector<1x256xf32>
      %cst_11 = arith.constant 0.000000e+00 : f32
      %32 = vector.broadcast %cst_11 : f32 to vector<1x256xf32>
      %33 = arith.maximumf %31, %32 : vector<1x256xf32>
      %34 = arith.index_cast %1 : i32 to index
      %c0_12 = arith.constant 0 : index
      %35 = vector.load %arg24[%34, %c0_12] : memref<256x256xf32, #tpu.memory_space<vmem>>, vector<128x256xf32>
      %36 = vector.broadcast %26 : vector<1x256xf32> to vector<128x256xf32>
      %37 = arith.subf %35, %36 : vector<128x256xf32>
      %cst_13 = arith.constant 9.99999974E-6 : f32
      %38 = vector.broadcast %cst_13 : f32 to vector<1x256xf32>
      %39 = arith.addf %33, %38 : vector<1x256xf32>
      %40 = math.rsqrt %39 : vector<1x256xf32>
      %41 = vector.broadcast %40 : vector<1x256xf32> to vector<128x256xf32>
      %42 = arith.mulf %37, %41 : vector<128x256xf32>
      %c0_14 = arith.constant 0 : index
      %c0_15 = arith.constant 0 : index
      %43 = vector.load %arg12[%c0_14, %c0_15] : memref<1x256xf32, #tpu.memory_space<vmem>>, vector<1x256xf32>
      %44 = vector.broadcast %43 : vector<1x256xf32> to vector<128x256xf32>
      %45 = arith.mulf %42, %44 : vector<128x256xf32>
      %c0_16 = arith.constant 0 : index
      %c0_17 = arith.constant 0 : index
      %46 = vector.load %arg13[%c0_16, %c0_17] : memref<1x256xf32, #tpu.memory_space<vmem>>, vector<1x256xf32>
      %47 = vector.broadcast %46 : vector<1x256xf32> to vector<128x256xf32>
      %48 = arith.addf %45, %47 : vector<128x256xf32>
      %cst_18 = arith.constant 0.000000e+00 : f32
      %49 = vector.broadcast %cst_18 : f32 to vector<128x256xf32>
      %50 = arith.maximumf %48, %49 : vector<128x256xf32>
      %51 = arith.index_cast %1 : i32 to index
      %c0_19 = arith.constant 0 : index
      %52 = vector.load %arg23[%51, %c0_19] : memref<256x128xf32, #tpu.memory_space<vmem>>, vector<128x128xf32>
      %53 = arith.truncf %52 : vector<128x128xf32> to vector<128x128xbf16>
      %c0_20 = arith.constant 0 : index
      %c0_21 = arith.constant 0 : index
      %54 = vector.load %arg14[%c0_20, %c0_21] : memref<128x128xbf16, #tpu.memory_space<vmem>>, vector<128x128xbf16>
      %cst_22 = arith.constant dense<0.000000e+00> : vector<128x128xf32>
      %55 = tpu.matmul %53, %54, %cst_22 {dimension_numbers = #tpu.dot_dimension_numbers<[1], [0], [0], [1], [0, 0, 1, 1], [], []>} : vector<128x128xbf16>, vector<128x128xbf16>, vector<128x128xf32> -> vector<128x128xf32>
      %56 = arith.truncf %50 : vector<128x256xf32> to vector<128x256xbf16>
      %c0_23 = arith.constant 0 : index
      %c0_24 = arith.constant 0 : index
      %57 = vector.load %arg15[%c0_23, %c0_24] : memref<256x128xbf16, #tpu.memory_space<vmem>>, vector<256x128xbf16>
      %cst_25 = arith.constant dense<0.000000e+00> : vector<128x128xf32>
      %58 = tpu.matmul %56, %57, %cst_25 {dimension_numbers = #tpu.dot_dimension_numbers<[1], [0], [0], [1], [0, 0, 1, 1], [], []>} : vector<128x256xbf16>, vector<256x128xbf16>, vector<128x128xf32> -> vector<128x128xf32>
      %59 = arith.addf %55, %58 : vector<128x128xf32>
      %c0_26 = arith.constant 0 : index
      %c0_27 = arith.constant 0 : index
      %60 = vector.load %arg16[%c0_26, %c0_27] : memref<1x128xf32, #tpu.memory_space<vmem>>, vector<1x128xf32>
      %61 = vector.broadcast %60 : vector<1x128xf32> to vector<128x128xf32>
      %62 = arith.addf %59, %61 : vector<128x128xf32>
      %63 = arith.addf %62, %52 : vector<128x128xf32>
      %64 = arith.index_cast %1 : i32 to index
      %c0_28 = arith.constant 0 : index
      %65 = vector.load %arg25[%64, %c0_28] : memref<256x128xf32, #tpu.memory_space<vmem>>, vector<128x128xf32>
      tpu.vector_store %arg25[%64, %c0_28], %63 {strides = array<i32>} : memref<256x128xf32, #tpu.memory_space<vmem>>, vector<128x128xf32>,
      %66 = vector.broadcast %9 : vector<128x1xf32> to vector<128x128xf32>
      %67 = arith.mulf %63, %66 : vector<128x128xf32>
      %c0_29 = arith.constant 0 : index
      %c0_30 = arith.constant 0 : index
      %68 = vector.load %arg28[%c0_29, %c0_30] : memref<1x128xf32, #tpu.memory_space<vmem>>, vector<1x128xf32>
      %cst_31 = arith.constant dense<0.000000e+00> : vector<128xf32>
      %69 = vector.multi_reduction <add>, %67, %cst_31 [0] : vector<128x128xf32> to vector<128xf32>
      %70 = vector.shape_cast %69 : vector<128xf32> to vector<1x128xf32>
      %71 = arith.addf %68, %70 : vector<1x128xf32>
      %c0_32 = arith.constant 0 : index
      %c0_33 = arith.constant 0 : index
      %72 = vector.load %arg28[%c0_32, %c0_33] : memref<1x128xf32, #tpu.memory_space<vmem>>, vector<1x128xf32>
      tpu.vector_store %arg28[%c0_32, %c0_33], %71 {strides = array<i32>} : memref<1x128xf32, #tpu.memory_space<vmem>>, vector<1x128xf32>,
      %c0_34 = arith.constant 0 : index
      %c0_35 = arith.constant 0 : index
      %73 = vector.load %arg29[%c0_34, %c0_35] : memref<1x128xf32, #tpu.memory_space<vmem>>, vector<1x128xf32>
      %74 = arith.mulf %67, %63 : vector<128x128xf32>
      %cst_36 = arith.constant dense<0.000000e+00> : vector<128xf32>
      %75 = vector.multi_reduction <add>, %74, %cst_36 [0] : vector<128x128xf32> to vector<128xf32>
      %76 = vector.shape_cast %75 : vector<128xf32> to vector<1x128xf32>
      %77 = arith.addf %73, %76 : vector<1x128xf32>
      %c0_37 = arith.constant 0 : index
      %c0_38 = arith.constant 0 : index
      %78 = vector.load %arg29[%c0_37, %c0_38] : memref<1x128xf32, #tpu.memory_space<vmem>>, vector<1x128xf32>
      tpu.vector_store %arg29[%c0_37, %c0_38], %77 {strides = array<i32>} : memref<1x128xf32, #tpu.memory_space<vmem>>, vector<1x128xf32>,
    } else {
    }
    %c2_i32 = arith.constant 2 : i32
    %21 = arith.cmpi eq, %arg0, %c2_i32 : i32
    %22 = arith.extui %21 : i1 to i32
    %c0_i32_6 = arith.constant 0 : i32
    %23 = arith.cmpi ne, %22, %c0_i32_6 : i32
    scf.if %23 {
      %c0 = arith.constant 0 : index
      %c0_7 = arith.constant 0 : index
      %24 = vector.load %arg28[%c0, %c0_7] : memref<1x128xf32, #tpu.memory_space<vmem>>, vector<1x128xf32>
      %cst = arith.constant 5.000000e-03 : f32
      %25 = vector.broadcast %cst : f32 to vector<1x128xf32>
      %26 = arith.mulf %24, %25 : vector<1x128xf32>
      %c0_8 = arith.constant 0 : index
      %c0_9 = arith.constant 0 : index
      %27 = vector.load %arg29[%c0_8, %c0_9] : memref<1x128xf32, #tpu.memory_space<vmem>>, vector<1x128xf32>
      %cst_10 = arith.constant 5.000000e-03 : f32
      %28 = vector.broadcast %cst_10 : f32 to vector<1x128xf32>
      %29 = arith.mulf %27, %28 : vector<1x128xf32>
      %30 = arith.mulf %26, %26 : vector<1x128xf32>
      %31 = arith.subf %29, %30 : vector<1x128xf32>
      %cst_11 = arith.constant 0.000000e+00 : f32
      %32 = vector.broadcast %cst_11 : f32 to vector<1x128xf32>
      %33 = arith.maximumf %31, %32 : vector<1x128xf32>
      %34 = arith.index_cast %1 : i32 to index
      %c0_12 = arith.constant 0 : index
      %35 = vector.load %arg25[%34, %c0_12] : memref<256x128xf32, #tpu.memory_space<vmem>>, vector<128x128xf32>
      %36 = vector.broadcast %26 : vector<1x128xf32> to vector<128x128xf32>
      %37 = arith.subf %35, %36 : vector<128x128xf32>
      %cst_13 = arith.constant 9.99999974E-6 : f32
      %38 = vector.broadcast %cst_13 : f32 to vector<1x128xf32>
      %39 = arith.addf %33, %38 : vector<1x128xf32>
      %40 = math.rsqrt %39 : vector<1x128xf32>
      %41 = vector.broadcast %40 : vector<1x128xf32> to vector<128x128xf32>
      %42 = arith.mulf %37, %41 : vector<128x128xf32>
      %c0_14 = arith.constant 0 : index
      %c0_15 = arith.constant 0 : index
      %43 = vector.load %arg17[%c0_14, %c0_15] : memref<1x128xf32, #tpu.memory_space<vmem>>, vector<1x128xf32>
      %44 = vector.broadcast %43 : vector<1x128xf32> to vector<128x128xf32>
      %45 = arith.mulf %42, %44 : vector<128x128xf32>
      %c0_16 = arith.constant 0 : index
      %c0_17 = arith.constant 0 : index
      %46 = vector.load %arg18[%c0_16, %c0_17] : memref<1x128xf32, #tpu.memory_space<vmem>>, vector<1x128xf32>
      %47 = vector.broadcast %46 : vector<1x128xf32> to vector<128x128xf32>
      %48 = arith.addf %45, %47 : vector<128x128xf32>
      %cst_18 = arith.constant 0.000000e+00 : f32
      %49 = vector.broadcast %cst_18 : f32 to vector<128x128xf32>
      %50 = arith.maximumf %48, %49 : vector<128x128xf32>
      %c0_19 = arith.constant 0 : index
      %c0_20 = arith.constant 0 : index
      %51 = vector.load %arg19[%c0_19, %c0_20] : memref<1x128xf32, #tpu.memory_space<vmem>>, vector<1x128xf32>
      %52 = vector.broadcast %51 : vector<1x128xf32> to vector<128x128xf32>
      %53 = arith.mulf %50, %52 : vector<128x128xf32>
      %c0_21 = arith.constant 0 : index
      %c0_22 = arith.constant 0 : index
      %54 = vector.load %arg8[%c0_21, %c0_22] : memref<128x128xf32, #tpu.memory_space<vmem>>, vector<128x128xf32>
      %c0_23 = arith.constant 0 : index
      %c0_24 = arith.constant 0 : index
      %55 = vector.load %arg20[%c0_23, %c0_24] : memref<1x128xf32, #tpu.memory_space<vmem>>, vector<1x128xf32>
      %56 = vector.broadcast %55 : vector<1x128xf32> to vector<128x128xf32>
      %57 = arith.mulf %54, %56 : vector<128x128xf32>
      %58 = arith.addf %53, %57 : vector<128x128xf32>
      %cst_25 = arith.constant dense<0.000000e+00> : vector<128xf32>
      %59 = vector.multi_reduction <add>, %58, %cst_25 [1] : vector<128x128xf32> to vector<128xf32>
      %60 = vector.shape_cast %59 : vector<128xf32> to vector<128x1xf32>
      %c0_26 = arith.constant 0 : index
      %c0_27 = arith.constant 0 : index
      %61 = vector.load %arg21[%c0_26, %c0_27] : memref<1x1xf32, #tpu.memory_space<vmem>>, vector<1x1xf32>
      %62 = vector.broadcast %61 : vector<1x1xf32> to vector<128x1xf32>
      %63 = arith.addf %60, %62 : vector<128x1xf32>
      %c0_28 = arith.constant 0 : index
      %c0_29 = arith.constant 0 : index
      %64 = vector.load %arg22[%c0_28, %c0_29] : memref<128x1xf32, #tpu.memory_space<vmem>>, vector<128x1xf32>
      tpu.vector_store %arg22[%c0_28, %c0_29], %63 {strides = array<i32>} : memref<128x1xf32, #tpu.memory_space<vmem>>, vector<128x1xf32>,
    } else {
    }
    return
  }
  func.func @transform_0(%arg0: i32, %arg1: i32) -> (i32, i32) {
    %c0_i32 = arith.constant 0 : i32
    %0 = arith.cmpi eq, %arg0, %c0_i32 : i32
    %c1_i32 = arith.constant 1 : i32
    %1 = arith.select %0, %arg1, %c1_i32 : i32
    %c0_i32_0 = arith.constant 0 : i32
    %c0_i32_1 = arith.constant 0 : i32
    return %1, %c0_i32_0 : i32, i32
  }
  func.func @transform_1(%arg0: i32, %arg1: i32) -> (i32, i32) {
    %c0_i32 = arith.constant 0 : i32
    %0 = arith.cmpi eq, %arg0, %c0_i32 : i32
    %c1_i32 = arith.constant 1 : i32
    %1 = arith.select %0, %arg1, %c1_i32 : i32
    %c0_i32_0 = arith.constant 0 : i32
    %c0_i32_1 = arith.constant 0 : i32
    return %1, %c0_i32_0 : i32, i32
  }
  func.func @transform_2(%arg0: i32, %arg1: i32) -> (i32, i32) {
    %c0_i32 = arith.constant 0 : i32
    %0 = arith.cmpi eq, %arg0, %c0_i32 : i32
    %c1_i32 = arith.constant 1 : i32
    %1 = arith.select %0, %arg1, %c1_i32 : i32
    %c0_i32_0 = arith.constant 0 : i32
    %c0_i32_1 = arith.constant 0 : i32
    return %1, %c0_i32_0 : i32, i32
  }
  func.func @transform_3(%arg0: i32, %arg1: i32) -> (i32, i32) {
    %c0_i32 = arith.constant 0 : i32
    %0 = arith.cmpi eq, %arg0, %c0_i32 : i32
    %c1_i32 = arith.constant 1 : i32
    %1 = arith.select %0, %arg1, %c1_i32 : i32
    %c0_i32_0 = arith.constant 0 : i32
    %c0_i32_1 = arith.constant 0 : i32
    return %1, %c0_i32_0 : i32, i32
  }
  func.func @transform_4(%arg0: i32, %arg1: i32) -> (i32, i32) {
    %c0_i32 = arith.constant 0 : i32
    %0 = arith.cmpi eq, %arg0, %c0_i32 : i32
    %c1_i32 = arith.constant 1 : i32
    %1 = arith.select %0, %arg1, %c1_i32 : i32
    %c0_i32_0 = arith.constant 0 : i32
    %c0_i32_1 = arith.constant 0 : i32
    return %1, %c0_i32_0 : i32, i32
  }
  func.func @transform_5(%arg0: i32, %arg1: i32) -> (i32, i32) {
    %c0_i32 = arith.constant 0 : i32
    %0 = arith.cmpi eq, %arg0, %c0_i32 : i32
    %c1_i32 = arith.constant 1 : i32
    %1 = arith.select %0, %arg1, %c1_i32 : i32
    %c0_i32_0 = arith.constant 0 : i32
    %c0_i32_1 = arith.constant 0 : i32
    return %1, %c0_i32_0 : i32, i32
  }
  func.func @transform_6(%arg0: i32, %arg1: i32) -> (i32, i32) {
    %c2_i32 = arith.constant 2 : i32
    %0 = arith.cmpi eq, %arg0, %c2_i32 : i32
    %c0_i32 = arith.constant 0 : i32
    %1 = arith.select %0, %arg1, %c0_i32 : i32
    %c0_i32_0 = arith.constant 0 : i32
    %c0_i32_1 = arith.constant 0 : i32
    return %1, %c0_i32_0 : i32, i32
  }
  func.func @transform_7(%arg0: i32, %arg1: i32) -> (i32, i32) {
    %c0_i32 = arith.constant 0 : i32
    %c0_i32_0 = arith.constant 0 : i32
    %c0_i32_1 = arith.constant 0 : i32
    return %c0_i32, %c0_i32_0 : i32, i32
  }
  func.func @transform_8(%arg0: i32, %arg1: i32) -> (i32, i32) {
    %c0_i32 = arith.constant 0 : i32
    %c0_i32_0 = arith.constant 0 : i32
    %c0_i32_1 = arith.constant 0 : i32
    return %c0_i32, %c0_i32_0 : i32, i32
  }
  func.func @transform_9(%arg0: i32, %arg1: i32) -> (i32, i32) {
    %c0_i32 = arith.constant 0 : i32
    %c0_i32_0 = arith.constant 0 : i32
    %c0_i32_1 = arith.constant 0 : i32
    return %c0_i32, %c0_i32_0 : i32, i32
  }
  func.func @transform_10(%arg0: i32, %arg1: i32) -> (i32, i32) {
    %c0_i32 = arith.constant 0 : i32
    %c0_i32_0 = arith.constant 0 : i32
    %c0_i32_1 = arith.constant 0 : i32
    return %c0_i32, %c0_i32_0 : i32, i32
  }
  func.func @transform_11(%arg0: i32, %arg1: i32) -> (i32, i32) {
    %c0_i32 = arith.constant 0 : i32
    %c0_i32_0 = arith.constant 0 : i32
    %c0_i32_1 = arith.constant 0 : i32
    return %c0_i32, %c0_i32_0 : i32, i32
  }
  func.func @transform_12(%arg0: i32, %arg1: i32) -> (i32, i32) {
    %c0_i32 = arith.constant 0 : i32
    %c0_i32_0 = arith.constant 0 : i32
    %c0_i32_1 = arith.constant 0 : i32
    return %c0_i32, %c0_i32_0 : i32, i32
  }
  func.func @transform_13(%arg0: i32, %arg1: i32) -> (i32, i32) {
    %c0_i32 = arith.constant 0 : i32
    %c0_i32_0 = arith.constant 0 : i32
    %c0_i32_1 = arith.constant 0 : i32
    return %c0_i32, %c0_i32_0 : i32, i32
  }
  func.func @transform_14(%arg0: i32, %arg1: i32) -> (i32, i32) {
    %c0_i32 = arith.constant 0 : i32
    %c0_i32_0 = arith.constant 0 : i32
    %c0_i32_1 = arith.constant 0 : i32
    return %c0_i32, %c0_i32_0 : i32, i32
  }
  func.func @transform_15(%arg0: i32, %arg1: i32) -> (i32, i32) {
    %c0_i32 = arith.constant 0 : i32
    %c0_i32_0 = arith.constant 0 : i32
    %c0_i32_1 = arith.constant 0 : i32
    return %c0_i32, %c0_i32_0 : i32, i32
  }
  func.func @transform_16(%arg0: i32, %arg1: i32) -> (i32, i32) {
    %c0_i32 = arith.constant 0 : i32
    %c0_i32_0 = arith.constant 0 : i32
    %c0_i32_1 = arith.constant 0 : i32
    return %c0_i32, %c0_i32_0 : i32, i32
  }
  func.func @transform_17(%arg0: i32, %arg1: i32) -> (i32, i32) {
    %c0_i32 = arith.constant 0 : i32
    %c0_i32_0 = arith.constant 0 : i32
    %c0_i32_1 = arith.constant 0 : i32
    return %c0_i32, %c0_i32_0 : i32, i32
  }
  func.func @transform_18(%arg0: i32, %arg1: i32) -> (i32, i32) {
    %c0_i32 = arith.constant 0 : i32
    %c0_i32_0 = arith.constant 0 : i32
    %c0_i32_1 = arith.constant 0 : i32
    return %c0_i32, %c0_i32_0 : i32, i32
  }
  func.func @transform_19(%arg0: i32, %arg1: i32) -> (i32, i32) {
    %c0_i32 = arith.constant 0 : i32
    %c0_i32_0 = arith.constant 0 : i32
    %c0_i32_1 = arith.constant 0 : i32
    return %c0_i32, %c0_i32_0 : i32, i32
  }
  func.func @transform_20(%arg0: i32, %arg1: i32) -> (i32, i32) {
    %c2_i32 = arith.constant 2 : i32
    %0 = arith.cmpi eq, %arg0, %c2_i32 : i32
    %c0_i32 = arith.constant 0 : i32
    %1 = arith.select %0, %arg1, %c0_i32 : i32
    %c0_i32_0 = arith.constant 0 : i32
    %c0_i32_1 = arith.constant 0 : i32
    return %1, %c0_i32_0 : i32, i32
  }
}

</mosaic_0001>

<bundles_post_ra>
// kernel: recsys_forward.1
= control target key start
LH: loop header
LB: loop body
LE: loop exit
PB: predicated region body
PF: predicated region fallthrough
CT: control target
= control target key end

     0   :  { %s9963_s23 = smov 0   ;;  %s9965_s24 = smov 0   ;;  %s16136_s0 = inlined_call_operand.vmem [shape: f32[256,128], index: 0, kind: input, shape index: {}]   ;;  %s16137_s1 = inlined_call_operand.vmem [shape: bf16[256,1024], index: 1, kind: input, shape index: {}]   ;;  %s16138_s2 = inlined_call_operand.vmem [shape: f32[256,8], index: 2, kind: input, shape index: {}]   ;;  %s16139_s3 = inlined_call_operand.vmem [shape: f32[256,1], index: 3, kind: input, shape index: {}]   ;;  %s16140_s4 = inlined_call_operand.vmem [shape: f32[256,256], index: 4, kind: input, shape index: {}]   ;;  %s16141_s5 = inlined_call_operand.vmem [shape: bf16[256,768], index: 5, kind: input, shape index: {}]   ;;  %s16142_s6 = inlined_call_operand.vmem [shape: f32[256,128], index: 6, kind: input, shape index: {}]   ;;  %s16143_s7 = inlined_call_operand.vmem [shape: bf16[768,256], index: 7, kind: input, shape index: {}]   ;;  %s16144_s8 = inlined_call_operand.vmem [shape: bf16[256,256], index: 8, kind: input, shape index: {}]   ;;  %s16145_s9 = inlined_call_operand.vmem [shape: f32[1,256], index: 9, kind: input, shape index: {}]   ;;  %s16146_s10 = inlined_call_operand.vmem [shape: f32[1,256], index: 10, kind: input, shape index: {}]   ;;  %s16147_s11 = inlined_call_operand.vmem [shape: f32[1,256], index: 11, kind: input, shape index: {}]   ;;  %s16148_s12 = inlined_call_operand.vmem [shape: bf16[128,128], index: 12, kind: input, shape index: {}]   ;;  %s16149_s13 = inlined_call_operand.vmem [shape: bf16[256,128], index: 13, kind: input, shape index: {}]   ;;  %s16150_s14 = inlined_call_operand.vmem [shape: f32[1,128], index: 14, kind: input, shape index: {}]   ;;  %s16151_s15 = inlined_call_operand.vmem [shape: f32[1,128], index: 15, kind: input, shape index: {}]   ;;  %s16152_s16 = inlined_call_operand.vmem [shape: f32[1,128], index: 16, kind: input, shape index: {}]   ;;  %s16153_s17 = inlined_call_operand.vmem [shape: f32[1,128], index: 17, kind: input, shape index: {}]   ;;  %s16154_s18 = inlined_call_operand.vmem [shape: f32[1,128], index: 18, kind: input, shape index: {}]   ;;  %s16155_s19 = inlined_call_operand.<no memory space> [shape: f32[1,1], index: 19, kind: input, shape index: {}]   ;;  %s16156_s20 = inlined_call_operand.vmem [shape: f32[256,1], index: 20, kind: output, shape index: {}]  }
   0x1   :  { %16691 = sst [smem:[#allocation308_spill]] %s16136_s0  ;;  %v25_v0 = vstv %s16155_s19  ;;  %s9969_s25 = smov 0  }
   0x2   :  { %16692 = sst [smem:[#allocation309_spill]] %s16137_s1  ;;  %26 = vst [vmem:[#allocation9] sm:$0x1] %v25_v0 }
   0x3   :  { %16693 = sst [smem:[#allocation310_spill]] %s16138_s2  ;;  %s9967_s2 = smov 0  }
   0x4   :  { %16694 = sst [smem:[#allocation311_spill]] %s16139_s3  ;;  %s9971_s3 = smov 0  }
   0x5   :  { %16695 = sst [smem:[#allocation312_spill]] %s16140_s4 }
   0x6   :  { %16696 = sst [smem:[#allocation313_spill]] %s16150_s14 }
   0x7   :  { %16697 = sst [smem:[#allocation314_spill]] %s16151_s15 }
   0x8   :  { %16698 = sst [smem:[#allocation315_spill]] %s16152_s16 }
   0x9   :  { %16699 = sst [smem:[#allocation316_spill]] %s16153_s17 }
   0xa   :  { %16700 = sst [smem:[#allocation317_spill]] %s16154_s18 }
   0xb LB: > { %16701 = sst [smem:[#allocation10_spill]] %s9820_s2  ;;  %s41_s19 = sadd.s32 1, %s9820_s2  ;;  %s9828_s3 = sphi %s9971_s3, %s32_s3   ;;  %s9824_s25 = sphi %s9969_s25, %s18091_s25   ;;  %s9820_s2 = sphi %s9967_s2, %s18090_s2   ;;  %s9816_s24 = sphi %s9965_s24, %s18089_s24   ;;  %s9812_s23 = sphi %s9963_s23, %s18088_s23  }
   0xc   : > { %16702 = sst [smem:[#allocation11_spill]] %s9824_s25  ;;  %s44_s26 = sadd.s32 1, %s9824_s25 }
   0xd   : > { %16703 = sst [smem:[#allocation12_spill]] %s9828_s3  ;;  %p42_p0 = scmp.ge.s32.totalorder %s41_s19, 2 }
   0xe   : > { %p8576_p1 = scmp.ge.s32.totalorder %s9828_s3, 1  ;;  %p706_p2 = scmp.lt.s32.totalorder %s9828_s3, 7 }
   0xf   : > { %s18093_s19 = smov (%p42_p0, %s41_s19), 0  ;;  %s18095_s26 = smov (!%p42_p0, %s44_s26), %s9824_s25 }
  0x10   : > { %16704 = sst [smem:[#allocation13_spill]] %s18093_s19  ;;  %p707_p3 = pnand %p8576_p1, %p706_p2 }
  0x11   : > { %p46_p4 = scmp.ge.s32.totalorder %s18095_s26, 3 }
  0x12   : > { %710 = sbr.rel (%p707_p3) target bundleno = 4895 (0x131f), region = 100 }
  0x13   : > { %s18097_s26 = smov (%p46_p4, %s18095_s26), 0 }
  0x14   : > { %16705 = sst [smem:[#allocation14_spill]] %s18097_s26 }
  0x19   : > { %p813_p5 = scmp.eq.s32.totalorder %s9816_s24, 0  ;;  %p876_p6 = scmp.eq.s32.totalorder %s9816_s24, 2  ;;  %v16190_v1 = vlaneseq  ;;  %v9830_v35 = vmov 0.0  }
  0x1a   : > { %s10000_s27 = sshll.u32 %s9812_s23, 7  ;;  %p981_p7 = scmp.eq.s32.totalorder %s9812_s23, 0 }
  0x1b   : > { %s814_s28 = scalar_select %p813_p5, %s9812_s23, 1  ;;  %v10007_v2 = vshrl.u32 %v16190_v1, 7  ;;  %v915_v3 = vstv %s10000_s27 }
  0x1c   : > { %s18099_s23 = smov (!%p876_p6, %s9812_s23), 0  ;;  %p10017_p8 = pnand %p981_p7, %p813_p5 }
  0x1d   : > { %16706 = vst [vmem:[#allocation15_spill] sm:$0xff] %v10007_v2  ;;  %s8577_s4 = sshll.u32 %s814_s28, 4  ;;  %v900_v4 = vadd.s32 8, %v10007_v2  ;;  %v901_v5 = vadd.s32 16, %v10007_v2  ;;  %v902_v6 = vadd.s32 24, %v10007_v2  ;;  %v903_v7 = vadd.s32 32, %v10007_v2 }
  0x1e   : > { %p816_p9 = scmp.lt.s32.totalorder %s8577_s4, 31  ;;  %s8591_s30 = sshll.u32 %s18099_s23, 4  ;;  %v904_v8 = vadd.s32 40, %v10007_v2  ;;  %v905_v9 = vadd.s32 48, %v10007_v2  ;;  %v906_v10 = vadd.s32 56, %v10007_v2  ;;  %v907_v11 = vadd.s32 64, %v10007_v2 }
  0x1f   : > { %p879_p10 = scmp.lt.s32.totalorder %s8591_s30, 31  ;;  %v908_v12 = vadd.s32 72, %v10007_v2  ;;  %v909_v13 = vadd.s32 80, %v10007_v2  ;;  %v910_v14 = vadd.s32 88, %v10007_v2  ;;  %v911_v15 = vadd.s32 96, %v10007_v2  ;;  %s16708_s23 = sld [smem:[#allocation308_spill]] }
  0x20   : > { %s18101_s4 = smov (!%p816_p9, %s8577_s4), 31  ;;  %v912_v16 = vadd.s32 104, %v10007_v2  ;;  %v913_v17 = vadd.s32 112, %v10007_v2  ;;  %v914_v18 = vadd.s32 120, %v10007_v2  ;;  %v916_v19 = vadd.s32 %v915_v3, %v10007_v2  ;;  %s16709_s25 = sld [smem:[#allocation309_spill]] }
  0x21   : > { %s18103_s30 = smov (!%p879_p10, %s8591_s30), 31  ;;  %v917_v20 = vadd.s32 %v915_v3, %v900_v4  ;;  %v918_v21 = vadd.s32 %v915_v3, %v901_v5  ;;  %v919_v22 = vadd.s32 %v915_v3, %v902_v6  ;;  %v920_v23 = vadd.s32 %v915_v3, %v903_v7  ;;  %s8578_s0 = sshll.u32 %s18101_s4, 3 }
  0x22   : > { %s8827_s21 = sshll.u32 %s18101_s4, 5  ;;  %v921_v24 = vadd.s32 %v915_v3, %v904_v8  ;;  %v922_v25 = vadd.s32 %v915_v3, %v905_v9  ;;  %v923_v26 = vadd.s32 %v915_v3, %v906_v10  ;;  %v924_v27 = vadd.s32 %v915_v3, %v907_v11  ;;  %s16710_s16 = sld [smem:[#allocation310_spill]] }
  0x23   : > { %v925_v28 = vadd.s32 %v915_v3, %v908_v12  ;;  %v926_v29 = vadd.s32 %v915_v3, %v909_v13  ;;  %v927_v30 = vadd.s32 %v915_v3, %v910_v14  ;;  %v928_v31 = vadd.s32 %v915_v3, %v911_v15  ;;  %s16711_s1 = sld [smem:[#allocation311_spill]]  ;;  %s9039_s19 = smul.u32 24, %s18101_s4 }
  0x24   : > { %v929_v32 = vadd.s32 %v915_v3, %v912_v16  ;;  %v930_v33 = vadd.s32 %v915_v3, %v913_v17  ;;  %v931_v34 = vadd.s32 %v915_v3, %v914_v18  ;;  %vm932_vm0 = vcmp.lt.s32.totalorder %v916_v19, 200  ;;  %s16712_s17 = sld [smem:[#allocation312_spill]]  ;;  %s8592_s3 = sshll.u32 %s18103_s30, 3 }
  0x25   : > { %s10042_s28 = scalar_lea.vmem %s16708_s23, %s8578_s0  ;;  %vm933_vm1 = vcmp.lt.s32.totalorder %v917_v20, 200  ;;  %vm934_vm2 = vcmp.lt.s32.totalorder %v918_v21, 200  ;;  %vm935_vm3 = vcmp.lt.s32.totalorder %v919_v22, 200  ;;  %vm936_vm4 = vcmp.lt.s32.totalorder %v920_v23, 200  ;;  %s10080_s26 = scalar_lea.vmem %s16156_s20, %s8592_s3 }
  0x26   : > { %s10047_s2 = scalar_lea.vmem %s16709_s25, %s8827_s21  ;;  %s8828_s25 = sshll.u32 %s18101_s4, 4  ;;  %vm937_vm5 = vcmp.lt.s32.totalorder %v921_v24, 200  ;;  %vm938_vm6 = vcmp.lt.s32.totalorder %v922_v25, 200  ;;  %vm939_vm7 = vcmp.lt.s32.totalorder %v923_v26, 200  ;;  %vm940_vm8 = vcmp.lt.s32.totalorder %v924_v27, 200 }
  0x27   : > { %vm941_vm9 = vcmp.lt.s32.totalorder %v925_v28, 200  ;;  %vm942_vm10 = vcmp.lt.s32.totalorder %v926_v29, 200  ;;  %vm943_vm11 = vcmp.lt.s32.totalorder %v927_v30, 200  ;;  %vm944_vm12 = vcmp.lt.s32.totalorder %v928_v31, 200 }
  0x28   : > { %s10052_s15 = scalar_lea.vmem %s16710_s16, %s8578_s0  ;;  %vm945_vm13 = vcmp.lt.s32.totalorder %v929_v32, 200  ;;  %vm946_vm14 = vcmp.lt.s32.totalorder %v930_v33, 200  ;;  %vm947_vm15 = vcmp.lt.s32.totalorder %v931_v34, 200  ;;  %v10083_v36 = vsel %vm932_vm0, 1.0, %v9830_v35 }
  0x29   : > { %s10057_s22 = scalar_lea.vmem %s16711_s1, %s8578_s0  ;;  %s10070_s0 = scalar_lea.vmem %s16141_s5, %s9039_s19  ;;  %16713 = vst [vmem:[#allocation16_spill] sm:$0xff] %v10083_v36  ;;  %v10086_v37 = vsel %vm933_vm1, 1.0, %v9830_v35  ;;  %v10089_v38 = vsel %vm934_vm2, 1.0, %v9830_v35  ;;  %v10092_v39 = vsel %vm935_vm3, 1.0, %v9830_v35  ;;  %v10095_v40 = vsel %vm936_vm4, 1.0, %v9830_v35 }
  0x2a   : > { %s10064_s16 = scalar_lea.vmem %s16712_s17, %s8828_s25  ;;  %s10075_s1 = scalar_lea.vmem %s16142_s6, %s8592_s3  ;;  %16714 = vst [vmem:[#allocation17_spill] sm:$0xff] %v10086_v37  ;;  %16715 = vst [vmem:[#allocation18_spill] sm:$0xff] %v10089_v38  ;;  %v10098_v41 = vsel %vm937_vm5, 1.0, %v9830_v35  ;;  %v10101_v42 = vsel %vm938_vm6, 1.0, %v9830_v35  ;;  %v10104_v43 = vsel %vm939_vm7, 1.0, %v9830_v35  ;;  %v10107_v44 = vsel %vm940_vm8, 1.0, %v9830_v35 }
  0x2b   : > { %16716 = vst [vmem:[#allocation19_spill] sm:$0xff] %v10092_v39  ;;  %16717 = vst [vmem:[#allocation20_spill] sm:$0xff] %v10095_v40  ;;  %v10110_v45 = vsel %vm941_vm9, 1.0, %v9830_v35  ;;  %v10113_v46 = vsel %vm942_vm10, 1.0, %v9830_v35  ;;  %v10116_v47 = vsel %vm943_vm11, 1.0, %v9830_v35  ;;  %v10119_v48 = vsel %vm944_vm12, 1.0, %v9830_v35 }
  0x2c   : > { %16718 = vst [vmem:[#allocation21_spill] sm:$0xff] %v10098_v41  ;;  %16719 = vst [vmem:[#allocation22_spill] sm:$0xff] %v10101_v42  ;;  %v10122_v49 = vsel %vm945_vm13, 1.0, %v9830_v35  ;;  %v10125_v50 = vsel %vm946_vm14, 1.0, %v9830_v35  ;;  %v10128_v51 = vsel %vm947_vm15, 1.0, %v9830_v35  ;;  %985 = sbr.rel (%p10017_p8) target bundleno = 52 (0x34), region = 104 }
  0x2d   : > { %16720 = vst [vmem:[#allocation23_spill] sm:$0xff] %v10104_v43  ;;  %16721 = vst [vmem:[#allocation24_spill] sm:$0xff] %v10107_v44  ;;  %vm988_vm0 = vcmp.lt.s32.totalorder (!%p10017_p8), %v16190_v1, 256  ;;  %v9831_v52 = vmov (!%p10017_p8), 0.0  }
  0x2e   : > { %16722 = vst [vmem:[#allocation25_spill] sm:$0xff] %v10110_v45  ;;  %16723 = vst [vmem:[#allocation26_spill] sm:$0xff] %v10113_v46 }
  0x2f   : > { %16724 = vst [vmem:[#allocation27_spill] sm:$0xff] %v10116_v47  ;;  %16725 = vst [vmem:[#allocation28_spill] sm:$0xff] %v10119_v48 }
  0x30   : > { %16726 = vst [vmem:[#allocation29_spill] sm:$0xff] %v10122_v49  ;;  %16727 = vst [vmem:[#allocation30_spill] sm:$0xff] %v10125_v50 }
  0x31   : > { %16728 = vst [vmem:[#allocation31_spill] sm:$0xff] %v10128_v51  ;;  %990 = vst.msk [vmem:[#allocation5] sm:$0x3] (!%p10017_p8), %vm988_vm0, %v9831_v52 }
  0x32   : > { %991 = vst.msk [vmem:[#allocation6] sm:$0x3] (!%p10017_p8), %vm988_vm0, %v9831_v52  ;;  %992 = vst [vmem:[#allocation7] sm:$0x1] (!%p10017_p8), %v9831_v52 }
  0x33   : > { %993 = vst [vmem:[#allocation8] sm:$0x1] %v9831_v52 }
  0x34 PF: > { %p8612_p11 = scmp.ne.s32.totalorder %s9816_s24, 0 }
  0x36   : > { %996 = sbr.rel (%p8612_p11) target bundleno = 4330 (0x10ea), region = 108 }
  0x3d   : > { %v10135_v53 = vld [vmem:[%s10042_s28 + $0x10] sm:$0xff]  ;;  %v10138_v54 = vld [vmem:[%s10042_s28] sm:$0xff]  ;;  %v10141_v55 = vld [vmem:[%s10042_s28 + $0x18] sm:$0xff]  ;;  %s9832_s29 = smov 127   ;;  %s9834_s19 = smov 125  }
  0x3e   : > { %v1031_v56 = vmul.f32 %v10135_v53, %v10135_v53  ;;  %v1029_v57 = vmul.f32 %v10138_v54, %v10138_v54  ;;  %v10148_v58 = vld [vmem:[%s10042_s28 + $0x8] sm:$0xff]  ;;  %v1032_v59 = vmul.f32 %v10141_v55, %v10141_v55  ;;  %v10158_v62 = vld [vmem:[%s10042_s28 + $0x20] sm:$0xff]  ;;  %v10165_v3 = vld [vmem:[%s10042_s28 + $0x38] sm:$0xff]  ;;  %s9835_s21 = smov 124   ;;  %s9836_s17 = smov 123  }
  0x3f   : > { %v1030_v60 = vmul.f32 %v10148_v58, %v10148_v58  ;;  %v10155_v61 = vld [vmem:[%s10042_s28 + $0x28] sm:$0xff]  ;;  %v1033_v0 = vmul.f32 %v10158_v62, %v10158_v62  ;;  %v10168_v4 = vld [vmem:[%s10042_s28 + $0x30] sm:$0xff]  ;;  %v10174_v6 = vld [vmem:[%s10042_s28 + $0x40] sm:$0xff]  ;;  %v1036_v7 = vmul.f32 %v10165_v3, %v10165_v3  ;;  %s9838_s3 = smov 121   ;;  %s9839_s14 = smov 1  }
  0x40   : > { %1049 = vadd.xlane.f32.xlu1 %v1031_v56  ;;  %1045 = vadd.xlane.f32.xlu0 %v1029_v57  ;;  %v1034_v63 = vmul.f32 %v10155_v61, %v10155_v61  ;;  %v10171_v5 = vld [vmem:[%s10042_s28 + $0x48] sm:$0xff]  ;;  %v1035_v8 = vmul.f32 %v10168_v4, %v10168_v4  ;;  %v10181_v9 = vld [vmem:[%s10042_s28 + $0x58] sm:$0xff]  ;;  %v10184_v10 = vld [vmem:[%s10042_s28 + $0x50] sm:$0xff]  ;;  %v1037_v12 = vmul.f32 %v10174_v6, %v10174_v6  ;;  %s9840_s18 = smov 2   ;;  %s9841_s4 = smov 3  }
  0x41   : > { %v1038_v11 = vmul.f32 %v10171_v5, %v10171_v5  ;;  %v10191_v13 = vld [vmem:[%s10042_s28 + $0x68] sm:$0xff]  ;;  %v10194_v14 = vld [vmem:[%s10042_s28 + $0x60] sm:$0xff]  ;;  %v1040_v15 = vmul.f32 %v10181_v9, %v10181_v9  ;;  %v1039_v16 = vmul.f32 %v10184_v10, %v10184_v10  ;;  %v10201_v17 = vld [vmem:[%s10042_s28 + $0x78] sm:$0xff]  ;;  %s9842_s23 = smov 4   ;;  %s9843_s25 = smov 5  }
  0x42   : > { %v10204_v18 = vld [vmem:[%s10042_s28 + $0x70] sm:$0xff]  ;;  %v10207_v19 = vld [vmem:[%s10047_s2 + $0x20] sm:$0xff]   ;;  %v1042_v21 = vmul.f32 %v10191_v13, %v10191_v13  ;;  %v1041_v22 = vmul.f32 %v10194_v14, %v10194_v14  ;;  %v1044_v25 = vmul.f32 %v10201_v17, %v10201_v17  ;;  %v10455_v49 = vld [vmem:[%s10052_s15 + $0x8] sm:$0xff]  ;;  %s9844_s30 = smov 6  }
  0x43   : > { %16729 = vst [vmem:[#allocation32_spill] sm:$0xff] %v10207_v19  ;;  %v10210_v20 = vld [vmem:[%s10047_s2] sm:$0xff]   ;;  %v1043_v26 = vmul.f32 %v10204_v18, %v10204_v18  ;;  %v16165_v27 = vunpack.c.l.bf16 %v10207_v19  ;;  %vm1174_vm1 = vcmp.gt.f32.partialorder %v10455_v49, 0.0  ;;  %v10463_v45 = vld [vmem:[%s10052_s15 + $0x10] sm:$0xff]  ;;  %v10478_v42 = vld [vmem:[%s10052_s15 + $0x18] sm:$0xff] }
  0x44   : > { %1051 = vadd.xlane.f32.xlu1 %v1032_v59  ;;  %1047 = vadd.xlane.f32.xlu0 %v1030_v60  ;;  %16730 = vst [vmem:[#allocation33_spill] sm:$0xff] %v10210_v20  ;;  %v10217_v23 = vld [vmem:[%s10047_s2 + $0x60] sm:$0xff]   ;;  %v16166_v28 = vunpack.c.l.bf16 %v10210_v20  ;;  %vm1175_vm3 = vcmp.gt.f32.partialorder %v10463_v45, 0.0  ;;  %vm1176_vm4 = vcmp.gt.f32.partialorder %v10478_v42, 0.0  ;;  %v10492_v39 = vld [vmem:[%s10052_s15 + $0x28] sm:$0xff]  ;;  %v10500_v2 = vld [vmem:[%s10052_s15 + $0x30] sm:$0xff] }
  0x45   : > { %16731 = vst [vmem:[#allocation34_spill] sm:$0xff] %v10217_v23  ;;  %v10220_v24 = vld [vmem:[%s10047_s2 + $0x40] sm:$0xff]   ;;  %v1110_v31 = vmul.f32 %v16165_v27, %v10148_v58  ;;  %v16163_v33 = vunpack.c.l.bf16 %v10217_v23  ;;  %vm1178_vm6 = vcmp.gt.f32.partialorder %v10492_v39, 0.0  ;;  %vm1179_vm7 = vcmp.gt.f32.partialorder %v10500_v2, 0.0 }
  0x46   : > { %16732 = vst [vmem:[#allocation35_spill] sm:$0xff] %v10220_v24  ;;  %v10229_v29 = vld [vmem:[%s10047_s2 + $0xa0] sm:$0xff]   ;;  %v1109_v32 = vmul.f32 %v16166_v28, %v10138_v54  ;;  %v16192_v34 = vunpack.c.l.bf16 %v10220_v24 }
  0x47   : > { %16733 = vst [vmem:[#allocation36_spill] sm:$0xff] %v10229_v29  ;;  %v10232_v30 = vld [vmem:[%s10047_s2 + $0x80] sm:$0xff]   ;;  %v1112_v56 = vmul.f32 %v16163_v33, %v10141_v55  ;;  %v16162_v59 = vunpack.c.l.bf16 %v10229_v29 }
  0x48   : > { %1055 = vadd.xlane.f32.xlu1 %v1034_v63  ;;  %1053 = vadd.xlane.f32.xlu0 %v1033_v0  ;;  %16734 = vst [vmem:[#allocation37_spill] sm:$0xff] %v10232_v30  ;;  %v10243_v35 = vld [vmem:[%s10047_s2 + $0xe0] sm:$0xff]   ;;  %v1111_v57 = vmul.f32 %v16192_v34, %v10135_v53  ;;  %v16188_v60 = vunpack.c.l.bf16 %v10232_v30 }
  0x49   : > { %16735 = vst [vmem:[#allocation38_spill] sm:$0xff] %v10243_v35  ;;  %v10246_v52 = vld [vmem:[%s10047_s2 + $0xc0] sm:$0xff]  }
  0x4a   : > { %16736 = vst [vmem:[#allocation39_spill] sm:$0xff] %v10246_v52  ;;  %v10257_v63 = vld [vmem:[%s10047_s2 + $0x120] sm:$0xff]  }
  0x4b   : > { %16737 = vst [vmem:[#allocation40_spill] sm:$0xff] %v10257_v63  ;;  %v10260_v0 = vld [vmem:[%s10047_s2 + $0x100] sm:$0xff]  }
  0x4c   : > { %1059 = vadd.xlane.f32.xlu1 %v1036_v7  ;;  %1057 = vadd.xlane.f32.xlu0 %v1035_v8  ;;  %16738 = vst [vmem:[#allocation41_spill] sm:$0xff] %v10260_v0  ;;  %v1114_v7 = vmul.f32 %v16162_v59, %v10155_v61  ;;  %v1113_v8 = vmul.f32 %v16188_v60, %v10158_v62  ;;  %v10310_v33 = vld [vmem:[%s10047_s2 + $0x1c0] sm:$0xff]  }
  0x4d   : > { %16744 = vst [vmem:[#allocation47_spill] sm:$0xff] %v10310_v33  ;;  %v16170_v27 = vunpack.c.l.bf16 %v10310_v33  ;;  %v10458_v48 = vld [vmem:[%s10052_s15] sm:$0xff] }
  0x4e   : > { %vm1173_vm2 = vcmp.gt.f32.partialorder %v10458_v48, 0.0  ;;  %v10482_v40 = vld [vmem:[%s10052_s15 + $0x20] sm:$0xff] }
  0x4f   : > { %vm1177_vm5 = vcmp.gt.f32.partialorder %v10482_v40, 0.0 }
  0x50   : > { %1063 = vadd.xlane.f32.xlu1 %v1038_v11  ;;  %1061 = vadd.xlane.f32.xlu0 %v1037_v12  ;;  %v16160_v11 = vunpack.c.l.bf16 %v10243_v35  ;;  %v16186_v12 = vunpack.c.l.bf16 %v10246_v52 }
  0x54   : > { %1067 = vadd.xlane.f32.xlu1 %v1040_v15  ;;  %1065 = vadd.xlane.f32.xlu0 %v1039_v16  ;;  %v10271_v15 = vld [vmem:[%s10047_s2 + $0x160] sm:$0xff]   ;;  %v1116_v16 = vmul.f32 %v16160_v11, %v10165_v3 }
  0x55   : > { %16739 = vst [vmem:[#allocation42_spill] sm:$0xff] %v10271_v15  ;;  %v10299_v11 = vld [vmem:[%s10047_s2 + $0x1e0] sm:$0xff]  }
  0x56   : > { %16743 = vst [vmem:[#allocation46_spill] sm:$0xff] %v10299_v11 }
  0x58   : > { %1071 = vadd.xlane.f32.xlu1 %v1042_v21  ;;  %1069 = vadd.xlane.f32.xlu0 %v1041_v22  ;;  %v1115_v21 = vmul.f32 %v16186_v12, %v10168_v4  ;;  %v16161_v22 = vunpack.c.l.bf16 %v10257_v63 }
  0x5c   : > { %1075 = vadd.xlane.f32.xlu1 %v1044_v25  ;;  %1073 = vadd.xlane.f32.xlu0 %v1043_v26  ;;  %v16185_v25 = vunpack.c.l.bf16 %v10260_v0  ;;  %v10282_v26 = vld [vmem:[%s10047_s2 + $0x140] sm:$0xff]  }
  0x5d   : > { %16740 = vst [vmem:[#allocation43_spill] sm:$0xff] %v10282_v26 }
  0x60   : > { %1127 = vadd.xlane.f32.xlu1 %v1110_v31  ;;  %1125 = vadd.xlane.f32.xlu0 %v1109_v32  ;;  %v10285_v31 = vld [vmem:[%s10047_s2 + $0x1a0] sm:$0xff]   ;;  %v1118_v32 = vmul.f32 %v16161_v22, %v10171_v5 }
  0x61   : > { %16741 = vst [vmem:[#allocation44_spill] sm:$0xff] %v10285_v31  ;;  %v16167_v22 = vunpack.c.l.bf16 %v10285_v31 }
  0x64   : > { %1131 = vadd.xlane.f32.xlu1 %v1112_v56  ;;  %1129 = vadd.xlane.f32.xlu0 %v1111_v57  ;;  %v1117_v56 = vmul.f32 %v16185_v25, %v10174_v6  ;;  %v16164_v57 = vunpack.c.l.bf16 %v10271_v15 }
  0x68   : > { %1135 = vadd.xlane.f32.xlu1 %v1114_v7  ;;  %1133 = vadd.xlane.f32.xlu0 %v1113_v8  ;;  %v16173_v7 = vunpack.c.l.bf16 %v10282_v26  ;;  %v10296_v8 = vld [vmem:[%s10047_s2 + $0x180] sm:$0xff]  }
  0x69   : > { %16742 = vst [vmem:[#allocation45_spill] sm:$0xff] %v10296_v8  ;;  %v16168_v59 = vunpack.c.l.bf16 %v10296_v8 }
  0x6c   : > { %1139 = vadd.xlane.f32.xlu1 %v1116_v16  ;;  %1137 = vadd.xlane.f32.xlu0 %v1115_v21  ;;  %v1120_v16 = vmul.f32 %v16164_v57, %v10181_v9  ;;  %v1119_v21 = vmul.f32 %v16173_v7, %v10184_v10  ;;  %v16169_v57 = vunpack.c.l.bf16 %v10299_v11  ;;  %v16178_v7 = vunpack.c.h.bf16 %v10243_v35 }
  0x6e   : > { %v1124_v28 = vmul.f32 %v16169_v57, %v10201_v17  ;;  %v16174_v57 = vunpack.c.h.bf16 %v10217_v23 }
  0x70   : > { %1143 = vadd.xlane.f32.xlu1 %v1118_v32  ;;  %1141 = vadd.xlane.f32.xlu0 %v1117_v56  ;;  %v1122_v32 = vmul.f32 %v16167_v22, %v10191_v13  ;;  %v1121_v56 = vmul.f32 %v16168_v59, %v10194_v14  ;;  %v16172_v22 = vunpack.c.h.bf16 %v10210_v20 }
  0x74   : > { %1147 = vadd.xlane.f32.xlu1 %v1120_v16  ;;  %1145 = vadd.xlane.f32.xlu0 %v1119_v21  ;;  %v1123_v16 = vmul.f32 %v16170_v27, %v10204_v18  ;;  %v16171_v21 = vunpack.c.h.bf16 %v10207_v19 }
  0x76   : > { %v1254_v59 = vmul.f32 %v16171_v21, %v10148_v58  ;;  %v16176_v21 = vunpack.c.h.bf16 %v10229_v29 }
  0x78   : > { %1151 = vadd.xlane.f32.xlu1 %v1122_v32  ;;  %1149 = vadd.xlane.f32.xlu0 %v1121_v56  ;;  %v1253_v32 = vmul.f32 %v16172_v22, %v10138_v54  ;;  %v16191_v56 = vunpack.c.h.bf16 %v10220_v24 }
  0x7a   : > { %v1255_v27 = vmul.f32 %v16191_v56, %v10135_v53 }
  0x7c   : > { %1155 = vadd.xlane.f32.xlu1 %v1124_v28  ;;  %1153 = vadd.xlane.f32.xlu0 %v1123_v16  ;;  %v1256_v28 = vmul.f32 %v16174_v57, %v10141_v55  ;;  %v16175_v16 = vunpack.c.h.bf16 %v10232_v30 }
  0x7e   : > { %v1257_v22 = vmul.f32 %v16175_v16, %v10158_v62  ;;  %v16180_v16 = vunpack.c.h.bf16 %v10257_v63 }
  0x80   : > { %1271 = vadd.xlane.f32.xlu1 %v1254_v59  ;;  %1269 = vadd.xlane.f32.xlu0 %v1253_v32  ;;  %v1258_v59 = vmul.f32 %v16176_v21, %v10155_v61  ;;  %v16177_v32 = vunpack.c.h.bf16 %v10246_v52 }
  0x82   : > { %v1259_v57 = vmul.f32 %v16177_v32, %v10168_v4  ;;  %v16182_v32 = vunpack.c.h.bf16 %v10271_v15 }
  0x84   : > { %1273 = vadd.xlane.f32.xlu0 %v1255_v27  ;;  %1275 = vadd.xlane.f32.xlu1 %v1256_v28  ;;  %v1260_v27 = vmul.f32 %v16178_v7, %v10165_v3  ;;  %v16179_v28 = vunpack.c.h.bf16 %v10260_v0 }
  0x86   : > { %v1261_v21 = vmul.f32 %v16179_v28, %v10174_v6  ;;  %v16184_v28 = vunpack.c.h.bf16 %v10285_v31 }
  0x88   : > { %1277 = vadd.xlane.f32.xlu0 %v1257_v22  ;;  %1279 = vadd.xlane.f32.xlu1 %v1258_v59  ;;  %v1262_v22 = vmul.f32 %v16180_v16, %v10171_v5  ;;  %v16181_v59 = vunpack.c.h.bf16 %v10282_v26 }
  0x8a   : > { %v1263_v7 = vmul.f32 %v16181_v59, %v10184_v10  ;;  %v16189_v59 = vunpack.c.h.bf16 %v10299_v11 }
  0x8c   : > { %1281 = vadd.xlane.f32.xlu0 %v1259_v57  ;;  %1283 = vadd.xlane.f32.xlu1 %v1260_v27  ;;  %v1264_v57 = vmul.f32 %v16182_v32, %v10181_v9  ;;  %v16183_v27 = vunpack.c.h.bf16 %v10296_v8 }
  0x8e   : > { %v1265_v16 = vmul.f32 %v16183_v27, %v10194_v14 }
  0x90   : > { %1285 = vadd.xlane.f32.xlu0 %v1261_v21  ;;  %1287 = vadd.xlane.f32.xlu1 %v1262_v22  ;;  %v1266_v21 = vmul.f32 %v16184_v28, %v10191_v13  ;;  %v16187_v22 = vunpack.c.h.bf16 %v10310_v33 }
  0x92   : > { %v1267_v32 = vmul.f32 %v16187_v22, %v10204_v18 }
  0x94   : > { %1289 = vadd.xlane.f32.xlu0 %v1263_v7  ;;  %1291 = vadd.xlane.f32.xlu1 %v1264_v57  ;;  %v1268_v7 = vmul.f32 %v16189_v59, %v10201_v17 }
  0x98   : > { %1293 = vadd.xlane.f32.xlu0 %v1265_v16  ;;  %1295 = vadd.xlane.f32.xlu1 %v1266_v21 }
  0x9c   : > { %1297 = vadd.xlane.f32.xlu0 %v1267_v32  ;;  %1299 = vadd.xlane.f32.xlu1 %v1268_v7 }
  0xcd   : > { %v10390_v57 = vpop.xlane.xlu1 %1049  ;;  %v10392_v27 = vpop.xlane.xlu0 %1045 }
  0xce   : > { %16745 = vst [vmem:[#allocation48_spill] sm:$0xff] %v10390_v57  ;;  %16746 = vst [vmem:[#allocation49_spill] sm:$0xff] %v10392_v27 }
  0xd1   : > { %v10394_v28 = vpop.xlane.xlu1 %1051  ;;  %v10396_v25 = vpop.xlane.xlu0 %1047 }
  0xd2   : > { %16747 = vst [vmem:[#allocation50_spill] sm:$0xff] %v10394_v28  ;;  %16748 = vst [vmem:[#allocation51_spill] sm:$0xff] %v10396_v25  ;;  %v11155_v28 = vld [vmem:[%s10047_s2 + $0x190] sm:$0xff]  }
  0xd3   : > { %16880 = vst [vmem:[#allocation183_spill] sm:$0xff] %v11155_v28 }
  0xd5   : > { %v10398_v16 = vpop.xlane.xlu1 %1055  ;;  %v10400_v21 = vpop.xlane.xlu0 %1053 }
  0xd6   : > { %16749 = vst [vmem:[#allocation52_spill] sm:$0xff] %v10398_v16  ;;  %16750 = vst [vmem:[#allocation53_spill] sm:$0xff] %v10400_v21  ;;  %v11152_v21 = vld [vmem:[%s10047_s2 + $0xf0] sm:$0xff]  }
  0xd7   : > { %16879 = vst [vmem:[#allocation182_spill] sm:$0xff] %v11152_v21 }
  0xd9   : > { %v10402_v12 = vpop.xlane.xlu1 %1059  ;;  %v10404_v22 = vpop.xlane.xlu0 %1057 }
  0xda   : > { %16751 = vst [vmem:[#allocation54_spill] sm:$0xff] %v10402_v12  ;;  %16752 = vst [vmem:[#allocation55_spill] sm:$0xff] %v10404_v22 }
  0xdd   : > { %v10406_v60 = vpop.xlane.xlu1 %1063  ;;  %v10408_v32 = vpop.xlane.xlu0 %1061 }
  0xde   : > { %16753 = vst [vmem:[#allocation56_spill] sm:$0xff] %v10406_v60  ;;  %16754 = vst [vmem:[#allocation57_spill] sm:$0xff] %v10408_v32  ;;  %v10637_v32 = vld [vmem:[%s10047_s2 + $0x88] sm:$0xff]  }
  0xdf   : > { %16796 = vst [vmem:[#allocation99_spill] sm:$0xff] %v10637_v32  ;;  %v10654_v60 = vld [vmem:[%s10047_s2 + $0xe8] sm:$0xff]  }
  0xe0   : > { %16799 = vst [vmem:[#allocation102_spill] sm:$0xff] %v10654_v60 }
  0xe1   : > { %v10410_v7 = vpop.xlane.xlu1 %1067  ;;  %v10412_v59 = vpop.xlane.xlu0 %1065 }
  0xe2   : > { %16755 = vst [vmem:[#allocation58_spill] sm:$0xff] %v10410_v7  ;;  %16756 = vst [vmem:[#allocation59_spill] sm:$0xff] %v10412_v59  ;;  %v10626_v59 = vld [vmem:[%s10047_s2 + $0x68] sm:$0xff]  }
  0xe3   : > { %16794 = vst [vmem:[#allocation97_spill] sm:$0xff] %v10626_v59 }
  0xe5   : > { %v10414_v1 = vpop.xlane.xlu1 %1071  ;;  %v10416_v56 = vpop.xlane.xlu0 %1069 }
  0xe6   : > { %16757 = vst [vmem:[#allocation60_spill] sm:$0xff] %v10414_v1  ;;  %16758 = vst [vmem:[#allocation61_spill] sm:$0xff] %v10416_v56 }
  0xe9   : > { %v10418_v34 = vpop.xlane.xlu1 %1075  ;;  %v10420_v11 = vpop.xlane.xlu0 %1073 }
  0xea   : > { %16759 = vst [vmem:[#allocation62_spill] sm:$0xff] %v10418_v34  ;;  %16760 = vst [vmem:[#allocation63_spill] sm:$0xff] %v10420_v11  ;;  %v10540_v34 = vld [vmem:[%s10052_s15 + $0x50] sm:$0xff]  ;;  %v10560_v11 = vld [vmem:[%s10052_s15 + $0x60] sm:$0xff] }
  0xeb   : > { %vm1183_vm11 = vcmp.gt.f32.partialorder %v10540_v34, 0.0  ;;  %vm1185_vm13 = vcmp.gt.f32.partialorder %v10560_v11, 0.0  ;;  %v17048_v34 = vld [vmem:[#allocation58_spill] sm:$0xff] }
  0xed   : > { %v10422_v31 = vpop.xlane.xlu1 %1127  ;;  %v10424_v15 = vpop.xlane.xlu0 %1125 }
  0xee   : > { %16761 = vst [vmem:[#allocation64_spill] sm:$0xff] %v10422_v31 }
  0xf1   : > { %v10426_v63 = vpop.xlane.xlu1 %1131  ;;  %v10428_v35 = vpop.xlane.xlu0 %1129 }
  0xf2   : > { %16762 = vst [vmem:[#allocation65_spill] sm:$0xff] %v10426_v63  ;;  %16763 = vst [vmem:[#allocation66_spill] sm:$0xff] %v10428_v35  ;;  %v11197_v63 = vld [vmem:[%s10047_s2 + $0x1f0] sm:$0xff]  }
  0xf3   : > { %16885 = vst [vmem:[#allocation188_spill] sm:$0xff] %v11197_v63 }
  0xf5   : > { %v10430_v29 = vpop.xlane.xlu1 %1135  ;;  %v10432_v23 = vpop.xlane.xlu0 %1133  ;;  %v17001_v48 = vld [vmem:[#allocation64_spill] sm:$0xff] }
  0xf6   : > { %16764 = vst [vmem:[#allocation67_spill] sm:$0xff] %v10430_v29  ;;  %16765 = vst [vmem:[#allocation68_spill] sm:$0xff] %v10432_v23  ;;  %v11166_v29 = vld [vmem:[%s10047_s2 + $0x130] sm:$0xff]  }
  0xf7   : > { %16881 = vst [vmem:[#allocation184_spill] sm:$0xff] %v11166_v29  ;;  %v11180_v23 = vld [vmem:[%s10047_s2 + $0x170] sm:$0xff]  }
  0xf8   : > { %16883 = vst [vmem:[#allocation186_spill] sm:$0xff] %v11180_v23  ;;  %v16383_v57 = vunpack.c.l.bf16 %v11180_v23 }
  0xf9   : > { %v10434_v19 = vpop.xlane.xlu1 %1139  ;;  %v10436_v20 = vpop.xlane.xlu0 %1137 }
  0xfa   : > { %16766 = vst [vmem:[#allocation69_spill] sm:$0xff] %v10434_v19  ;;  %16767 = vst [vmem:[#allocation70_spill] sm:$0xff] %v10436_v20 }
  0xfd   : > { %v10438_v33 = vpop.xlane.xlu1 %1143  ;;  %v10440_v8 = vpop.xlane.xlu0 %1141  ;;  %v17013_v45 = vld [vmem:[#allocation67_spill] sm:$0xff] }
  0xfe   : > { %16768 = vst [vmem:[#allocation71_spill] sm:$0xff] %v10438_v33  ;;  %16769 = vst [vmem:[#allocation72_spill] sm:$0xff] %v10440_v8  ;;  %v11127_v33 = vld [vmem:[%s10047_s2 + $0x30] sm:$0xff]  }
  0xff   : > { %16875 = vst [vmem:[#allocation178_spill] sm:$0xff] %v11127_v33  ;;  %v16374_v16 = vunpack.c.l.bf16 %v11127_v33 }
 0x101   : > { %v10442_v26 = vpop.xlane.xlu1 %1147  ;;  %v10444_v0 = vpop.xlane.xlu0 %1145  ;;  %v17019_v40 = vld [vmem:[#allocation69_spill] sm:$0xff] }
 0x102   : > { %16770 = vst [vmem:[#allocation73_spill] sm:$0xff] %v10442_v26  ;;  %16771 = vst [vmem:[#allocation74_spill] sm:$0xff] %v10444_v0  ;;  %v10668_v26 = vld [vmem:[%s10047_s2 + $0x128] sm:$0xff]  }
 0x103   : > { %16801 = vst [vmem:[#allocation104_spill] sm:$0xff] %v10668_v26 }
 0x105   : > { %v10446_v52 = vpop.xlane.xlu1 %1151  ;;  %v10448_v30 = vpop.xlane.xlu0 %1149 }
 0x106   : > { %16772 = vst [vmem:[#allocation75_spill] sm:$0xff] %v10446_v52  ;;  %16773 = vst [vmem:[#allocation76_spill] sm:$0xff] %v10448_v30  ;;  %v16270_v52 = vunpack.c.l.bf16 %v10626_v59 }
 0x109   : > { %v10450_v51 = vpop.xlane.xlu1 %1155  ;;  %v10452_v50 = vpop.xlane.xlu0 %1153 }
 0x10a   : > { %16774 = vst [vmem:[#allocation77_spill] sm:$0xff] %v10450_v51  ;;  %16775 = vst [vmem:[#allocation78_spill] sm:$0xff] %v10452_v50 }
 0x10d   : > { %v1272_v47 = vpop.xlane.xlu1 %1271  ;;  %v1270_v46 = vpop.xlane.xlu0 %1269 }
 0x10e   : > { %v10467_v44 = vsel %vm1174_vm1, %v1272_v47, -1e+30  ;;  %v10471_v43 = vsel %vm1173_vm2, %v1270_v46, -1e+30 }
 0x10f   : > { %16776 = vst [vmem:[#allocation79_spill] sm:$0xff] %v10467_v44  ;;  %16777 = vst [vmem:[#allocation80_spill] sm:$0xff] %v10471_v43  ;;  %1335 = vrot.lane.b32.xlu1 %v10467_v44, %s9832_s29  ;;  %1333 = vrot.lane.b32.xlu0 %v10471_v43, %s9832_s29  ;;  %v10520_v44 = vld [vmem:[%s10052_s15 + $0x40] sm:$0xff] }
 0x110   : > { %vm1181_vm9 = vcmp.gt.f32.partialorder %v10520_v44, 0.0 }
 0x111   : > { %v1274_v41 = vpop.xlane.xlu0 %1273  ;;  %v1276_v47 = vpop.xlane.xlu1 %1275 }
 0x112   : > { %v10486_v46 = vsel %vm1175_vm3, %v1274_v41, -1e+30  ;;  %v10496_v38 = vsel %vm1176_vm4, %v1276_v47, -1e+30  ;;  %v10512_v47 = vld [vmem:[%s10052_s15 + $0x38] sm:$0xff] }
 0x113   : > { %16778 = vst [vmem:[#allocation81_spill] sm:$0xff] %v10486_v46  ;;  %1337 = vrot.lane.b32.xlu1 %v10486_v46, %s9832_s29  ;;  %16779 = vst [vmem:[#allocation82_spill] sm:$0xff] %v10496_v38  ;;  %vm1180_vm8 = vcmp.gt.f32.partialorder %v10512_v47, 0.0 }
 0x115   : > { %v1278_v37 = vpop.xlane.xlu0 %1277  ;;  %v1280_v36 = vpop.xlane.xlu1 %1279 }
 0x116   : > { %v10504_v41 = vsel %vm1177_vm5, %v1278_v37, -1e+30  ;;  %v10516_v24 = vsel %vm1178_vm6, %v1280_v36, -1e+30  ;;  %v10532_v36 = vld [vmem:[%s10052_s15 + $0x48] sm:$0xff] }
 0x117   : > { %16780 = vst [vmem:[#allocation83_spill] sm:$0xff] %v10504_v41  ;;  %1339 = vrot.lane.b32.xlu1 %v10496_v38, %s9832_s29  ;;  %1341 = vrot.lane.b32.xlu0 %v10504_v41, %s9832_s29  ;;  %16781 = vst [vmem:[#allocation84_spill] sm:$0xff] %v10516_v24  ;;  %vm1182_vm10 = vcmp.gt.f32.partialorder %v10532_v36, 0.0 }
 0x119   : > { %v1282_v46 = vpop.xlane.xlu0 %1281  ;;  %v1284_v37 = vpop.xlane.xlu1 %1283 }
 0x11a   : > { %v10524_v38 = vsel %vm1179_vm7, %v1282_v46, -1e+30  ;;  %v10536_v41 = vsel %vm1180_vm8, %v1284_v37, -1e+30  ;;  %v10552_v37 = vld [vmem:[%s10052_s15 + $0x58] sm:$0xff] }
 0x11b   : > { %16782 = vst [vmem:[#allocation85_spill] sm:$0xff] %v10524_v38  ;;  %1343 = vrot.lane.b32.xlu1 %v10516_v24, %s9832_s29  ;;  %1345 = vrot.lane.b32.xlu0 %v10524_v38, %s9832_s29  ;;  %16783 = vst [vmem:[#allocation86_spill] sm:$0xff] %v10536_v41  ;;  %vm1184_vm12 = vcmp.gt.f32.partialorder %v10552_v37, 0.0 }
 0x11d   : > { %v1286_v43 = vpop.xlane.xlu0 %1285  ;;  %v1288_v46 = vpop.xlane.xlu1 %1287 }
 0x11e   : > { %v10544_v24 = vsel %vm1181_vm9, %v1286_v43, -1e+30  ;;  %v10556_v38 = vsel %vm1182_vm10, %v1288_v46, -1e+30  ;;  %v10572_v46 = vld [vmem:[%s10052_s15 + $0x68] sm:$0xff] }
 0x11f   : > { %16784 = vst [vmem:[#allocation87_spill] sm:$0xff] %v10544_v24  ;;  %1347 = vrot.lane.b32.xlu1 %v10536_v41, %s9832_s29  ;;  %1349 = vrot.lane.b32.xlu0 %v10544_v24, %s9832_s29  ;;  %16785 = vst [vmem:[#allocation88_spill] sm:$0xff] %v10556_v38  ;;  %vm1186_vm14 = vcmp.gt.f32.partialorder %v10572_v46, 0.0 }
 0x121   : > { %v1290_v51 = vpop.xlane.xlu0 %1289  ;;  %v1292_v43 = vpop.xlane.xlu1 %1291 }
 0x122   : > { %v10564_v41 = vsel %vm1183_vm11, %v1290_v51, -1e+30  ;;  %v10576_v24 = vsel %vm1184_vm12, %v1292_v43, -1e+30  ;;  %v10580_v51 = vld [vmem:[%s10052_s15 + $0x70] sm:$0xff]  ;;  %v10592_v43 = vld [vmem:[%s10052_s15 + $0x78] sm:$0xff] }
 0x123   : > { %16786 = vst [vmem:[#allocation89_spill] sm:$0xff] %v10564_v41  ;;  %1351 = vrot.lane.b32.xlu1 %v10556_v38, %s9832_s29  ;;  %1353 = vrot.lane.b32.xlu0 %v10564_v41, %s9832_s29  ;;  %16787 = vst [vmem:[#allocation90_spill] sm:$0xff] %v10576_v24  ;;  %vm1187_vm15 = vcmp.gt.f32.partialorder %v10580_v51, 0.0  ;;  %vm1188_vm0 = vcmp.gt.f32.partialorder %v10592_v43, 0.0  ;;  %s9833_s15 = smov 126  }
 0x125   : > { %v1294_v50 = vpop.xlane.xlu0 %1293  ;;  %v1296_v56 = vpop.xlane.xlu1 %1295 }
 0x126   : > { %v10584_v30 = vsel %vm1185_vm13, %v1294_v50, -1e+30  ;;  %v10596_v41 = vsel %vm1186_vm14, %v1296_v56, -1e+30 }
 0x127   : > { %16788 = vst [vmem:[#allocation91_spill] sm:$0xff] %v10584_v30  ;;  %1355 = vrot.lane.b32.xlu1 %v10576_v24, %s9832_s29  ;;  %1357 = vrot.lane.b32.xlu0 %v10584_v30, %s9832_s29  ;;  %16789 = vst [vmem:[#allocation92_spill] sm:$0xff] %v10596_v41  ;;  %v10615_v30 = vld [vmem:[%s10047_s2 + $0x8] sm:$0xff]  }
 0x128   : > { %16792 = vst [vmem:[#allocation95_spill] sm:$0xff] %v10615_v30  ;;  %v10619_v24 = vld [vmem:[%s10047_s2 + $0x48] sm:$0xff]  }
 0x129   : > { %v1298_v50 = vpop.xlane.xlu0 %1297  ;;  %v1300_v38 = vpop.xlane.xlu1 %1299  ;;  %16793 = vst [vmem:[#allocation96_spill] sm:$0xff] %v10619_v24 }
 0x12a   : > { %v10601_v1 = vsel %vm1187_vm15, %v1298_v50, -1e+30  ;;  %v10610_v56 = vsel %vm1188_vm0, %v1300_v38, -1e+30  ;;  %v16267_v50 = vunpack.c.l.bf16 %v10615_v30  ;;  %v10629_v38 = vld [vmem:[%s10047_s2 + $0x28] sm:$0xff]  }
 0x12b   : > { %16790 = vst [vmem:[#allocation93_spill] sm:$0xff] %v10601_v1  ;;  %1359 = vrot.lane.b32.xlu1 %v10596_v41, %s9832_s29  ;;  %1361 = vrot.lane.b32.xlu0 %v10601_v1, %s9832_s29  ;;  %16791 = vst [vmem:[#allocation94_spill] sm:$0xff] %v10610_v56  ;;  %v16268_v1 = vunpack.c.l.bf16 %v10619_v24  ;;  %v16271_v7 = vunpack.c.l.bf16 %v10629_v38 }
 0x12c   : > { %v1429_v41 = vmul.f32 %v16267_v50, %v10138_v54  ;;  %16795 = vst [vmem:[#allocation98_spill] sm:$0xff] %v10629_v38  ;;  %v10640_v54 = vld [vmem:[%s10047_s2 + $0xa8] sm:$0xff]   ;;  %v1432_v50 = vmul.f32 %v16270_v52, %v10141_v55 }
 0x12d   : > { %16797 = vst [vmem:[#allocation100_spill] sm:$0xff] %v10640_v54  ;;  %v16272_v0 = vunpack.c.l.bf16 %v10640_v54  ;;  %v10661_v52 = vld [vmem:[%s10047_s2 + $0x108] sm:$0xff]  }
 0x12e   : > { %16800 = vst [vmem:[#allocation103_spill] sm:$0xff] %v10661_v52 }
 0x12f   : > { %1363 = vrot.lane.b32.xlu1 %v10610_v56, %s9832_s29  ;;  %v1431_v56 = vmul.f32 %v16268_v1, %v10135_v53  ;;  %v1430_v53 = vmul.f32 %v16271_v7, %v10148_v58  ;;  %v10650_v1 = vld [vmem:[%s10047_s2 + $0xc8] sm:$0xff]   ;;  %v1434_v58 = vmul.f32 %v16272_v0, %v10155_v61  ;;  %v16275_v7 = vunpack.c.l.bf16 %v10654_v60 }
 0x130   : > { %16798 = vst [vmem:[#allocation101_spill] sm:$0xff] %v10650_v1  ;;  %v16274_v55 = vunpack.c.l.bf16 %v10650_v1  ;;  %v16277_v0 = vunpack.c.l.bf16 %v10668_v26 }
 0x131   : > { %v1436_v61 = vmul.f32 %v16275_v7, %v10165_v3  ;;  %v10696_v7 = vld [vmem:[%s10047_s2 + $0x1a8] sm:$0xff]  }
 0x132   : > { %16805 = vst [vmem:[#allocation108_spill] sm:$0xff] %v10696_v7 }
 0x14a   : > { %1445 = vadd.xlane.f32.xlu0 %v1429_v41  ;;  %v16273_v41 = vunpack.c.l.bf16 %v10637_v32 }
 0x14e   : > { %1449 = vadd.xlane.f32.xlu0 %v1431_v56  ;;  %v1433_v56 = vmul.f32 %v16273_v41, %v10158_v62  ;;  %v1435_v62 = vmul.f32 %v16274_v55, %v10168_v4  ;;  %v10682_v41 = vld [vmem:[%s10047_s2 + $0x168] sm:$0xff]   ;;  %v1438_v55 = vmul.f32 %v16277_v0, %v10171_v5  ;;  %v16280_v5 = vunpack.c.l.bf16 %v10696_v7 }
 0x14f   : > { %16803 = vst [vmem:[#allocation106_spill] sm:$0xff] %v10682_v41  ;;  %v16279_v3 = vunpack.c.l.bf16 %v10682_v41  ;;  %v10710_v0 = vld [vmem:[%s10047_s2 + $0x1e8] sm:$0xff]  }
 0x150   : > { %16807 = vst [vmem:[#allocation110_spill] sm:$0xff] %v10710_v0 }
 0x152   : > { %1451 = vadd.xlane.f32.xlu0 %v1432_v50  ;;  %v16276_v50 = vunpack.c.l.bf16 %v10661_v52 }
 0x153   : > { %1447 = vadd.xlane.f32.xlu1 %v1430_v53  ;;  %v10675_v53 = vld [vmem:[%s10047_s2 + $0x148] sm:$0xff]  }
 0x154   : > { %16802 = vst [vmem:[#allocation105_spill] sm:$0xff] %v10675_v53  ;;  %v1437_v4 = vmul.f32 %v16276_v50, %v10174_v6  ;;  %v10703_v50 = vld [vmem:[%s10047_s2 + $0x1c8] sm:$0xff]  }
 0x155   : > { %16806 = vst [vmem:[#allocation109_spill] sm:$0xff] %v10703_v50 }
 0x156   : > { %1453 = vadd.xlane.f32.xlu0 %v1433_v56  ;;  %v16278_v56 = vunpack.c.l.bf16 %v10675_v53 }
 0x157   : > { %1455 = vadd.xlane.f32.xlu1 %v1434_v58  ;;  %v10689_v58 = vld [vmem:[%s10047_s2 + $0x188] sm:$0xff]  }
 0x158   : > { %16804 = vst [vmem:[#allocation107_spill] sm:$0xff] %v10689_v58  ;;  %v16283_v6 = vunpack.c.l.bf16 %v10689_v58 }
 0x15a   : > { %1457 = vadd.xlane.f32.xlu0 %v1435_v62  ;;  %v1439_v62 = vmul.f32 %v16278_v56, %v10184_v10  ;;  %v16281_v10 = vunpack.c.l.bf16 %v10703_v50  ;;  %v16282_v56 = vunpack.c.l.bf16 %v10710_v0 }
 0x15b   : > { %1459 = vadd.xlane.f32.xlu1 %v1436_v61  ;;  %v1440_v61 = vmul.f32 %v16279_v3, %v10181_v9 }
 0x15c   : > { %v1443_v9 = vmul.f32 %v16281_v10, %v10204_v18 }
 0x15e   : > { %1461 = vadd.xlane.f32.xlu0 %v1437_v4  ;;  %v1441_v4 = vmul.f32 %v16283_v6, %v10194_v14 }
 0x15f   : > { %1463 = vadd.xlane.f32.xlu1 %v1438_v55  ;;  %v1442_v55 = vmul.f32 %v16280_v5, %v10191_v13 }
 0x162   : > { %1465 = vadd.xlane.f32.xlu0 %v1439_v62  ;;  %v1444_v62 = vmul.f32 %v16282_v56, %v10201_v17 }
 0x163   : > { %1467 = vadd.xlane.f32.xlu1 %v1440_v61 }
 0x166   : > { %1469 = vadd.xlane.f32.xlu0 %v1441_v4 }
 0x167   : > { %1471 = vadd.xlane.f32.xlu1 %v1442_v55 }
 0x16a   : > { %1473 = vadd.xlane.f32.xlu0 %v1443_v9 }
 0x16b   : > { %1475 = vadd.xlane.f32.xlu1 %v1444_v62 }
 0x181   : > { %v10726_v14 = vpop.permute.xlu1 %1335  ;;  %v10728_v61 = vpop.permute.xlu0 %1333 }
 0x182   : > { %16808 = vst [vmem:[#allocation111_spill] sm:$0xff] %v10726_v14 }
 0x185   : > { %v10730_v3 = vpop.permute.xlu1 %1337 }
 0x186   : > { %16809 = vst [vmem:[#allocation112_spill] sm:$0xff] %v10730_v3 }
 0x189   : > { %v10732_v13 = vpop.permute.xlu0 %1341  ;;  %v10734_v4 = vpop.permute.xlu1 %1339 }
 0x18a   : > { %16810 = vst [vmem:[#allocation113_spill] sm:$0xff] %v10732_v13  ;;  %16811 = vst [vmem:[#allocation114_spill] sm:$0xff] %v10734_v4 }
 0x18d   : > { %v10736_v5 = vpop.permute.xlu0 %1345  ;;  %v10738_v18 = vpop.permute.xlu1 %1343 }
 0x18e   : > { %16812 = vst [vmem:[#allocation115_spill] sm:$0xff] %v10736_v5  ;;  %16813 = vst [vmem:[#allocation116_spill] sm:$0xff] %v10738_v18 }
 0x191   : > { %v10740_v55 = vpop.permute.xlu0 %1349  ;;  %v10742_v10 = vpop.permute.xlu1 %1347 }
 0x192   : > { %16814 = vst [vmem:[#allocation117_spill] sm:$0xff] %v10740_v55  ;;  %16815 = vst [vmem:[#allocation118_spill] sm:$0xff] %v10742_v10  ;;  %v10899_v10 = vld [vmem:[%s10042_s28 + $0x28] sm:$0xff] }
 0x195   : > { %v10744_v17 = vpop.permute.xlu0 %1353  ;;  %v10746_v9 = vpop.permute.xlu1 %1351 }
 0x196   : > { %16816 = vst [vmem:[#allocation119_spill] sm:$0xff] %v10744_v17  ;;  %16817 = vst [vmem:[#allocation120_spill] sm:$0xff] %v10746_v9 }
 0x199   : > { %v10748_v62 = vpop.permute.xlu0 %1357  ;;  %v10750_v56 = vpop.permute.xlu1 %1355  ;;  %v17056_v46 = vld [vmem:[#allocation118_spill] sm:$0xff] }
 0x19a   : > { %16818 = vst [vmem:[#allocation121_spill] sm:$0xff] %v10748_v62  ;;  %16819 = vst [vmem:[#allocation122_spill] sm:$0xff] %v10750_v56 }
 0x19d   : > { %v10752_v6 = vpop.permute.xlu0 %1361  ;;  %v10754_v8 = vpop.permute.xlu1 %1359  ;;  %v17069_v11 = vld [vmem:[#allocation119_spill] sm:$0xff] }
 0x19e   : > { %16820 = vst [vmem:[#allocation123_spill] sm:$0xff] %v10752_v6  ;;  %16821 = vst [vmem:[#allocation124_spill] sm:$0xff] %v10754_v8 }
 0x1a1   : > { %v10762_v55 = vpop.permute.xlu1 %1363 }
 0x1a2   : > { %16823 = vst [vmem:[#allocation126_spill] sm:$0xff] %v10762_v55 }
 0x1d7   : > { %v1446_v22 = vpop.xlane.xlu0 %1445 }
 0x1d8   : > { %v10758_v5 = vsel %vm1173_vm2, %v1446_v22, -1e+30 }
 0x1d9   : > { %16822 = vst [vmem:[#allocation125_spill] sm:$0xff] %v10758_v5  ;;  %1509 = vrot.lane.b32.xlu0 %v10758_v5, %s9833_s15 }
 0x1db   : > { %v1450_v17 = vpop.xlane.xlu0 %1449 }
 0x1dc   : > { %v10772_v22 = vsel %vm1175_vm3, %v1450_v17, -1e+30 }
 0x1dd   : > { %16825 = vst [vmem:[#allocation128_spill] sm:$0xff] %v10772_v22 }
 0x1df   : > { %v1452_v9 = vpop.xlane.xlu0 %1451 }
 0x1e0   : > { %v1448_v62 = vpop.xlane.xlu1 %1447 }
 0x1e1   : > { %v10766_v56 = vsel %vm1174_vm1, %v1448_v62, -1e+30 }
 0x1e2   : > { %16824 = vst [vmem:[#allocation127_spill] sm:$0xff] %v10766_v56  ;;  %1511 = vrot.lane.b32.xlu1 %v10766_v56, %s9833_s15  ;;  %v10784_v56 = vsel %vm1176_vm4, %v1452_v9, -1e+30 }
 0x1e3   : > { %v1454_v6 = vpop.xlane.xlu0 %1453  ;;  %16827 = vst [vmem:[#allocation130_spill] sm:$0xff] %v10784_v56 }
 0x1e4   : > { %v10776_v5 = vsel %vm1177_vm5, %v1454_v6, -1e+30  ;;  %v1456_v8 = vpop.xlane.xlu1 %1455 }
 0x1e5   : > { %16826 = vst [vmem:[#allocation129_spill] sm:$0xff] %v10776_v5  ;;  %1517 = vrot.lane.b32.xlu0 %v10776_v5, %s9833_s15  ;;  %v10796_v5 = vsel %vm1178_vm6, %v1456_v8, -1e+30 }
 0x1e6   : > { %1513 = vrot.lane.b32.xlu1 %v10772_v22, %s9833_s15  ;;  %16829 = vst [vmem:[#allocation132_spill] sm:$0xff] %v10796_v5 }
 0x1e7   : > { %v1458_v62 = vpop.xlane.xlu0 %1457 }
 0x1e8   : > { %v10788_v17 = vsel %vm1179_vm7, %v1458_v62, -1e+30  ;;  %v1460_v55 = vpop.xlane.xlu1 %1459 }
 0x1e9   : > { %16828 = vst [vmem:[#allocation131_spill] sm:$0xff] %v10788_v17  ;;  %1521 = vrot.lane.b32.xlu0 %v10788_v17, %s9833_s15  ;;  %v10808_v17 = vsel %vm1180_vm8, %v1460_v55, -1e+30 }
 0x1ea   : > { %1515 = vrot.lane.b32.xlu1 %v10784_v56, %s9833_s15  ;;  %16831 = vst [vmem:[#allocation134_spill] sm:$0xff] %v10808_v17 }
 0x1eb   : > { %v1462_v6 = vpop.xlane.xlu0 %1461 }
 0x1ec   : > { %v10800_v9 = vsel %vm1181_vm9, %v1462_v6, -1e+30  ;;  %v1464_v22 = vpop.xlane.xlu1 %1463 }
 0x1ed   : > { %16830 = vst [vmem:[#allocation133_spill] sm:$0xff] %v10800_v9  ;;  %1525 = vrot.lane.b32.xlu0 %v10800_v9, %s9833_s15  ;;  %v10820_v9 = vsel %vm1182_vm10, %v1464_v22, -1e+30 }
 0x1ee   : > { %1519 = vrot.lane.b32.xlu1 %v10796_v5, %s9833_s15  ;;  %16833 = vst [vmem:[#allocation136_spill] sm:$0xff] %v10820_v9  ;;  %v10885_v5 = vld [vmem:[%s10042_s28 + $0x8] sm:$0xff] }
 0x1ef   : > { %v1466_v62 = vpop.xlane.xlu0 %1465  ;;  %v1782_v20 = vmul.f32 %v10885_v5, %v16374_v16  ;;  %v16379_v16 = vunpack.c.l.bf16 %v11152_v21 }
 0x1f0   : > { %v10812_v8 = vsel %vm1183_vm11, %v1466_v62, -1e+30  ;;  %v1468_v56 = vpop.xlane.xlu1 %1467 }
 0x1f1   : > { %16832 = vst [vmem:[#allocation135_spill] sm:$0xff] %v10812_v8  ;;  %1529 = vrot.lane.b32.xlu0 %v10812_v8, %s9833_s15 }
 0x1f2   : > { %1523 = vrot.lane.b32.xlu1 %v10808_v17, %s9833_s15  ;;  %v10832_v17 = vsel %vm1184_vm12, %v1468_v56, -1e+30 }
 0x1f3   : > { %v1470_v6 = vpop.xlane.xlu0 %1469  ;;  %16835 = vst [vmem:[#allocation138_spill] sm:$0xff] %v10832_v17 }
 0x1f4   : > { %v10824_v55 = vsel %vm1185_vm13, %v1470_v6, -1e+30  ;;  %v1472_v62 = vpop.xlane.xlu1 %1471 }
 0x1f5   : > { %16834 = vst [vmem:[#allocation137_spill] sm:$0xff] %v10824_v55  ;;  %1533 = vrot.lane.b32.xlu0 %v10824_v55, %s9833_s15  ;;  %v10844_v6 = vsel %vm1186_vm14, %v1472_v62, -1e+30 }
 0x1f6   : > { %1527 = vrot.lane.b32.xlu1 %v10820_v9, %s9833_s15  ;;  %16837 = vst [vmem:[#allocation140_spill] sm:$0xff] %v10844_v6  ;;  %v10870_v9 = vld [vmem:[%s10042_s28 + $0x18] sm:$0xff] }
 0x1f7   : > { %v1474_v8 = vpop.xlane.xlu0 %1473 }
 0x1f8   : > { %v10836_v22 = vsel %vm1187_vm15, %v1474_v8, -1e+30  ;;  %v1476_v55 = vpop.xlane.xlu1 %1475  ;;  %v16300_v8 = vunpack.c.h.bf16 %v10615_v30  ;;  %v16312_v30 = vunpack.c.h.bf16 %v10637_v32 }
 0x1f9   : > { %16836 = vst [vmem:[#allocation139_spill] sm:$0xff] %v10836_v22  ;;  %1537 = vrot.lane.b32.xlu0 %v10836_v22, %s9833_s15  ;;  %v10850_v56 = vsel %vm1188_vm0, %v1476_v55, -1e+30  ;;  %v10856_v22 = vld [vmem:[%s10042_s28] sm:$0xff] }
 0x1fa   : > { %1531 = vrot.lane.b32.xlu1 %v10832_v17, %s9833_s15  ;;  %16838 = vst [vmem:[#allocation141_spill] sm:$0xff] %v10850_v56  ;;  %v1605_v62 = vmul.f32 %v10856_v22, %v16300_v8  ;;  %v16305_v17 = vunpack.c.h.bf16 %v10619_v24  ;;  %v10878_v24 = vld [vmem:[%s10042_s28 + $0x20] sm:$0xff] }
 0x1fe   : > { %1535 = vrot.lane.b32.xlu1 %v10844_v6, %s9833_s15  ;;  %v10863_v6 = vld [vmem:[%s10042_s28 + $0x10] sm:$0xff] }
 0x1ff   : > { %v1607_v55 = vmul.f32 %v10863_v6, %v16305_v17  ;;  %v1609_v17 = vmul.f32 %v10878_v24, %v16312_v30  ;;  %v16322_v30 = vunpack.c.h.bf16 %v10661_v52  ;;  %v16336_v52 = vunpack.c.h.bf16 %v10689_v58 }
 0x202   : > { %1539 = vrot.lane.b32.xlu1 %v10850_v56, %s9833_s15  ;;  %v16307_v56 = vunpack.c.h.bf16 %v10626_v59  ;;  %v16319_v59 = vunpack.c.h.bf16 %v10640_v54  ;;  %v16333_v54 = vunpack.c.h.bf16 %v10668_v26 }
 0x204   : > { %v1608_v8 = vmul.f32 %v10870_v9, %v16307_v56 }
 0x218   : > { %1621 = vadd.xlane.f32.xlu0 %v1605_v62  ;;  %v16313_v62 = vunpack.c.h.bf16 %v10629_v38  ;;  %v16325_v38 = vunpack.c.h.bf16 %v10654_v60  ;;  %v16339_v60 = vunpack.c.h.bf16 %v10682_v41  ;;  %v16348_v41 = vunpack.c.h.bf16 %v10710_v0 }
 0x21a   : > { %v1606_v56 = vmul.f32 %v10885_v5, %v16313_v62  ;;  %v1610_v62 = vmul.f32 %v10899_v10, %v16319_v59 }
 0x21c   : > { %1625 = vadd.xlane.f32.xlu0 %v1607_v55  ;;  %v16316_v55 = vunpack.c.h.bf16 %v10650_v1  ;;  %v16328_v1 = vunpack.c.h.bf16 %v10675_v53  ;;  %v16342_v53 = vunpack.c.h.bf16 %v10703_v50 }
 0x220   : > { %1627 = vadd.xlane.f32.xlu0 %v1608_v8  ;;  %v10892_v8 = vld [vmem:[%s10042_s28 + $0x30] sm:$0xff] }
 0x221   : > { %v1611_v32 = vmul.f32 %v10892_v8, %v16316_v55 }
 0x224   : > { %1629 = vadd.xlane.f32.xlu0 %v1609_v17  ;;  %v10906_v17 = vld [vmem:[%s10042_s28 + $0x40] sm:$0xff] }
 0x225   : > { %v1613_v55 = vmul.f32 %v10906_v17, %v16322_v30 }
 0x226   : > { %1623 = vadd.xlane.f32.xlu1 %v1606_v56  ;;  %v10913_v56 = vld [vmem:[%s10042_s28 + $0x38] sm:$0xff] }
 0x227   : > { %v1612_v59 = vmul.f32 %v10913_v56, %v16325_v38 }
 0x228   : > { %1633 = vadd.xlane.f32.xlu0 %v1611_v32  ;;  %v10920_v32 = vld [vmem:[%s10042_s28 + $0x50] sm:$0xff] }
 0x229   : > { %v1615_v30 = vmul.f32 %v10920_v32, %v16328_v1 }
 0x22a   : > { %1631 = vadd.xlane.f32.xlu1 %v1610_v62  ;;  %v10927_v62 = vld [vmem:[%s10042_s28 + $0x48] sm:$0xff] }
 0x22b   : > { %v1614_v38 = vmul.f32 %v10927_v62, %v16333_v54  ;;  %v16345_v54 = vunpack.c.h.bf16 %v10696_v7 }
 0x22c   : > { %1637 = vadd.xlane.f32.xlu0 %v1613_v55  ;;  %v10934_v55 = vld [vmem:[%s10042_s28 + $0x60] sm:$0xff] }
 0x22d   : > { %v1617_v1 = vmul.f32 %v10934_v55, %v16336_v52  ;;  %v10954_v52 = vld [vmem:[%s10042_s28 + $0x68] sm:$0xff] }
 0x22e   : > { %1635 = vadd.xlane.f32.xlu1 %v1612_v59  ;;  %v10941_v59 = vld [vmem:[%s10042_s28 + $0x58] sm:$0xff] }
 0x22f   : > { %v1616_v26 = vmul.f32 %v10941_v59, %v16339_v60  ;;  %v10961_v60 = vld [vmem:[%s10042_s28 + $0x78] sm:$0xff] }
 0x230   : > { %1641 = vadd.xlane.f32.xlu0 %v1615_v30  ;;  %v10948_v30 = vld [vmem:[%s10042_s28 + $0x70] sm:$0xff] }
 0x231   : > { %v1619_v58 = vmul.f32 %v10948_v30, %v16342_v53 }
 0x232   : > { %1639 = vadd.xlane.f32.xlu1 %v1614_v38  ;;  %v1618_v38 = vmul.f32 %v10954_v52, %v16345_v54 }
 0x234   : > { %1645 = vadd.xlane.f32.xlu0 %v1617_v1  ;;  %v1620_v1 = vmul.f32 %v10961_v60, %v16348_v41 }
 0x236   : > { %1643 = vadd.xlane.f32.xlu1 %v1616_v26 }
 0x238   : > { %1649 = vadd.xlane.f32.xlu0 %v1619_v58 }
 0x23a   : > { %1647 = vadd.xlane.f32.xlu1 %v1618_v38 }
 0x23e   : > { %1651 = vadd.xlane.f32.xlu1 %v1620_v1 }
 0x24b   : > { %v10966_v50 = vpop.permute.xlu0 %1509 }
 0x254   : > { %v10968_v26 = vpop.permute.xlu1 %1511 }
 0x255   : > { %16839 = vst [vmem:[#allocation142_spill] sm:$0xff] %v10968_v26  ;;  %v11169_v26 = vld [vmem:[%s10047_s2 + $0x1d0] sm:$0xff]  }
 0x256   : > { %16882 = vst [vmem:[#allocation185_spill] sm:$0xff] %v11169_v26 }
 0x257   : > { %v10970_v53 = vpop.permute.xlu0 %1517 }
 0x258   : > { %16840 = vst [vmem:[#allocation143_spill] sm:$0xff] %v10970_v53  ;;  %v10972_v7 = vpop.permute.xlu1 %1513 }
 0x259   : > { %16841 = vst [vmem:[#allocation144_spill] sm:$0xff] %v10972_v7  ;;  %v11138_v7 = vld [vmem:[%s10047_s2 + $0xb0] sm:$0xff]  }
 0x25a   : > { %16877 = vst [vmem:[#allocation180_spill] sm:$0xff] %v11138_v7  ;;  %v16376_v19 = vunpack.c.l.bf16 %v11138_v7 }
 0x25b   : > { %v10974_v54 = vpop.permute.xlu0 %1521 }
 0x25c   : > { %16842 = vst [vmem:[#allocation145_spill] sm:$0xff] %v10974_v54  ;;  %v10976_v18 = vpop.permute.xlu1 %1515  ;;  %v1786_v3 = vmul.f32 %v10899_v10, %v16376_v19  ;;  %v16381_v19 = vunpack.c.l.bf16 %v11166_v29 }
 0x25d   : > { %16843 = vst [vmem:[#allocation146_spill] sm:$0xff] %v10976_v18  ;;  %v11120_v18 = vld [vmem:[%s10047_s2 + $0xd0] sm:$0xff]  }
 0x25e   : > { %16874 = vst [vmem:[#allocation177_spill] sm:$0xff] %v11120_v18 }
 0x25f   : > { %v10978_v58 = vpop.permute.xlu0 %1525 }
 0x260   : > { %16844 = vst [vmem:[#allocation147_spill] sm:$0xff] %v10978_v58  ;;  %v10980_v38 = vpop.permute.xlu1 %1519 }
 0x261   : > { %16845 = vst [vmem:[#allocation148_spill] sm:$0xff] %v10980_v38 }
 0x263   : > { %v10982_v0 = vpop.permute.xlu0 %1529 }
 0x264   : > { %16846 = vst [vmem:[#allocation149_spill] sm:$0xff] %v10982_v0  ;;  %v10984_v41 = vpop.permute.xlu1 %1523 }
 0x265   : > { %16847 = vst [vmem:[#allocation150_spill] sm:$0xff] %v10984_v41 }
 0x267   : > { %v10986_v1 = vpop.permute.xlu0 %1533 }
 0x268   : > { %16848 = vst [vmem:[#allocation151_spill] sm:$0xff] %v10986_v1  ;;  %v10988_v12 = vpop.permute.xlu1 %1527 }
 0x269   : > { %16849 = vst [vmem:[#allocation152_spill] sm:$0xff] %v10988_v12 }
 0x26b   : > { %v10990_v13 = vpop.permute.xlu0 %1537 }
 0x26c   : > { %16850 = vst [vmem:[#allocation153_spill] sm:$0xff] %v10990_v13  ;;  %v10992_v53 = vpop.permute.xlu1 %1531 }
 0x26d   : > { %16851 = vst [vmem:[#allocation154_spill] sm:$0xff] %v10992_v53 }
 0x270   : > { %v11000_v0 = vpop.permute.xlu1 %1535 }
 0x271   : > { %16853 = vst [vmem:[#allocation156_spill] sm:$0xff] %v11000_v0  ;;  %v11113_v0 = vld [vmem:[%s10047_s2 + $0x90] sm:$0xff]  }
 0x272   : > { %16873 = vst [vmem:[#allocation176_spill] sm:$0xff] %v11113_v0  ;;  %v16370_v38 = vunpack.c.l.bf16 %v11113_v0 }
 0x274   : > { %v11002_v1 = vpop.permute.xlu1 %1539 }
 0x275   : > { %16854 = vst [vmem:[#allocation157_spill] sm:$0xff] %v11002_v1 }
 0x2a5   : > { %v1622_v4 = vpop.xlane.xlu0 %1621 }
 0x2a6   : > { %v10996_v54 = vsel %vm1173_vm2, %v1622_v4, -1e+30 }
 0x2a7   : > { %16852 = vst [vmem:[#allocation155_spill] sm:$0xff] %v10996_v54  ;;  %1685 = vrot.lane.b32.xlu0 %v10996_v54, %s9834_s19 }
 0x2a9   : > { %v1626_v41 = vpop.xlane.xlu0 %1625 }
 0x2aa   : > { %v11018_v1 = vsel %vm1175_vm3, %v1626_v41, -1e+30 }
 0x2ab   : > { %16857 = vst [vmem:[#allocation160_spill] sm:$0xff] %v11018_v1 }
 0x2ad   : > { %v1628_v58 = vpop.xlane.xlu0 %1627 }
 0x2b1   : > { %v1630_v12 = vpop.xlane.xlu0 %1629 }
 0x2b2   : > { %v11006_v13 = vsel %vm1177_vm5, %v1630_v12, -1e+30 }
 0x2b3   : > { %16855 = vst [vmem:[#allocation158_spill] sm:$0xff] %v11006_v13  ;;  %v1624_v53 = vpop.xlane.xlu1 %1623  ;;  %1693 = vrot.lane.b32.xlu0 %v11006_v13, %s9834_s19 }
 0x2b4   : > { %v11012_v4 = vsel %vm1174_vm1, %v1624_v53, -1e+30 }
 0x2b5   : > { %16856 = vst [vmem:[#allocation159_spill] sm:$0xff] %v11012_v4  ;;  %1687 = vrot.lane.b32.xlu1 %v11012_v4, %s9834_s19  ;;  %v1634_v54 = vpop.xlane.xlu0 %1633  ;;  %v11030_v4 = vsel %vm1176_vm4, %v1628_v58, -1e+30 }
 0x2b6   : > { %v11022_v12 = vsel %vm1179_vm7, %v1634_v54, -1e+30  ;;  %16859 = vst [vmem:[#allocation162_spill] sm:$0xff] %v11030_v4 }
 0x2b7   : > { %16858 = vst [vmem:[#allocation161_spill] sm:$0xff] %v11022_v12  ;;  %1697 = vrot.lane.b32.xlu0 %v11022_v12, %s9834_s19  ;;  %v1632_v13 = vpop.xlane.xlu1 %1631 }
 0x2b8   : > { %v11046_v58 = vsel %vm1178_vm6, %v1632_v13, -1e+30 }
 0x2b9   : > { %1689 = vrot.lane.b32.xlu1 %v11018_v1, %s9834_s19  ;;  %v1638_v53 = vpop.xlane.xlu0 %1637  ;;  %16862 = vst [vmem:[#allocation165_spill] sm:$0xff] %v11046_v58 }
 0x2ba   : > { %v11034_v41 = vsel %vm1181_vm9, %v1638_v53, -1e+30 }
 0x2bb   : > { %16860 = vst [vmem:[#allocation163_spill] sm:$0xff] %v11034_v41  ;;  %1701 = vrot.lane.b32.xlu0 %v11034_v41, %s9834_s19  ;;  %v1636_v54 = vpop.xlane.xlu1 %1635 }
 0x2bd   : > { %1691 = vrot.lane.b32.xlu1 %v11030_v4, %s9834_s19  ;;  %v1642_v12 = vpop.xlane.xlu0 %1641 }
 0x2be   : > { %v11042_v1 = vsel %vm1183_vm11, %v1642_v12, -1e+30  ;;  %v11058_v12 = vsel %vm1180_vm8, %v1636_v54, -1e+30 }
 0x2bf   : > { %16861 = vst [vmem:[#allocation164_spill] sm:$0xff] %v11042_v1  ;;  %1705 = vrot.lane.b32.xlu0 %v11042_v1, %s9834_s19  ;;  %v1640_v53 = vpop.xlane.xlu1 %1639  ;;  %16864 = vst [vmem:[#allocation167_spill] sm:$0xff] %v11058_v12 }
 0x2c1   : > { %1695 = vrot.lane.b32.xlu1 %v11046_v58, %s9834_s19  ;;  %v1646_v41 = vpop.xlane.xlu0 %1645 }
 0x2c2   : > { %v11054_v4 = vsel %vm1185_vm13, %v1646_v41, -1e+30  ;;  %v11070_v41 = vsel %vm1182_vm10, %v1640_v53, -1e+30 }
 0x2c3   : > { %16863 = vst [vmem:[#allocation166_spill] sm:$0xff] %v11054_v4  ;;  %1709 = vrot.lane.b32.xlu0 %v11054_v4, %s9834_s19  ;;  %v1644_v13 = vpop.xlane.xlu1 %1643  ;;  %16866 = vst [vmem:[#allocation169_spill] sm:$0xff] %v11070_v41 }
 0x2c4   : > { %v11078_v4 = vsel %vm1184_vm12, %v1644_v13, -1e+30  ;;  %v11095_v13 = vld [vmem:[%s10047_s2 + $0x10] sm:$0xff]  }
 0x2c5   : > { %1699 = vrot.lane.b32.xlu1 %v11058_v12, %s9834_s19  ;;  %v1650_v1 = vpop.xlane.xlu0 %1649  ;;  %16867 = vst [vmem:[#allocation170_spill] sm:$0xff] %v11078_v4  ;;  %16870 = vst [vmem:[#allocation173_spill] sm:$0xff] %v11095_v13  ;;  %v11106_v12 = vld [vmem:[%s10047_s2 + $0x70] sm:$0xff]  }
 0x2c6   : > { %v11066_v58 = vsel %vm1187_vm15, %v1650_v1, -1e+30  ;;  %16872 = vst [vmem:[#allocation175_spill] sm:$0xff] %v11106_v12 }
 0x2c7   : > { %16865 = vst [vmem:[#allocation168_spill] sm:$0xff] %v11066_v58  ;;  %1713 = vrot.lane.b32.xlu0 %v11066_v58, %s9834_s19  ;;  %v1648_v54 = vpop.xlane.xlu1 %1647 }
 0x2c8   : > { %v11084_v1 = vsel %vm1186_vm14, %v1648_v54, -1e+30 }
 0x2c9   : > { %1703 = vrot.lane.b32.xlu1 %v11070_v41, %s9834_s19  ;;  %16868 = vst [vmem:[#allocation171_spill] sm:$0xff] %v11084_v1  ;;  %v11099_v41 = vld [vmem:[%s10047_s2 + $0x50] sm:$0xff]  }
 0x2ca   : > { %16871 = vst [vmem:[#allocation174_spill] sm:$0xff] %v11099_v41 }
 0x2cb   : > { %v1652_v53 = vpop.xlane.xlu1 %1651 }
 0x2cc   : > { %v11090_v58 = vsel %vm1188_vm0, %v1652_v53, -1e+30 }
 0x2cd   : > { %1707 = vrot.lane.b32.xlu1 %v11078_v4, %s9834_s19  ;;  %16869 = vst [vmem:[#allocation172_spill] sm:$0xff] %v11090_v58  ;;  %v16366_v4 = vunpack.c.l.bf16 %v11095_v13 }
 0x2cf   : > { %v1781_v54 = vmul.f32 %v10856_v22, %v16366_v4 }
 0x2d1   : > { %1711 = vrot.lane.b32.xlu1 %v11084_v1, %s9834_s19  ;;  %v16367_v1 = vunpack.c.l.bf16 %v11099_v41 }
 0x2d3   : > { %v1783_v53 = vmul.f32 %v10863_v6, %v16367_v1  ;;  %v16371_v1 = vunpack.c.l.bf16 %v11120_v18 }
 0x2d5   : > { %1715 = vrot.lane.b32.xlu1 %v11090_v58, %s9834_s19  ;;  %v16369_v58 = vunpack.c.l.bf16 %v11106_v12 }
 0x2d7   : > { %v1784_v4 = vmul.f32 %v10870_v9, %v16369_v58  ;;  %v1787_v58 = vmul.f32 %v10892_v8, %v16371_v1 }
 0x2e6   : > { %1797 = vadd.xlane.f32.xlu0 %v1781_v54  ;;  %v1785_v54 = vmul.f32 %v10878_v24, %v16370_v38  ;;  %v11141_v38 = vld [vmem:[%s10047_s2 + $0x150] sm:$0xff]  }
 0x2e7   : > { %16878 = vst [vmem:[#allocation181_spill] sm:$0xff] %v11141_v38  ;;  %v16377_v1 = vunpack.c.l.bf16 %v11141_v38 }
 0x2ea   : > { %1801 = vadd.xlane.f32.xlu0 %v1783_v53  ;;  %v11130_v53 = vld [vmem:[%s10047_s2 + $0x110] sm:$0xff]  }
 0x2eb   : > { %16876 = vst [vmem:[#allocation179_spill] sm:$0xff] %v11130_v53 }
 0x2ee   : > { %1803 = vadd.xlane.f32.xlu0 %v1784_v4  ;;  %v16375_v4 = vunpack.c.l.bf16 %v11130_v53 }
 0x2f2   : > { %1805 = vadd.xlane.f32.xlu0 %v1785_v54  ;;  %v1789_v54 = vmul.f32 %v10906_v17, %v16375_v4  ;;  %v16380_v4 = vunpack.c.l.bf16 %v11155_v28 }
 0x2f6   : > { %1809 = vadd.xlane.f32.xlu0 %v1787_v58  ;;  %v1791_v58 = vmul.f32 %v10920_v32, %v16377_v1  ;;  %v16382_v1 = vunpack.c.l.bf16 %v11169_v26 }
 0x2f9   : > { %1799 = vadd.xlane.f32.xlu1 %v1782_v20  ;;  %v1788_v20 = vmul.f32 %v10913_v56, %v16379_v16  ;;  %v11190_v16 = vld [vmem:[%s10047_s2 + $0x1b0] sm:$0xff]  }
 0x2fa   : > { %1813 = vadd.xlane.f32.xlu0 %v1789_v54  ;;  %v1793_v54 = vmul.f32 %v10934_v55, %v16380_v4  ;;  %16884 = vst [vmem:[#allocation187_spill] sm:$0xff] %v11190_v16  ;;  %v1792_v4 = vmul.f32 %v10941_v59, %v16383_v57 }
 0x2fd   : > { %1807 = vadd.xlane.f32.xlu1 %v1786_v3  ;;  %v1790_v3 = vmul.f32 %v10927_v62, %v16381_v19  ;;  %v16386_v19 = vunpack.c.l.bf16 %v11197_v63 }
 0x2fe   : > { %1817 = vadd.xlane.f32.xlu0 %v1791_v58  ;;  %v1795_v58 = vmul.f32 %v10948_v30, %v16382_v1 }
 0x301   : > { %1811 = vadd.xlane.f32.xlu1 %v1788_v20  ;;  %v16384_v20 = vunpack.c.l.bf16 %v11190_v16 }
 0x302   : > { %1821 = vadd.xlane.f32.xlu0 %v1793_v54 }
 0x303   : > { %v1794_v54 = vmul.f32 %v10954_v52, %v16384_v20 }
 0x305   : > { %1815 = vadd.xlane.f32.xlu1 %v1790_v3  ;;  %v1796_v3 = vmul.f32 %v10961_v60, %v16386_v19 }
 0x306   : > { %1825 = vadd.xlane.f32.xlu0 %v1795_v58 }
 0x309   : > { %1819 = vadd.xlane.f32.xlu1 %v1792_v4 }
 0x30d   : > { %1823 = vadd.xlane.f32.xlu1 %v1794_v54 }
 0x311   : > { %1827 = vadd.xlane.f32.xlu1 %v1796_v3 }
 0x319   : > { %v11206_v1 = vpop.permute.xlu0 %1685 }
 0x325   : > { %v11208_v57 = vpop.permute.xlu0 %1693 }
 0x326   : > { %16886 = vst [vmem:[#allocation189_spill] sm:$0xff] %v11208_v57 }
 0x327   : > { %v11210_v58 = vpop.permute.xlu1 %1687 }
 0x328   : > { %16887 = vst [vmem:[#allocation190_spill] sm:$0xff] %v11210_v58 }
 0x329   : > { %v11212_v14 = vpop.permute.xlu0 %1697 }
 0x32a   : > { %16888 = vst [vmem:[#allocation191_spill] sm:$0xff] %v11212_v14 }
 0x32b   : > { %v11214_v4 = vpop.permute.xlu1 %1689 }
 0x32c   : > { %16889 = vst [vmem:[#allocation192_spill] sm:$0xff] %v11214_v4 }
 0x32d   : > { %v11216_v35 = vpop.permute.xlu0 %1701 }
 0x32e   : > { %16890 = vst [vmem:[#allocation193_spill] sm:$0xff] %v11216_v35 }
 0x32f   : > { %v11218_v20 = vpop.permute.xlu1 %1691  ;;  %v17016_v42 = vld [vmem:[#allocation190_spill] sm:$0xff] }
 0x330   : > { %16891 = vst [vmem:[#allocation194_spill] sm:$0xff] %v11218_v20 }
 0x331   : > { %v11220_v54 = vpop.permute.xlu0 %1705 }
 0x332   : > { %16892 = vst [vmem:[#allocation195_spill] sm:$0xff] %v11220_v54 }
 0x333   : > { %v11222_v25 = vpop.permute.xlu1 %1695  ;;  %v17030_v2 = vld [vmem:[#allocation192_spill] sm:$0xff] }
 0x334   : > { %16893 = vst [vmem:[#allocation196_spill] sm:$0xff] %v11222_v25 }
 0x335   : > { %v11224_v19 = vpop.permute.xlu0 %1709 }
 0x336   : > { %16894 = vst [vmem:[#allocation197_spill] sm:$0xff] %v11224_v19 }
 0x337   : > { %v11226_v3 = vpop.permute.xlu1 %1699 }
 0x338   : > { %16895 = vst [vmem:[#allocation198_spill] sm:$0xff] %v11226_v3 }
 0x339   : > { %v11228_v31 = vpop.permute.xlu0 %1713 }
 0x33a   : > { %16896 = vst [vmem:[#allocation199_spill] sm:$0xff] %v11228_v31 }
 0x33b   : > { %v11230_v57 = vpop.permute.xlu1 %1703 }
 0x33c   : > { %16897 = vst [vmem:[#allocation200_spill] sm:$0xff] %v11230_v57 }
 0x33f   : > { %v11238_v54 = vpop.permute.xlu1 %1707 }
 0x340   : > { %16899 = vst [vmem:[#allocation202_spill] sm:$0xff] %v11238_v54 }
 0x343   : > { %v11240_v19 = vpop.permute.xlu1 %1711 }
 0x344   : > { %16900 = vst [vmem:[#allocation203_spill] sm:$0xff] %v11240_v19 }
 0x373   : > { %v1798_v58 = vpop.xlane.xlu0 %1797 }
 0x374   : > { %v11234_v14 = vsel %vm1173_vm2, %v1798_v58, -1e+30  ;;  %v11248_v58 = vpop.permute.xlu1 %1715 }
 0x375   : > { %16898 = vst [vmem:[#allocation201_spill] sm:$0xff] %v11234_v14  ;;  %1861 = vrot.lane.b32.xlu0 %v11234_v14, %s9835_s21  ;;  %16902 = vst [vmem:[#allocation205_spill] sm:$0xff] %v11248_v58  ;;  %v11552_v58 = vld [vmem:[%s10047_s2 + $0xd8] sm:$0xff]  }
 0x376   : > { %16953 = vst [vmem:[#allocation256_spill] sm:$0xff] %v11552_v58 }
 0x377   : > { %v1802_v35 = vpop.xlane.xlu0 %1801 }
 0x37b   : > { %v1804_v25 = vpop.xlane.xlu0 %1803 }
 0x37f   : > { %v1806_v3 = vpop.xlane.xlu0 %1805 }
 0x380   : > { %v11244_v31 = vsel %vm1177_vm5, %v1806_v3, -1e+30 }
 0x381   : > { %16901 = vst [vmem:[#allocation204_spill] sm:$0xff] %v11244_v31  ;;  %1869 = vrot.lane.b32.xlu0 %v11244_v31, %s9835_s21 }
 0x383   : > { %v1810_v57 = vpop.xlane.xlu0 %1809 }
 0x384   : > { %v11252_v14 = vsel %vm1179_vm7, %v1810_v57, -1e+30  ;;  %v11268_v57 = vsel %vm1175_vm3, %v1802_v35, -1e+30 }
 0x385   : > { %16903 = vst [vmem:[#allocation206_spill] sm:$0xff] %v11252_v14  ;;  %1873 = vrot.lane.b32.xlu0 %v11252_v14, %s9835_s21  ;;  %16906 = vst [vmem:[#allocation209_spill] sm:$0xff] %v11268_v57 }
 0x386   : > { %v1800_v54 = vpop.xlane.xlu1 %1799 }
 0x387   : > { %v11258_v19 = vsel %vm1174_vm1, %v1800_v54, -1e+30  ;;  %v1814_v3 = vpop.xlane.xlu0 %1813 }
 0x388   : > { %16904 = vst [vmem:[#allocation207_spill] sm:$0xff] %v11258_v19  ;;  %v11262_v20 = vsel %vm1181_vm9, %v1814_v3, -1e+30  ;;  %1863 = vrot.lane.b32.xlu1 %v11258_v19, %s9835_s21  ;;  %v11280_v3 = vsel %vm1176_vm4, %v1804_v25, -1e+30 }
 0x389   : > { %16905 = vst [vmem:[#allocation208_spill] sm:$0xff] %v11262_v20  ;;  %1877 = vrot.lane.b32.xlu0 %v11262_v20, %s9835_s21  ;;  %16908 = vst [vmem:[#allocation211_spill] sm:$0xff] %v11280_v3 }
 0x38a   : > { %v1808_v14 = vpop.xlane.xlu1 %1807 }
 0x38b   : > { %v1818_v31 = vpop.xlane.xlu0 %1817 }
 0x38c   : > { %v11274_v54 = vsel %vm1183_vm11, %v1818_v31, -1e+30  ;;  %1865 = vrot.lane.b32.xlu1 %v11268_v57, %s9835_s21  ;;  %v11294_v31 = vsel %vm1178_vm6, %v1808_v14, -1e+30 }
 0x38d   : > { %16907 = vst [vmem:[#allocation210_spill] sm:$0xff] %v11274_v54  ;;  %1881 = vrot.lane.b32.xlu0 %v11274_v54, %s9835_s21  ;;  %16910 = vst [vmem:[#allocation213_spill] sm:$0xff] %v11294_v31 }
 0x38e   : > { %v1812_v35 = vpop.xlane.xlu1 %1811 }
 0x38f   : > { %v1822_v19 = vpop.xlane.xlu0 %1821 }
 0x390   : > { %v11286_v20 = vsel %vm1185_vm13, %v1822_v19, -1e+30  ;;  %1867 = vrot.lane.b32.xlu1 %v11280_v3, %s9835_s21  ;;  %v11306_v19 = vsel %vm1180_vm8, %v1812_v35, -1e+30 }
 0x391   : > { %16909 = vst [vmem:[#allocation212_spill] sm:$0xff] %v11286_v20  ;;  %1885 = vrot.lane.b32.xlu0 %v11286_v20, %s9835_s21  ;;  %16912 = vst [vmem:[#allocation215_spill] sm:$0xff] %v11306_v19 }
 0x392   : > { %v1816_v25 = vpop.xlane.xlu1 %1815 }
 0x393   : > { %v1826_v57 = vpop.xlane.xlu0 %1825  ;;  %v11312_v14 = vsel %vm1182_vm10, %v1816_v25, -1e+30 }
 0x394   : > { %v11298_v54 = vsel %vm1187_vm15, %v1826_v57, -1e+30  ;;  %1871 = vrot.lane.b32.xlu1 %v11294_v31, %s9835_s21  ;;  %16913 = vst [vmem:[#allocation216_spill] sm:$0xff] %v11312_v14 }
 0x395   : > { %16911 = vst [vmem:[#allocation214_spill] sm:$0xff] %v11298_v54  ;;  %1889 = vrot.lane.b32.xlu0 %v11298_v54, %s9835_s21 }
 0x396   : > { %v1820_v20 = vpop.xlane.xlu1 %1819 }
 0x397   : > { %v11318_v31 = vsel %vm1184_vm12, %v1820_v20, -1e+30  ;;  %v16401_v20 = vunpack.c.h.bf16 %v11095_v13 }
 0x398   : > { %1875 = vrot.lane.b32.xlu1 %v11306_v19, %s9835_s21  ;;  %16914 = vst [vmem:[#allocation217_spill] sm:$0xff] %v11318_v31 }
 0x39a   : > { %v1824_v57 = vpop.xlane.xlu1 %1823 }
 0x39b   : > { %v11324_v35 = vsel %vm1186_vm14, %v1824_v57, -1e+30  ;;  %v16402_v57 = vunpack.c.h.bf16 %v11099_v41 }
 0x39c   : > { %1879 = vrot.lane.b32.xlu1 %v11312_v14, %s9835_s21  ;;  %16915 = vst [vmem:[#allocation218_spill] sm:$0xff] %v11324_v35  ;;  %v16403_v14 = vunpack.c.h.bf16 %v11106_v12  ;;  %v16412_v12 = vunpack.c.h.bf16 %v11141_v38 }
 0x39e   : > { %v1828_v54 = vpop.xlane.xlu1 %1827 }
 0x39f   : > { %v11330_v25 = vsel %vm1188_vm0, %v1828_v54, -1e+30  ;;  %v1960_v54 = vmul.f32 %v10870_v9, %v16403_v14 }
 0x3a0   : > { %1883 = vrot.lane.b32.xlu1 %v11318_v31, %s9835_s21  ;;  %16916 = vst [vmem:[#allocation219_spill] sm:$0xff] %v11330_v25  ;;  %v1957_v31 = vmul.f32 %v10856_v22, %v16401_v20 }
 0x3a4   : > { %1887 = vrot.lane.b32.xlu1 %v11324_v35, %s9835_s21  ;;  %v1959_v35 = vmul.f32 %v10863_v6, %v16402_v57 }
 0x3a8   : > { %1891 = vrot.lane.b32.xlu1 %v11330_v25, %s9835_s21  ;;  %v16407_v25 = vunpack.c.h.bf16 %v11113_v0 }
 0x3aa   : > { %v1961_v20 = vmul.f32 %v10878_v24, %v16407_v25  ;;  %v16414_v25 = vunpack.c.h.bf16 %v11155_v28 }
 0x3b4   : > { %1973 = vadd.xlane.f32.xlu0 %v1957_v31  ;;  %v16406_v31 = vunpack.c.h.bf16 %v11120_v18 }
 0x3b6   : > { %v1963_v57 = vmul.f32 %v10892_v8, %v16406_v31  ;;  %v1967_v31 = vmul.f32 %v10920_v32, %v16412_v12 }
 0x3b8   : > { %1977 = vadd.xlane.f32.xlu0 %v1959_v35  ;;  %v16408_v35 = vunpack.c.h.bf16 %v11130_v53 }
 0x3ba   : > { %v1965_v14 = vmul.f32 %v10906_v17, %v16408_v35  ;;  %v1969_v35 = vmul.f32 %v10934_v55, %v16414_v25  ;;  %v16417_v25 = vunpack.c.h.bf16 %v11180_v23 }
 0x3bc   : > { %1979 = vadd.xlane.f32.xlu0 %v1960_v54  ;;  %v16409_v54 = vunpack.c.h.bf16 %v11127_v33  ;;  %v16415_v33 = vunpack.c.h.bf16 %v11152_v21 }
 0x3c0   : > { %1981 = vadd.xlane.f32.xlu0 %v1961_v20  ;;  %v1958_v20 = vmul.f32 %v10885_v5, %v16409_v54 }
 0x3c4   : > { %1985 = vadd.xlane.f32.xlu0 %v1963_v57  ;;  %v16413_v57 = vunpack.c.h.bf16 %v11138_v7 }
 0x3c6   : > { %v1962_v54 = vmul.f32 %v10899_v10, %v16413_v57 }
 0x3c8   : > { %1989 = vadd.xlane.f32.xlu0 %v1965_v14  ;;  %v16418_v14 = vunpack.c.h.bf16 %v11169_v26 }
 0x3ca   : > { %v1971_v12 = vmul.f32 %v10948_v30, %v16418_v14 }
 0x3cc   : > { %1975 = vadd.xlane.f32.xlu1 %v1958_v20  ;;  %1993 = vadd.xlane.f32.xlu0 %v1967_v31  ;;  %v1964_v31 = vmul.f32 %v10913_v56, %v16415_v33  ;;  %v16416_v20 = vunpack.c.h.bf16 %v11166_v29 }
 0x3ce   : > { %v1966_v57 = vmul.f32 %v10927_v62, %v16416_v20 }
 0x3d0   : > { %1997 = vadd.xlane.f32.xlu0 %v1969_v35  ;;  %1983 = vadd.xlane.f32.xlu1 %v1962_v54  ;;  %v1968_v35 = vmul.f32 %v10941_v59, %v16417_v25  ;;  %v16421_v54 = vunpack.c.h.bf16 %v11190_v16 }
 0x3d2   : > { %v1970_v33 = vmul.f32 %v10954_v52, %v16421_v54 }
 0x3d4   : > { %2001 = vadd.xlane.f32.xlu0 %v1971_v12  ;;  %1987 = vadd.xlane.f32.xlu1 %v1964_v31  ;;  %v16424_v12 = vunpack.c.h.bf16 %v11197_v63 }
 0x3d6   : > { %v1972_v31 = vmul.f32 %v10961_v60, %v16424_v12 }
 0x3d8   : > { %1991 = vadd.xlane.f32.xlu1 %v1966_v57 }
 0x3dc   : > { %1995 = vadd.xlane.f32.xlu1 %v1968_v35 }
 0x3e0   : > { %1999 = vadd.xlane.f32.xlu1 %v1970_v33 }
 0x3e4   : > { %2003 = vadd.xlane.f32.xlu1 %v1972_v31 }
 0x3e7   : > { %v11398_v57 = vpop.permute.xlu0 %1861 }
 0x3e8   : > { %16917 = vst [vmem:[#allocation220_spill] sm:$0xff] %v11398_v57 }
 0x3f3   : > { %v11400_v20 = vpop.permute.xlu0 %1869 }
 0x3f4   : > { %16918 = vst [vmem:[#allocation221_spill] sm:$0xff] %v11400_v20 }
 0x3f7   : > { %v11402_v25 = vpop.permute.xlu0 %1873 }
 0x3f8   : > { %16919 = vst [vmem:[#allocation222_spill] sm:$0xff] %v11402_v25  ;;  %v11608_v25 = vld [vmem:[%s10047_s2 + $0x138] sm:$0xff]  }
 0x3f9   : > { %16961 = vst [vmem:[#allocation264_spill] sm:$0xff] %v11608_v25 }
 0x3fa   : > { %v11404_v14 = vpop.permute.xlu1 %1863 }
 0x3fb   : > { %16920 = vst [vmem:[#allocation223_spill] sm:$0xff] %v11404_v14  ;;  %v11406_v35 = vpop.permute.xlu0 %1877 }
 0x3fc   : > { %16921 = vst [vmem:[#allocation224_spill] sm:$0xff] %v11406_v35  ;;  %v11598_v35 = vld [vmem:[%s10047_s2 + $0xf8] sm:$0xff]  }
 0x3fd   : > { %16960 = vst [vmem:[#allocation263_spill] sm:$0xff] %v11598_v35 }
 0x3fe   : > { %v11408_v16 = vpop.permute.xlu1 %1865 }
 0x3ff   : > { %16922 = vst [vmem:[#allocation225_spill] sm:$0xff] %v11408_v16  ;;  %v11410_v54 = vpop.permute.xlu0 %1881 }
 0x400   : > { %16923 = vst [vmem:[#allocation226_spill] sm:$0xff] %v11410_v54  ;;  %v11587_v54 = vld [vmem:[%s10047_s2 + $0xb8] sm:$0xff]  }
 0x401   : > { %16959 = vst [vmem:[#allocation262_spill] sm:$0xff] %v11587_v54 }
 0x402   : > { %v11412_v33 = vpop.permute.xlu1 %1867 }
 0x403   : > { %16924 = vst [vmem:[#allocation227_spill] sm:$0xff] %v11412_v33  ;;  %v11414_v63 = vpop.permute.xlu0 %1885  ;;  %v11615_v33 = vld [vmem:[%s10047_s2 + $0x178] sm:$0xff]  }
 0x404   : > { %16925 = vst [vmem:[#allocation228_spill] sm:$0xff] %v11414_v63  ;;  %v11576_v63 = vld [vmem:[%s10047_s2 + $0x38] sm:$0xff]   ;;  %16962 = vst [vmem:[#allocation265_spill] sm:$0xff] %v11615_v33 }
 0x405   : > { %16957 = vst [vmem:[#allocation260_spill] sm:$0xff] %v11576_v63 }
 0x406   : > { %v11416_v12 = vpop.permute.xlu1 %1871 }
 0x407   : > { %16926 = vst [vmem:[#allocation229_spill] sm:$0xff] %v11416_v12  ;;  %v11418_v31 = vpop.permute.xlu0 %1889  ;;  %v16478_v12 = vunpack.c.l.bf16 %v11598_v35 }
 0x408   : > { %16927 = vst [vmem:[#allocation230_spill] sm:$0xff] %v11418_v31  ;;  %v11566_v31 = vld [vmem:[%s10047_s2 + $0x158] sm:$0xff]  }
 0x409   : > { %16955 = vst [vmem:[#allocation258_spill] sm:$0xff] %v11566_v31 }
 0x40a   : > { %v11420_v23 = vpop.permute.xlu1 %1875 }
 0x40b   : > { %16928 = vst [vmem:[#allocation231_spill] sm:$0xff] %v11420_v23  ;;  %v16476_v23 = vunpack.c.l.bf16 %v11587_v54 }
 0x40e   : > { %v11426_v7 = vpop.permute.xlu1 %1879 }
 0x40f   : > { %16930 = vst [vmem:[#allocation233_spill] sm:$0xff] %v11426_v7  ;;  %v11584_v7 = vld [vmem:[%s10047_s2 + $0x1d8] sm:$0xff]  }
 0x410   : > { %16958 = vst [vmem:[#allocation261_spill] sm:$0xff] %v11584_v7 }
 0x412   : > { %v11430_v28 = vpop.permute.xlu1 %1883 }
 0x413   : > { %16931 = vst [vmem:[#allocation234_spill] sm:$0xff] %v11430_v28  ;;  %v11573_v28 = vld [vmem:[%s10047_s2 + $0x198] sm:$0xff]  }
 0x414   : > { %16956 = vst [vmem:[#allocation259_spill] sm:$0xff] %v11573_v28 }
 0x416   : > { %v11436_v18 = vpop.permute.xlu1 %1887 }
 0x417   : > { %16933 = vst [vmem:[#allocation236_spill] sm:$0xff] %v11436_v18  ;;  %v11559_v18 = vld [vmem:[%s10047_s2 + $0x118] sm:$0xff]  }
 0x418   : > { %16954 = vst [vmem:[#allocation257_spill] sm:$0xff] %v11559_v18 }
 0x41a   : > { %v11446_v41 = vpop.permute.xlu1 %1891 }
 0x41b   : > { %16935 = vst [vmem:[#allocation238_spill] sm:$0xff] %v11446_v41 }
 0x441   : > { %v1974_v29 = vpop.xlane.xlu0 %1973 }
 0x442   : > { %v11424_v21 = vsel %vm1173_vm2, %v1974_v29, -1e+30 }
 0x443   : > { %16929 = vst [vmem:[#allocation232_spill] sm:$0xff] %v11424_v21  ;;  %2037 = vrot.lane.b32.xlu0 %v11424_v21, %s9836_s17 }
 0x445   : > { %v1978_v26 = vpop.xlane.xlu0 %1977 }
 0x449   : > { %v1980_v38 = vpop.xlane.xlu0 %1979 }
 0x44d   : > { %v1982_v53 = vpop.xlane.xlu0 %1981 }
 0x44e   : > { %v11434_v13 = vsel %vm1177_vm5, %v1982_v53, -1e+30 }
 0x44f   : > { %16932 = vst [vmem:[#allocation235_spill] sm:$0xff] %v11434_v13  ;;  %2045 = vrot.lane.b32.xlu0 %v11434_v13, %s9836_s17 }
 0x451   : > { %v1986_v29 = vpop.xlane.xlu0 %1985 }
 0x452   : > { %v11442_v0 = vsel %vm1179_vm7, %v1986_v29, -1e+30 }
 0x453   : > { %16934 = vst [vmem:[#allocation237_spill] sm:$0xff] %v11442_v0  ;;  %2049 = vrot.lane.b32.xlu0 %v11442_v0, %s9836_s17 }
 0x455   : > { %v1990_v21 = vpop.xlane.xlu0 %1989 }
 0x456   : > { %v11450_v53 = vsel %vm1181_vm9, %v1990_v21, -1e+30  ;;  %v11468_v21 = vsel %vm1175_vm3, %v1978_v26, -1e+30 }
 0x457   : > { %16936 = vst [vmem:[#allocation239_spill] sm:$0xff] %v11450_v53  ;;  %2053 = vrot.lane.b32.xlu0 %v11450_v53, %s9836_s17  ;;  %16939 = vst [vmem:[#allocation242_spill] sm:$0xff] %v11468_v21 }
 0x459   : > { %v1976_v19 = vpop.xlane.xlu1 %1975  ;;  %v1994_v13 = vpop.xlane.xlu0 %1993 }
 0x45a   : > { %v11456_v3 = vsel %vm1174_vm1, %v1976_v19, -1e+30  ;;  %v11460_v29 = vsel %vm1183_vm11, %v1994_v13, -1e+30  ;;  %v11480_v13 = vsel %vm1176_vm4, %v1980_v38, -1e+30 }
 0x45b   : > { %16937 = vst [vmem:[#allocation240_spill] sm:$0xff] %v11456_v3  ;;  %16938 = vst [vmem:[#allocation241_spill] sm:$0xff] %v11460_v29  ;;  %2039 = vrot.lane.b32.xlu1 %v11456_v3, %s9836_s17  ;;  %2057 = vrot.lane.b32.xlu0 %v11460_v29, %s9836_s17 }
 0x45c   : > { %16941 = vst [vmem:[#allocation244_spill] sm:$0xff] %v11480_v13 }
 0x45d   : > { %v1998_v53 = vpop.xlane.xlu0 %1997  ;;  %v1984_v0 = vpop.xlane.xlu1 %1983 }
 0x45e   : > { %v11472_v19 = vsel %vm1185_vm13, %v1998_v53, -1e+30  ;;  %v11492_v53 = vsel %vm1178_vm6, %v1984_v0, -1e+30 }
 0x45f   : > { %16940 = vst [vmem:[#allocation243_spill] sm:$0xff] %v11472_v19  ;;  %2041 = vrot.lane.b32.xlu1 %v11468_v21, %s9836_s17  ;;  %2061 = vrot.lane.b32.xlu0 %v11472_v19, %s9836_s17  ;;  %16943 = vst [vmem:[#allocation246_spill] sm:$0xff] %v11492_v53 }
 0x461   : > { %v2002_v29 = vpop.xlane.xlu0 %2001  ;;  %v1988_v3 = vpop.xlane.xlu1 %1987 }
 0x462   : > { %v11484_v26 = vsel %vm1187_vm15, %v2002_v29, -1e+30  ;;  %v11498_v38 = vsel %vm1180_vm8, %v1988_v3, -1e+30 }
 0x463   : > { %16942 = vst [vmem:[#allocation245_spill] sm:$0xff] %v11484_v26  ;;  %2043 = vrot.lane.b32.xlu1 %v11480_v13, %s9836_s17  ;;  %2065 = vrot.lane.b32.xlu0 %v11484_v26, %s9836_s17  ;;  %16944 = vst [vmem:[#allocation247_spill] sm:$0xff] %v11498_v38  ;;  %v11538_v13 = vld [vmem:[%s10047_s2 + $0x78] sm:$0xff]  }
 0x464   : > { %16951 = vst [vmem:[#allocation254_spill] sm:$0xff] %v11538_v13  ;;  %v16469_v21 = vunpack.c.l.bf16 %v11538_v13 }
 0x465   : > { %v1992_v19 = vpop.xlane.xlu1 %1991 }
 0x466   : > { %v11504_v26 = vsel %vm1182_vm10, %v1992_v19, -1e+30  ;;  %v11521_v19 = vld [vmem:[%s10047_s2 + $0x18] sm:$0xff]  }
 0x467   : > { %2047 = vrot.lane.b32.xlu1 %v11492_v53, %s9836_s17  ;;  %16945 = vst [vmem:[#allocation248_spill] sm:$0xff] %v11504_v26  ;;  %16948 = vst [vmem:[#allocation251_spill] sm:$0xff] %v11521_v19 }
 0x469   : > { %v1996_v29 = vpop.xlane.xlu1 %1995 }
 0x46a   : > { %v11510_v53 = vsel %vm1184_vm12, %v1996_v29, -1e+30  ;;  %v16467_v29 = vunpack.c.l.bf16 %v11521_v19 }
 0x46b   : > { %2051 = vrot.lane.b32.xlu1 %v11498_v38, %s9836_s17  ;;  %16946 = vst [vmem:[#allocation249_spill] sm:$0xff] %v11510_v53 }
 0x46d   : > { %v2000_v0 = vpop.xlane.xlu1 %1999 }
 0x46e   : > { %v11516_v3 = vsel %vm1186_vm14, %v2000_v0, -1e+30  ;;  %v2133_v0 = vmul.f32 %v10856_v22, %v16467_v29  ;;  %v2136_v29 = vmul.f32 %v10870_v9, %v16469_v21  ;;  %v16472_v21 = vunpack.c.l.bf16 %v11559_v18 }
 0x46f   : > { %2055 = vrot.lane.b32.xlu1 %v11504_v26, %s9836_s17  ;;  %16947 = vst [vmem:[#allocation250_spill] sm:$0xff] %v11516_v3 }
 0x471   : > { %v2004_v38 = vpop.xlane.xlu1 %2003 }
 0x472   : > { %v11525_v26 = vsel %vm1188_vm0, %v2004_v38, -1e+30 }
 0x473   : > { %2059 = vrot.lane.b32.xlu1 %v11510_v53, %s9836_s17  ;;  %16949 = vst [vmem:[#allocation252_spill] sm:$0xff] %v11525_v26  ;;  %v11531_v53 = vld [vmem:[%s10047_s2 + $0x58] sm:$0xff]  }
 0x474   : > { %16950 = vst [vmem:[#allocation253_spill] sm:$0xff] %v11531_v53 }
 0x477   : > { %2063 = vrot.lane.b32.xlu1 %v11516_v3, %s9836_s17  ;;  %v16468_v3 = vunpack.c.l.bf16 %v11531_v53 }
 0x479   : > { %v2135_v38 = vmul.f32 %v10863_v6, %v16468_v3  ;;  %v16471_v3 = vunpack.c.l.bf16 %v11552_v58 }
 0x47b   : > { %2067 = vrot.lane.b32.xlu1 %v11525_v26, %s9836_s17  ;;  %v11545_v26 = vld [vmem:[%s10047_s2 + $0x98] sm:$0xff]  }
 0x47c   : > { %16952 = vst [vmem:[#allocation255_spill] sm:$0xff] %v11545_v26  ;;  %v16470_v41 = vunpack.c.l.bf16 %v11545_v26 }
 0x482   : > { %2149 = vadd.xlane.f32.xlu0 %v2133_v0  ;;  %v2137_v0 = vmul.f32 %v10878_v24, %v16470_v41  ;;  %v16473_v41 = vunpack.c.l.bf16 %v11566_v31 }
 0x486   : > { %2153 = vadd.xlane.f32.xlu0 %v2135_v38  ;;  %v2139_v38 = vmul.f32 %v10892_v8, %v16471_v3  ;;  %v16474_v3 = vunpack.c.l.bf16 %v11573_v28 }
 0x48a   : > { %2155 = vadd.xlane.f32.xlu0 %v2136_v29  ;;  %v2141_v29 = vmul.f32 %v10906_v17, %v16472_v21  ;;  %v2145_v21 = vmul.f32 %v10934_v55, %v16474_v3  ;;  %v2138_v3 = vmul.f32 %v10899_v10, %v16476_v23  ;;  %v16480_v23 = vunpack.c.l.bf16 %v11615_v33 }
 0x48e   : > { %2157 = vadd.xlane.f32.xlu0 %v2137_v0  ;;  %v2143_v0 = vmul.f32 %v10920_v32, %v16473_v41 }
 0x492   : > { %2161 = vadd.xlane.f32.xlu0 %v2139_v38  ;;  %v16475_v38 = vunpack.c.l.bf16 %v11576_v63 }
 0x494   : > { %v2134_v41 = vmul.f32 %v10885_v5, %v16475_v38  ;;  %v16479_v38 = vunpack.c.l.bf16 %v11608_v25 }
 0x496   : > { %2165 = vadd.xlane.f32.xlu0 %v2141_v29  ;;  %v16477_v29 = vunpack.c.l.bf16 %v11584_v7 }
 0x49a   : > { %2169 = vadd.xlane.f32.xlu0 %v2143_v0  ;;  %v2147_v0 = vmul.f32 %v10948_v30, %v16477_v29  ;;  %v11622_v29 = vld [vmem:[%s10047_s2 + $0x1b8] sm:$0xff]  }
 0x49b   : > { %16963 = vst [vmem:[#allocation266_spill] sm:$0xff] %v11622_v29 }
 0x49e   : > { %2173 = vadd.xlane.f32.xlu0 %v2145_v21  ;;  %v2140_v21 = vmul.f32 %v10913_v56, %v16478_v12  ;;  %v11629_v12 = vld [vmem:[%s10047_s2 + $0x1f8] sm:$0xff]   ;;  %s9837_s2 = smov 122  }
 0x49f   : > { %2151 = vadd.xlane.f32.xlu1 %v2134_v41  ;;  %v2142_v41 = vmul.f32 %v10927_v62, %v16479_v38  ;;  %16964 = vst [vmem:[#allocation267_spill] sm:$0xff] %v11629_v12  ;;  %v16482_v38 = vunpack.c.l.bf16 %v11629_v12 }
 0x4a2   : > { %2177 = vadd.xlane.f32.xlu0 %v2147_v0  ;;  %v16481_v0 = vunpack.c.l.bf16 %v11622_v29 }
 0x4a3   : > { %2159 = vadd.xlane.f32.xlu1 %v2138_v3  ;;  %v2144_v3 = vmul.f32 %v10941_v59, %v16480_v23 }
 0x4a7   : > { %2163 = vadd.xlane.f32.xlu1 %v2140_v21  ;;  %v2146_v21 = vmul.f32 %v10954_v52, %v16481_v0 }
 0x4ab   : > { %2167 = vadd.xlane.f32.xlu1 %v2142_v41  ;;  %v2148_v41 = vmul.f32 %v10961_v60, %v16482_v38 }
 0x4af   : > { %2171 = vadd.xlane.f32.xlu1 %v2144_v3 }
 0x4b3   : > { %2175 = vadd.xlane.f32.xlu1 %v2146_v21 }
 0x4b5   : > { %v11638_v20 = vpop.permute.xlu0 %2037 }
 0x4b6   : > { %16965 = vst [vmem:[#allocation268_spill] sm:$0xff] %v11638_v20 }
 0x4b7   : > { %2179 = vadd.xlane.f32.xlu1 %v2148_v41 }
 0x4c1   : > { %v11640_v23 = vpop.permute.xlu0 %2045 }
 0x4c2   : > { %16966 = vst [vmem:[#allocation269_spill] sm:$0xff] %v11640_v23 }
 0x4c5   : > { %v11642_v16 = vpop.permute.xlu0 %2049 }
 0x4c6   : > { %16967 = vst [vmem:[#allocation270_spill] sm:$0xff] %v11642_v16 }
 0x4c9   : > { %v11646_v3 = vpop.permute.xlu0 %2053 }
 0x4ca   : > { %16968 = vst [vmem:[#allocation271_spill] sm:$0xff] %v11646_v3 }
 0x4cd   : > { %v11644_v4 = vpop.permute.xlu1 %2039  ;;  %v11650_v0 = vpop.permute.xlu0 %2057 }
 0x4ce   : > { %16970 = vst [vmem:[#allocation273_spill] sm:$0xff] %v11650_v0 }
 0x4d1   : > { %v11648_v14 = vpop.permute.xlu1 %2041  ;;  %v11654_v57 = vpop.permute.xlu0 %2061 }
 0x4d2   : > { %16969 = vst [vmem:[#allocation272_spill] sm:$0xff] %v11648_v14  ;;  %16972 = vst [vmem:[#allocation275_spill] sm:$0xff] %v11654_v57 }
 0x4d5   : > { %v11652_v21 = vpop.permute.xlu1 %2043  ;;  %v11658_v41 = vpop.permute.xlu0 %2065 }
 0x4d6   : > { %16971 = vst [vmem:[#allocation274_spill] sm:$0xff] %v11652_v21  ;;  %16974 = vst [vmem:[#allocation277_spill] sm:$0xff] %v11658_v41 }
 0x4d9   : > { %v11656_v38 = vpop.permute.xlu1 %2047 }
 0x4da   : > { %16973 = vst [vmem:[#allocation276_spill] sm:$0xff] %v11656_v38 }
 0x4dd   : > { %v11660_v23 = vpop.permute.xlu1 %2051 }
 0x4de   : > { %16975 = vst [vmem:[#allocation278_spill] sm:$0xff] %v11660_v23 }
 0x4e1   : > { %v11668_v3 = vpop.permute.xlu1 %2055 }
 0x4e2   : > { %16977 = vst [vmem:[#allocation280_spill] sm:$0xff] %v11668_v3 }
 0x4e5   : > { %v11670_v14 = vpop.permute.xlu1 %2059 }
 0x4e6   : > { %16978 = vst [vmem:[#allocation281_spill] sm:$0xff] %v11670_v14 }
 0x50f   : > { %v2150_v20 = vpop.xlane.xlu0 %2149 }
 0x510   : > { %v11664_v16 = vsel %vm1173_vm2, %v2150_v20, -1e+30 }
 0x511   : > { %16976 = vst [vmem:[#allocation279_spill] sm:$0xff] %v11664_v16  ;;  %2213 = vrot.lane.b32.xlu0 %v11664_v16, %s9837_s2  ;;  %v11684_v16 = vpop.permute.xlu1 %2063 }
 0x512   : > { %16981 = vst [vmem:[#allocation284_spill] sm:$0xff] %v11684_v16 }
 0x513   : > { %v2154_v0 = vpop.xlane.xlu0 %2153 }
 0x517   : > { %v2156_v21 = vpop.xlane.xlu0 %2155 }
 0x51b   : > { %v2158_v57 = vpop.xlane.xlu0 %2157 }
 0x51c   : > { %v11674_v41 = vsel %vm1177_vm5, %v2158_v57, -1e+30 }
 0x51d   : > { %16979 = vst [vmem:[#allocation282_spill] sm:$0xff] %v11674_v41  ;;  %2221 = vrot.lane.b32.xlu0 %v11674_v41, %s9837_s2  ;;  %v11692_v41 = vpop.permute.xlu1 %2067 }
 0x51f   : > { %v2162_v20 = vpop.xlane.xlu0 %2161 }
 0x520   : > { %v11680_v23 = vsel %vm1179_vm7, %v2162_v20, -1e+30 }
 0x521   : > { %16980 = vst [vmem:[#allocation283_spill] sm:$0xff] %v11680_v23  ;;  %2225 = vrot.lane.b32.xlu0 %v11680_v23, %s9837_s2 }
 0x523   : > { %v2166_v3 = vpop.xlane.xlu0 %2165 }
 0x524   : > { %v11688_v14 = vsel %vm1181_vm9, %v2166_v3, -1e+30 }
 0x525   : > { %16982 = vst [vmem:[#allocation285_spill] sm:$0xff] %v11688_v14  ;;  %2229 = vrot.lane.b32.xlu0 %v11688_v14, %s9837_s2 }
 0x527   : > { %v2170_v57 = vpop.xlane.xlu0 %2169 }
 0x528   : > { %v11696_v20 = vsel %vm1183_vm11, %v2170_v57, -1e+30  ;;  %v11714_v57 = vsel %vm1175_vm3, %v2154_v0, -1e+30 }
 0x529   : > { %16983 = vst [vmem:[#allocation286_spill] sm:$0xff] %v11696_v20  ;;  %2233 = vrot.lane.b32.xlu0 %v11696_v20, %s9837_s2  ;;  %16985 = vst [vmem:[#allocation288_spill] sm:$0xff] %v11714_v57 }
 0x52b   : > { %v2174_v23 = vpop.xlane.xlu0 %2173 }
 0x52c   : > { %v11702_v16 = vsel %vm1185_vm13, %v2174_v23, -1e+30  ;;  %v2152_v3 = vpop.xlane.xlu1 %2151 }
 0x52d   : > { %16984 = vst [vmem:[#allocation287_spill] sm:$0xff] %v11702_v16  ;;  %v11706_v38 = vsel %vm1174_vm1, %v2152_v3, -1e+30  ;;  %2237 = vrot.lane.b32.xlu0 %v11702_v16, %s9837_s2  ;;  %v11726_v3 = vsel %vm1176_vm4, %v2156_v21, -1e+30 }
 0x52e   : > { %2215 = vrot.lane.b32.xlu1 %v11706_v38, %s9837_s2  ;;  %16987 = vst [vmem:[#allocation290_spill] sm:$0xff] %v11726_v3 }
 0x52f   : > { %v2178_v20 = vpop.xlane.xlu0 %2177 }
 0x530   : > { %v11718_v23 = vsel %vm1187_vm15, %v2178_v20, -1e+30  ;;  %v2160_v14 = vpop.xlane.xlu1 %2159 }
 0x531   : > { %16986 = vst [vmem:[#allocation289_spill] sm:$0xff] %v11718_v23  ;;  %2241 = vrot.lane.b32.xlu0 %v11718_v23, %s9837_s2  ;;  %v11732_v0 = vsel %vm1178_vm6, %v2160_v14, -1e+30 }
 0x532   : > { %2217 = vrot.lane.b32.xlu1 %v11714_v57, %s9837_s2  ;;  %16988 = vst [vmem:[#allocation291_spill] sm:$0xff] %v11732_v0 }
 0x534   : > { %v2164_v16 = vpop.xlane.xlu1 %2163 }
 0x535   : > { %v11738_v23 = vsel %vm1180_vm8, %v2164_v16, -1e+30 }
 0x536   : > { %2219 = vrot.lane.b32.xlu1 %v11726_v3, %s9837_s2  ;;  %16989 = vst [vmem:[#allocation292_spill] sm:$0xff] %v11738_v23 }
 0x538   : > { %v2168_v20 = vpop.xlane.xlu1 %2167 }
 0x539   : > { %v11744_v21 = vsel %vm1182_vm10, %v2168_v20, -1e+30 }
 0x53a   : > { %2223 = vrot.lane.b32.xlu1 %v11732_v0, %s9837_s2  ;;  %v16510_v0 = vunpack.c.h.bf16 %v11521_v19  ;;  %v16512_v19 = vunpack.c.h.bf16 %v11545_v26 }
 0x53c   : > { %v2172_v57 = vpop.xlane.xlu1 %2171 }
 0x53d   : > { %v11750_v3 = vsel %vm1184_vm12, %v2172_v57, -1e+30  ;;  %v2309_v57 = vmul.f32 %v10856_v22, %v16510_v0  ;;  %v2313_v22 = vmul.f32 %v10878_v24, %v16512_v19 }
 0x53e   : > { %2227 = vrot.lane.b32.xlu1 %v11738_v23, %s9837_s2  ;;  %16990 = vst [vmem:[#allocation293_spill] sm:$0xff] %v11750_v3 }
 0x540   : > { %v2176_v14 = vpop.xlane.xlu1 %2175 }
 0x541   : > { %v11756_v16 = vsel %vm1186_vm14, %v2176_v14, -1e+30 }
 0x542   : > { %2231 = vrot.lane.b32.xlu1 %v11744_v21, %s9837_s2  ;;  %16991 = vst [vmem:[#allocation294_spill] sm:$0xff] %v11756_v16 }
 0x544   : > { %v2180_v23 = vpop.xlane.xlu1 %2179 }
 0x545   : > { %v11763_v20 = vsel %vm1188_vm0, %v2180_v23, -1e+30 }
 0x546   : > { %2235 = vrot.lane.b32.xlu1 %v11750_v3, %s9837_s2  ;;  %v16513_v3 = vunpack.c.h.bf16 %v11531_v53 }
 0x548   : > { %v2311_v14 = vmul.f32 %v10863_v6, %v16513_v3 }
 0x54a   : > { %2239 = vrot.lane.b32.xlu1 %v11756_v16, %s9837_s2  ;;  %v16498_v16 = vunpack.c.h.bf16 %v11538_v13 }
 0x54c   : > { %v2312_v23 = vmul.f32 %v10870_v9, %v16498_v16  ;;  %v16505_v16 = vunpack.c.h.bf16 %v11576_v63 }
 0x54e   : > { %2243 = vrot.lane.b32.xlu1 %v11763_v20, %s9837_s2 }
 0x550   : > { %2325 = vadd.xlane.f32.xlu0 %v2309_v57  ;;  %v16511_v57 = vunpack.c.h.bf16 %v11552_v58 }
 0x552   : > { %v2315_v6 = vmul.f32 %v10892_v8, %v16511_v57 }
 0x554   : > { %2329 = vadd.xlane.f32.xlu0 %v2311_v14  ;;  %v16509_v14 = vunpack.c.h.bf16 %v11559_v18 }
 0x556   : > { %v2317_v9 = vmul.f32 %v10906_v17, %v16509_v14 }
 0x558   : > { %2331 = vadd.xlane.f32.xlu0 %v2312_v23  ;;  %v16508_v23 = vunpack.c.h.bf16 %v11566_v31 }
 0x55a   : > { %v2319_v24 = vmul.f32 %v10920_v32, %v16508_v23  ;;  %v2310_v32 = vmul.f32 %v10885_v5, %v16505_v16 }
 0x55c   : > { %2333 = vadd.xlane.f32.xlu0 %v2313_v22  ;;  %v16507_v22 = vunpack.c.h.bf16 %v11573_v28 }
 0x55e   : > { %v2321_v8 = vmul.f32 %v10934_v55, %v16507_v22 }
 0x560   : > { %2337 = vadd.xlane.f32.xlu0 %v2315_v6  ;;  %v16506_v6 = vunpack.c.h.bf16 %v11584_v7 }
 0x562   : > { %v2323_v17 = vmul.f32 %v10948_v30, %v16506_v6  ;;  %v16500_v30 = vunpack.c.h.bf16 %v11608_v25 }
 0x564   : > { %2341 = vadd.xlane.f32.xlu0 %v2317_v9  ;;  %v16504_v9 = vunpack.c.h.bf16 %v11587_v54  ;;  %v2318_v5 = vmul.f32 %v10927_v62, %v16500_v30 }
 0x566   : > { %v2314_v55 = vmul.f32 %v10899_v10, %v16504_v9 }
 0x568   : > { %2345 = vadd.xlane.f32.xlu0 %v2319_v24  ;;  %v16503_v24 = vunpack.c.h.bf16 %v11598_v35 }
 0x56c   : > { %2349 = vadd.xlane.f32.xlu0 %v2321_v8  ;;  %v2316_v8 = vmul.f32 %v10913_v56, %v16503_v24 }
 0x570   : > { %2353 = vadd.xlane.f32.xlu0 %v2323_v17  ;;  %v16499_v17 = vunpack.c.h.bf16 %v11615_v33 }
 0x572   : > { %2327 = vadd.xlane.f32.xlu1 %v2310_v32  ;;  %v2320_v10 = vmul.f32 %v10941_v59, %v16499_v17  ;;  %v16501_v32 = vunpack.c.h.bf16 %v11622_v29 }
 0x574   : > { %v2322_v56 = vmul.f32 %v10954_v52, %v16501_v32 }
 0x576   : > { %2335 = vadd.xlane.f32.xlu1 %v2314_v55  ;;  %v16502_v55 = vunpack.c.h.bf16 %v11629_v12 }
 0x578   : > { %v2324_v62 = vmul.f32 %v10961_v60, %v16502_v55 }
 0x57a   : > { %2339 = vadd.xlane.f32.xlu1 %v2316_v8 }
 0x57e   : > { %2343 = vadd.xlane.f32.xlu1 %v2318_v5 }
 0x582   : > { %2347 = vadd.xlane.f32.xlu1 %v2320_v10 }
 0x583   : > { %v11830_v8 = vpop.permute.xlu0 %2213 }
 0x586   : > { %2351 = vadd.xlane.f32.xlu1 %v2322_v56 }
 0x58a   : > { %2355 = vadd.xlane.f32.xlu1 %v2324_v62 }
 0x58f   : > { %v11832_v5 = vpop.permute.xlu0 %2221 }
 0x593   : > { %v11834_v59 = vpop.permute.xlu0 %2225 }
 0x597   : > { %v11836_v17 = vpop.permute.xlu0 %2229 }
 0x59b   : > { %v11840_v30 = vpop.permute.xlu0 %2233 }
 0x59f   : > { %v11844_v56 = vpop.permute.xlu0 %2237 }
 0x5a0   : > { %v11838_v10 = vpop.permute.xlu1 %2215 }
 0x5a3   : > { %v11848_v60 = vpop.permute.xlu0 %2241 }
 0x5a4   : > { %v11842_v52 = vpop.permute.xlu1 %2217 }
 0x5a8   : > { %v11846_v32 = vpop.permute.xlu1 %2219 }
 0x5ac   : > { %v11850_v62 = vpop.permute.xlu1 %2223 }
 0x5b0   : > { %v11858_v16 = vpop.permute.xlu1 %2227 }
 0x5b4   : > { %v11860_v22 = vpop.permute.xlu1 %2231 }
 0x5b8   : > { %v11872_v57 = vpop.permute.xlu1 %2235 }
 0x5dd   : > { %v2326_v55 = vpop.xlane.xlu0 %2325 }
 0x5de   : > { %v11854_v24 = vsel %vm1173_vm2, %v2326_v55, -1e+30 }
 0x5df   : > { %2389 = vrot.lane.b32.xlu0 %v11854_v24, %s9838_s3 }
 0x5e1   : > { %v2330_v9 = vpop.xlane.xlu0 %2329 }
 0x5e5   : > { %v2332_v6 = vpop.xlane.xlu0 %2331 }
 0x5e9   : > { %v2334_v23 = vpop.xlane.xlu0 %2333 }
 0x5ea   : > { %v11864_v14 = vsel %vm1177_vm5, %v2334_v23, -1e+30  ;;  %v11882_v23 = vpop.permute.xlu1 %2239 }
 0x5eb   : > { %2397 = vrot.lane.b32.xlu0 %v11864_v14, %s9838_s3 }
 0x5ed   : > { %v2338_v55 = vpop.xlane.xlu0 %2337 }
 0x5ee   : > { %v11870_v0 = vsel %vm1179_vm7, %v2338_v55, -1e+30 }
 0x5ef   : > { %2401 = vrot.lane.b32.xlu0 %v11870_v0, %s9838_s3 }
 0x5f1   : > { %v2342_v19 = vpop.xlane.xlu0 %2341 }
 0x5f2   : > { %v11878_v3 = vsel %vm1181_vm9, %v2342_v19, -1e+30  ;;  %v11894_v19 = vpop.permute.xlu1 %2243 }
 0x5f3   : > { %2405 = vrot.lane.b32.xlu0 %v11878_v3, %s9838_s3 }
 0x5f5   : > { %v2346_v12 = vpop.xlane.xlu0 %2345 }
 0x5f6   : > { %v11886_v55 = vsel %vm1183_vm11, %v2346_v12, -1e+30 }
 0x5f7   : > { %16992 = vst [vmem:[#allocation295_spill] sm:$0xff] %v11886_v55  ;;  %2409 = vrot.lane.b32.xlu0 %v11886_v55, %s9838_s3 }
 0x5f9   : > { %v2350_v29 = vpop.xlane.xlu0 %2349 }
 0x5fa   : > { %v11892_v33 = vsel %vm1185_vm13, %v2350_v29, -1e+30  ;;  %v11912_v29 = vsel %vm1175_vm3, %v2330_v9, -1e+30 }
 0x5fb   : > { %16993 = vst [vmem:[#allocation296_spill] sm:$0xff] %v11892_v33  ;;  %2413 = vrot.lane.b32.xlu0 %v11892_v33, %s9838_s3 }
 0x5fd   : > { %v2354_v25 = vpop.xlane.xlu0 %2353 }
 0x5fe   : > { %v11900_v35 = vsel %vm1187_vm15, %v2354_v25, -1e+30  ;;  %v11918_v25 = vsel %vm1176_vm4, %v2332_v6, -1e+30 }
 0x5ff   : > { %16994 = vst [vmem:[#allocation297_spill] sm:$0xff] %v11900_v35  ;;  %v2328_v12 = vpop.xlane.xlu1 %2327  ;;  %2417 = vrot.lane.b32.xlu0 %v11900_v35, %s9838_s3  ;;  %v16999_v35 = vld [vmem:[#allocation220_spill] sm:$0xff] }
 0x600   : > { %v11906_v54 = vsel %vm1174_vm1, %v2328_v12, -1e+30 }
 0x601   : > { %2391 = vrot.lane.b32.xlu1 %v11906_v54, %s9838_s3 }
 0x603   : > { %v2336_v13 = vpop.xlane.xlu1 %2335 }
 0x604   : > { %v11924_v12 = vsel %vm1178_vm6, %v2336_v13, -1e+30 }
 0x605   : > { %2393 = vrot.lane.b32.xlu1 %v11912_v29, %s9838_s3 }
 0x607   : > { %v2340_v63 = vpop.xlane.xlu1 %2339 }
 0x608   : > { %v11930_v9 = vsel %vm1180_vm8, %v2340_v63, -1e+30 }
 0x609   : > { %2395 = vrot.lane.b32.xlu1 %v11918_v25, %s9838_s3 }
 0x60b   : > { %v2344_v7 = vpop.xlane.xlu1 %2343 }
 0x60c   : > { %v11936_v6 = vsel %vm1182_vm10, %v2344_v7, -1e+30 }
 0x60d   : > { %2399 = vrot.lane.b32.xlu1 %v11924_v12, %s9838_s3 }
 0x60f   : > { %v2348_v28 = vpop.xlane.xlu1 %2347 }
 0x610   : > { %v11942_v31 = vsel %vm1184_vm12, %v2348_v28, -1e+30  ;;  %v11961_v28 = vsel %vm1173_vm2, %v10424_v15, -1e+30  ;;  %v11978_v15 = vsel %vm1174_vm1, %v17001_v48, -1e+30 }
 0x611   : > { %2403 = vrot.lane.b32.xlu1 %v11930_v9, %s9838_s3  ;;  %16995 = vst [vmem:[#allocation298_spill] sm:$0xff] %v11942_v31  ;;  %16998 = vst [vmem:[#allocation301_spill] sm:$0xff] %v11961_v28  ;;  %v17015_v48 = vld [vmem:[#allocation112_spill] sm:$0xff] }
 0x612   : > { %17002 = vst [vmem:[#allocation220_spill] sm:$0xff] %v11978_v15 }
 0x613   : > { %v2352_v13 = vpop.xlane.xlu1 %2351 }
 0x614   : > { %v11948_v63 = vsel %vm1186_vm14, %v2352_v13, -1e+30  ;;  %v1205_v13 = vmax.f32 %v10392_v27, %v11961_v28  ;;  %v17063_v27 = vld [vmem:[#allocation76_spill] sm:$0xff] }
 0x615   : > { %2407 = vrot.lane.b32.xlu1 %v11936_v6, %s9838_s3  ;;  %16996 = vst [vmem:[#allocation299_spill] sm:$0xff] %v11948_v63 }
 0x616   : > { %v1381_v58 = vmax.f32 %v1205_v13, %v10728_v61 }
 0x617   : > { %v2356_v18 = vpop.xlane.xlu1 %2355 }
 0x618   : > { %v11954_v7 = vsel %vm1188_vm0, %v2356_v18, -1e+30  ;;  %v1557_v26 = vmax.f32 %v1381_v58, %v10966_v50  ;;  %v17003_v50 = vld [vmem:[#allocation51_spill] sm:$0xff] }
 0x619   : > { %2411 = vrot.lane.b32.xlu1 %v11942_v31, %s9838_s3  ;;  %16997 = vst [vmem:[#allocation300_spill] sm:$0xff] %v11954_v7  ;;  %v1206_v61 = vmax.f32 %v17003_v50, %v11978_v15  ;;  %v17029_v50 = vld [vmem:[#allocation113_spill] sm:$0xff] }
 0x61a   : > { %v1733_v53 = vmax.f32 %v1557_v26, %v11206_v1  ;;  %v17004_v1 = vld [vmem:[#allocation66_spill] sm:$0xff] }
 0x61b   : > { %v11985_v58 = vsel %vm1175_vm3, %v17004_v1, -1e+30 }
 0x61c   : > { %v1909_v18 = vmax.f32 %v1733_v53, %v16999_v35  ;;  %v17006_v35 = vld [vmem:[#allocation111_spill] sm:$0xff]  ;;  %v17009_v53 = vld [vmem:[#allocation48_spill] sm:$0xff] }
 0x61d   : > { %2415 = vrot.lane.b32.xlu1 %v11948_v63, %s9838_s3  ;;  %v17000_v63 = vld [vmem:[#allocation268_spill] sm:$0xff]  ;;  %v1207_v49 = vmax.f32 %v17009_v53, %v11985_v58 }
 0x61e   : > { %v2085_v33 = vmax.f32 %v1909_v18, %v17000_v63  ;;  %17005 = vst [vmem:[#allocation268_spill] sm:$0xff] %v11985_v58  ;;  %v12004_v18 = vsel %vm1178_vm6, %v17013_v45, -1e+30  ;;  %v17018_v58 = vld [vmem:[#allocation53_spill] sm:$0xff]  ;;  %v17024_v45 = vld [vmem:[#allocation223_spill] sm:$0xff] }
 0x61f   : > { %17014 = vst [vmem:[#allocation111_spill] sm:$0xff] %v12004_v18 }
 0x621   : > { %2419 = vrot.lane.b32.xlu1 %v11954_v7, %s9838_s3  ;;  %v2261_v7 = vmax.f32 %v2085_v33, %v11830_v8  ;;  %v1382_v33 = vmax.f32 %v1206_v61, %v17006_v35  ;;  %v17010_v8 = vld [vmem:[#allocation68_spill] sm:$0xff]  ;;  %v1383_v61 = vmax.f32 %v1207_v49, %v17015_v48  ;;  %v17017_v35 = vld [vmem:[#allocation50_spill] sm:$0xff] }
 0x622   : > { %v11998_v63 = vsel %vm1177_vm5, %v17010_v8, -1e+30  ;;  %v12015_v8 = vsel %vm1180_vm8, %v17019_v40, -1e+30  ;;  %v17025_v48 = vld [vmem:[#allocation52_spill] sm:$0xff]  ;;  %v17028_v40 = vld [vmem:[#allocation114_spill] sm:$0xff] }
 0x623   : > { %17011 = vst [vmem:[#allocation66_spill] sm:$0xff] %v11998_v63  ;;  %v1209_v53 = vmax.f32 %v17018_v58, %v11998_v63 }
 0x625   : > { %v1385_v63 = vmax.f32 %v1209_v53, %v17029_v50  ;;  %v17037_v50 = vld [vmem:[#allocation143_spill] sm:$0xff] }
 0x627   : > { %v1561_v53 = vmax.f32 %v1385_v63, %v17037_v50  ;;  %v17044_v63 = vld [vmem:[#allocation189_spill] sm:$0xff] }
 0x629   : > { %v1737_v50 = vmax.f32 %v1561_v53, %v17044_v63  ;;  %v17053_v63 = vld [vmem:[#allocation221_spill] sm:$0xff] }
 0x651   : > { %v2390_v31 = vpop.permute.xlu0 %2389 }
 0x652   : > { %v11971_v55 = vmax.f32 %v2261_v7, %v2390_v31  ;;  %v17007_v31 = vld [vmem:[#allocation65_spill] sm:$0xff]  ;;  %v17012_v7 = vld [vmem:[#allocation142_spill] sm:$0xff] }
 0x653   : > { %v11991_v26 = vsel %vm1176_vm4, %v17007_v31, -1e+30  ;;  %v1558_v13 = vmax.f32 %v1382_v33, %v17012_v7  ;;  %17020 = vst [vmem:[#allocation65_spill] sm:$0xff] %v12015_v8  ;;  %v17021_v33 = vld [vmem:[#allocation70_spill] sm:$0xff]  ;;  %v17023_v7 = vld [vmem:[#allocation144_spill] sm:$0xff] }
 0x654   : > { %2581 = vrot.lane.b32.xlu0 %v11971_v55, %s9839_s14  ;;  %17008 = vst [vmem:[#allocation64_spill] sm:$0xff] %v11991_v26  ;;  %v1208_v31 = vmax.f32 %v17017_v35, %v11991_v26  ;;  %v12020_v39 = vsel %vm1179_vm7, %v17021_v33, -1e+30  ;;  %v1559_v49 = vmax.f32 %v1383_v61, %v17023_v7  ;;  %v17026_v26 = vld [vmem:[#allocation71_spill] sm:$0xff]  ;;  %v17031_v61 = vld [vmem:[#allocation54_spill] sm:$0xff] }
 0x655   : > { %v1734_v1 = vmax.f32 %v1558_v13, %v17016_v42  ;;  %17022 = vst [vmem:[#allocation68_spill] sm:$0xff] %v12020_v39  ;;  %v1210_v42 = vmax.f32 %v17025_v48, %v12004_v18  ;;  %v12029_v35 = vsel %vm1182_vm10, %v17026_v26, -1e+30  ;;  %v17032_v7 = vld [vmem:[#allocation55_spill] sm:$0xff]  ;;  %v17033_v18 = vld [vmem:[#allocation72_spill] sm:$0xff]  ;;  %v17035_v26 = vld [vmem:[#allocation73_spill] sm:$0xff] }
 0x656   : > { %17027 = vst [vmem:[#allocation142_spill] sm:$0xff] %v12029_v35  ;;  %v1384_v15 = vmax.f32 %v1208_v31, %v17028_v40  ;;  %v1735_v33 = vmax.f32 %v1559_v49, %v17030_v2  ;;  %v12042_v36 = vsel %vm1181_vm9, %v17033_v18, -1e+30  ;;  %v12047_v31 = vsel %vm1184_vm12, %v17035_v26, -1e+30  ;;  %v17038_v49 = vld [vmem:[#allocation146_spill] sm:$0xff] }
 0x657   : > { %v1910_v13 = vmax.f32 %v1734_v1, %v17024_v45  ;;  %v1212_v1 = vmax.f32 %v17031_v61, %v12015_v8  ;;  %v1211_v45 = vmax.f32 %v17032_v7, %v12020_v39  ;;  %17034 = vst [vmem:[#allocation67_spill] sm:$0xff] %v12042_v36  ;;  %17036 = vst [vmem:[#allocation112_spill] sm:$0xff] %v12047_v31  ;;  %v17040_v8 = vld [vmem:[#allocation56_spill] sm:$0xff]  ;;  %v17041_v48 = vld [vmem:[#allocation74_spill] sm:$0xff] }
 0x658   : > { %v1214_v61 = vmax.f32 %v17040_v8, %v12029_v35  ;;  %v12058_v44 = vsel %vm1183_vm11, %v17041_v48, -1e+30  ;;  %v17042_v18 = vld [vmem:[#allocation116_spill] sm:$0xff]  ;;  %v17043_v26 = vld [vmem:[#allocation115_spill] sm:$0xff]  ;;  %v1216_v48 = vmax.f32 %v17048_v34, %v12047_v31  ;;  %v17057_v34 = vld [vmem:[#allocation117_spill] sm:$0xff] }
 0x659   : > { %v2086_v58 = vmax.f32 %v1910_v13, %v11644_v4  ;;  %v1560_v4 = vmax.f32 %v1384_v15, %v17038_v49  ;;  %v17039_v13 = vld [vmem:[#allocation225_spill] sm:$0xff]  ;;  %v1386_v37 = vmax.f32 %v1210_v42, %v17042_v18  ;;  %v1387_v39 = vmax.f32 %v1211_v45, %v17043_v26  ;;  %v17045_v15 = vld [vmem:[#allocation194_spill] sm:$0xff]  ;;  %v17049_v8 = vld [vmem:[#allocation75_spill] sm:$0xff] }
 0x65a   : > { %v1911_v40 = vmax.f32 %v1735_v33, %v17039_v13  ;;  %v17046_v33 = vld [vmem:[#allocation272_spill] sm:$0xff]  ;;  %v12074_v42 = vsel %vm1186_vm14, %v17049_v8, -1e+30  ;;  %v17051_v45 = vld [vmem:[#allocation145_spill] sm:$0xff]  ;;  %v1388_v8 = vmax.f32 %v1212_v1, %v17056_v46  ;;  %v12098_v1 = vsel %vm1185_vm13, %v17063_v27, -1e+30 }
 0x65b   : > { %v2262_v2 = vmax.f32 %v2086_v58, %v11838_v10  ;;  %v1736_v49 = vmax.f32 %v1560_v4, %v17045_v15  ;;  %v17047_v58 = vld [vmem:[#allocation57_spill] sm:$0xff]  ;;  %17050 = vst [vmem:[#allocation190_spill] sm:$0xff] %v12074_v42  ;;  %v1563_v18 = vmax.f32 %v1387_v39, %v17051_v45  ;;  %v17052_v26 = vld [vmem:[#allocation148_spill] sm:$0xff]  ;;  %v17058_v39 = vld [vmem:[#allocation191_spill] sm:$0xff] }
 0x65c   : > { %v2087_v13 = vmax.f32 %v1911_v40, %v17046_v33  ;;  %v1213_v35 = vmax.f32 %v17047_v58, %v12042_v36  ;;  %v1562_v4 = vmax.f32 %v1386_v37, %v17052_v26  ;;  %v1913_v40 = vmax.f32 %v1737_v50, %v17053_v63  ;;  %v17055_v33 = vld [vmem:[#allocation59_spill] sm:$0xff]  ;;  %v17059_v37 = vld [vmem:[#allocation196_spill] sm:$0xff]  ;;  %v17060_v50 = vld [vmem:[#allocation269_spill] sm:$0xff] }
 0x65d   : > { %v2398_v47 = vpop.permute.xlu0 %2397  ;;  %v1215_v31 = vmax.f32 %v17055_v33, %v12058_v44  ;;  %v1739_v45 = vmax.f32 %v1563_v18, %v17058_v39  ;;  %v17065_v18 = vld [vmem:[#allocation150_spill] sm:$0xff] }
 0x65e   : > { %v2263_v15 = vmax.f32 %v2087_v13, %v11842_v52  ;;  %v1389_v36 = vmax.f32 %v1213_v35, %v17057_v34  ;;  %v1738_v26 = vmax.f32 %v1562_v4, %v17059_v37  ;;  %v2089_v63 = vmax.f32 %v1913_v40, %v17060_v50  ;;  %v17062_v13 = vld [vmem:[#allocation60_spill] sm:$0xff]  ;;  %v17064_v35 = vld [vmem:[#allocation147_spill] sm:$0xff]  ;;  %v17066_v39 = vld [vmem:[#allocation222_spill] sm:$0xff] }
 0x65f   : > { %v1218_v28 = vmax.f32 %v17062_v13, %v12074_v42  ;;  %v1564_v46 = vmax.f32 %v1388_v8, %v17065_v18  ;;  %v1915_v4 = vmax.f32 %v1739_v45, %v17066_v39  ;;  %v17067_v37 = vld [vmem:[#allocation229_spill] sm:$0xff]  ;;  %v1391_v27 = vmax.f32 %v1215_v31, %v17069_v11  ;;  %v17072_v45 = vld [vmem:[#allocation270_spill] sm:$0xff]  ;;  %v17076_v31 = vld [vmem:[#allocation152_spill] sm:$0xff] }
 0x660   : > { %v1565_v34 = vmax.f32 %v1389_v36, %v17064_v35  ;;  %v1914_v40 = vmax.f32 %v1738_v26, %v17067_v37  ;;  %v17071_v36 = vld [vmem:[#allocation198_spill] sm:$0xff]  ;;  %v17073_v26 = vld [vmem:[#allocation276_spill] sm:$0xff] }
 0x661   : > { %v2402_v53 = vpop.permute.xlu0 %2401  ;;  %v1740_v35 = vmax.f32 %v1564_v46, %v17071_v36  ;;  %v2091_v39 = vmax.f32 %v1915_v4, %v17072_v45  ;;  %v17078_v46 = vld [vmem:[#allocation78_spill] sm:$0xff]  ;;  %v17079_v4 = vld [vmem:[#allocation231_spill] sm:$0xff]  ;;  %v17083_v45 = vld [vmem:[#allocation200_spill] sm:$0xff] }
 0x662   : > { %v2090_v37 = vmax.f32 %v1914_v40, %v17073_v26  ;;  %v12126_v36 = vsel %vm1187_vm15, %v17078_v46, -1e+30 }
 0x663   : > { %v1916_v40 = vmax.f32 %v1740_v35, %v17079_v4  ;;  %v17084_v35 = vld [vmem:[#allocation271_spill] sm:$0xff] }
 0x664   : > { %v17087_v4 = vld [vmem:[#allocation151_spill] sm:$0xff] }
 0x665   : > { %v2406_v8 = vpop.permute.xlu0 %2405 }
 0x673   : > { %v2392_v7 = vpop.permute.xlu1 %2391 }
 0x674   : > { %v12065_v10 = vmax.f32 %v2262_v2, %v2392_v7  ;;  %v17054_v7 = vld [vmem:[#allocation227_spill] sm:$0xff] }
 0x675   : > { %v1912_v2 = vmax.f32 %v1736_v49, %v17054_v7  ;;  %v17061_v49 = vld [vmem:[#allocation274_spill] sm:$0xff] }
 0x676   : > { %2583 = vrot.lane.b32.xlu1 %v12065_v10, %s9839_s14 }
 0x677   : > { %v2394_v58 = vpop.permute.xlu1 %2393  ;;  %v2088_v7 = vmax.f32 %v1912_v2, %v17061_v49  ;;  %v2265_v2 = vmax.f32 %v2089_v63, %v11832_v5  ;;  %v17070_v49 = vld [vmem:[#allocation193_spill] sm:$0xff] }
 0x678   : > { %v12091_v52 = vmax.f32 %v2263_v15, %v2394_v58  ;;  %v17068_v15 = vld [vmem:[#allocation120_spill] sm:$0xff]  ;;  %v1741_v42 = vmax.f32 %v1565_v34, %v17070_v49  ;;  %v17074_v63 = vld [vmem:[#allocation61_spill] sm:$0xff] }
 0x679   : > { %v2264_v58 = vmax.f32 %v2088_v7, %v11846_v32  ;;  %v1390_v50 = vmax.f32 %v1214_v61, %v17068_v15  ;;  %v12114_v5 = vmax.f32 %v2265_v2, %v2398_v47  ;;  %v1217_v7 = vmax.f32 %v17074_v63, %v12098_v1  ;;  %v17075_v61 = vld [vmem:[#allocation149_spill] sm:$0xff]  ;;  %v17077_v34 = vld [vmem:[#allocation224_spill] sm:$0xff] }
 0x67a   : > { %2585 = vrot.lane.b32.xlu0 %v12091_v52, %s9839_s14  ;;  %v1567_v15 = vmax.f32 %v1391_v27, %v17075_v61  ;;  %v1917_v49 = vmax.f32 %v1741_v42, %v17077_v34  ;;  %v2267_v47 = vmax.f32 %v2091_v39, %v11834_v59  ;;  %v2266_v2 = vmax.f32 %v2090_v37, %v11850_v62  ;;  %v17081_v42 = vld [vmem:[#allocation121_spill] sm:$0xff]  ;;  %v17085_v59 = vld [vmem:[#allocation278_spill] sm:$0xff]  ;;  %v17086_v34 = vld [vmem:[#allocation63_spill] sm:$0xff] }
 0x67b   : > { %v2396_v18 = vpop.permute.xlu1 %2395  ;;  %v1566_v11 = vmax.f32 %v1390_v50, %v17076_v31  ;;  %v1393_v27 = vmax.f32 %v1217_v7, %v17081_v42  ;;  %v2092_v39 = vmax.f32 %v1916_v40, %v17085_v59  ;;  %v1219_v46 = vmax.f32 %v17086_v34, %v12126_v36  ;;  %v17089_v42 = vld [vmem:[#allocation226_spill] sm:$0xff]  ;;  %v17091_v40 = vld [vmem:[#allocation233_spill] sm:$0xff] }
 0x67c   : > { %v12116_v32 = vmax.f32 %v2264_v58, %v2396_v18  ;;  %v17080_v58 = vld [vmem:[#allocation122_spill] sm:$0xff]  ;;  %v17082_v18 = vld [vmem:[#allocation195_spill] sm:$0xff]  ;;  %v2093_v31 = vmax.f32 %v1917_v49, %v17084_v35  ;;  %v12141_v62 = vmax.f32 %v2267_v47, %v2402_v53 }
 0x67d   : > { %v1392_v50 = vmax.f32 %v1216_v48, %v17080_v58  ;;  %v1743_v51 = vmax.f32 %v1567_v15, %v17082_v18  ;;  %v1742_v26 = vmax.f32 %v1566_v11, %v17083_v45  ;;  %v1569_v48 = vmax.f32 %v1393_v27, %v17087_v4  ;;  %v17088_v58 = vld [vmem:[#allocation154_spill] sm:$0xff]  ;;  %v2410_v18 = vpop.permute.xlu0 %2409  ;;  %v17090_v11 = vld [vmem:[#allocation77_spill] sm:$0xff] }
 0x67e   : > { %2587 = vrot.lane.b32.xlu1 %v12116_v32, %s9839_s14  ;;  %2589 = vrot.lane.b32.xlu0 %v12114_v5, %s9839_s14  ;;  %v12153_v49 = vsel %vm1188_vm0, %v17090_v11, -1e+30  ;;  %v2269_v47 = vmax.f32 %v2093_v31, %v11836_v17  ;;  %v17095_v35 = vld [vmem:[#allocation202_spill] sm:$0xff]  ;;  %v17097_v17 = vld [vmem:[#allocation280_spill] sm:$0xff] }
 0x67f   : > { %v2400_v61 = vpop.permute.xlu1 %2399  ;;  %v1568_v7 = vmax.f32 %v1392_v50, %v17088_v58  ;;  %v1919_v15 = vmax.f32 %v1743_v51, %v17089_v42  ;;  %v1918_v53 = vmax.f32 %v1742_v26, %v17091_v40  ;;  %v17092_v50 = vld [vmem:[#allocation124_spill] sm:$0xff]  ;;  %v17093_v51 = vld [vmem:[#allocation123_spill] sm:$0xff]  ;;  %v17096_v26 = vld [vmem:[#allocation273_spill] sm:$0xff] }
 0x680   : > { %v12143_v37 = vmax.f32 %v2266_v2, %v2400_v61  ;;  %v2268_v2 = vmax.f32 %v2092_v39, %v11858_v16  ;;  %v1394_v27 = vmax.f32 %v1218_v28, %v17092_v50  ;;  %v1395_v45 = vmax.f32 %v1219_v46, %v17093_v51  ;;  %v17094_v61 = vld [vmem:[#allocation197_spill] sm:$0xff]  ;;  %v17098_v42 = vld [vmem:[#allocation62_spill] sm:$0xff]  ;;  %v17100_v50 = vld [vmem:[#allocation156_spill] sm:$0xff] }
 0x681   : > { %v1745_v43 = vmax.f32 %v1569_v48, %v17094_v61  ;;  %v1744_v59 = vmax.f32 %v1568_v7, %v17095_v35  ;;  %v2095_v58 = vmax.f32 %v1919_v15, %v17096_v26  ;;  %v2094_v31 = vmax.f32 %v1918_v53, %v17097_v17  ;;  %v17099_v40 = vld [vmem:[#allocation153_spill] sm:$0xff]  ;;  %v17101_v51 = vld [vmem:[#allocation228_spill] sm:$0xff]  ;;  %v17102_v61 = vld [vmem:[#allocation234_spill] sm:$0xff] }
 0x682   : > { %2591 = vrot.lane.b32.xlu1 %v12143_v37, %s9839_s14  ;;  %2593 = vrot.lane.b32.xlu0 %v12141_v62, %s9839_s14  ;;  %v12168_v16 = vmax.f32 %v2269_v47, %v2406_v8  ;;  %v1220_v11 = vmax.f32 %v17098_v42, %v12153_v49  ;;  %v1571_v28 = vmax.f32 %v1395_v45, %v17099_v40  ;;  %v17103_v8 = vld [vmem:[#allocation126_spill] sm:$0xff]  ;;  %v17104_v47 = vld [vmem:[#allocation199_spill] sm:$0xff]  ;;  %v17107_v17 = vld [vmem:[#allocation281_spill] sm:$0xff] }
 0x683   : > { %v2404_v4 = vpop.permute.xlu1 %2403  ;;  %v1570_v46 = vmax.f32 %v1394_v27, %v17100_v50  ;;  %v1921_v48 = vmax.f32 %v1745_v43, %v17101_v51  ;;  %v1920_v7 = vmax.f32 %v1744_v59, %v17102_v61  ;;  %v2271_v35 = vmax.f32 %v2095_v58, %v11840_v30  ;;  %v17105_v45 = vld [vmem:[#allocation203_spill] sm:$0xff]  ;;  %v17109_v50 = vld [vmem:[#allocation230_spill] sm:$0xff]  ;;  %v17110_v61 = vld [vmem:[#allocation236_spill] sm:$0xff] }
 0x684   : > { %v12170_v39 = vmax.f32 %v2268_v2, %v2404_v4  ;;  %v2270_v15 = vmax.f32 %v2094_v31, %v11860_v22  ;;  %v1396_v53 = vmax.f32 %v1220_v11, %v17103_v8  ;;  %v1747_v2 = vmax.f32 %v1571_v28, %v17104_v47  ;;  %v2414_v4 = vpop.permute.xlu0 %2413  ;;  %v17106_v26 = vld [vmem:[#allocation275_spill] sm:$0xff]  ;;  %v17108_v31 = vld [vmem:[#allocation157_spill] sm:$0xff]  ;;  %v17113_v8 = vld [vmem:[#allocation284_spill] sm:$0xff] }
 0x685   : > { %v1746_v27 = vmax.f32 %v1570_v46, %v17105_v45  ;;  %v2097_v59 = vmax.f32 %v1921_v48, %v17106_v26  ;;  %v2096_v30 = vmax.f32 %v1920_v7, %v17107_v17  ;;  %v12189_v58 = vmax.f32 %v2271_v35, %v2410_v18  ;;  %v17111_v18 = vld [vmem:[#allocation205_spill] sm:$0xff]  ;;  %v17114_v45 = vld [vmem:[#allocation238_spill] sm:$0xff] }
 0x686   : > { %2595 = vrot.lane.b32.xlu1 %v12170_v39, %s9839_s14  ;;  %2597 = vrot.lane.b32.xlu0 %v12168_v16, %s9839_s14  ;;  %v1572_v40 = vmax.f32 %v1396_v53, %v17108_v31  ;;  %v1923_v51 = vmax.f32 %v1747_v2, %v17109_v50  ;;  %v17112_v35 = vld [vmem:[#allocation277_spill] sm:$0xff] }
 0x687   : > { %v2408_v43 = vpop.permute.xlu1 %2407  ;;  %v1922_v11 = vmax.f32 %v1746_v27, %v17110_v61  ;;  %v2273_v28 = vmax.f32 %v2097_v59, %v11844_v56  ;;  %v2272_v46 = vmax.f32 %v2096_v30, %v11872_v57  ;;  %v17117_v61 = vld [vmem:[#allocation79_spill] sm:$0xff] }
 0x688   : > { %v12191_v22 = vmax.f32 %v2270_v15, %v2408_v43  ;;  %v1748_v48 = vmax.f32 %v1572_v40, %v17111_v18  ;;  %v2099_v15 = vmax.f32 %v1923_v51, %v17112_v35  ;;  %v2418_v56 = vpop.permute.xlu0 %2417  ;;  %v17118_v18 = vld [vmem:[#allocation81_spill] sm:$0xff] }
 0x689   : > { %v2098_v53 = vmax.f32 %v1922_v11, %v17113_v8  ;;  %v12205_v47 = vmax.f32 %v2273_v28, %v2414_v4  ;;  %v17119_v8 = vld [vmem:[#allocation82_spill] sm:$0xff] }
 0x68a   : > { %2599 = vrot.lane.b32.xlu1 %v12191_v22, %s9839_s14  ;;  %2601 = vrot.lane.b32.xlu0 %v12189_v58, %s9839_s14  ;;  %v1924_v57 = vmax.f32 %v1748_v48, %v17114_v45  ;;  %v2275_v27 = vmax.f32 %v2099_v15, %v11848_v60 }
 0x68b   : > { %v2412_v7 = vpop.permute.xlu1 %2411  ;;  %v2274_v43 = vmax.f32 %v2098_v53, %v11882_v23 }
 0x68c   : > { %v12207_v2 = vmax.f32 %v2272_v46, %v2412_v7  ;;  %v2100_v59 = vmax.f32 %v1924_v57, %v11692_v41  ;;  %v12217_v4 = vmax.f32 %v2275_v27, %v2418_v56  ;;  %v17115_v41 = vld [vmem:[#allocation80_spill] sm:$0xff]  ;;  %v17120_v56 = vld [vmem:[#allocation83_spill] sm:$0xff] }
 0x68e   : > { %2603 = vrot.lane.b32.xlu1 %v12207_v2, %s9839_s14  ;;  %2605 = vrot.lane.b32.xlu0 %v12205_v47, %s9839_s14  ;;  %v2276_v30 = vmax.f32 %v2100_v59, %v11894_v19  ;;  %v17121_v59 = vld [vmem:[#allocation84_spill] sm:$0xff] }
 0x68f   : > { %v2416_v26 = vpop.permute.xlu1 %2415 }
 0x690   : > { %v12219_v17 = vmax.f32 %v2274_v43, %v2416_v26 }
 0x692   : > { %2607 = vrot.lane.b32.xlu1 %v12219_v17, %s9839_s14  ;;  %2609 = vrot.lane.b32.xlu0 %v12217_v4, %s9839_s14 }
 0x693   : > { %v2420_v60 = vpop.permute.xlu1 %2419 }
 0x694   : > { %v12226_v23 = vmax.f32 %v2276_v30, %v2420_v60  ;;  %v17122_v60 = vld [vmem:[#allocation85_spill] sm:$0xff] }
 0x696   : > { %2611 = vrot.lane.b32.xlu1 %v12226_v23, %s9839_s14 }
 0x6c6   : > { %v2582_v31 = vpop.permute.xlu0 %2581 }
 0x6c7   : > { %v2629_v40 = vsub.f32 %v17115_v41, %v2582_v31 }
 0x6c9   : > { %v2645_v50 = vmul.f32 1.442695, %v2629_v40 }
 0x6cb   : > { %9386 = vpow2.f32 %v2645_v50 }
 0x6d5   : > { %v12231_v51 = vpop.eup %9386 }
 0x6d6   : > { %17116 = vst [vmem:[#allocation69_spill] sm:$0xff] %v12231_v51  ;;  %2693 = vrot.lane.b32.xlu0 %v12231_v51, %s9832_s29  ;;  %v17161_v51 = vld [vmem:[#allocation128_spill] sm:$0xff] }
 0x6e8   : > { %v2584_v19 = vpop.permute.xlu1 %2583 }
 0x6e9   : > { %v2630_v11 = vsub.f32 %v17117_v61, %v2584_v19 }
 0x6eb   : > { %v2647_v28 = vmul.f32 1.442695, %v2630_v11  ;;  %v17124_v11 = vld [vmem:[#allocation86_spill] sm:$0xff] }
 0x6ec   : > { %v2586_v46 = vpop.permute.xlu0 %2585 }
 0x6ed   : > { %9388 = vpow2.f32 %v2647_v28  ;;  %v2631_v48 = vsub.f32 %v17118_v18, %v2586_v46  ;;  %v17125_v46 = vld [vmem:[#allocation87_spill] sm:$0xff] }
 0x6ef   : > { %v2649_v7 = vmul.f32 1.442695, %v2631_v48 }
 0x6f0   : > { %v2588_v35 = vpop.permute.xlu1 %2587  ;;  %v2590_v15 = vpop.permute.xlu0 %2589 }
 0x6f1   : > { %9390 = vpow2.f32 %v2649_v7  ;;  %v2632_v53 = vsub.f32 %v17119_v8, %v2588_v35  ;;  %v2633_v45 = vsub.f32 %v17120_v56, %v2590_v15 }
 0x6f3   : > { %v2651_v57 = vmul.f32 1.442695, %v2632_v53  ;;  %v2653_v27 = vmul.f32 1.442695, %v2633_v45  ;;  %v17127_v53 = vld [vmem:[#allocation88_spill] sm:$0xff]  ;;  %v17128_v45 = vld [vmem:[#allocation89_spill] sm:$0xff] }
 0x6f4   : > { %v2592_v43 = vpop.permute.xlu1 %2591  ;;  %v2594_v26 = vpop.permute.xlu0 %2593 }
 0x6f5   : > { %9392 = vpow2.f32 %v2651_v57  ;;  %v2634_v30 = vsub.f32 %v17121_v59, %v2592_v43  ;;  %v2635_v31 = vsub.f32 %v17122_v60, %v2594_v26 }
 0x6f6   : > { %9394 = vpow2.f32 %v2653_v27 }
 0x6f7   : > { %v12241_v41 = vpop.eup %9388  ;;  %v2655_v40 = vmul.f32 1.442695, %v2634_v30  ;;  %v2657_v50 = vmul.f32 1.442695, %v2635_v31  ;;  %v17131_v31 = vld [vmem:[#allocation90_spill] sm:$0xff] }
 0x6f8   : > { %17123 = vst [vmem:[#allocation70_spill] sm:$0xff] %v12241_v41  ;;  %2695 = vrot.lane.b32.xlu1 %v12241_v41, %s9832_s29  ;;  %v2596_v19 = vpop.permute.xlu1 %2595  ;;  %v2598_v61 = vpop.permute.xlu0 %2597 }
 0x6f9   : > { %9396 = vpow2.f32 %v2655_v40  ;;  %v2636_v28 = vsub.f32 %v17124_v11, %v2596_v19  ;;  %v2637_v18 = vsub.f32 %v17125_v46, %v2598_v61 }
 0x6fa   : > { %9398 = vpow2.f32 %v2657_v50  ;;  %v17132_v50 = vld [vmem:[#allocation91_spill] sm:$0xff] }
 0x6fb   : > { %v12247_v48 = vpop.eup %9390  ;;  %v2659_v7 = vmul.f32 1.442695, %v2636_v28  ;;  %v2661_v35 = vmul.f32 1.442695, %v2637_v18 }
 0x6fc   : > { %17126 = vst [vmem:[#allocation144_spill] sm:$0xff] %v12247_v48  ;;  %v2600_v15 = vpop.permute.xlu1 %2599  ;;  %2697 = vrot.lane.b32.xlu0 %v12247_v48, %s9832_s29  ;;  %v2602_v8 = vpop.permute.xlu0 %2601 }
 0x6fd   : > { %9400 = vpow2.f32 %v2659_v7  ;;  %v2638_v56 = vsub.f32 %v17127_v53, %v2600_v15  ;;  %v2639_v57 = vsub.f32 %v17128_v45, %v2602_v8  ;;  %v17136_v8 = vld [vmem:[#allocation93_spill] sm:$0xff] }
 0x6fe   : > { %9402 = vpow2.f32 %v2661_v35  ;;  %v17135_v35 = vld [vmem:[#allocation92_spill] sm:$0xff] }
 0x6ff   : > { %v12253_v27 = vpop.eup %9392  ;;  %v2663_v43 = vmul.f32 1.442695, %v2638_v56  ;;  %v2665_v26 = vmul.f32 1.442695, %v2639_v57 }
 0x700   : > { %17129 = vst [vmem:[#allocation223_spill] sm:$0xff] %v12253_v27  ;;  %v12255_v59 = vpop.eup %9394  ;;  %2699 = vrot.lane.b32.xlu1 %v12253_v27, %s9832_s29  ;;  %v2604_v30 = vpop.permute.xlu1 %2603 }
 0x701   : > { %17130 = vst [vmem:[#allocation71_spill] sm:$0xff] %v12255_v59  ;;  %v2606_v60 = vpop.permute.xlu0 %2605  ;;  %9404 = vpow2.f32 %v2663_v43  ;;  %v2640_v40 = vsub.f32 %v17131_v31, %v2604_v30  ;;  %2701 = vrot.lane.b32.xlu0 %v12255_v59, %s9832_s29  ;;  %v17139_v30 = vld [vmem:[#allocation94_spill] sm:$0xff]  ;;  %v17160_v59 = vld [vmem:[#allocation127_spill] sm:$0xff] }
 0x702   : > { %v2641_v19 = vsub.f32 %v17132_v50, %v2606_v60  ;;  %9406 = vpow2.f32 %v2665_v26 }
 0x703   : > { %v12263_v61 = vpop.eup %9396  ;;  %v2667_v11 = vmul.f32 1.442695, %v2640_v40 }
 0x704   : > { %17133 = vst [vmem:[#allocation114_spill] sm:$0xff] %v12263_v61  ;;  %v2669_v28 = vmul.f32 1.442695, %v2641_v19  ;;  %v12265_v46 = vpop.eup %9398  ;;  %2703 = vrot.lane.b32.xlu1 %v12263_v61, %s9832_s29  ;;  %v2608_v18 = vpop.permute.xlu1 %2607 }
 0x705   : > { %17134 = vst [vmem:[#allocation113_spill] sm:$0xff] %v12265_v46  ;;  %v2610_v7 = vpop.permute.xlu0 %2609  ;;  %9408 = vpow2.f32 %v2667_v11  ;;  %v2642_v15 = vsub.f32 %v17135_v35, %v2608_v18  ;;  %2705 = vrot.lane.b32.xlu0 %v12265_v46, %s9832_s29 }
 0x706   : > { %v2643_v53 = vsub.f32 %v17136_v8, %v2610_v7  ;;  %9410 = vpow2.f32 %v2669_v28 }
 0x707   : > { %v12273_v56 = vpop.eup %9400  ;;  %v2671_v45 = vmul.f32 1.442695, %v2642_v15 }
 0x708   : > { %17137 = vst [vmem:[#allocation192_spill] sm:$0xff] %v12273_v56  ;;  %v2673_v57 = vmul.f32 1.442695, %v2643_v53  ;;  %v12275_v43 = vpop.eup %9402  ;;  %2707 = vrot.lane.b32.xlu1 %v12273_v56, %s9832_s29  ;;  %v2612_v26 = vpop.permute.xlu1 %2611 }
 0x709   : > { %17138 = vst [vmem:[#allocation72_spill] sm:$0xff] %v12275_v43  ;;  %9412 = vpow2.f32 %v2671_v45  ;;  %v2644_v60 = vsub.f32 %v17139_v30, %v2612_v26  ;;  %2709 = vrot.lane.b32.xlu0 %v12275_v43, %s9832_s29  ;;  %v17159_v43 = vld [vmem:[#allocation125_spill] sm:$0xff] }
 0x70a   : > { %9414 = vpow2.f32 %v2673_v57 }
 0x70b   : > { %v12282_v31 = vpop.eup %9404  ;;  %v2675_v40 = vmul.f32 1.442695, %v2644_v60 }
 0x70c   : > { %17140 = vst [vmem:[#allocation73_spill] sm:$0xff] %v12282_v31  ;;  %v12284_v50 = vpop.eup %9406  ;;  %2711 = vrot.lane.b32.xlu1 %v12282_v31, %s9832_s29 }
 0x70d   : > { %17141 = vst [vmem:[#allocation143_spill] sm:$0xff] %v12284_v50  ;;  %9416 = vpow2.f32 %v2675_v40  ;;  %2713 = vrot.lane.b32.xlu0 %v12284_v50, %s9832_s29 }
 0x70f   : > { %v12290_v19 = vpop.eup %9408 }
 0x710   : > { %17142 = vst [vmem:[#allocation146_spill] sm:$0xff] %v12290_v19  ;;  %v12292_v11 = vpop.eup %9410  ;;  %2715 = vrot.lane.b32.xlu1 %v12290_v19, %s9832_s29 }
 0x711   : > { %17143 = vst [vmem:[#allocation225_spill] sm:$0xff] %v12292_v11  ;;  %2717 = vrot.lane.b32.xlu0 %v12292_v11, %s9832_s29 }
 0x713   : > { %v12298_v28 = vpop.eup %9412 }
 0x714   : > { %17144 = vst [vmem:[#allocation74_spill] sm:$0xff] %v12298_v28  ;;  %v12300_v18 = vpop.eup %9414  ;;  %2719 = vrot.lane.b32.xlu1 %v12298_v28, %s9832_s29 }
 0x715   : > { %17145 = vst [vmem:[#allocation116_spill] sm:$0xff] %v12300_v18  ;;  %2721 = vrot.lane.b32.xlu0 %v12300_v18, %s9832_s29 }
 0x717   : > { %v12306_v7 = vpop.eup %9416 }
 0x718   : > { %17146 = vst [vmem:[#allocation115_spill] sm:$0xff] %v12306_v7  ;;  %2723 = vrot.lane.b32.xlu1 %v12306_v7, %s9832_s29  ;;  %s16689_s29 = smov 7  }
 0x719   : > { %2757 = vrot.lane.b32.xlu0 %v11971_v55, %s9840_s18 }
 0x71c   : > { %2759 = vrot.lane.b32.xlu1 %v12065_v10, %s9840_s18 }
 0x71d   : > { %2761 = vrot.lane.b32.xlu0 %v12091_v52, %s9840_s18 }
 0x720   : > { %2763 = vrot.lane.b32.xlu1 %v12116_v32, %s9840_s18 }
 0x721   : > { %2765 = vrot.lane.b32.xlu0 %v12114_v5, %s9840_s18 }
 0x724   : > { %2767 = vrot.lane.b32.xlu1 %v12143_v37, %s9840_s18 }
 0x725   : > { %2769 = vrot.lane.b32.xlu0 %v12141_v62, %s9840_s18 }
 0x728   : > { %2771 = vrot.lane.b32.xlu1 %v12170_v39, %s9840_s18 }
 0x729   : > { %2773 = vrot.lane.b32.xlu0 %v12168_v16, %s9840_s18 }
 0x72c   : > { %2775 = vrot.lane.b32.xlu1 %v12191_v22, %s9840_s18 }
 0x72d   : > { %2777 = vrot.lane.b32.xlu0 %v12189_v58, %s9840_s18 }
 0x730   : > { %2779 = vrot.lane.b32.xlu1 %v12207_v2, %s9840_s18 }
 0x731   : > { %2781 = vrot.lane.b32.xlu0 %v12205_v47, %s9840_s18 }
 0x734   : > { %2783 = vrot.lane.b32.xlu1 %v12219_v17, %s9840_s18 }
 0x735   : > { %2785 = vrot.lane.b32.xlu0 %v12217_v4, %s9840_s18 }
 0x738   : > { %2787 = vrot.lane.b32.xlu1 %v12226_v23, %s9840_s18 }
 0x748   : > { %v12342_v35 = vpop.permute.xlu0 %2693 }
 0x749   : > { %17147 = vst [vmem:[#allocation189_spill] sm:$0xff] %v12342_v35 }
 0x76a   : > { %v12344_v15 = vpop.permute.xlu1 %2695 }
 0x76e   : > { %v12346_v8 = vpop.permute.xlu0 %2697 }
 0x772   : > { %v12348_v53 = vpop.permute.xlu1 %2699 }
 0x773   : > { %v12350_v45 = vpop.permute.xlu0 %2701 }
 0x776   : > { %v12352_v57 = vpop.permute.xlu1 %2703 }
 0x777   : > { %17148 = vst [vmem:[#allocation194_spill] sm:$0xff] %v12352_v57  ;;  %v12354_v26 = vpop.permute.xlu0 %2705 }
 0x778   : > { %17149 = vst [vmem:[#allocation272_spill] sm:$0xff] %v12354_v26 }
 0x77a   : > { %v12356_v30 = vpop.permute.xlu1 %2707 }
 0x77b   : > { %17150 = vst [vmem:[#allocation75_spill] sm:$0xff] %v12356_v30  ;;  %v12358_v60 = vpop.permute.xlu0 %2709 }
 0x77c   : > { %17151 = vst [vmem:[#allocation145_spill] sm:$0xff] %v12358_v60 }
 0x77e   : > { %v12360_v40 = vpop.permute.xlu1 %2711 }
 0x77f   : > { %17152 = vst [vmem:[#allocation148_spill] sm:$0xff] %v12360_v40  ;;  %v12362_v7 = vpop.permute.xlu0 %2713 }
 0x780   : > { %17153 = vst [vmem:[#allocation221_spill] sm:$0xff] %v12362_v7 }
 0x782   : > { %v12364_v18 = vpop.permute.xlu1 %2715 }
 0x783   : > { %17154 = vst [vmem:[#allocation227_spill] sm:$0xff] %v12364_v18  ;;  %v12366_v28 = vpop.permute.xlu0 %2717 }
 0x784   : > { %17155 = vst [vmem:[#allocation59_spill] sm:$0xff] %v12366_v28 }
 0x786   : > { %v12368_v11 = vpop.permute.xlu1 %2719 }
 0x787   : > { %17156 = vst [vmem:[#allocation118_spill] sm:$0xff] %v12368_v11  ;;  %v12370_v19 = vpop.permute.xlu0 %2721  ;;  %v17162_v11 = vld [vmem:[#allocation130_spill] sm:$0xff] }
 0x788   : > { %17157 = vst [vmem:[#allocation117_spill] sm:$0xff] %v12370_v19 }
 0x78a   : > { %v12372_v50 = vpop.permute.xlu1 %2723 }
 0x78b   : > { %17158 = vst [vmem:[#allocation191_spill] sm:$0xff] %v12372_v50  ;;  %v2758_v31 = vpop.permute.xlu0 %2757  ;;  %v17163_v50 = vld [vmem:[#allocation129_spill] sm:$0xff] }
 0x78c   : > { %v2805_v56 = vsub.f32 %v17159_v43, %v2758_v31  ;;  %v17164_v31 = vld [vmem:[#allocation132_spill] sm:$0xff] }
 0x78e   : > { %v2821_v46 = vmul.f32 1.442695, %v2805_v56  ;;  %v2760_v61 = vpop.permute.xlu1 %2759 }
 0x78f   : > { %v2806_v27 = vsub.f32 %v17160_v59, %v2760_v61  ;;  %v2762_v48 = vpop.permute.xlu0 %2761 }
 0x790   : > { %9418 = vpow2.f32 %v2821_v46  ;;  %v2807_v41 = vsub.f32 %v17161_v51, %v2762_v48  ;;  %v17165_v46 = vld [vmem:[#allocation131_spill] sm:$0xff] }
 0x791   : > { %v2823_v18 = vmul.f32 1.442695, %v2806_v27 }
 0x792   : > { %v2825_v7 = vmul.f32 1.442695, %v2807_v41  ;;  %v2764_v28 = vpop.permute.xlu1 %2763 }
 0x793   : > { %9420 = vpow2.f32 %v2823_v18  ;;  %v2808_v40 = vsub.f32 %v17162_v11, %v2764_v28  ;;  %v2766_v19 = vpop.permute.xlu0 %2765  ;;  %v17167_v11 = vld [vmem:[#allocation134_spill] sm:$0xff] }
 0x794   : > { %9422 = vpow2.f32 %v2825_v7  ;;  %v2809_v60 = vsub.f32 %v17163_v50, %v2766_v19  ;;  %v17168_v19 = vld [vmem:[#allocation133_spill] sm:$0xff] }
 0x795   : > { %v2827_v30 = vmul.f32 1.442695, %v2808_v40 }
 0x796   : > { %v2829_v43 = vmul.f32 1.442695, %v2809_v60  ;;  %v2768_v56 = vpop.permute.xlu1 %2767 }
 0x797   : > { %9424 = vpow2.f32 %v2827_v30  ;;  %v2810_v59 = vsub.f32 %v17164_v31, %v2768_v56  ;;  %v2770_v61 = vpop.permute.xlu0 %2769  ;;  %v17171_v31 = vld [vmem:[#allocation136_spill] sm:$0xff] }
 0x798   : > { %9426 = vpow2.f32 %v2829_v43  ;;  %v2811_v51 = vsub.f32 %v17165_v46, %v2770_v61  ;;  %v17172_v46 = vld [vmem:[#allocation135_spill] sm:$0xff] }
 0x799   : > { %v2831_v48 = vmul.f32 1.442695, %v2810_v59 }
 0x79a   : > { %v12381_v41 = vpop.eup %9418  ;;  %v2833_v27 = vmul.f32 1.442695, %v2811_v51  ;;  %v2772_v18 = vpop.permute.xlu1 %2771 }
 0x79b   : > { %17166 = vst [vmem:[#allocation196_spill] sm:$0xff] %v12381_v41  ;;  %9428 = vpow2.f32 %v2831_v48  ;;  %v2812_v28 = vsub.f32 %v17167_v11, %v2772_v18  ;;  %2869 = vrot.lane.b32.xlu0 %v12381_v41, %s9833_s15  ;;  %v2774_v50 = vpop.permute.xlu0 %2773 }
 0x79c   : > { %9430 = vpow2.f32 %v2833_v27  ;;  %v2813_v7 = vsub.f32 %v17168_v19, %v2774_v50  ;;  %v17175_v50 = vld [vmem:[#allocation138_spill] sm:$0xff] }
 0x79d   : > { %v12387_v30 = vpop.eup %9420  ;;  %v2835_v60 = vmul.f32 1.442695, %v2812_v28 }
 0x79e   : > { %17169 = vst [vmem:[#allocation269_spill] sm:$0xff] %v12387_v30  ;;  %v12389_v40 = vpop.eup %9422  ;;  %v2837_v43 = vmul.f32 1.442695, %v2813_v7  ;;  %2871 = vrot.lane.b32.xlu1 %v12387_v30, %s9833_s15  ;;  %v2776_v56 = vpop.permute.xlu1 %2775  ;;  %v17205_v30 = vld [vmem:[#allocation155_spill] sm:$0xff] }
 0x79f   : > { %17170 = vst [vmem:[#allocation274_spill] sm:$0xff] %v12389_v40  ;;  %9432 = vpow2.f32 %v2835_v60  ;;  %v2814_v59 = vsub.f32 %v17171_v31, %v2776_v56  ;;  %2873 = vrot.lane.b32.xlu0 %v12389_v40, %s9833_s15  ;;  %v2778_v61 = vpop.permute.xlu0 %2777  ;;  %v17176_v60 = vld [vmem:[#allocation137_spill] sm:$0xff] }
 0x7a0   : > { %9434 = vpow2.f32 %v2837_v43  ;;  %v2815_v51 = vsub.f32 %v17172_v46, %v2778_v61 }
 0x7a1   : > { %v12397_v48 = vpop.eup %9424  ;;  %v2839_v27 = vmul.f32 1.442695, %v2814_v59 }
 0x7a2   : > { %17173 = vst [vmem:[#allocation60_spill] sm:$0xff] %v12397_v48  ;;  %v12399_v18 = vpop.eup %9426  ;;  %v2841_v11 = vmul.f32 1.442695, %v2815_v51  ;;  %2875 = vrot.lane.b32.xlu1 %v12397_v48, %s9833_s15  ;;  %v2780_v28 = vpop.permute.xlu1 %2779  ;;  %v17179_v51 = vld [vmem:[#allocation140_spill] sm:$0xff] }
 0x7a3   : > { %17174 = vst [vmem:[#allocation76_spill] sm:$0xff] %v12399_v18  ;;  %9436 = vpow2.f32 %v2839_v27  ;;  %v2816_v19 = vsub.f32 %v17175_v50, %v2780_v28  ;;  %2877 = vrot.lane.b32.xlu0 %v12399_v18, %s9833_s15  ;;  %v2782_v7 = vpop.permute.xlu0 %2781 }
 0x7a4   : > { %9438 = vpow2.f32 %v2841_v11  ;;  %v2817_v43 = vsub.f32 %v17176_v60, %v2782_v7  ;;  %v17180_v11 = vld [vmem:[#allocation139_spill] sm:$0xff] }
 0x7a5   : > { %v12407_v56 = vpop.eup %9428  ;;  %v2843_v31 = vmul.f32 1.442695, %v2816_v19 }
 0x7a6   : > { %17177 = vst [vmem:[#allocation147_spill] sm:$0xff] %v12407_v56  ;;  %v12409_v59 = vpop.eup %9430  ;;  %v2845_v61 = vmul.f32 1.442695, %v2817_v43  ;;  %2879 = vrot.lane.b32.xlu1 %v12407_v56, %s9833_s15  ;;  %v2784_v46 = vpop.permute.xlu1 %2783 }
 0x7a7   : > { %17178 = vst [vmem:[#allocation150_spill] sm:$0xff] %v12409_v59  ;;  %9440 = vpow2.f32 %v2843_v31  ;;  %v2818_v27 = vsub.f32 %v17179_v51, %v2784_v46  ;;  %2881 = vrot.lane.b32.xlu0 %v12409_v59, %s9833_s15  ;;  %v2786_v28 = vpop.permute.xlu0 %2785  ;;  %v17183_v31 = vld [vmem:[#allocation141_spill] sm:$0xff] }
 0x7a8   : > { %9442 = vpow2.f32 %v2845_v61  ;;  %v2819_v50 = vsub.f32 %v17180_v11, %v2786_v28 }
 0x7a9   : > { %v12417_v7 = vpop.eup %9432  ;;  %v2847_v19 = vmul.f32 1.442695, %v2818_v27 }
 0x7aa   : > { %17181 = vst [vmem:[#allocation222_spill] sm:$0xff] %v12417_v7  ;;  %v12419_v60 = vpop.eup %9434  ;;  %v2849_v43 = vmul.f32 1.442695, %v2819_v50  ;;  %2883 = vrot.lane.b32.xlu1 %v12417_v7, %s9833_s15  ;;  %v2788_v56 = vpop.permute.xlu1 %2787 }
 0x7ab   : > { %17182 = vst [vmem:[#allocation229_spill] sm:$0xff] %v12419_v60  ;;  %9444 = vpow2.f32 %v2847_v19  ;;  %v2820_v46 = vsub.f32 %v17183_v31, %v2788_v56  ;;  %2885 = vrot.lane.b32.xlu0 %v12419_v60, %s9833_s15 }
 0x7ac   : > { %9446 = vpow2.f32 %v2849_v43 }
 0x7ad   : > { %v12426_v61 = vpop.eup %9436  ;;  %v2851_v51 = vmul.f32 1.442695, %v2820_v46 }
 0x7ae   : > { %17184 = vst [vmem:[#allocation120_spill] sm:$0xff] %v12426_v61  ;;  %v12428_v28 = vpop.eup %9438  ;;  %2887 = vrot.lane.b32.xlu1 %v12426_v61, %s9833_s15 }
 0x7af   : > { %17185 = vst [vmem:[#allocation119_spill] sm:$0xff] %v12428_v28  ;;  %9448 = vpow2.f32 %v2851_v51  ;;  %2889 = vrot.lane.b32.xlu0 %v12428_v28, %s9833_s15 }
 0x7b1   : > { %v12434_v27 = vpop.eup %9440 }
 0x7b2   : > { %17186 = vst [vmem:[#allocation193_spill] sm:$0xff] %v12434_v27  ;;  %v12436_v11 = vpop.eup %9442  ;;  %2891 = vrot.lane.b32.xlu1 %v12434_v27, %s9833_s15 }
 0x7b3   : > { %17187 = vst [vmem:[#allocation198_spill] sm:$0xff] %v12436_v11  ;;  %2893 = vrot.lane.b32.xlu0 %v12436_v11, %s9833_s15 }
 0x7b5   : > { %v12442_v56 = vpop.eup %9444 }
 0x7b6   : > { %17188 = vst [vmem:[#allocation270_spill] sm:$0xff] %v12442_v56  ;;  %v12444_v50 = vpop.eup %9446  ;;  %2895 = vrot.lane.b32.xlu1 %v12442_v56, %s9833_s15 }
 0x7b7   : > { %17189 = vst [vmem:[#allocation276_spill] sm:$0xff] %v12444_v50  ;;  %2897 = vrot.lane.b32.xlu0 %v12444_v50, %s9833_s15 }
 0x7b9   : > { %v12450_v19 = vpop.eup %9448 }
 0x7ba   : > { %17190 = vst [vmem:[#allocation61_spill] sm:$0xff] %v12450_v19  ;;  %2899 = vrot.lane.b32.xlu1 %v12450_v19, %s9833_s15 }
 0x7bb   : > { %2933 = vrot.lane.b32.xlu0 %v11971_v55, %s9841_s4 }
 0x7be   : > { %2935 = vrot.lane.b32.xlu1 %v12065_v10, %s9841_s4 }
 0x7bf   : > { %2937 = vrot.lane.b32.xlu0 %v12091_v52, %s9841_s4 }
 0x7c2   : > { %2939 = vrot.lane.b32.xlu1 %v12116_v32, %s9841_s4 }
 0x7c3   : > { %2941 = vrot.lane.b32.xlu0 %v12114_v5, %s9841_s4 }
 0x7c6   : > { %2943 = vrot.lane.b32.xlu1 %v12143_v37, %s9841_s4 }
 0x7c7   : > { %2945 = vrot.lane.b32.xlu0 %v12141_v62, %s9841_s4 }
 0x7ca   : > { %2947 = vrot.lane.b32.xlu1 %v12170_v39, %s9841_s4 }
 0x7cb   : > { %2949 = vrot.lane.b32.xlu0 %v12168_v16, %s9841_s4 }
 0x7ce   : > { %2951 = vrot.lane.b32.xlu1 %v12191_v22, %s9841_s4 }
 0x7cf   : > { %2953 = vrot.lane.b32.xlu0 %v12189_v58, %s9841_s4 }
 0x7d2   : > { %2955 = vrot.lane.b32.xlu1 %v12207_v2, %s9841_s4 }
 0x7d3   : > { %2957 = vrot.lane.b32.xlu0 %v12205_v47, %s9841_s4 }
 0x7d6   : > { %2959 = vrot.lane.b32.xlu1 %v12219_v17, %s9841_s4 }
 0x7d7   : > { %2961 = vrot.lane.b32.xlu0 %v12217_v4, %s9841_s4 }
 0x7da   : > { %2963 = vrot.lane.b32.xlu1 %v12226_v23, %s9841_s4 }
 0x80d   : > { %v12486_v43 = vpop.permute.xlu0 %2869 }
 0x80e   : > { %17191 = vst [vmem:[#allocation149_spill] sm:$0xff] %v12486_v43 }
 0x810   : > { %v12488_v31 = vpop.permute.xlu1 %2871 }
 0x811   : > { %v12490_v46 = vpop.permute.xlu0 %2873 }
 0x814   : > { %v12492_v51 = vpop.permute.xlu1 %2875 }
 0x815   : > { %17192 = vst [vmem:[#allocation152_spill] sm:$0xff] %v12492_v51  ;;  %v12494_v19 = vpop.permute.xlu0 %2877 }
 0x816   : > { %17193 = vst [vmem:[#allocation224_spill] sm:$0xff] %v12494_v19 }
 0x818   : > { %v12496_v50 = vpop.permute.xlu1 %2879 }
 0x819   : > { %17194 = vst [vmem:[#allocation78_spill] sm:$0xff] %v12496_v50  ;;  %v12498_v56 = vpop.permute.xlu0 %2881 }
 0x81a   : > { %17195 = vst [vmem:[#allocation231_spill] sm:$0xff] %v12498_v56 }
 0x81c   : > { %v12500_v11 = vpop.permute.xlu1 %2883 }
 0x81d   : > { %17196 = vst [vmem:[#allocation122_spill] sm:$0xff] %v12500_v11  ;;  %v12502_v27 = vpop.permute.xlu0 %2885 }
 0x81e   : > { %17197 = vst [vmem:[#allocation121_spill] sm:$0xff] %v12502_v27  ;;  %v17206_v27 = vld [vmem:[#allocation159_spill] sm:$0xff] }
 0x820   : > { %v12504_v28 = vpop.permute.xlu1 %2887 }
 0x821   : > { %17198 = vst [vmem:[#allocation195_spill] sm:$0xff] %v12504_v28  ;;  %v12506_v61 = vpop.permute.xlu0 %2889 }
 0x822   : > { %17199 = vst [vmem:[#allocation200_spill] sm:$0xff] %v12506_v61  ;;  %v17207_v61 = vld [vmem:[#allocation160_spill] sm:$0xff] }
 0x824   : > { %v12508_v60 = vpop.permute.xlu1 %2891 }
 0x825   : > { %17200 = vst [vmem:[#allocation271_spill] sm:$0xff] %v12508_v60  ;;  %v12510_v7 = vpop.permute.xlu0 %2893 }
 0x826   : > { %17201 = vst [vmem:[#allocation278_spill] sm:$0xff] %v12510_v7 }
 0x828   : > { %v12512_v59 = vpop.permute.xlu1 %2895 }
 0x829   : > { %17202 = vst [vmem:[#allocation63_spill] sm:$0xff] %v12512_v59  ;;  %v12514_v18 = vpop.permute.xlu0 %2897  ;;  %v17208_v59 = vld [vmem:[#allocation162_spill] sm:$0xff] }
 0x82a   : > { %17203 = vst [vmem:[#allocation151_spill] sm:$0xff] %v12514_v18 }
 0x82c   : > { %v12516_v48 = vpop.permute.xlu1 %2899 }
 0x82d   : > { %17204 = vst [vmem:[#allocation154_spill] sm:$0xff] %v12516_v48  ;;  %v2934_v40 = vpop.permute.xlu0 %2933  ;;  %v17209_v48 = vld [vmem:[#allocation158_spill] sm:$0xff] }
 0x82e   : > { %v2981_v41 = vsub.f32 %v17205_v30, %v2934_v40  ;;  %v17210_v40 = vld [vmem:[#allocation165_spill] sm:$0xff] }
 0x830   : > { %v2997_v43 = vmul.f32 1.442695, %v2981_v41  ;;  %v2936_v11 = vpop.permute.xlu1 %2935 }
 0x831   : > { %v2982_v56 = vsub.f32 %v17206_v27, %v2936_v11  ;;  %v2938_v28 = vpop.permute.xlu0 %2937 }
 0x832   : > { %9450 = vpow2.f32 %v2997_v43  ;;  %v2983_v50 = vsub.f32 %v17207_v61, %v2938_v28  ;;  %v17211_v43 = vld [vmem:[#allocation161_spill] sm:$0xff] }
 0x833   : > { %v2999_v60 = vmul.f32 1.442695, %v2982_v56 }
 0x834   : > { %v3001_v26 = vmul.f32 1.442695, %v2983_v50  ;;  %v2940_v7 = vpop.permute.xlu1 %2939 }
 0x835   : > { %9452 = vpow2.f32 %v2999_v60  ;;  %v2984_v57 = vsub.f32 %v17208_v59, %v2940_v7  ;;  %v2942_v18 = vpop.permute.xlu0 %2941  ;;  %v17213_v59 = vld [vmem:[#allocation167_spill] sm:$0xff] }
 0x836   : > { %9454 = vpow2.f32 %v3001_v26  ;;  %v2985_v35 = vsub.f32 %v17209_v48, %v2942_v18 }
 0x837   : > { %v3003_v19 = vmul.f32 1.442695, %v2984_v57  ;;  %v17214_v57 = vld [vmem:[#allocation163_spill] sm:$0xff] }
 0x838   : > { %v3005_v30 = vmul.f32 1.442695, %v2985_v35  ;;  %v2944_v41 = vpop.permute.xlu1 %2943 }
 0x839   : > { %9456 = vpow2.f32 %v3003_v19  ;;  %v2986_v27 = vsub.f32 %v17210_v40, %v2944_v41  ;;  %v2946_v11 = vpop.permute.xlu0 %2945  ;;  %v17217_v40 = vld [vmem:[#allocation169_spill] sm:$0xff] }
 0x83a   : > { %9458 = vpow2.f32 %v3005_v30  ;;  %v2987_v61 = vsub.f32 %v17211_v43, %v2946_v11  ;;  %v17218_v43 = vld [vmem:[#allocation164_spill] sm:$0xff] }
 0x83b   : > { %v3007_v28 = vmul.f32 1.442695, %v2986_v27 }
 0x83c   : > { %v12525_v56 = vpop.eup %9450  ;;  %v3009_v60 = vmul.f32 1.442695, %v2987_v61  ;;  %v2948_v50 = vpop.permute.xlu1 %2947 }
 0x83d   : > { %17212 = vst [vmem:[#allocation226_spill] sm:$0xff] %v12525_v56  ;;  %9460 = vpow2.f32 %v3007_v28  ;;  %v2988_v26 = vsub.f32 %v17213_v59, %v2948_v50  ;;  %3045 = vrot.lane.b32.xlu0 %v12525_v56, %s9834_s19  ;;  %v2950_v35 = vpop.permute.xlu0 %2949 }
 0x83e   : > { %9462 = vpow2.f32 %v3009_v60  ;;  %v2989_v48 = vsub.f32 %v17214_v57, %v2950_v35  ;;  %v17221_v35 = vld [vmem:[#allocation170_spill] sm:$0xff] }
 0x83f   : > { %v12531_v18 = vpop.eup %9452  ;;  %v3011_v7 = vmul.f32 1.442695, %v2988_v26 }
 0x840   : > { %17215 = vst [vmem:[#allocation77_spill] sm:$0xff] %v12531_v18  ;;  %v12533_v19 = vpop.eup %9454  ;;  %v3013_v30 = vmul.f32 1.442695, %v2989_v48  ;;  %3047 = vrot.lane.b32.xlu1 %v12531_v18, %s9834_s19  ;;  %v2952_v41 = vpop.permute.xlu1 %2951  ;;  %v17252_v18 = vld [vmem:[#allocation201_spill] sm:$0xff] }
 0x841   : > { %17216 = vst [vmem:[#allocation233_spill] sm:$0xff] %v12533_v19  ;;  %9464 = vpow2.f32 %v3011_v7  ;;  %v2990_v27 = vsub.f32 %v17217_v40, %v2952_v41  ;;  %3049 = vrot.lane.b32.xlu0 %v12533_v19, %s9834_s19  ;;  %v2954_v11 = vpop.permute.xlu0 %2953  ;;  %v17222_v7 = vld [vmem:[#allocation166_spill] sm:$0xff] }
 0x842   : > { %9466 = vpow2.f32 %v3013_v30  ;;  %v2991_v61 = vsub.f32 %v17218_v43, %v2954_v11 }
 0x843   : > { %v12541_v28 = vpop.eup %9456  ;;  %v3015_v60 = vmul.f32 1.442695, %v2990_v27 }
 0x844   : > { %17219 = vst [vmem:[#allocation124_spill] sm:$0xff] %v12541_v28  ;;  %v12543_v50 = vpop.eup %9458  ;;  %v3017_v59 = vmul.f32 1.442695, %v2991_v61  ;;  %3051 = vrot.lane.b32.xlu1 %v12541_v28, %s9834_s19  ;;  %v2956_v26 = vpop.permute.xlu1 %2955  ;;  %v17225_v61 = vld [vmem:[#allocation171_spill] sm:$0xff] }
 0x845   : > { %17220 = vst [vmem:[#allocation123_spill] sm:$0xff] %v12543_v50  ;;  %9468 = vpow2.f32 %v3015_v60  ;;  %v2992_v57 = vsub.f32 %v17221_v35, %v2956_v26  ;;  %3053 = vrot.lane.b32.xlu0 %v12543_v50, %s9834_s19  ;;  %v2958_v48 = vpop.permute.xlu0 %2957 }
 0x846   : > { %9470 = vpow2.f32 %v3017_v59  ;;  %v2993_v30 = vsub.f32 %v17222_v7, %v2958_v48  ;;  %v17226_v59 = vld [vmem:[#allocation168_spill] sm:$0xff] }
 0x847   : > { %v12551_v41 = vpop.eup %9460  ;;  %v3019_v40 = vmul.f32 1.442695, %v2992_v57 }
 0x848   : > { %17223 = vst [vmem:[#allocation197_spill] sm:$0xff] %v12551_v41  ;;  %v12553_v27 = vpop.eup %9462  ;;  %v3021_v11 = vmul.f32 1.442695, %v2993_v30  ;;  %3055 = vrot.lane.b32.xlu1 %v12551_v41, %s9834_s19  ;;  %v2960_v43 = vpop.permute.xlu1 %2959 }
 0x849   : > { %17224 = vst [vmem:[#allocation202_spill] sm:$0xff] %v12553_v27  ;;  %9472 = vpow2.f32 %v3019_v40  ;;  %v2994_v60 = vsub.f32 %v17225_v61, %v2960_v43  ;;  %3057 = vrot.lane.b32.xlu0 %v12553_v27, %s9834_s19  ;;  %v2962_v26 = vpop.permute.xlu0 %2961  ;;  %v17229_v40 = vld [vmem:[#allocation172_spill] sm:$0xff] }
 0x84a   : > { %9474 = vpow2.f32 %v3021_v11  ;;  %v2995_v35 = vsub.f32 %v17226_v59, %v2962_v26 }
 0x84b   : > { %v12561_v48 = vpop.eup %9464  ;;  %v3023_v57 = vmul.f32 1.442695, %v2994_v60 }
 0x84c   : > { %17227 = vst [vmem:[#allocation273_spill] sm:$0xff] %v12561_v48  ;;  %v12563_v7 = vpop.eup %9466  ;;  %v3025_v30 = vmul.f32 1.442695, %v2995_v35  ;;  %3059 = vrot.lane.b32.xlu1 %v12561_v48, %s9834_s19  ;;  %v2964_v41 = vpop.permute.xlu1 %2963 }
 0x84d   : > { %17228 = vst [vmem:[#allocation280_spill] sm:$0xff] %v12563_v7  ;;  %9476 = vpow2.f32 %v3023_v57  ;;  %v2996_v43 = vsub.f32 %v17229_v40, %v2964_v41  ;;  %3061 = vrot.lane.b32.xlu0 %v12563_v7, %s9834_s19 }
 0x84e   : > { %9478 = vpow2.f32 %v3025_v30 }
 0x84f   : > { %v12570_v11 = vpop.eup %9468  ;;  %v3027_v61 = vmul.f32 1.442695, %v2996_v43 }
 0x850   : > { %17230 = vst [vmem:[#allocation62_spill] sm:$0xff] %v12570_v11  ;;  %v12572_v26 = vpop.eup %9470  ;;  %3063 = vrot.lane.b32.xlu1 %v12570_v11, %s9834_s19 }
 0x851   : > { %17231 = vst [vmem:[#allocation153_spill] sm:$0xff] %v12572_v26  ;;  %9480 = vpow2.f32 %v3027_v61  ;;  %3065 = vrot.lane.b32.xlu0 %v12572_v26, %s9834_s19 }
 0x853   : > { %v12578_v60 = vpop.eup %9472 }
 0x854   : > { %17232 = vst [vmem:[#allocation156_spill] sm:$0xff] %v12578_v60  ;;  %v12580_v59 = vpop.eup %9474  ;;  %3067 = vrot.lane.b32.xlu1 %v12578_v60, %s9834_s19 }
 0x855   : > { %17233 = vst [vmem:[#allocation228_spill] sm:$0xff] %v12580_v59  ;;  %3069 = vrot.lane.b32.xlu0 %v12580_v59, %s9834_s19 }
 0x857   : > { %v12586_v41 = vpop.eup %9476 }
 0x858   : > { %17234 = vst [vmem:[#allocation234_spill] sm:$0xff] %v12586_v41  ;;  %v12588_v35 = vpop.eup %9478  ;;  %3071 = vrot.lane.b32.xlu1 %v12586_v41, %s9834_s19 }
 0x859   : > { %17235 = vst [vmem:[#allocation126_spill] sm:$0xff] %v12588_v35  ;;  %3073 = vrot.lane.b32.xlu0 %v12588_v35, %s9834_s19 }
 0x85b   : > { %v12594_v57 = vpop.eup %9480 }
 0x85c   : > { %17236 = vst [vmem:[#allocation199_spill] sm:$0xff] %v12594_v57  ;;  %3075 = vrot.lane.b32.xlu1 %v12594_v57, %s9834_s19 }
 0x85d   : > { %3109 = vrot.lane.b32.xlu0 %v11971_v55, %s9842_s23 }
 0x860   : > { %3111 = vrot.lane.b32.xlu1 %v12065_v10, %s9842_s23 }
 0x861   : > { %3113 = vrot.lane.b32.xlu0 %v12091_v52, %s9842_s23 }
 0x864   : > { %3115 = vrot.lane.b32.xlu1 %v12116_v32, %s9842_s23 }
 0x865   : > { %3117 = vrot.lane.b32.xlu0 %v12114_v5, %s9842_s23 }
 0x868   : > { %3119 = vrot.lane.b32.xlu1 %v12143_v37, %s9842_s23 }
 0x869   : > { %3121 = vrot.lane.b32.xlu0 %v12141_v62, %s9842_s23 }
 0x86c   : > { %3123 = vrot.lane.b32.xlu1 %v12170_v39, %s9842_s23 }
 0x86d   : > { %3125 = vrot.lane.b32.xlu0 %v12168_v16, %s9842_s23 }
 0x870   : > { %3127 = vrot.lane.b32.xlu1 %v12191_v22, %s9842_s23 }
 0x871   : > { %3129 = vrot.lane.b32.xlu0 %v12189_v58, %s9842_s23 }
 0x874   : > { %3131 = vrot.lane.b32.xlu1 %v12207_v2, %s9842_s23 }
 0x875   : > { %3133 = vrot.lane.b32.xlu0 %v12205_v47, %s9842_s23 }
 0x878   : > { %3135 = vrot.lane.b32.xlu1 %v12219_v17, %s9842_s23 }
 0x879   : > { %3137 = vrot.lane.b32.xlu0 %v12217_v4, %s9842_s23 }
 0x87c   : > { %3139 = vrot.lane.b32.xlu1 %v12226_v23, %s9842_s23 }
 0x8af   : > { %v12630_v30 = vpop.permute.xlu0 %3045 }
 0x8b0   : > { %17237 = vst [vmem:[#allocation203_spill] sm:$0xff] %v12630_v30 }
 0x8b2   : > { %v12632_v40 = vpop.permute.xlu1 %3047 }
 0x8b3   : > { %v12634_v43 = vpop.permute.xlu0 %3049 }
 0x8b4   : > { %17238 = vst [vmem:[#allocation275_spill] sm:$0xff] %v12634_v43 }
 0x8b6   : > { %v12636_v61 = vpop.permute.xlu1 %3051 }
 0x8b7   : > { %17239 = vst [vmem:[#allocation281_spill] sm:$0xff] %v12636_v61  ;;  %v12638_v57 = vpop.permute.xlu0 %3053 }
 0x8b8   : > { %17240 = vst [vmem:[#allocation157_spill] sm:$0xff] %v12638_v57 }
 0x8ba   : > { %v12640_v35 = vpop.permute.xlu1 %3055 }
 0x8bb   : > { %17241 = vst [vmem:[#allocation230_spill] sm:$0xff] %v12640_v35  ;;  %v12642_v41 = vpop.permute.xlu0 %3057 }
 0x8bc   : > { %17242 = vst [vmem:[#allocation236_spill] sm:$0xff] %v12642_v41 }
 0x8be   : > { %v12644_v59 = vpop.permute.xlu1 %3059 }
 0x8bf   : > { %17243 = vst [vmem:[#allocation205_spill] sm:$0xff] %v12644_v59  ;;  %v12646_v60 = vpop.permute.xlu0 %3061 }
 0x8c0   : > { %17244 = vst [vmem:[#allocation277_spill] sm:$0xff] %v12646_v60  ;;  %v17253_v60 = vld [vmem:[#allocation207_spill] sm:$0xff] }
 0x8c2   : > { %v12648_v26 = vpop.permute.xlu1 %3063 }
 0x8c3   : > { %17245 = vst [vmem:[#allocation284_spill] sm:$0xff] %v12648_v26  ;;  %v12650_v11 = vpop.permute.xlu0 %3065 }
 0x8c4   : > { %17246 = vst [vmem:[#allocation238_spill] sm:$0xff] %v12650_v11  ;;  %v17254_v11 = vld [vmem:[#allocation209_spill] sm:$0xff] }
 0x8c6   : > { %v12652_v7 = vpop.permute.xlu1 %3067 }
 0x8c7   : > { %17247 = vst [vmem:[#allocation80_spill] sm:$0xff] %v12652_v7  ;;  %v12654_v48 = vpop.permute.xlu0 %3069 }
 0x8c8   : > { %17248 = vst [vmem:[#allocation79_spill] sm:$0xff] %v12654_v48 }
 0x8ca   : > { %v12656_v27 = vpop.permute.xlu1 %3071 }
 0x8cb   : > { %17249 = vst [vmem:[#allocation81_spill] sm:$0xff] %v12656_v27  ;;  %v12658_v50 = vpop.permute.xlu0 %3073  ;;  %v17255_v27 = vld [vmem:[#allocation211_spill] sm:$0xff] }
 0x8cc   : > { %17250 = vst [vmem:[#allocation82_spill] sm:$0xff] %v12658_v50 }
 0x8ce   : > { %v12660_v28 = vpop.permute.xlu1 %3075 }
 0x8cf   : > { %17251 = vst [vmem:[#allocation83_spill] sm:$0xff] %v12660_v28  ;;  %v3110_v19 = vpop.permute.xlu0 %3109  ;;  %v17256_v28 = vld [vmem:[#allocation204_spill] sm:$0xff] }
 0x8d0   : > { %v3157_v56 = vsub.f32 %v17252_v18, %v3110_v19  ;;  %v17257_v19 = vld [vmem:[#allocation213_spill] sm:$0xff] }
 0x8d2   : > { %v3173_v30 = vmul.f32 1.442695, %v3157_v56  ;;  %v3112_v59 = vpop.permute.xlu1 %3111 }
 0x8d3   : > { %v3158_v41 = vsub.f32 %v17253_v60, %v3112_v59  ;;  %v3114_v26 = vpop.permute.xlu0 %3113 }
 0x8d4   : > { %9482 = vpow2.f32 %v3173_v30  ;;  %v3159_v35 = vsub.f32 %v17254_v11, %v3114_v26  ;;  %v17258_v30 = vld [vmem:[#allocation206_spill] sm:$0xff] }
 0x8d5   : > { %v3175_v7 = vmul.f32 1.442695, %v3158_v41 }
 0x8d6   : > { %v3177_v57 = vmul.f32 1.442695, %v3159_v35  ;;  %v3116_v48 = vpop.permute.xlu1 %3115 }
 0x8d7   : > { %9484 = vpow2.f32 %v3175_v7  ;;  %v3160_v61 = vsub.f32 %v17255_v27, %v3116_v48  ;;  %v3118_v50 = vpop.permute.xlu0 %3117  ;;  %v17260_v27 = vld [vmem:[#allocation215_spill] sm:$0xff] }
 0x8d8   : > { %9486 = vpow2.f32 %v3177_v57  ;;  %v3161_v51 = vsub.f32 %v17256_v28, %v3118_v50  ;;  %v17261_v28 = vld [vmem:[#allocation208_spill] sm:$0xff] }
 0x8d9   : > { %v3179_v43 = vmul.f32 1.442695, %v3160_v61 }
 0x8da   : > { %v3181_v18 = vmul.f32 1.442695, %v3161_v51  ;;  %v3120_v56 = vpop.permute.xlu1 %3119 }
 0x8db   : > { %9488 = vpow2.f32 %v3179_v43  ;;  %v3162_v60 = vsub.f32 %v17257_v19, %v3120_v56  ;;  %v3122_v59 = vpop.permute.xlu0 %3121  ;;  %v17264_v19 = vld [vmem:[#allocation216_spill] sm:$0xff] }
 0x8dc   : > { %9490 = vpow2.f32 %v3181_v18  ;;  %v3163_v11 = vsub.f32 %v17258_v30, %v3122_v59  ;;  %v17265_v30 = vld [vmem:[#allocation210_spill] sm:$0xff] }
 0x8dd   : > { %v3183_v26 = vmul.f32 1.442695, %v3162_v60 }
 0x8de   : > { %v12669_v41 = vpop.eup %9482  ;;  %v3185_v7 = vmul.f32 1.442695, %v3163_v11  ;;  %v3124_v35 = vpop.permute.xlu1 %3123 }
 0x8df   : > { %17259 = vst [vmem:[#allocation84_spill] sm:$0xff] %v12669_v41  ;;  %9492 = vpow2.f32 %v3183_v26  ;;  %v3164_v48 = vsub.f32 %v17260_v27, %v3124_v35  ;;  %3221 = vrot.lane.b32.xlu0 %v12669_v41, %s9835_s21  ;;  %v3126_v51 = vpop.permute.xlu0 %3125 }
 0x8e0   : > { %9494 = vpow2.f32 %v3185_v7  ;;  %v3165_v50 = vsub.f32 %v17261_v28, %v3126_v51  ;;  %v17268_v51 = vld [vmem:[#allocation217_spill] sm:$0xff] }
 0x8e1   : > { %v12675_v57 = vpop.eup %9484  ;;  %v3187_v43 = vmul.f32 1.442695, %v3164_v48 }
 0x8e2   : > { %17262 = vst [vmem:[#allocation85_spill] sm:$0xff] %v12675_v57  ;;  %v12677_v61 = vpop.eup %9486  ;;  %v3189_v18 = vmul.f32 1.442695, %v3165_v50  ;;  %3223 = vrot.lane.b32.xlu1 %v12675_v57, %s9835_s21  ;;  %v3128_v56 = vpop.permute.xlu1 %3127  ;;  %v17300_v57 = vld [vmem:[#allocation232_spill] sm:$0xff] }
 0x8e3   : > { %17263 = vst [vmem:[#allocation86_spill] sm:$0xff] %v12677_v61  ;;  %9496 = vpow2.f32 %v3187_v43  ;;  %v3166_v60 = vsub.f32 %v17264_v19, %v3128_v56  ;;  %3225 = vrot.lane.b32.xlu0 %v12677_v61, %s9835_s21  ;;  %v3130_v59 = vpop.permute.xlu0 %3129  ;;  %v17269_v43 = vld [vmem:[#allocation212_spill] sm:$0xff] }
 0x8e4   : > { %9498 = vpow2.f32 %v3189_v18  ;;  %v3167_v11 = vsub.f32 %v17265_v30, %v3130_v59 }
 0x8e5   : > { %v12685_v26 = vpop.eup %9488  ;;  %v3191_v7 = vmul.f32 1.442695, %v3166_v60 }
 0x8e6   : > { %17266 = vst [vmem:[#allocation87_spill] sm:$0xff] %v12685_v26  ;;  %v12687_v35 = vpop.eup %9490  ;;  %v3193_v27 = vmul.f32 1.442695, %v3167_v11  ;;  %3227 = vrot.lane.b32.xlu1 %v12685_v26, %s9835_s21  ;;  %v3132_v48 = vpop.permute.xlu1 %3131  ;;  %v17272_v11 = vld [vmem:[#allocation218_spill] sm:$0xff] }
 0x8e7   : > { %17267 = vst [vmem:[#allocation88_spill] sm:$0xff] %v12687_v35  ;;  %9500 = vpow2.f32 %v3191_v7  ;;  %v3168_v28 = vsub.f32 %v17268_v51, %v3132_v48  ;;  %3229 = vrot.lane.b32.xlu0 %v12687_v35, %s9835_s21  ;;  %v3134_v50 = vpop.permute.xlu0 %3133 }
 0x8e8   : > { %9502 = vpow2.f32 %v3193_v27  ;;  %v3169_v18 = vsub.f32 %v17269_v43, %v3134_v50  ;;  %v17273_v27 = vld [vmem:[#allocation214_spill] sm:$0xff] }
 0x8e9   : > { %v12695_v56 = vpop.eup %9492  ;;  %v3195_v19 = vmul.f32 1.442695, %v3168_v28 }
 0x8ea   : > { %17270 = vst [vmem:[#allocation89_spill] sm:$0xff] %v12695_v56  ;;  %v12697_v60 = vpop.eup %9494  ;;  %v3197_v59 = vmul.f32 1.442695, %v3169_v18  ;;  %3231 = vrot.lane.b32.xlu1 %v12695_v56, %s9835_s21  ;;  %v3136_v30 = vpop.permute.xlu1 %3135 }
 0x8eb   : > { %17271 = vst [vmem:[#allocation90_spill] sm:$0xff] %v12697_v60  ;;  %9504 = vpow2.f32 %v3195_v19  ;;  %v3170_v7 = vsub.f32 %v17272_v11, %v3136_v30  ;;  %3233 = vrot.lane.b32.xlu0 %v12697_v60, %s9835_s21  ;;  %v3138_v48 = vpop.permute.xlu0 %3137  ;;  %v17276_v19 = vld [vmem:[#allocation219_spill] sm:$0xff] }
 0x8ec   : > { %9506 = vpow2.f32 %v3197_v59  ;;  %v3171_v51 = vsub.f32 %v17273_v27, %v3138_v48 }
 0x8ed   : > { %v12705_v50 = vpop.eup %9496  ;;  %v3199_v28 = vmul.f32 1.442695, %v3170_v7 }
 0x8ee   : > { %17274 = vst [vmem:[#allocation91_spill] sm:$0xff] %v12705_v50  ;;  %v12707_v43 = vpop.eup %9498  ;;  %v3201_v18 = vmul.f32 1.442695, %v3171_v51  ;;  %3235 = vrot.lane.b32.xlu1 %v12705_v50, %s9835_s21  ;;  %v3140_v56 = vpop.permute.xlu1 %3139 }
 0x8ef   : > { %17275 = vst [vmem:[#allocation92_spill] sm:$0xff] %v12707_v43  ;;  %9508 = vpow2.f32 %v3199_v28  ;;  %v3172_v30 = vsub.f32 %v17276_v19, %v3140_v56  ;;  %3237 = vrot.lane.b32.xlu0 %v12707_v43, %s9835_s21 }
 0x8f0   : > { %9510 = vpow2.f32 %v3201_v18 }
 0x8f1   : > { %v12714_v59 = vpop.eup %9500  ;;  %v3203_v11 = vmul.f32 1.442695, %v3172_v30 }
 0x8f2   : > { %17277 = vst [vmem:[#allocation93_spill] sm:$0xff] %v12714_v59  ;;  %v12716_v48 = vpop.eup %9502  ;;  %3239 = vrot.lane.b32.xlu1 %v12714_v59, %s9835_s21 }
 0x8f3   : > { %17278 = vst [vmem:[#allocation94_spill] sm:$0xff] %v12716_v48  ;;  %9512 = vpow2.f32 %v3203_v11  ;;  %3241 = vrot.lane.b32.xlu0 %v12716_v48, %s9835_s21 }
 0x8f5   : > { %v12722_v7 = vpop.eup %9504 }
 0x8f6   : > { %17279 = vst [vmem:[#allocation125_spill] sm:$0xff] %v12722_v7  ;;  %v12724_v27 = vpop.eup %9506  ;;  %3243 = vrot.lane.b32.xlu1 %v12722_v7, %s9835_s21 }
 0x8f7   : > { %17280 = vst [vmem:[#allocation127_spill] sm:$0xff] %v12724_v27  ;;  %3245 = vrot.lane.b32.xlu0 %v12724_v27, %s9835_s21 }
 0x8f9   : > { %v12730_v56 = vpop.eup %9508 }
 0x8fa   : > { %17281 = vst [vmem:[#allocation128_spill] sm:$0xff] %v12730_v56  ;;  %v12732_v51 = vpop.eup %9510  ;;  %3247 = vrot.lane.b32.xlu1 %v12730_v56, %s9835_s21 }
 0x8fb   : > { %17282 = vst [vmem:[#allocation130_spill] sm:$0xff] %v12732_v51  ;;  %3249 = vrot.lane.b32.xlu0 %v12732_v51, %s9835_s21 }
 0x8fd   : > { %v12738_v28 = vpop.eup %9512 }
 0x8fe   : > { %17283 = vst [vmem:[#allocation129_spill] sm:$0xff] %v12738_v28  ;;  %3251 = vrot.lane.b32.xlu1 %v12738_v28, %s9835_s21 }
 0x8ff   : > { %3285 = vrot.lane.b32.xlu0 %v11971_v55, %s9843_s25 }
 0x902   : > { %3287 = vrot.lane.b32.xlu1 %v12065_v10, %s9843_s25 }
 0x903   : > { %3289 = vrot.lane.b32.xlu0 %v12091_v52, %s9843_s25 }
 0x906   : > { %3291 = vrot.lane.b32.xlu1 %v12116_v32, %s9843_s25 }
 0x907   : > { %3293 = vrot.lane.b32.xlu0 %v12114_v5, %s9843_s25 }
 0x90a   : > { %3295 = vrot.lane.b32.xlu1 %v12143_v37, %s9843_s25 }
 0x90b   : > { %3297 = vrot.lane.b32.xlu0 %v12141_v62, %s9843_s25 }
 0x90e   : > { %3299 = vrot.lane.b32.xlu1 %v12170_v39, %s9843_s25 }
 0x90f   : > { %3301 = vrot.lane.b32.xlu0 %v12168_v16, %s9843_s25 }
 0x912   : > { %3303 = vrot.lane.b32.xlu1 %v12191_v22, %s9843_s25 }
 0x913   : > { %3305 = vrot.lane.b32.xlu0 %v12189_v58, %s9843_s25 }
 0x916   : > { %3307 = vrot.lane.b32.xlu1 %v12207_v2, %s9843_s25 }
 0x917   : > { %3309 = vrot.lane.b32.xlu0 %v12205_v47, %s9843_s25 }
 0x91a   : > { %3311 = vrot.lane.b32.xlu1 %v12219_v17, %s9843_s25 }
 0x91b   : > { %3313 = vrot.lane.b32.xlu0 %v12217_v4, %s9843_s25 }
 0x91e   : > { %3315 = vrot.lane.b32.xlu1 %v12226_v23, %s9843_s25 }
 0x951   : > { %v12774_v18 = vpop.permute.xlu0 %3221 }
 0x952   : > { %17284 = vst [vmem:[#allocation132_spill] sm:$0xff] %v12774_v18 }
 0x954   : > { %v12776_v19 = vpop.permute.xlu1 %3223 }
 0x955   : > { %17285 = vst [vmem:[#allocation131_spill] sm:$0xff] %v12776_v19  ;;  %v12778_v30 = vpop.permute.xlu0 %3225 }
 0x956   : > { %17286 = vst [vmem:[#allocation134_spill] sm:$0xff] %v12778_v30 }
 0x958   : > { %v12780_v11 = vpop.permute.xlu1 %3227 }
 0x959   : > { %17287 = vst [vmem:[#allocation133_spill] sm:$0xff] %v12780_v11  ;;  %v12782_v28 = vpop.permute.xlu0 %3229 }
 0x95a   : > { %17288 = vst [vmem:[#allocation136_spill] sm:$0xff] %v12782_v28 }
 0x95c   : > { %v12784_v51 = vpop.permute.xlu1 %3231 }
 0x95d   : > { %17289 = vst [vmem:[#allocation135_spill] sm:$0xff] %v12784_v51  ;;  %v12786_v56 = vpop.permute.xlu0 %3233 }
 0x95e   : > { %17290 = vst [vmem:[#allocation138_spill] sm:$0xff] %v12786_v56 }
 0x960   : > { %v12788_v27 = vpop.permute.xlu1 %3235 }
 0x961   : > { %17291 = vst [vmem:[#allocation137_spill] sm:$0xff] %v12788_v27  ;;  %v12790_v7 = vpop.permute.xlu0 %3237 }
 0x962   : > { %17292 = vst [vmem:[#allocation140_spill] sm:$0xff] %v12790_v7  ;;  %v17301_v7 = vld [vmem:[#allocation240_spill] sm:$0xff] }
 0x964   : > { %v12792_v48 = vpop.permute.xlu1 %3239 }
 0x965   : > { %17293 = vst [vmem:[#allocation139_spill] sm:$0xff] %v12792_v48  ;;  %v12794_v59 = vpop.permute.xlu0 %3241 }
 0x966   : > { %17294 = vst [vmem:[#allocation141_spill] sm:$0xff] %v12794_v59  ;;  %v17302_v59 = vld [vmem:[#allocation242_spill] sm:$0xff] }
 0x968   : > { %v12796_v43 = vpop.permute.xlu1 %3243 }
 0x969   : > { %17295 = vst [vmem:[#allocation155_spill] sm:$0xff] %v12796_v43  ;;  %v12798_v50 = vpop.permute.xlu0 %3245 }
 0x96a   : > { %17296 = vst [vmem:[#allocation159_spill] sm:$0xff] %v12798_v50 }
 0x96c   : > { %v12800_v60 = vpop.permute.xlu1 %3247 }
 0x96d   : > { %17297 = vst [vmem:[#allocation160_spill] sm:$0xff] %v12800_v60  ;;  %v12802_v35 = vpop.permute.xlu0 %3249  ;;  %v17303_v60 = vld [vmem:[#allocation244_spill] sm:$0xff] }
 0x96e   : > { %17298 = vst [vmem:[#allocation162_spill] sm:$0xff] %v12802_v35 }
 0x970   : > { %v12804_v26 = vpop.permute.xlu1 %3251 }
 0x971   : > { %17299 = vst [vmem:[#allocation158_spill] sm:$0xff] %v12804_v26  ;;  %v3286_v61 = vpop.permute.xlu0 %3285  ;;  %v17304_v26 = vld [vmem:[#allocation235_spill] sm:$0xff] }
 0x972   : > { %v3333_v41 = vsub.f32 %v17300_v57, %v3286_v61  ;;  %v17305_v61 = vld [vmem:[#allocation246_spill] sm:$0xff] }
 0x974   : > { %v3349_v18 = vmul.f32 1.442695, %v3333_v41  ;;  %v3288_v27 = vpop.permute.xlu1 %3287 }
 0x975   : > { %v3334_v56 = vsub.f32 %v17301_v7, %v3288_v27  ;;  %v3290_v48 = vpop.permute.xlu0 %3289 }
 0x976   : > { %9514 = vpow2.f32 %v3349_v18  ;;  %v3335_v51 = vsub.f32 %v17302_v59, %v3290_v48  ;;  %v17306_v18 = vld [vmem:[#allocation237_spill] sm:$0xff] }
 0x977   : > { %v3351_v43 = vmul.f32 1.442695, %v3334_v56 }
 0x978   : > { %v3353_v28 = vmul.f32 1.442695, %v3335_v51  ;;  %v3292_v50 = vpop.permute.xlu1 %3291 }
 0x979   : > { %9516 = vpow2.f32 %v3351_v43  ;;  %v3336_v11 = vsub.f32 %v17303_v60, %v3292_v50  ;;  %v3294_v35 = vpop.permute.xlu0 %3293  ;;  %v17308_v60 = vld [vmem:[#allocation247_spill] sm:$0xff] }
 0x97a   : > { %9518 = vpow2.f32 %v3353_v28  ;;  %v3337_v30 = vsub.f32 %v17304_v26, %v3294_v35  ;;  %v17309_v35 = vld [vmem:[#allocation239_spill] sm:$0xff] }
 0x97b   : > { %v3355_v19 = vmul.f32 1.442695, %v3336_v11 }
 0x97c   : > { %v3357_v57 = vmul.f32 1.442695, %v3337_v30  ;;  %v3296_v41 = vpop.permute.xlu1 %3295 }
 0x97d   : > { %9520 = vpow2.f32 %v3355_v19  ;;  %v3338_v7 = vsub.f32 %v17305_v61, %v3296_v41  ;;  %v3298_v27 = vpop.permute.xlu0 %3297  ;;  %v17312_v61 = vld [vmem:[#allocation248_spill] sm:$0xff] }
 0x97e   : > { %9522 = vpow2.f32 %v3357_v57  ;;  %v3339_v59 = vsub.f32 %v17306_v18, %v3298_v27  ;;  %v17313_v18 = vld [vmem:[#allocation241_spill] sm:$0xff] }
 0x97f   : > { %v3359_v48 = vmul.f32 1.442695, %v3338_v7 }
 0x980   : > { %v12813_v56 = vpop.eup %9514  ;;  %v3361_v43 = vmul.f32 1.442695, %v3339_v59  ;;  %v3300_v51 = vpop.permute.xlu1 %3299 }
 0x981   : > { %17307 = vst [vmem:[#allocation165_spill] sm:$0xff] %v12813_v56  ;;  %9524 = vpow2.f32 %v3359_v48  ;;  %v3340_v50 = vsub.f32 %v17308_v60, %v3300_v51  ;;  %3397 = vrot.lane.b32.xlu0 %v12813_v56, %s9836_s17  ;;  %v3302_v26 = vpop.permute.xlu0 %3301 }
 0x982   : > { %9526 = vpow2.f32 %v3361_v43  ;;  %v3341_v28 = vsub.f32 %v17309_v35, %v3302_v26  ;;  %v17316_v26 = vld [vmem:[#allocation249_spill] sm:$0xff] }
 0x983   : > { %v12819_v19 = vpop.eup %9516  ;;  %v3363_v30 = vmul.f32 1.442695, %v3340_v50 }
 0x984   : > { %17310 = vst [vmem:[#allocation161_spill] sm:$0xff] %v12819_v19  ;;  %v12821_v11 = vpop.eup %9518  ;;  %v3365_v57 = vmul.f32 1.442695, %v3341_v28  ;;  %3399 = vrot.lane.b32.xlu1 %v12819_v19, %s9836_s17  ;;  %v3304_v41 = vpop.permute.xlu1 %3303  ;;  %v17347_v19 = vld [vmem:[#allocation279_spill] sm:$0xff] }
 0x985   : > { %17311 = vst [vmem:[#allocation167_spill] sm:$0xff] %v12821_v11  ;;  %9528 = vpow2.f32 %v3363_v30  ;;  %v3342_v7 = vsub.f32 %v17312_v61, %v3304_v41  ;;  %3401 = vrot.lane.b32.xlu0 %v12821_v11, %s9836_s17  ;;  %v3306_v27 = vpop.permute.xlu0 %3305  ;;  %v17317_v30 = vld [vmem:[#allocation243_spill] sm:$0xff] }
 0x986   : > { %9530 = vpow2.f32 %v3365_v57  ;;  %v3343_v59 = vsub.f32 %v17313_v18, %v3306_v27 }
 0x987   : > { %v12829_v48 = vpop.eup %9520  ;;  %v3367_v43 = vmul.f32 1.442695, %v3342_v7 }
 0x988   : > { %17314 = vst [vmem:[#allocation163_spill] sm:$0xff] %v12829_v48  ;;  %v12831_v51 = vpop.eup %9522  ;;  %v3369_v60 = vmul.f32 1.442695, %v3343_v59  ;;  %3403 = vrot.lane.b32.xlu1 %v12829_v48, %s9836_s17  ;;  %v3308_v50 = vpop.permute.xlu1 %3307  ;;  %v17320_v59 = vld [vmem:[#allocation250_spill] sm:$0xff] }
 0x989   : > { %17315 = vst [vmem:[#allocation169_spill] sm:$0xff] %v12831_v51  ;;  %9532 = vpow2.f32 %v3367_v43  ;;  %v3344_v35 = vsub.f32 %v17316_v26, %v3308_v50  ;;  %3405 = vrot.lane.b32.xlu0 %v12831_v51, %s9836_s17  ;;  %v3310_v28 = vpop.permute.xlu0 %3309 }
 0x98a   : > { %9534 = vpow2.f32 %v3369_v60  ;;  %v3345_v57 = vsub.f32 %v17317_v30, %v3310_v28  ;;  %v17321_v60 = vld [vmem:[#allocation245_spill] sm:$0xff] }
 0x98b   : > { %v12839_v41 = vpop.eup %9524  ;;  %v3371_v61 = vmul.f32 1.442695, %v3344_v35 }
 0x98c   : > { %17318 = vst [vmem:[#allocation164_spill] sm:$0xff] %v12839_v41  ;;  %v12841_v7 = vpop.eup %9526  ;;  %v3373_v27 = vmul.f32 1.442695, %v3345_v57  ;;  %3407 = vrot.lane.b32.xlu1 %v12839_v41, %s9836_s17  ;;  %v3312_v18 = vpop.permute.xlu1 %3311 }
 0x98d   : > { %17319 = vst [vmem:[#allocation170_spill] sm:$0xff] %v12841_v7  ;;  %9536 = vpow2.f32 %v3371_v61  ;;  %v3346_v43 = vsub.f32 %v17320_v59, %v3312_v18  ;;  %3409 = vrot.lane.b32.xlu0 %v12841_v7, %s9836_s17  ;;  %v3314_v50 = vpop.permute.xlu0 %3313  ;;  %v17324_v61 = vld [vmem:[#allocation252_spill] sm:$0xff] }
 0x98e   : > { %9538 = vpow2.f32 %v3373_v27  ;;  %v3347_v26 = vsub.f32 %v17321_v60, %v3314_v50 }
 0x98f   : > { %v12849_v28 = vpop.eup %9528  ;;  %v3375_v35 = vmul.f32 1.442695, %v3346_v43 }
 0x990   : > { %17322 = vst [vmem:[#allocation166_spill] sm:$0xff] %v12849_v28  ;;  %v12851_v30 = vpop.eup %9530  ;;  %v3377_v57 = vmul.f32 1.442695, %v3347_v26  ;;  %3411 = vrot.lane.b32.xlu1 %v12849_v28, %s9836_s17  ;;  %v3316_v41 = vpop.permute.xlu1 %3315 }
 0x991   : > { %17323 = vst [vmem:[#allocation171_spill] sm:$0xff] %v12851_v30  ;;  %9540 = vpow2.f32 %v3375_v35  ;;  %v3348_v18 = vsub.f32 %v17324_v61, %v3316_v41  ;;  %3413 = vrot.lane.b32.xlu0 %v12851_v30, %s9836_s17 }
 0x992   : > { %9542 = vpow2.f32 %v3377_v57 }
 0x993   : > { %v12858_v27 = vpop.eup %9532  ;;  %v3379_v59 = vmul.f32 1.442695, %v3348_v18 }
 0x994   : > { %17325 = vst [vmem:[#allocation168_spill] sm:$0xff] %v12858_v27  ;;  %v12860_v50 = vpop.eup %9534  ;;  %3415 = vrot.lane.b32.xlu1 %v12858_v27, %s9836_s17 }
 0x995   : > { %17326 = vst [vmem:[#allocation172_spill] sm:$0xff] %v12860_v50  ;;  %9544 = vpow2.f32 %v3379_v59  ;;  %3417 = vrot.lane.b32.xlu0 %v12860_v50, %s9836_s17 }
 0x997   : > { %v12866_v43 = vpop.eup %9536 }
 0x998   : > { %17327 = vst [vmem:[#allocation201_spill] sm:$0xff] %v12866_v43  ;;  %v12868_v60 = vpop.eup %9538  ;;  %3419 = vrot.lane.b32.xlu1 %v12866_v43, %s9836_s17 }
 0x999   : > { %17328 = vst [vmem:[#allocation207_spill] sm:$0xff] %v12868_v60  ;;  %3421 = vrot.lane.b32.xlu0 %v12868_v60, %s9836_s17 }
 0x99b   : > { %v12874_v41 = vpop.eup %9540 }
 0x99c   : > { %17329 = vst [vmem:[#allocation209_spill] sm:$0xff] %v12874_v41  ;;  %v12876_v26 = vpop.eup %9542  ;;  %3423 = vrot.lane.b32.xlu1 %v12874_v41, %s9836_s17 }
 0x99d   : > { %17330 = vst [vmem:[#allocation211_spill] sm:$0xff] %v12876_v26  ;;  %3425 = vrot.lane.b32.xlu0 %v12876_v26, %s9836_s17 }
 0x99f   : > { %v12882_v35 = vpop.eup %9544 }
 0x9a0   : > { %17331 = vst [vmem:[#allocation204_spill] sm:$0xff] %v12882_v35  ;;  %3427 = vrot.lane.b32.xlu1 %v12882_v35, %s9836_s17 }
 0x9a1   : > { %3461 = vrot.lane.b32.xlu0 %v11971_v55, %s9844_s30 }
 0x9a4   : > { %3463 = vrot.lane.b32.xlu1 %v12065_v10, %s9844_s30 }
 0x9a5   : > { %3465 = vrot.lane.b32.xlu0 %v12091_v52, %s9844_s30 }
 0x9a8   : > { %3467 = vrot.lane.b32.xlu1 %v12116_v32, %s9844_s30 }
 0x9a9   : > { %3469 = vrot.lane.b32.xlu0 %v12114_v5, %s9844_s30 }
 0x9ac   : > { %3471 = vrot.lane.b32.xlu1 %v12143_v37, %s9844_s30 }
 0x9ad   : > { %3473 = vrot.lane.b32.xlu0 %v12141_v62, %s9844_s30 }
 0x9b0   : > { %3475 = vrot.lane.b32.xlu1 %v12170_v39, %s9844_s30 }
 0x9b1   : > { %3477 = vrot.lane.b32.xlu0 %v12168_v16, %s9844_s30 }
 0x9b4   : > { %3479 = vrot.lane.b32.xlu1 %v12191_v22, %s9844_s30 }
 0x9b5   : > { %3481 = vrot.lane.b32.xlu0 %v12189_v58, %s9844_s30 }
 0x9b8   : > { %3483 = vrot.lane.b32.xlu1 %v12207_v2, %s9844_s30 }
 0x9b9   : > { %3485 = vrot.lane.b32.xlu0 %v12205_v47, %s9844_s30 }
 0x9bc   : > { %3487 = vrot.lane.b32.xlu1 %v12219_v17, %s9844_s30 }
 0x9bd   : > { %3489 = vrot.lane.b32.xlu0 %v12217_v4, %s9844_s30 }
 0x9c0   : > { %3491 = vrot.lane.b32.xlu1 %v12226_v23, %s9844_s30 }
 0x9f3   : > { %v12918_v57 = vpop.permute.xlu0 %3397 }
 0x9f4   : > { %17332 = vst [vmem:[#allocation213_spill] sm:$0xff] %v12918_v57 }
 0x9f6   : > { %v12920_v61 = vpop.permute.xlu1 %3399 }
 0x9f7   : > { %v12922_v18 = vpop.permute.xlu0 %3401 }
 0x9f8   : > { %17333 = vst [vmem:[#allocation206_spill] sm:$0xff] %v12922_v18 }
 0x9fa   : > { %v12924_v59 = vpop.permute.xlu1 %3403 }
 0x9fb   : > { %17334 = vst [vmem:[#allocation215_spill] sm:$0xff] %v12924_v59  ;;  %v12926_v35 = vpop.permute.xlu0 %3405 }
 0x9fc   : > { %17335 = vst [vmem:[#allocation208_spill] sm:$0xff] %v12926_v35 }
 0x9fe   : > { %v12928_v26 = vpop.permute.xlu1 %3407 }
 0x9ff   : > { %17336 = vst [vmem:[#allocation216_spill] sm:$0xff] %v12928_v26  ;;  %v12930_v41 = vpop.permute.xlu0 %3409 }
 0xa00   : > { %17337 = vst [vmem:[#allocation210_spill] sm:$0xff] %v12930_v41 }
 0xa02   : > { %v12932_v60 = vpop.permute.xlu1 %3411 }
 0xa03   : > { %17338 = vst [vmem:[#allocation217_spill] sm:$0xff] %v12932_v60  ;;  %v12934_v43 = vpop.permute.xlu0 %3413 }
 0xa04   : > { %17339 = vst [vmem:[#allocation212_spill] sm:$0xff] %v12934_v43 }
 0xa06   : > { %v12936_v50 = vpop.permute.xlu1 %3415 }
 0xa07   : > { %17340 = vst [vmem:[#allocation218_spill] sm:$0xff] %v12936_v50  ;;  %v12938_v27 = vpop.permute.xlu0 %3417 }
 0xa08   : > { %17341 = vst [vmem:[#allocation214_spill] sm:$0xff] %v12938_v27  ;;  %v17348_v27 = vld [vmem:[#allocation288_spill] sm:$0xff] }
 0xa0a   : > { %v12940_v30 = vpop.permute.xlu1 %3419 }
 0xa0b   : > { %17342 = vst [vmem:[#allocation219_spill] sm:$0xff] %v12940_v30  ;;  %v12942_v28 = vpop.permute.xlu0 %3421 }
 0xa0c   : > { %17343 = vst [vmem:[#allocation232_spill] sm:$0xff] %v12942_v28 }
 0xa0e   : > { %v12944_v7 = vpop.permute.xlu1 %3423 }
 0xa0f   : > { %17344 = vst [vmem:[#allocation240_spill] sm:$0xff] %v12944_v7  ;;  %v12946_v51 = vpop.permute.xlu0 %3425  ;;  %v17349_v7 = vld [vmem:[#allocation290_spill] sm:$0xff] }
 0xa10   : > { %17345 = vst [vmem:[#allocation242_spill] sm:$0xff] %v12946_v51 }
 0xa12   : > { %v12948_v48 = vpop.permute.xlu1 %3427 }
 0xa13   : > { %17346 = vst [vmem:[#allocation244_spill] sm:$0xff] %v12948_v48  ;;  %v3462_v11 = vpop.permute.xlu0 %3461  ;;  %v17350_v48 = vld [vmem:[#allocation282_spill] sm:$0xff] }
 0xa14   : > { %v3509_v56 = vsub.f32 %v17347_v19, %v3462_v11  ;;  %v17351_v11 = vld [vmem:[#allocation291_spill] sm:$0xff] }
 0xa16   : > { %v3525_v57 = vmul.f32 1.442695, %v3509_v56  ;;  %v3464_v60 = vpop.permute.xlu1 %3463 }
 0xa17   : > { %v3510_v43 = vsub.f32 %v11706_v38, %v3464_v60  ;;  %v3466_v50 = vpop.permute.xlu0 %3465 }
 0xa18   : > { %9546 = vpow2.f32 %v3525_v57  ;;  %v3511_v41 = vsub.f32 %v17348_v27, %v3466_v50  ;;  %v17352_v57 = vld [vmem:[#allocation283_spill] sm:$0xff] }
 0xa19   : > { %v3527_v30 = vmul.f32 1.442695, %v3510_v43 }
 0xa1a   : > { %v3529_v26 = vmul.f32 1.442695, %v3511_v41  ;;  %v3468_v28 = vpop.permute.xlu1 %3467 }
 0xa1b   : > { %9548 = vpow2.f32 %v3527_v30  ;;  %v3512_v35 = vsub.f32 %v17349_v7, %v3468_v28  ;;  %v3470_v51 = vpop.permute.xlu0 %3469  ;;  %v17354_v7 = vld [vmem:[#allocation292_spill] sm:$0xff] }
 0xa1c   : > { %9550 = vpow2.f32 %v3529_v26  ;;  %v3513_v59 = vsub.f32 %v17350_v48, %v3470_v51  ;;  %v17355_v51 = vld [vmem:[#allocation285_spill] sm:$0xff] }
 0xa1d   : > { %v3531_v18 = vmul.f32 1.442695, %v3512_v35 }
 0xa1e   : > { %v3533_v19 = vmul.f32 1.442695, %v3513_v59  ;;  %v3472_v56 = vpop.permute.xlu1 %3471 }
 0xa1f   : > { %9552 = vpow2.f32 %v3531_v18  ;;  %v3514_v38 = vsub.f32 %v17351_v11, %v3472_v56  ;;  %v3474_v60 = vpop.permute.xlu0 %3473 }
 0xa20   : > { %9554 = vpow2.f32 %v3533_v19  ;;  %v3515_v27 = vsub.f32 %v17352_v57, %v3474_v60  ;;  %v17358_v60 = vld [vmem:[#allocation286_spill] sm:$0xff] }
 0xa21   : > { %v3535_v50 = vmul.f32 1.442695, %v3514_v38 }
 0xa22   : > { %v12957_v43 = vpop.eup %9546  ;;  %v3537_v30 = vmul.f32 1.442695, %v3515_v27  ;;  %v3476_v41 = vpop.permute.xlu1 %3475 }
 0xa23   : > { %17353 = vst [vmem:[#allocation235_spill] sm:$0xff] %v12957_v43  ;;  %9556 = vpow2.f32 %v3535_v50  ;;  %v3516_v28 = vsub.f32 %v17354_v7, %v3476_v41  ;;  %3573 = vrot.lane.b32.xlu0 %v12957_v43, %s9837_s2  ;;  %v3478_v48 = vpop.permute.xlu0 %3477 }
 0xa24   : > { %9558 = vpow2.f32 %v3537_v30  ;;  %v3517_v26 = vsub.f32 %v17355_v51, %v3478_v48  ;;  %v17362_v51 = vld [vmem:[#allocation287_spill] sm:$0xff] }
 0xa25   : > { %v12963_v35 = vpop.eup %9548  ;;  %v3539_v18 = vmul.f32 1.442695, %v3516_v28  ;;  %v17361_v28 = vld [vmem:[#allocation293_spill] sm:$0xff] }
 0xa26   : > { %17356 = vst [vmem:[#allocation246_spill] sm:$0xff] %v12963_v35  ;;  %v12965_v59 = vpop.eup %9550  ;;  %v3541_v19 = vmul.f32 1.442695, %v3517_v26  ;;  %3575 = vrot.lane.b32.xlu1 %v12963_v35, %s9837_s2  ;;  %v3480_v56 = vpop.permute.xlu1 %3479 }
 0xa27   : > { %17357 = vst [vmem:[#allocation237_spill] sm:$0xff] %v12965_v59  ;;  %9560 = vpow2.f32 %v3539_v18  ;;  %v3518_v11 = vsub.f32 %v11744_v21, %v3480_v56  ;;  %3577 = vrot.lane.b32.xlu0 %v12965_v59, %s9837_s2  ;;  %v3482_v38 = vpop.permute.xlu0 %3481 }
 0xa28   : > { %9562 = vpow2.f32 %v3541_v19  ;;  %v3519_v57 = vsub.f32 %v17358_v60, %v3482_v38  ;;  %v17365_v60 = vld [vmem:[#allocation294_spill] sm:$0xff] }
 0xa29   : > { %v12973_v27 = vpop.eup %9552  ;;  %v3543_v50 = vmul.f32 1.442695, %v3518_v11 }
 0xa2a   : > { %17359 = vst [vmem:[#allocation247_spill] sm:$0xff] %v12973_v27  ;;  %v12975_v30 = vpop.eup %9554  ;;  %v3545_v41 = vmul.f32 1.442695, %v3519_v57  ;;  %3579 = vrot.lane.b32.xlu1 %v12973_v27, %s9837_s2  ;;  %v3484_v7 = vpop.permute.xlu1 %3483 }
 0xa2b   : > { %17360 = vst [vmem:[#allocation239_spill] sm:$0xff] %v12975_v30  ;;  %9564 = vpow2.f32 %v3543_v50  ;;  %v3520_v21 = vsub.f32 %v17361_v28, %v3484_v7  ;;  %3581 = vrot.lane.b32.xlu0 %v12975_v30, %s9837_s2  ;;  %v3486_v48 = vpop.permute.xlu0 %3485 }
 0xa2c   : > { %9566 = vpow2.f32 %v3545_v41  ;;  %v3521_v26 = vsub.f32 %v17362_v51, %v3486_v48  ;;  %v17366_v41 = vld [vmem:[#allocation289_spill] sm:$0xff] }
 0xa2d   : > { %v12983_v18 = vpop.eup %9556  ;;  %v3547_v19 = vmul.f32 1.442695, %v3520_v21 }
 0xa2e   : > { %17363 = vst [vmem:[#allocation248_spill] sm:$0xff] %v12983_v18  ;;  %v12985_v56 = vpop.eup %9558  ;;  %v3549_v11 = vmul.f32 1.442695, %v3521_v26  ;;  %3583 = vrot.lane.b32.xlu1 %v12983_v18, %s9837_s2  ;;  %v3488_v38 = vpop.permute.xlu1 %3487 }
 0xa2f   : > { %17364 = vst [vmem:[#allocation241_spill] sm:$0xff] %v12985_v56  ;;  %9568 = vpow2.f32 %v3547_v19  ;;  %v3522_v57 = vsub.f32 %v17365_v60, %v3488_v38  ;;  %3585 = vrot.lane.b32.xlu0 %v12985_v56, %s9837_s2  ;;  %v3490_v50 = vpop.permute.xlu0 %3489 }
 0xa30   : > { %9570 = vpow2.f32 %v3549_v11  ;;  %v3523_v7 = vsub.f32 %v17366_v41, %v3490_v50 }
 0xa31   : > { %v12993_v28 = vpop.eup %9560  ;;  %v3551_v21 = vmul.f32 1.442695, %v3522_v57 }
 0xa32   : > { %17367 = vst [vmem:[#allocation249_spill] sm:$0xff] %v12993_v28  ;;  %v12995_v48 = vpop.eup %9562  ;;  %v3553_v51 = vmul.f32 1.442695, %v3523_v7  ;;  %3587 = vrot.lane.b32.xlu1 %v12993_v28, %s9837_s2  ;;  %v3492_v26 = vpop.permute.xlu1 %3491 }
 0xa33   : > { %17368 = vst [vmem:[#allocation243_spill] sm:$0xff] %v12995_v48  ;;  %9572 = vpow2.f32 %v3551_v21  ;;  %v3524_v19 = vsub.f32 %v11763_v20, %v3492_v26  ;;  %3589 = vrot.lane.b32.xlu0 %v12995_v48, %s9837_s2 }
 0xa34   : > { %9574 = vpow2.f32 %v3553_v51 }
 0xa35   : > { %v13002_v11 = vpop.eup %9564  ;;  %v3555_v38 = vmul.f32 1.442695, %v3524_v19 }
 0xa36   : > { %17369 = vst [vmem:[#allocation250_spill] sm:$0xff] %v13002_v11  ;;  %v13004_v60 = vpop.eup %9566  ;;  %3591 = vrot.lane.b32.xlu1 %v13002_v11, %s9837_s2 }
 0xa37   : > { %17370 = vst [vmem:[#allocation245_spill] sm:$0xff] %v13004_v60  ;;  %9576 = vpow2.f32 %v3555_v38  ;;  %3593 = vrot.lane.b32.xlu0 %v13004_v60, %s9837_s2 }
 0xa39   : > { %v13010_v57 = vpop.eup %9568 }
 0xa3a   : > { %17371 = vst [vmem:[#allocation252_spill] sm:$0xff] %v13010_v57  ;;  %v13012_v50 = vpop.eup %9570  ;;  %3595 = vrot.lane.b32.xlu1 %v13010_v57, %s9837_s2 }
 0xa3b   : > { %17372 = vst [vmem:[#allocation279_spill] sm:$0xff] %v13012_v50  ;;  %3597 = vrot.lane.b32.xlu0 %v13012_v50, %s9837_s2 }
 0xa3d   : > { %v13018_v20 = vpop.eup %9572 }
 0xa3e   : > { %17373 = vst [vmem:[#allocation288_spill] sm:$0xff] %v13018_v20  ;;  %v13020_v41 = vpop.eup %9574  ;;  %3599 = vrot.lane.b32.xlu1 %v13018_v20, %s9837_s2 }
 0xa3f   : > { %17374 = vst [vmem:[#allocation290_spill] sm:$0xff] %v13020_v41  ;;  %3601 = vrot.lane.b32.xlu0 %v13020_v41, %s9837_s2 }
 0xa41   : > { %v13026_v7 = vpop.eup %9576 }
 0xa42   : > { %17375 = vst [vmem:[#allocation282_spill] sm:$0xff] %v13026_v7  ;;  %3603 = vrot.lane.b32.xlu1 %v13026_v7, %s9837_s2 }
 0xa43   : > { %3637 = vrot.lane.b32.xlu0 %v11971_v55, %s16689_s29 }
 0xa46   : > { %3639 = vrot.lane.b32.xlu1 %v12065_v10, %s16689_s29 }
 0xa47   : > { %3641 = vrot.lane.b32.xlu0 %v12091_v52, %s16689_s29 }
 0xa4a   : > { %3643 = vrot.lane.b32.xlu1 %v12116_v32, %s16689_s29 }
 0xa4b   : > { %3645 = vrot.lane.b32.xlu0 %v12114_v5, %s16689_s29 }
 0xa4e   : > { %3647 = vrot.lane.b32.xlu1 %v12143_v37, %s16689_s29 }
 0xa4f   : > { %3649 = vrot.lane.b32.xlu0 %v12141_v62, %s16689_s29 }
 0xa52   : > { %3651 = vrot.lane.b32.xlu1 %v12170_v39, %s16689_s29 }
 0xa53   : > { %3653 = vrot.lane.b32.xlu0 %v12168_v16, %s16689_s29 }
 0xa56   : > { %3655 = vrot.lane.b32.xlu1 %v12191_v22, %s16689_s29 }
 0xa57   : > { %3657 = vrot.lane.b32.xlu0 %v12189_v58, %s16689_s29 }
 0xa5a   : > { %3659 = vrot.lane.b32.xlu1 %v12207_v2, %s16689_s29 }
 0xa5b   : > { %3661 = vrot.lane.b32.xlu0 %v12205_v47, %s16689_s29 }
 0xa5e   : > { %3663 = vrot.lane.b32.xlu1 %v12219_v17, %s16689_s29 }
 0xa5f   : > { %3665 = vrot.lane.b32.xlu0 %v12217_v4, %s16689_s29 }
 0xa62   : > { %3667 = vrot.lane.b32.xlu1 %v12226_v23, %s16689_s29 }
 0xa95   : > { %v13062_v21 = vpop.permute.xlu0 %3573 }
 0xa96   : > { %17376 = vst [vmem:[#allocation291_spill] sm:$0xff] %v13062_v21 }
 0xa98   : > { %v13064_v51 = vpop.permute.xlu1 %3575 }
 0xa99   : > { %v13066_v26 = vpop.permute.xlu0 %3577 }
 0xa9c   : > { %v13068_v19 = vpop.permute.xlu1 %3579 }
 0xa9d   : > { %v13070_v38 = vpop.permute.xlu0 %3581 }
 0xaa0   : > { %v13072_v7 = vpop.permute.xlu1 %3583 }
 0xaa1   : > { %v13074_v41 = vpop.permute.xlu0 %3585 }
 0xaa4   : > { %v13076_v20 = vpop.permute.xlu1 %3587 }
 0xaa5   : > { %v13078_v50 = vpop.permute.xlu0 %3589 }
 0xaa6   : > { %17377 = vst [vmem:[#allocation283_spill] sm:$0xff] %v13078_v50 }
 0xaa8   : > { %v13080_v57 = vpop.permute.xlu1 %3591 }
 0xaa9   : > { %17378 = vst [vmem:[#allocation292_spill] sm:$0xff] %v13080_v57  ;;  %v13082_v60 = vpop.permute.xlu0 %3593 }
 0xaaa   : > { %17379 = vst [vmem:[#allocation285_spill] sm:$0xff] %v13082_v60 }
 0xaac   : > { %v13084_v11 = vpop.permute.xlu1 %3595 }
 0xaad   : > { %17380 = vst [vmem:[#allocation286_spill] sm:$0xff] %v13084_v11  ;;  %v13086_v48 = vpop.permute.xlu0 %3597 }
 0xaae   : > { %17381 = vst [vmem:[#allocation293_spill] sm:$0xff] %v13086_v48 }
 0xab0   : > { %v13088_v28 = vpop.permute.xlu1 %3599 }
 0xab1   : > { %17382 = vst [vmem:[#allocation287_spill] sm:$0xff] %v13088_v28  ;;  %v13090_v56 = vpop.permute.xlu0 %3601 }
 0xab2   : > { %17383 = vst [vmem:[#allocation294_spill] sm:$0xff] %v13090_v56 }
 0xab4   : > { %v13092_v18 = vpop.permute.xlu1 %3603 }
 0xab5   : > { %17384 = vst [vmem:[#allocation289_spill] sm:$0xff] %v13092_v18  ;;  %v3638_v30 = vpop.permute.xlu0 %3637 }
 0xab6   : > { %v3685_v27 = vsub.f32 %v11854_v24, %v3638_v30 }
 0xab8   : > { %v3701_v59 = vmul.f32 1.442695, %v3685_v27  ;;  %v3640_v35 = vpop.permute.xlu1 %3639 }
 0xab9   : > { %v3686_v43 = vsub.f32 %v11906_v54, %v3640_v35  ;;  %v3642_v21 = vpop.permute.xlu0 %3641 }
 0xaba   : > { %9578 = vpow2.f32 %v3701_v59  ;;  %v3687_v60 = vsub.f32 %v11912_v29, %v3642_v21 }
 0xabb   : > { %v3703_v11 = vmul.f32 1.442695, %v3686_v43 }
 0xabc   : > { %v3705_v57 = vmul.f32 1.442695, %v3687_v60  ;;  %v3644_v48 = vpop.permute.xlu1 %3643 }
 0xabd   : > { %9580 = vpow2.f32 %v3703_v11  ;;  %v3688_v28 = vsub.f32 %v11918_v25, %v3644_v48  ;;  %v3646_v56 = vpop.permute.xlu0 %3645 }
 0xabe   : > { %9582 = vpow2.f32 %v3705_v57  ;;  %v3689_v18 = vsub.f32 %v11864_v14, %v3646_v56  ;;  %v17385_v57 = vld [vmem:[#allocation295_spill] sm:$0xff] }
 0xabf   : > { %v3707_v50 = vmul.f32 1.442695, %v3688_v28 }
 0xac0   : > { %v3709_v24 = vmul.f32 1.442695, %v3689_v18  ;;  %v3648_v27 = vpop.permute.xlu1 %3647 }
 0xac1   : > { %9584 = vpow2.f32 %v3707_v50  ;;  %v3690_v54 = vsub.f32 %v11924_v12, %v3648_v27  ;;  %v3650_v35 = vpop.permute.xlu0 %3649 }
 0xac2   : > { %9586 = vpow2.f32 %v3709_v24  ;;  %v3691_v29 = vsub.f32 %v11870_v0, %v3650_v35  ;;  %v16659_v24 = vmov 0   ;;  %v17387_v35 = vld [vmem:[#allocation298_spill] sm:$0xff] }
 0xac3   : > { %v3711_v43 = vmul.f32 1.442695, %v3690_v54  ;;  %9105 = vset.pattern.permute.xlu1 %v16659_v24 }
 0xac4   : > { %v13101_v59 = vpop.eup %9578  ;;  %v3713_v30 = vmul.f32 1.442695, %v3691_v29  ;;  %v3652_v11 = vpop.permute.xlu1 %3651 }
 0xac5   : > { %9588 = vpow2.f32 %v3711_v43  ;;  %v3692_v25 = vsub.f32 %v11930_v9, %v3652_v11  ;;  %3749 = vrot.lane.b32.xlu0 %v13101_v59, %s9838_s3  ;;  %v3654_v14 = vpop.permute.xlu0 %3653 }
 0xac6   : > { %9590 = vpow2.f32 %v3713_v30  ;;  %v3693_v18 = vsub.f32 %v11878_v3, %v3654_v14  ;;  %v17388_v30 = vld [vmem:[#allocation296_spill] sm:$0xff] }
 0xac7   : > { %v13107_v12 = vpop.eup %9580  ;;  %v3715_v56 = vmul.f32 1.442695, %v3692_v25 }
 0xac8   : > { %v13109_v28 = vpop.eup %9582  ;;  %v3717_v0 = vmul.f32 1.442695, %v3693_v18  ;;  %3751 = vrot.lane.b32.xlu1 %v13107_v12, %s9838_s3  ;;  %v3656_v48 = vpop.permute.xlu1 %3655 }
 0xac9   : > { %9592 = vpow2.f32 %v3715_v56  ;;  %v3694_v9 = vsub.f32 %v11936_v6, %v3656_v48  ;;  %3753 = vrot.lane.b32.xlu0 %v13109_v28, %s9838_s3  ;;  %v3658_v60 = vpop.permute.xlu0 %3657  ;;  %v17391_v48 = vld [vmem:[#allocation299_spill] sm:$0xff] }
 0xaca   : > { %9594 = vpow2.f32 %v3717_v0  ;;  %v3695_v3 = vsub.f32 %v17385_v57, %v3658_v60  ;;  %v17392_v57 = vld [vmem:[#allocation297_spill] sm:$0xff] }
 0xacb   : > { %v13117_v50 = vpop.eup %9584  ;;  %v3719_v21 = vmul.f32 1.442695, %v3694_v9 }
 0xacc   : > { %v13120_v27 = vpop.eup %9586  ;;  %v3721_v54 = vmul.f32 1.442695, %v3695_v3  ;;  %3755 = vrot.lane.b32.xlu1 %v13117_v50, %s9838_s3  ;;  %v3660_v6 = vpop.permute.xlu1 %3659 }
 0xacd   : > { %17386 = vst [vmem:[#allocation295_spill] sm:$0xff] %v13120_v27  ;;  %9596 = vpow2.f32 %v3719_v21  ;;  %v3696_v29 = vsub.f32 %v17387_v35, %v3660_v6  ;;  %3757 = vrot.lane.b32.xlu0 %v13120_v27, %s9838_s3  ;;  %v3662_v43 = vpop.permute.xlu0 %3661  ;;  %v17459_v27 = vld [vmem:[#allocation136_spill] sm:$0xff] }
 0xace   : > { %9598 = vpow2.f32 %v3721_v54  ;;  %v3697_v11 = vsub.f32 %v17388_v30, %v3662_v43  ;;  %v17395_v43 = vld [vmem:[#allocation300_spill] sm:$0xff] }
 0xacf   : > { %v13128_v25 = vpop.eup %9588  ;;  %v3723_v14 = vmul.f32 1.442695, %v3696_v29 }
 0xad0   : > { %17389 = vst [vmem:[#allocation298_spill] sm:$0xff] %v13128_v25  ;;  %v13130_v18 = vpop.eup %9590  ;;  %v3725_v56 = vmul.f32 1.442695, %v3697_v11  ;;  %3759 = vrot.lane.b32.xlu1 %v13128_v25, %s9838_s3  ;;  %v3664_v0 = vpop.permute.xlu1 %3663  ;;  %v17444_v25 = vld [vmem:[#allocation131_spill] sm:$0xff] }
 0xad1   : > { %17390 = vst [vmem:[#allocation296_spill] sm:$0xff] %v13130_v18  ;;  %9600 = vpow2.f32 %v3723_v14  ;;  %v3698_v9 = vsub.f32 %v17391_v48, %v3664_v0  ;;  %3761 = vrot.lane.b32.xlu0 %v13130_v18, %s9838_s3  ;;  %v3666_v60 = vpop.permute.xlu0 %3665 }
 0xad2   : > { %9602 = vpow2.f32 %v3725_v56  ;;  %v3699_v3 = vsub.f32 %v17392_v57, %v3666_v60 }
 0xad3   : > { %v13138_v21 = vpop.eup %9592  ;;  %v3727_v54 = vmul.f32 1.442695, %v3698_v9 }
 0xad4   : > { %17393 = vst [vmem:[#allocation299_spill] sm:$0xff] %v13138_v21  ;;  %v13140_v6 = vpop.eup %9594  ;;  %v3729_v35 = vmul.f32 1.442695, %v3699_v3  ;;  %3763 = vrot.lane.b32.xlu1 %v13138_v21, %s9838_s3  ;;  %v3668_v29 = vpop.permute.xlu1 %3667  ;;  %v17403_v3 = vld [vmem:[#allocation49_spill] sm:$0xff] }
 0xad5   : > { %17394 = vst [vmem:[#allocation297_spill] sm:$0xff] %v13140_v6  ;;  %9604 = vpow2.f32 %v3727_v54  ;;  %v3700_v30 = vsub.f32 %v17395_v43, %v3668_v29  ;;  %3765 = vrot.lane.b32.xlu0 %v13140_v6, %s9838_s3  ;;  %v2453_v54 = vsub.f32 %v17403_v3, %v11971_v55  ;;  %v17405_v43 = vld [vmem:[#allocation53_spill] sm:$0xff] }
 0xad6   : > { %9606 = vpow2.f32 %v3729_v35  ;;  %v17404_v35 = vld [vmem:[#allocation301_spill] sm:$0xff] }
 0xad7   : > { %v13147_v11 = vpop.eup %9596  ;;  %v3731_v14 = vmul.f32 1.442695, %v3700_v30  ;;  %v2501_v29 = vsub.f32 %v17404_v35, %v11971_v55  ;;  %v2457_v30 = vsub.f32 %v17405_v43, %v12114_v5  ;;  %v17409_v3 = vld [vmem:[#allocation57_spill] sm:$0xff]  ;;  %v17410_v55 = vld [vmem:[#allocation67_spill] sm:$0xff] }
 0xad8   : > { %17396 = vst [vmem:[#allocation300_spill] sm:$0xff] %v13147_v11  ;;  %v13149_v56 = vpop.eup %9598  ;;  %3767 = vrot.lane.b32.xlu1 %v13147_v11, %s9838_s3  ;;  %v2461_v6 = vsub.f32 %v17409_v3, %v12168_v16  ;;  %v2509_v35 = vsub.f32 %v17410_v55, %v12168_v16  ;;  %v2513_v16 = vsub.f32 %v12098_v1, %v12205_v47  ;;  %v17416_v3 = vld [vmem:[#allocation50_spill] sm:$0xff] }
 0xad9   : > { %17397 = vst [vmem:[#allocation302_spill] sm:$0xff] %v13149_v56  ;;  %9608 = vpow2.f32 %v3731_v14  ;;  %3769 = vrot.lane.b32.xlu0 %v13149_v56, %s9838_s3  ;;  %v17406_v14 = vld [vmem:[#allocation66_spill] sm:$0xff]  ;;  %v17408_v56 = vld [vmem:[#allocation68_spill] sm:$0xff]  ;;  %v2477_v11 = vmul.f32 1.442695, %v2457_v30  ;;  %v2515_v1 = vsub.f32 %v12126_v36, %v12217_v4  ;;  %v2456_v55 = vsub.f32 %v17416_v3, %v12116_v32 }
 0xada   : > { %v2505_v24 = vsub.f32 %v17406_v14, %v12114_v5  ;;  %v2463_v5 = vsub.f32 %v17055_v33, %v12189_v58  ;;  %v2467_v33 = vsub.f32 %v17086_v34, %v12217_v4  ;;  %v17417_v36 = vld [vmem:[#allocation64_spill] sm:$0xff] }
 0xadb   : > { %v13155_v0 = vpop.eup %9600  ;;  %v2504_v4 = vsub.f32 %v17417_v36, %v12116_v32  ;;  %v2475_v32 = vmul.f32 1.442695, %v2456_v55  ;;  %v17425_v36 = vld [vmem:[#allocation112_spill] sm:$0xff] }
 0xadc   : > { %17398 = vst [vmem:[#allocation303_spill] sm:$0xff] %v13155_v0  ;;  %v13157_v48 = vpop.eup %9602  ;;  %3771 = vrot.lane.b32.xlu1 %v13155_v0, %s9838_s3  ;;  %v2517_v0 = vmul.f32 1.442695, %v2501_v29  ;;  %v2525_v21 = vmul.f32 1.442695, %v2505_v24  ;;  %v17414_v29 = vld [vmem:[#allocation268_spill] sm:$0xff] }
 0xadd   : > { %17399 = vst [vmem:[#allocation304_spill] sm:$0xff] %v13157_v48  ;;  %3773 = vrot.lane.b32.xlu0 %v13157_v48, %s9838_s3  ;;  %v2533_v24 = vmul.f32 1.442695, %v2509_v35  ;;  %v2497_v34 = vmul.f32 1.442695, %v2467_v33  ;;  %v2503_v30 = vsub.f32 %v17414_v29, %v12091_v52  ;;  %v17420_v33 = vld [vmem:[#allocation54_spill] sm:$0xff] }
 0xadf   : > { %v13163_v9 = vpop.eup %9604 }
 0xae0   : > { %17400 = vst [vmem:[#allocation305_spill] sm:$0xff] %v13163_v9  ;;  %v13165_v60 = vpop.eup %9606  ;;  %3775 = vrot.lane.b32.xlu1 %v13163_v9, %s9838_s3  ;;  %v2469_v9 = vmul.f32 1.442695, %v2453_v54 }
 0xae1   : > { %17401 = vst [vmem:[#allocation306_spill] sm:$0xff] %v13165_v60  ;;  %3777 = vrot.lane.b32.xlu0 %v13165_v60, %s9838_s3  ;;  %v17407_v60 = vld [vmem:[#allocation55_spill] sm:$0xff] }
 0xae2   : > { %v2459_v48 = vsub.f32 %v17407_v60, %v12141_v62  ;;  %9610 = vpow2.f32 %v2469_v9  ;;  %v2511_v60 = vsub.f32 %v12058_v44, %v12189_v58  ;;  %v17412_v58 = vld [vmem:[#allocation220_spill] sm:$0xff] }
 0xae3   : > { %v13171_v57 = vpop.eup %9608  ;;  %9612 = vpow2.f32 %v2517_v0  ;;  %v17411_v0 = vld [vmem:[#allocation51_spill] sm:$0xff] }
 0xae4   : > { %17402 = vst [vmem:[#allocation307_spill] sm:$0xff] %v13171_v57  ;;  %3779 = vrot.lane.b32.xlu1 %v13171_v57, %s9838_s3  ;;  %v2507_v57 = vsub.f32 %v17408_v56, %v12141_v62  ;;  %v2481_v43 = vmul.f32 1.442695, %v2459_v48  ;;  %9614 = vpow2.f32 %v2477_v11  ;;  %v2485_v62 = vmul.f32 1.442695, %v2461_v6 }
 0xae5   : > { %v2465_v56 = vsub.f32 %v17074_v63, %v12205_v47  ;;  %9616 = vpow2.f32 %v2525_v21  ;;  %v2489_v48 = vmul.f32 1.442695, %v2463_v5  ;;  %v2454_v9 = vsub.f32 %v17411_v0, %v12065_v10  ;;  %v17413_v47 = vld [vmem:[#allocation48_spill] sm:$0xff] }
 0xae6   : > { %v2529_v54 = vmul.f32 1.442695, %v2507_v57  ;;  %9618 = vpow2.f32 %v2481_v43  ;;  %v2537_v44 = vmul.f32 1.442695, %v2511_v60  ;;  %v2502_v6 = vsub.f32 %v17412_v58, %v12065_v10  ;;  %v17421_v58 = vld [vmem:[#allocation65_spill] sm:$0xff] }
 0xae7   : > { %v2493_v63 = vmul.f32 1.442695, %v2465_v56  ;;  %v2541_v21 = vmul.f32 1.442695, %v2513_v16  ;;  %v2455_v11 = vsub.f32 %v17413_v47, %v12091_v52  ;;  %v2471_v57 = vmul.f32 1.442695, %v2454_v9 }
 0xae8   : > { %9620 = vpow2.f32 %v2529_v54  ;;  %v2519_v10 = vmul.f32 1.442695, %v2502_v6  ;;  %v2545_v43 = vmul.f32 1.442695, %v2515_v1  ;;  %v17418_v52 = vld [vmem:[#allocation52_spill] sm:$0xff]  ;;  %v2460_v0 = vsub.f32 %v17420_v33, %v12170_v39 }
 0xae9   : > { %9622 = vpow2.f32 %v2485_v62  ;;  %v2473_v54 = vmul.f32 1.442695, %v2455_v11  ;;  %v2458_v60 = vsub.f32 %v17418_v52, %v12143_v37  ;;  %v2521_v56 = vmul.f32 1.442695, %v2503_v30 }
 0xaea   : > { %9624 = vpow2.f32 %v2533_v24  ;;  %v17419_v24 = vld [vmem:[#allocation111_spill] sm:$0xff]  ;;  %v2508_v6 = vsub.f32 %v17421_v58, %v12170_v39  ;;  %v2483_v30 = vmul.f32 1.442695, %v2460_v0  ;;  %v17424_v39 = vld [vmem:[#allocation58_spill] sm:$0xff] }
 0xaeb   : > { %9626 = vpow2.f32 %v2489_v48  ;;  %v2506_v16 = vsub.f32 %v17419_v24, %v12143_v37  ;;  %v17422_v37 = vld [vmem:[#allocation56_spill] sm:$0xff] }
 0xaec   : > { %9628 = vpow2.f32 %v2537_v44  ;;  %v13211_v14 = vpop.eup %9610  ;;  %v2523_v44 = vmul.f32 1.442695, %v2504_v4  ;;  %v2462_v1 = vsub.f32 %v17422_v37, %v12191_v22  ;;  %v2531_v55 = vmul.f32 1.442695, %v2508_v6 }
 0xaed   : > { %17415 = vst [vmem:[#allocation49_spill] sm:$0xff] %v13211_v14  ;;  %9630 = vpow2.f32 %v2493_v63  ;;  %v13215_v35 = vpop.eup %9612  ;;  %v2527_v11 = vmul.f32 1.442695, %v2506_v16  ;;  %v2512_v4 = vsub.f32 %v17425_v36, %v12207_v2 }
 0xaee   : > { %9632 = vpow2.f32 %v2541_v21  ;;  %v13219_v5 = vpop.eup %9614  ;;  %v2479_v21 = vmul.f32 1.442695, %v2458_v60 }
 0xaef   : > { %9634 = vpow2.f32 %v2497_v34  ;;  %v13223_v62 = vpop.eup %9616  ;;  %v17423_v34 = vld [vmem:[#allocation142_spill] sm:$0xff]  ;;  %v2539_v0 = vmul.f32 1.442695, %v2512_v4 }
 0xaf0   : > { %9636 = vpow2.f32 %v2471_v57  ;;  %v13227_v48 = vpop.eup %9618  ;;  %v2510_v57 = vsub.f32 %v17423_v34, %v12191_v22  ;;  %v2466_v22 = vsub.f32 %v17062_v13, %v12219_v17  ;;  %v2516_v13 = vsub.f32 %v12153_v49, %v12226_v23 }
 0xaf1   : > { %9638 = vpow2.f32 %v2519_v10  ;;  %v2464_v10 = vsub.f32 %v17424_v39, %v12207_v2  ;;  %v2468_v2 = vsub.f32 %v17098_v42, %v12226_v23 }
 0xaf2   : > { %v13231_v9 = vpop.eup %9620  ;;  %9640 = vpow2.f32 %v2545_v43  ;;  %v2535_v60 = vmul.f32 1.442695, %v2510_v57  ;;  %v2495_v58 = vmul.f32 1.442695, %v2466_v22 }
 0xaf3   : > { %v13235_v63 = vpop.eup %9622  ;;  %9642 = vpow2.f32 %v2473_v54  ;;  %v2487_v54 = vmul.f32 1.442695, %v2462_v1  ;;  %v2499_v37 = vmul.f32 1.442695, %v2468_v2  ;;  %v2547_v1 = vmul.f32 1.442695, %v2516_v13 }
 0xaf4   : > { %v13239_v47 = vpop.eup %9624  ;;  %9644 = vpow2.f32 %v2521_v56  ;;  %v17426_v56 = vld [vmem:[#allocation190_spill] sm:$0xff] }
 0xaf5   : > { %v13243_v29 = vpop.eup %9626  ;;  %9646 = vpow2.f32 %v2475_v32  ;;  %v2514_v24 = vsub.f32 %v17426_v56, %v12219_v17  ;;  %v2491_v32 = vmul.f32 1.442695, %v2464_v10 }
 0xaf6   : > { %v13247_v3 = vpop.eup %9628  ;;  %9648 = vpow2.f32 %v2523_v44 }
 0xaf7   : > { %v13251_v43 = vpop.eup %9630  ;;  %9650 = vpow2.f32 %v2479_v21  ;;  %v2543_v17 = vmul.f32 1.442695, %v2514_v24 }
 0xaf8   : > { %v13255_v52 = vpop.eup %9632  ;;  %9652 = vpow2.f32 %v2527_v11 }
 0xaf9   : > { %v13259_v16 = vpop.eup %9634  ;;  %9654 = vpow2.f32 %v2483_v30 }
 0xafa   : > { %v13263_v33 = vpop.eup %9636  ;;  %9656 = vpow2.f32 %v2531_v55 }
 0xafb   : > { %v13267_v44 = vpop.eup %9638  ;;  %9658 = vpow2.f32 %v2487_v54 }
 0xafc   : > { %17427 = vst [vmem:[#allocation301_spill] sm:$0xff] %v13267_v44  ;;  %v13269_v6 = vpop.eup %9640  ;;  %9660 = vpow2.f32 %v2535_v60  ;;  %v2550_v55 = vadd.f32 %v13267_v44, %v13263_v33 }
 0xafd   : > { %v13271_v21 = vpop.eup %9642  ;;  %9662 = vpow2.f32 %v2491_v32  ;;  %v2549_v32 = vadd.f32 %v13215_v35, %v13211_v14  ;;  %v17443_v14 = vld [vmem:[#allocation152_spill] sm:$0xff] }
 0xafe   : > { %v13273_v42 = vpop.eup %9644  ;;  %9664 = vpow2.f32 %v2539_v0  ;;  %v2742_v22 = vadd.f32 %v12344_v15, %v2550_v55  ;;  %v2553_v0 = vadd.f32 %v13223_v62, %v13219_v5  ;;  %v2555_v15 = vadd.f32 %v13231_v9, %v13227_v48 }
 0xaff   : > { %v13275_v11 = vpop.eup %9646  ;;  %9666 = vpow2.f32 %v2495_v58  ;;  %v2551_v4 = vadd.f32 %v13273_v42, %v13271_v21 }
 0xb00   : > { %17428 = vst [vmem:[#allocation53_spill] sm:$0xff] %v13275_v11  ;;  %v13277_v49 = vpop.eup %9648  ;;  %9668 = vpow2.f32 %v2543_v17  ;;  %v2918_v13 = vadd.f32 %v12488_v31, %v2742_v22  ;;  %v2559_v17 = vadd.f32 %v13247_v3, %v13243_v29  ;;  %v2561_v31 = vadd.f32 %v13255_v52, %v13251_v43 }
 0xb01   : > { %17429 = vst [vmem:[#allocation66_spill] sm:$0xff] %v13277_v49  ;;  %v13279_v23 = vpop.eup %9650  ;;  %9670 = vpow2.f32 %v2499_v37  ;;  %v2743_v56 = vadd.f32 %v12346_v8, %v2551_v4  ;;  %v2552_v2 = vadd.f32 %v13277_v49, %v13275_v11  ;;  %v2557_v8 = vadd.f32 %v13239_v47, %v13235_v63 }
 0xb02   : > { %17430 = vst [vmem:[#allocation55_spill] sm:$0xff] %v13279_v23  ;;  %v13281_v34 = vpop.eup %9652  ;;  %9672 = vpow2.f32 %v2547_v1  ;;  %v13328_v4 = vadd.f32 %v13269_v6, %v13259_v16  ;;  %v3094_v22 = vadd.f32 %v12632_v40, %v2918_v13  ;;  %v2745_v49 = vadd.f32 %v12350_v45, %v2553_v0  ;;  %v17445_v13 = vld [vmem:[#allocation224_spill] sm:$0xff] }
 0xb03   : > { %17431 = vst [vmem:[#allocation68_spill] sm:$0xff] %v13281_v34  ;;  %v13283_v57 = vpop.eup %9654  ;;  %v2919_v37 = vadd.f32 %v12490_v46, %v2743_v56  ;;  %v2744_v55 = vadd.f32 %v12348_v53, %v2552_v2  ;;  %v2554_v44 = vadd.f32 %v13281_v34, %v13279_v23  ;;  %v17442_v56 = vld [vmem:[#allocation275_spill] sm:$0xff]  ;;  %v17447_v34 = vld [vmem:[#allocation189_spill] sm:$0xff] }
 0xb04   : > { %17432 = vst [vmem:[#allocation57_spill] sm:$0xff] %v13283_v57  ;;  %v13285_v30 = vpop.eup %9656  ;;  %v3270_v40 = vadd.f32 %v17444_v25, %v3094_v22  ;;  %v17450_v22 = vld [vmem:[#allocation272_spill] sm:$0xff]  ;;  %v17456_v23 = vld [vmem:[#allocation133_spill] sm:$0xff] }
 0xb05   : > { %17433 = vst [vmem:[#allocation67_spill] sm:$0xff] %v13285_v30  ;;  %v13287_v39 = vpop.eup %9658  ;;  %v2556_v46 = vadd.f32 %v13285_v30, %v13283_v57  ;;  %v3095_v11 = vadd.f32 %v17442_v56, %v2919_v37  ;;  %v2920_v18 = vadd.f32 %v17443_v14, %v2744_v55  ;;  %v2921_v30 = vadd.f32 %v17445_v13, %v2745_v49  ;;  %v17446_v37 = vld [vmem:[#allocation134_spill] sm:$0xff] }
 0xb06   : > { %17434 = vst [vmem:[#allocation51_spill] sm:$0xff] %v13287_v39  ;;  %v13289_v10 = vpop.eup %9660  ;;  %v3446_v25 = vadd.f32 %v12920_v61, %v3270_v40  ;;  %v17453_v49 = vld [vmem:[#allocation206_spill] sm:$0xff] }
 0xb07   : > { %17435 = vst [vmem:[#allocation220_spill] sm:$0xff] %v13289_v10  ;;  %v13293_v36 = vpop.eup %9662  ;;  %v2558_v53 = vadd.f32 %v13289_v10, %v13287_v39  ;;  %v3271_v56 = vadd.f32 %v17446_v37, %v3095_v11  ;;  %v13352_v10 = vadd.f32 %v17447_v34, %v2549_v32  ;;  %v17448_v39 = vld [vmem:[#allocation194_spill] sm:$0xff]  ;;  %v17454_v11 = vld [vmem:[#allocation145_spill] sm:$0xff] }
 0xb08   : > { %17436 = vst [vmem:[#allocation48_spill] sm:$0xff] %v13293_v36  ;;  %v13297_v54 = vpop.eup %9664  ;;  %v2749_v37 = vadd.f32 %v17454_v11, %v2557_v8  ;;  %v17455_v34 = vld [vmem:[#allocation78_spill] sm:$0xff] }
 0xb09   : > { %17437 = vst [vmem:[#allocation268_spill] sm:$0xff] %v13297_v54  ;;  %v13300_v60 = vpop.eup %9666  ;;  %v2560_v2 = vadd.f32 %v13297_v54, %v13293_v36  ;;  %v2746_v54 = vadd.f32 %v17448_v39, %v2554_v44  ;;  %v17449_v36 = vld [vmem:[#allocation281_spill] sm:$0xff]  ;;  %v3447_v13 = vadd.f32 %v17453_v49, %v3271_v56  ;;  %v17457_v39 = vld [vmem:[#allocation148_spill] sm:$0xff]  ;;  %v17461_v56 = vld [vmem:[#allocation215_spill] sm:$0xff] }
 0xb0a   : > { %17438 = vst [vmem:[#allocation50_spill] sm:$0xff] %v13300_v60  ;;  %v13303_v24 = vpop.eup %9668  ;;  %v3096_v14 = vadd.f32 %v17449_v36, %v2920_v18  ;;  %v3622_v18 = vadd.f32 %v13064_v51, %v3446_v25  ;;  %v2750_v61 = vadd.f32 %v17457_v39, %v2558_v53  ;;  %v17458_v36 = vld [vmem:[#allocation231_spill] sm:$0xff]  ;;  %v17464_v51 = vld [vmem:[#allocation208_spill] sm:$0xff] }
 0xb0b   : > { %17439 = vst [vmem:[#allocation64_spill] sm:$0xff] %v13303_v24  ;;  %v13312_v58 = vpop.eup %9670  ;;  %v2562_v45 = vadd.f32 %v13303_v24, %v13300_v60  ;;  %v2747_v24 = vadd.f32 %v17450_v22, %v2555_v15  ;;  %v17451_v60 = vld [vmem:[#allocation75_spill] sm:$0xff]  ;;  %v2922_v32 = vadd.f32 %v17455_v34, %v2746_v54  ;;  %v17462_v54 = vld [vmem:[#allocation221_spill] sm:$0xff]  ;;  %v9847_v34 = vmov 1  }
 0xb0c   : > { %17440 = vst [vmem:[#allocation52_spill] sm:$0xff] %v13312_v58  ;;  %v13321_v1 = vpop.eup %9672  ;;  %v3272_v44 = vadd.f32 %v17456_v23, %v3096_v14  ;;  %v2751_v11 = vadd.f32 %v17462_v54, %v2559_v17  ;;  %v17463_v23 = vld [vmem:[#allocation236_spill] sm:$0xff]  ;;  %9107 = vset.pattern.permute.xlu0 %v9847_v34  ;;  %v17469_v17 = vld [vmem:[#allocation138_spill] sm:$0xff] }
 0xb0d   : > { %17441 = vst [vmem:[#allocation111_spill] sm:$0xff] %v13321_v1  ;;  %v13347_v0 = vadd.f32 %v13321_v1, %v13312_v58  ;;  %v2748_v1 = vadd.f32 %v17451_v60, %v2556_v46  ;;  %v17452_v58 = vld [vmem:[#allocation157_spill] sm:$0xff]  ;;  %v2923_v40 = vadd.f32 %v17458_v36, %v2747_v24  ;;  %v3623_v60 = vadd.f32 %v13066_v26, %v3447_v13  ;;  %v17466_v26 = vld [vmem:[#allocation135_spill] sm:$0xff] }
 0xb0e   : > { %v3097_v57 = vadd.f32 %v17452_v58, %v2921_v30  ;;  %v17460_v30 = vld [vmem:[#allocation230_spill] sm:$0xff]  ;;  %v3448_v22 = vadd.f32 %v17461_v56, %v3272_v44 }
 0xb0f   : > { %v3098_v58 = vadd.f32 %v17460_v30, %v2922_v32  ;;  %v3099_v14 = vadd.f32 %v17463_v23, %v2923_v40  ;;  %v17467_v32 = vld [vmem:[#allocation227_spill] sm:$0xff]  ;;  %v17471_v30 = vld [vmem:[#allocation216_spill] sm:$0xff] }
 0xb10   : > { %v3273_v15 = vadd.f32 %v17459_v27, %v3097_v57  ;;  %v17465_v27 = vld [vmem:[#allocation122_spill] sm:$0xff]  ;;  %v3624_v13 = vadd.f32 %v13068_v19, %v3448_v22  ;;  %v2752_v44 = vadd.f32 %v17467_v32, %v2560_v2  ;;  %v17473_v19 = vld [vmem:[#allocation277_spill] sm:$0xff] }
 0xb11   : > { %v2924_v57 = vadd.f32 %v17465_v27, %v2748_v1  ;;  %v3274_v24 = vadd.f32 %v17466_v26, %v3098_v58  ;;  %v3275_v36 = vadd.f32 %v17469_v17, %v3099_v14  ;;  %v17472_v58 = vld [vmem:[#allocation59_spill] sm:$0xff]  ;;  %v17476_v14 = vld [vmem:[#allocation137_spill] sm:$0xff]  ;;  %v17478_v26 = vld [vmem:[#allocation200_spill] sm:$0xff] }
 0xb12   : > { %v3449_v25 = vadd.f32 %v17464_v51, %v3273_v15  ;;  %v2753_v54 = vadd.f32 %v17472_v58, %v2561_v31  ;;  %v17481_v17 = vld [vmem:[#allocation217_spill] sm:$0xff] }
 0xb13   : > { %v3450_v56 = vadd.f32 %v17471_v30, %v3274_v24  ;;  %v17479_v24 = vld [vmem:[#allocation140_spill] sm:$0xff] }
 0xb14   : > { %v3625_v40 = vadd.f32 %v13070_v38, %v3449_v25  ;;  %v17477_v25 = vld [vmem:[#allocation118_spill] sm:$0xff] }
 0xb15   : > { %v3626_v38 = vadd.f32 %v13072_v7, %v3450_v56  ;;  %v17485_v56 = vld [vmem:[#allocation271_spill] sm:$0xff] }
 0xb37   : > { %v13357_v55 = vpop.permute.xlu0 %3749 }
 0xb3a   : > { %v3752_v46 = vpop.permute.xlu1 %3751 }
 0xb3b   : > { %v3798_v8 = vadd.f32 %v3752_v46, %v3622_v18  ;;  %v3754_v49 = vpop.permute.xlu0 %3753  ;;  %v17468_v18 = vld [vmem:[#allocation121_spill] sm:$0xff] }
 0xb3c   : > { %v3799_v53 = vadd.f32 %v3754_v49, %v3623_v60  ;;  %v2925_v39 = vadd.f32 %v17468_v18, %v2749_v37  ;;  %v17470_v60 = vld [vmem:[#allocation205_spill] sm:$0xff]  ;;  %v17475_v37 = vld [vmem:[#allocation195_spill] sm:$0xff]  ;;  %v17480_v18 = vld [vmem:[#allocation284_spill] sm:$0xff] }
 0xb3d   : > { %9674 = vrcp.f32 %v3798_v8  ;;  %v3100_v46 = vadd.f32 %v17470_v60, %v2924_v57  ;;  %v17474_v8 = vld [vmem:[#allocation210_spill] sm:$0xff]  ;;  %v2926_v51 = vadd.f32 %v17475_v37, %v2750_v61  ;;  %v2754_v57 = vadd.f32 %v17477_v25, %v2562_v45  ;;  %v17484_v45 = vld [vmem:[#allocation212_spill] sm:$0xff] }
 0xb3e   : > { %v3756_v15 = vpop.permute.xlu1 %3755  ;;  %9676 = vrcp.f32 %v3799_v53  ;;  %v3101_v22 = vadd.f32 %v17473_v19, %v2925_v39  ;;  %v3451_v2 = vadd.f32 %v17474_v8, %v3275_v36  ;;  %v2927_v53 = vadd.f32 %v17478_v26, %v2751_v11  ;;  %v17483_v60 = vld [vmem:[#allocation238_spill] sm:$0xff]  ;;  %v17487_v19 = vld [vmem:[#allocation191_spill] sm:$0xff] }
 0xb3f   : > { %v3800_v1 = vadd.f32 %v3756_v15, %v3624_v13  ;;  %v3758_v49 = vpop.permute.xlu0 %3757  ;;  %v3276_v27 = vadd.f32 %v17476_v14, %v3100_v46  ;;  %v3102_v39 = vadd.f32 %v17480_v18, %v2926_v51  ;;  %v17482_v15 = vld [vmem:[#allocation117_spill] sm:$0xff]  ;;  %v17488_v8 = vld [vmem:[#allocation278_spill] sm:$0xff] }
 0xb40   : > { %v3801_v23 = vadd.f32 %v3758_v49, %v3625_v40  ;;  %v3277_v13 = vadd.f32 %v17479_v24, %v3101_v22  ;;  %v3627_v31 = vadd.f32 %v13074_v41, %v3451_v2  ;;  %v2755_v7 = vadd.f32 %v17482_v15, %v13328_v4  ;;  %v17486_v49 = vld [vmem:[#allocation139_spill] sm:$0xff] }
 0xb41   : > { %9678 = vrcp.f32 %v3800_v1  ;;  %v3452_v36 = vadd.f32 %v17481_v17, %v3276_v27  ;;  %v3103_v46 = vadd.f32 %v17483_v60, %v2927_v53  ;;  %v2928_v1 = vadd.f32 %v17485_v56, %v2752_v44  ;;  %v17490_v4 = vld [vmem:[#allocation283_spill] sm:$0xff]  ;;  %v17492_v44 = vld [vmem:[#allocation218_spill] sm:$0xff]  ;;  %v17498_v60 = vld [vmem:[#allocation149_spill] sm:$0xff] }
 0xb42   : > { %v3760_v32 = vpop.permute.xlu1 %3759  ;;  %9680 = vrcp.f32 %v3801_v23  ;;  %v3453_v30 = vadd.f32 %v17484_v45, %v3277_v13  ;;  %v3278_v41 = vadd.f32 %v17486_v49, %v3102_v39  ;;  %v2756_v22 = vadd.f32 %v17487_v19, %v13347_v0  ;;  %v17489_v23 = vld [vmem:[#allocation141_spill] sm:$0xff]  ;;  %v17493_v24 = vld [vmem:[#allocation79_spill] sm:$0xff] }
 0xb43   : > { %v3802_v61 = vadd.f32 %v3760_v32, %v3626_v38  ;;  %v3762_v40 = vpop.permute.xlu0 %3761  ;;  %v3628_v58 = vadd.f32 %v13076_v20, %v3452_v36  ;;  %v2929_v2 = vadd.f32 %v17488_v8, %v2753_v54  ;;  %v3279_v37 = vadd.f32 %v17489_v23, %v3103_v46  ;;  %v17491_v38 = vld [vmem:[#allocation80_spill] sm:$0xff]  ;;  %v17495_v39 = vld [vmem:[#allocation63_spill] sm:$0xff] }
 0xb44   : > { %v3803_v11 = vadd.f32 %v3762_v40, %v3627_v31  ;;  %v3629_v51 = vadd.f32 %v17490_v4, %v3453_v30  ;;  %v3104_v25 = vadd.f32 %v17491_v38, %v2928_v1  ;;  %v3454_v26 = vadd.f32 %v17492_v44, %v3278_v41  ;;  %v17494_v31 = vld [vmem:[#allocation214_spill] sm:$0xff]  ;;  %v17496_v36 = vld [vmem:[#allocation155_spill] sm:$0xff]  ;;  %v17497_v40 = vld [vmem:[#allocation292_spill] sm:$0xff] }
 0xb45   : > { %9682 = vrcp.f32 %v3802_v61  ;;  %v3105_v13 = vadd.f32 %v17493_v24, %v2929_v2  ;;  %v3455_v0 = vadd.f32 %v17494_v31, %v3279_v37  ;;  %v2930_v17 = vadd.f32 %v17495_v39, %v2754_v57  ;;  %v17499_v45 = vld [vmem:[#allocation151_spill] sm:$0xff]  ;;  %v17501_v1 = vld [vmem:[#allocation285_spill] sm:$0xff]  ;;  %v17504_v37 = vld [vmem:[#allocation82_spill] sm:$0xff] }
 0xb46   : > { %v3764_v14 = vpop.permute.xlu1 %3763  ;;  %9684 = vrcp.f32 %v3803_v11  ;;  %v3280_v61 = vadd.f32 %v17496_v36, %v3104_v25  ;;  %v3630_v15 = vadd.f32 %v17497_v40, %v3454_v26  ;;  %v2917_v46 = vadd.f32 %v17498_v60, %v13352_v10  ;;  %v17500_v11 = vld [vmem:[#allocation159_spill] sm:$0xff]  ;;  %v17505_v10 = vld [vmem:[#allocation232_spill] sm:$0xff]  ;;  %v17506_v25 = vld [vmem:[#allocation154_spill] sm:$0xff] }
 0xb47   : > { %v13410_v27 = vpop.eup %9674  ;;  %v3804_v53 = vadd.f32 %v3764_v14, %v3628_v58  ;;  %v3766_v20 = vpop.permute.xlu0 %3765  ;;  %v2931_v30 = vadd.f32 %v17499_v45, %v2755_v7  ;;  %v3281_v56 = vadd.f32 %v17500_v11, %v3105_v13  ;;  %v3631_v49 = vadd.f32 %v17501_v1, %v3455_v0  ;;  %v17502_v58 = vld [vmem:[#allocation81_spill] sm:$0xff]  ;;  %v17503_v19 = vld [vmem:[#allocation219_spill] sm:$0xff]  ;;  %v17507_v26 = vld [vmem:[#allocation160_spill] sm:$0xff] }
 0xb48   : > { %v3805_v32 = vadd.f32 %v3766_v20, %v3629_v51  ;;  %4087 = vrot.lane.b32.xlu0 %v13410_v27, %s9839_s14  ;;  %v3830_v54 = vmul.f32 %v13410_v27, %v13263_v33  ;;  %v13420_v18 = vpop.eup %9676  ;;  %v3106_v57 = vadd.f32 %v17502_v58, %v2930_v17  ;;  %v3456_v8 = vadd.f32 %v17503_v19, %v3280_v61  ;;  %v17508_v20 = vld [vmem:[#allocation286_spill] sm:$0xff]  ;;  %v17509_v13 = vld [vmem:[#allocation203_spill] sm:$0xff]  ;;  %v17513_v40 = vld [vmem:[#allocation240_spill] sm:$0xff] }
 0xb49   : > { %9686 = vrcp.f32 %v3804_v53  ;;  %v3107_v4 = vadd.f32 %v17504_v37, %v2931_v30  ;;  %v3457_v51 = vadd.f32 %v17505_v10, %v3281_v56  ;;  %v3831_v14 = vmul.f32 %v13420_v18, %v13271_v21  ;;  %v17510_v0 = vld [vmem:[#allocation162_spill] sm:$0xff]  ;;  %v17512_v21 = vld [vmem:[#allocation83_spill] sm:$0xff]  ;;  %v17515_v1 = vld [vmem:[#allocation132_spill] sm:$0xff] }
 0xb4a   : > { %3852 = vperm.xlu1 %9105, %v3830_v54   ;;  %v3768_v33 = vpop.permute.xlu1 %3767  ;;  %9688 = vrcp.f32 %v3805_v32  ;;  %v2932_v44 = vadd.f32 %v17506_v25, %v2756_v22  ;;  %v3282_v53 = vadd.f32 %v17507_v26, %v3106_v57  ;;  %v3632_v24 = vadd.f32 %v17508_v20, %v3456_v8  ;;  %v17511_v54 = vld [vmem:[#allocation293_spill] sm:$0xff]  ;;  %v17514_v45 = vld [vmem:[#allocation242_spill] sm:$0xff]  ;;  %v17517_v57 = vld [vmem:[#allocation287_spill] sm:$0xff] }
 0xb4b   : > { %v13430_v41 = vpop.eup %9678  ;;  %v3806_v2 = vadd.f32 %v3768_v33, %v3630_v15  ;;  %v3770_v23 = vpop.permute.xlu0 %3769  ;;  %v3093_v31 = vadd.f32 %v17509_v13, %v2917_v46  ;;  %v3283_v32 = vadd.f32 %v17510_v0, %v3107_v4  ;;  %v3633_v39 = vadd.f32 %v17511_v54, %v3457_v51  ;;  %v17516_v33 = vld [vmem:[#allocation158_spill] sm:$0xff]  ;;  %v17519_v4 = vld [vmem:[#allocation213_spill] sm:$0xff]  ;;  %v17520_v51 = vld [vmem:[#allocation244_spill] sm:$0xff] }
 0xb4c   : > { %v3807_v7 = vadd.f32 %v3770_v23, %v3631_v49  ;;  %4091 = vrot.lane.b32.xlu0 %v13430_v41, %s9839_s14  ;;  %v13440_v38 = vpop.eup %9680  ;;  %v3108_v61 = vadd.f32 %v17512_v21, %v2932_v44  ;;  %v3458_v15 = vadd.f32 %v17513_v40, %v3282_v53  ;;  %v17518_v8 = vld [vmem:[#allocation294_spill] sm:$0xff]  ;;  %v17521_v53 = vld [vmem:[#allocation291_spill] sm:$0xff] }
 0xb4d   : > { %9690 = vrcp.f32 %v3806_v2  ;;  %v3459_v30 = vadd.f32 %v17514_v45, %v3283_v32  ;;  %v3833_v46 = vmul.f32 %v13440_v38, %v13219_v5  ;;  %v3269_v49 = vadd.f32 %v17515_v1, %v3093_v31 }
 0xb4e   : > { %v3772_v17 = vpop.permute.xlu1 %3771  ;;  %3857 = vperm.xlu1 %9105, %v3831_v14   ;;  %9692 = vrcp.f32 %v3807_v7  ;;  %v3284_v58 = vadd.f32 %v17516_v33, %v3108_v61  ;;  %v3634_v19 = vadd.f32 %v17517_v57, %v3458_v15  ;;  %v3945_v45 = vmul.f32 %v13440_v38, %v13223_v62 }
 0xb4f   : > { %v13448_v36 = vpop.eup %9682  ;;  %v3808_v22 = vadd.f32 %v3772_v17, %v3632_v24  ;;  %v3774_v60 = vpop.permute.xlu0 %3773  ;;  %v3635_v2 = vadd.f32 %v17518_v8, %v3459_v30  ;;  %v3445_v10 = vadd.f32 %v17519_v4, %v3269_v49  ;;  %v17522_v24 = vld [vmem:[#allocation289_spill] sm:$0xff] }
 0xb50   : > { %v3809_v11 = vadd.f32 %v3774_v60, %v3633_v39  ;;  %4095 = vrot.lane.b32.xlu0 %v13448_v36, %s9839_s14  ;;  %v13457_v56 = vpop.eup %9684  ;;  %v3460_v7 = vadd.f32 %v17520_v51, %v3284_v58 }
 0xb51   : > { %9694 = vrcp.f32 %v3808_v22  ;;  %v3835_v44 = vmul.f32 %v13457_v56, %v13227_v48  ;;  %v3621_v20 = vadd.f32 %v17521_v53, %v3445_v10  ;;  %v3947_v30 = vmul.f32 %v13457_v56, %v13231_v9  ;;  %v17536_v53 = vld [vmem:[#allocation144_spill] sm:$0xff] }
 0xb52   : > { %v3776_v23 = vpop.permute.xlu1 %3775  ;;  %3867 = vperm.xlu1 %9105, %v3833_v46   ;;  %9696 = vrcp.f32 %v3809_v11  ;;  %v3636_v13 = vadd.f32 %v17522_v24, %v3460_v7 }
 0xb53   : > { %v13463_v37 = vpop.eup %9686  ;;  %v3810_v5 = vadd.f32 %v3776_v23, %v3634_v19  ;;  %v3778_v14 = vpop.permute.xlu0 %3777  ;;  %v3797_v32 = vadd.f32 %v13357_v55, %v3621_v20 }
 0xb54   : > { %v3811_v25 = vadd.f32 %v3778_v14, %v3635_v2  ;;  %4099 = vrot.lane.b32.xlu0 %v13463_v37, %s9839_s14  ;;  %v13471_v26 = vpop.eup %9688  ;;  %v17535_v14 = vld [vmem:[#allocation69_spill] sm:$0xff] }
 0xb55   : > { %9698 = vrcp.f32 %v3810_v5  ;;  %v3837_v48 = vmul.f32 %v13471_v26, %v13235_v63 }
 0xb56   : > { %v3780_v31 = vpop.permute.xlu1 %3779  ;;  %3877 = vperm.xlu1 %9105, %v3835_v44   ;;  %9700 = vrcp.f32 %v3811_v25 }
 0xb57   : > { %v13475_v0 = vpop.eup %9690  ;;  %v3812_v54 = vadd.f32 %v3780_v31, %v3636_v13  ;;  %v17537_v31 = vld [vmem:[#allocation223_spill] sm:$0xff] }
 0xb58   : > { %4103 = vrot.lane.b32.xlu0 %v13475_v0, %s9839_s14  ;;  %v13482_v39 = vpop.eup %9692 }
 0xb59   : > { %9702 = vrcp.f32 %v3812_v54  ;;  %v3839_v55 = vmul.f32 %v13482_v39, %v13243_v29  ;;  %v17538_v54 = vld [vmem:[#allocation71_spill] sm:$0xff] }
 0xb5a   : > { %3887 = vperm.xlu1 %9105, %v3837_v48   ;;  %9704 = vrcp.f32 %v3797_v32 }
 0xb5b   : > { %v13484_v17 = vpop.eup %9694 }
 0xb5c   : > { %4107 = vrot.lane.b32.xlu0 %v13484_v17, %s9839_s14  ;;  %v13490_v21 = vpop.eup %9696 }
 0xb5d   : > { %v3841_v63 = vmul.f32 %v13490_v21, %v13251_v43  ;;  %v3943_v43 = vmul.f32 %v13420_v18, %v13273_v42  ;;  %v3953_v42 = vmul.f32 %v13490_v21, %v13255_v52 }
 0xb5e   : > { %3897 = vperm.xlu1 %9105, %v3839_v55  }
 0xb5f   : > { %v13492_v61 = vpop.eup %9698 }
 0xb60   : > { %4111 = vrot.lane.b32.xlu0 %v13492_v61, %s9839_s14  ;;  %v13498_v40 = vpop.eup %9700 }
 0xb61   : > { %v3843_v29 = vmul.f32 %v13498_v40, %v13259_v16  ;;  %v3949_v16 = vmul.f32 %v13471_v26, %v13239_v47  ;;  %v3955_v62 = vmul.f32 %v13498_v40, %v13269_v6  ;;  %v17523_v47 = vld [vmem:[#allocation70_spill] sm:$0xff] }
 0xb62   : > { %3907 = vperm.xlu1 %9105, %v3841_v63  }
 0xb63   : > { %v13500_v15 = vpop.eup %9702 }
 0xb64   : > { %4115 = vrot.lane.b32.xlu0 %v13500_v15, %s9839_s14  ;;  %v13506_v22 = vpop.eup %9704 }
 0xb65   : > { %v3941_v60 = vmul.f32 %v13506_v22, %v13215_v35  ;;  %v3951_v35 = vmul.f32 %v13482_v39, %v13247_v3 }
 0xb66   : > { %3917 = vperm.xlu1 %9105, %v3843_v29   ;;  %v17539_v29 = vld [vmem:[#allocation114_spill] sm:$0xff] }
 0xb6a   : > { %3959 = vperm.xlu1 %9105, %v3941_v60  }
 0xb6e   : > { %3969 = vperm.xlu1 %9105, %v3943_v43   ;;  %v17540_v43 = vld [vmem:[#allocation113_spill] sm:$0xff] }
 0xb72   : > { %3979 = vperm.xlu1 %9105, %v3945_v45  }
 0xb76   : > { %3989 = vperm.xlu1 %9105, %v3947_v30  }
 0xb7a   : > { %3999 = vperm.xlu1 %9105, %v3949_v16   ;;  %v17541_v16 = vld [vmem:[#allocation192_spill] sm:$0xff] }
 0xb7e   : > { %4009 = vperm.xlu1 %9105, %v3951_v35  }
 0xb82   : > { %4019 = vperm.xlu1 %9105, %v3953_v42   ;;  %v17542_v42 = vld [vmem:[#allocation72_spill] sm:$0xff] }
 0xb86   : > { %4029 = vperm.xlu1 %9105, %v3955_v62  }
 0xb8a   : > { %4085 = vrot.lane.b32.xlu1 %v13506_v22, %s9839_s14 }
 0xb8b   : > { %9106 = vset.pattern.permute.xlu1 %v9847_v34 }
 0xb8e   : > { %4089 = vrot.lane.b32.xlu1 %v13420_v18, %s9839_s14 }
 0xb92   : > { %4093 = vrot.lane.b32.xlu1 %v13440_v38, %s9839_s14 }
 0xb96   : > { %4097 = vrot.lane.b32.xlu1 %v13457_v56, %s9839_s14 }
 0xb9a   : > { %4101 = vrot.lane.b32.xlu1 %v13471_v26, %s9839_s14 }
 0xb9e   : > { %4105 = vrot.lane.b32.xlu1 %v13482_v39, %s9839_s14 }
 0xba2   : > { %4109 = vrot.lane.b32.xlu1 %v13490_v21, %s9839_s14 }
 0xba6   : > { %4113 = vrot.lane.b32.xlu1 %v13498_v40, %s9839_s14 }
 0xbba   : > { %v4088_v9 = vpop.permute.xlu0 %4087 }
 0xbbb   : > { %v4134_v3 = vmul.f32 %v17523_v47, %v4088_v9 }
 0xbbd   : > { %4156 = vperm.xlu0 %9107, %v4134_v3   ;;  %v17543_v3 = vld [vmem:[#allocation73_spill] sm:$0xff] }
 0xbbe   : > { %v4092_v10 = vpop.permute.xlu0 %4091 }
 0xbbf   : > { %v4136_v32 = vmul.f32 %v17537_v31, %v4092_v10  ;;  %v17547_v31 = vld [vmem:[#allocation74_spill] sm:$0xff] }
 0xbc2   : > { %v4096_v7 = vpop.permute.xlu0 %4095 }
 0xbc3   : > { %v4138_v60 = vmul.f32 %v17539_v29, %v4096_v7 }
 0xbc6   : > { %v4100_v24 = vpop.permute.xlu0 %4099 }
 0xbc7   : > { %v4140_v35 = vmul.f32 %v17541_v16, %v4100_v24 }
 0xbc9   : > { %v13542_v52 = vpop.permute.xlu1 %3852 }
 0xbca   : > { %17524 = vst [vmem:[#allocation54_spill] sm:$0xff] %v13542_v52  ;;  %v4104_v55 = vpop.permute.xlu0 %4103 }
 0xbcb   : > { %v4142_v10 = vmul.f32 %v17543_v3, %v4104_v55  ;;  %v17549_v55 = vld [vmem:[#allocation115_spill] sm:$0xff] }
 0xbcd   : > { %v13544_v6 = vpop.permute.xlu1 %3857 }
 0xbce   : > { %v4108_v9 = vpop.permute.xlu0 %4107 }
 0xbd1   : > { %v13546_v34 = vpop.permute.xlu1 %3867 }
 0xbd2   : > { %v4112_v7 = vpop.permute.xlu0 %4111 }
 0xbd5   : > { %v13548_v11 = vpop.permute.xlu1 %3877 }
 0xbd6   : > { %17525 = vst [vmem:[#allocation65_spill] sm:$0xff] %v13548_v11  ;;  %v17742_v11 = vld [vmem:[#allocation24_spill] sm:$0xff] }
 0xbd9   : > { %v13550_v46 = vpop.permute.xlu1 %3887 }
 0xbda   : > { %17526 = vst [vmem:[#allocation56_spill] sm:$0xff] %v13550_v46  ;;  %v9730_v46 = vld [vmem:[%s10064_s16 + $0x78] sm:$0xff] }
 0xbdd   : > { %v13552_v1 = vpop.permute.xlu1 %3897 }
 0xbde   : > { %17527 = vst [vmem:[#allocation142_spill] sm:$0xff] %v13552_v1 }
 0xbe1   : > { %v13554_v49 = vpop.permute.xlu1 %3907 }
 0xbe2   : > { %17528 = vst [vmem:[#allocation58_spill] sm:$0xff] %v13554_v49  ;;  %v5468_v49 = vld [vmem:[%s10064_s16 + $0xb0] sm:$0xff] }
 0xbe5   : > { %v13556_v33 = vpop.permute.xlu1 %3917 }
 0xbe6   : > { %17529 = vst [vmem:[#allocation112_spill] sm:$0xff] %v13556_v33 }
 0xbe9   : > { %v13558_v58 = vpop.permute.xlu1 %3959 }
 0xbea   : > { %17530 = vst [vmem:[#allocation190_spill] sm:$0xff] %v13558_v58 }
 0xbed   : > { %v13560_v57 = vpop.permute.xlu1 %3969 }
 0xbf1   : > { %v13562_v19 = vpop.permute.xlu1 %3979 }
 0xbf5   : > { %v13564_v8 = vpop.permute.xlu1 %3989 }
 0xbf9   : > { %v13566_v2 = vpop.permute.xlu1 %3999 }
 0xbfa   : > { %17531 = vst [vmem:[#allocation275_spill] sm:$0xff] %v13566_v2 }
 0xbfd   : > { %v13568_v23 = vpop.permute.xlu1 %4009 }
 0xbfe   : > { %17532 = vst [vmem:[#allocation152_spill] sm:$0xff] %v13568_v23 }
 0xc01   : > { %v13570_v4 = vpop.permute.xlu1 %4019 }
 0xc02   : > { %17533 = vst [vmem:[#allocation131_spill] sm:$0xff] %v13570_v4 }
 0xc05   : > { %v13572_v51 = vpop.permute.xlu1 %4029 }
 0xc06   : > { %17534 = vst [vmem:[#allocation224_spill] sm:$0xff] %v13572_v51 }
 0xc09   : > { %v4086_v5 = vpop.permute.xlu1 %4085 }
 0xc0a   : > { %v4133_v25 = vmul.f32 %v17535_v14, %v4086_v5  ;;  %v17544_v5 = vld [vmem:[#allocation143_spill] sm:$0xff] }
 0xc0c   : > { %4151 = vperm.xlu1 %9106, %v4133_v25  }
 0xc0d   : > { %v4090_v44 = vpop.permute.xlu1 %4089 }
 0xc0e   : > { %v4135_v20 = vmul.f32 %v17536_v53, %v4090_v44  ;;  %v17545_v44 = vld [vmem:[#allocation146_spill] sm:$0xff] }
 0xc0f   : > { %v4144_v53 = vmul.f32 %v17545_v44, %v4108_v9 }
 0xc10   : > { %4161 = vperm.xlu1 %9106, %v4135_v20   ;;  %v17546_v20 = vld [vmem:[#allocation225_spill] sm:$0xff] }
 0xc11   : > { %v4094_v13 = vpop.permute.xlu1 %4093 }
 0xc12   : > { %v4137_v48 = vmul.f32 %v17538_v54, %v4094_v13  ;;  %v17548_v54 = vld [vmem:[#allocation116_spill] sm:$0xff] }
 0xc14   : > { %4171 = vperm.xlu0 %9107, %v4137_v48   ;;  %4166 = vperm.xlu1 %9106, %v4136_v32   ;;  %v4146_v32 = vmul.f32 %v17547_v31, %v4112_v7 }
 0xc15   : > { %v4098_v63 = vpop.permute.xlu1 %4097 }
 0xc16   : > { %v4139_v45 = vmul.f32 %v17540_v43, %v4098_v63  ;;  %v4116_v63 = vpop.permute.xlu0 %4115 }
 0xc17   : > { %v4148_v29 = vmul.f32 %v17549_v55, %v4116_v63  ;;  %v17567_v55 = vld [vmem:[#allocation274_spill] sm:$0xff] }
 0xc18   : > { %4181 = vperm.xlu0 %9107, %v4139_v45   ;;  %4176 = vperm.xlu1 %9106, %v4138_v60   ;;  %v9848_v60 = vmov 2  }
 0xc19   : > { %v4102_v30 = vpop.permute.xlu1 %4101 }
 0xc1a   : > { %v4141_v62 = vmul.f32 %v17542_v42, %v4102_v30 }
 0xc1c   : > { %4191 = vperm.xlu0 %9107, %v4141_v62   ;;  %4186 = vperm.xlu1 %9106, %v4140_v35  }
 0xc1d   : > { %v4106_v47 = vpop.permute.xlu1 %4105 }
 0xc1e   : > { %v4143_v14 = vmul.f32 %v17544_v5, %v4106_v47 }
 0xc20   : > { %4201 = vperm.xlu0 %9107, %v4143_v14   ;;  %4196 = vperm.xlu1 %9106, %v4142_v10  }
 0xc21   : > { %v4110_v25 = vpop.permute.xlu1 %4109 }
 0xc22   : > { %v4145_v13 = vmul.f32 %v17546_v20, %v4110_v25  ;;  %v17565_v20 = vld [vmem:[#allocation196_spill] sm:$0xff] }
 0xc24   : > { %4211 = vperm.xlu0 %9107, %v4145_v13   ;;  %4206 = vperm.xlu1 %9106, %v4144_v53  }
 0xc25   : > { %v4114_v24 = vpop.permute.xlu1 %4113 }
 0xc26   : > { %v4147_v48 = vmul.f32 %v17548_v54, %v4114_v24 }
 0xc28   : > { %4221 = vperm.xlu0 %9107, %v4147_v48   ;;  %4216 = vperm.xlu1 %9106, %v4146_v32   ;;  %v17566_v32 = vld [vmem:[#allocation269_spill] sm:$0xff] }
 0xc2c   : > { %4261 = vrot.lane.b32.xlu0 %v13506_v22, %s9840_s18  ;;  %4226 = vperm.xlu1 %9106, %v4148_v29  }
 0xc2d   : > { %9108 = vset.pattern.permute.xlu0 %v9848_v60 }
 0xc30   : > { %4265 = vrot.lane.b32.xlu0 %v13420_v18, %s9840_s18  ;;  %4263 = vrot.lane.b32.xlu1 %v13410_v27, %s9840_s18 }
 0xc31   : > { %9109 = vset.pattern.permute.xlu1 %v9848_v60  ;;  %v17568_v60 = vld [vmem:[#allocation60_spill] sm:$0xff] }
 0xc34   : > { %4269 = vrot.lane.b32.xlu0 %v13440_v38, %s9840_s18  ;;  %4267 = vrot.lane.b32.xlu1 %v13430_v41, %s9840_s18 }
 0xc38   : > { %4273 = vrot.lane.b32.xlu0 %v13457_v56, %s9840_s18  ;;  %4271 = vrot.lane.b32.xlu1 %v13448_v36, %s9840_s18 }
 0xc3c   : > { %4277 = vrot.lane.b32.xlu0 %v13471_v26, %s9840_s18  ;;  %4275 = vrot.lane.b32.xlu1 %v13463_v37, %s9840_s18  ;;  %v13623_v45 = vpop.permute.xlu0 %4156 }
 0xc3d   : > { %17551 = vst [vmem:[#allocation189_spill] sm:$0xff] %v13623_v45  ;;  %v17598_v45 = vld [vmem:[#allocation233_spill] sm:$0xff] }
 0xc40   : > { %4281 = vrot.lane.b32.xlu0 %v13482_v39, %s9840_s18  ;;  %4279 = vrot.lane.b32.xlu1 %v13475_v0, %s9840_s18 }
 0xc44   : > { %4285 = vrot.lane.b32.xlu0 %v13490_v21, %s9840_s18  ;;  %4283 = vrot.lane.b32.xlu1 %v13484_v17, %s9840_s18 }
 0xc48   : > { %4289 = vrot.lane.b32.xlu0 %v13498_v40, %s9840_s18  ;;  %4287 = vrot.lane.b32.xlu1 %v13492_v61, %s9840_s18 }
 0xc4c   : > { %4291 = vrot.lane.b32.xlu1 %v13500_v15, %s9840_s18  ;;  %s7078_s18 = sshra.s32 %s10000_s27, 3 }
 0xc8b   : > { %v13621_v43 = vpop.permute.xlu1 %4151 }
 0xc8c   : > { %17550 = vst [vmem:[#allocation134_spill] sm:$0xff] %v13621_v43 }
 0xc8f   : > { %v13625_v30 = vpop.permute.xlu1 %4161 }
 0xc93   : > { %v13627_v16 = vpop.permute.xlu1 %4166  ;;  %v13629_v35 = vpop.permute.xlu0 %4171 }
 0xc94   : > { %17552 = vst [vmem:[#allocation194_spill] sm:$0xff] %v13627_v16  ;;  %17553 = vst [vmem:[#allocation281_spill] sm:$0xff] %v13629_v35  ;;  %v5466_v35 = vld [vmem:[%s10064_s16 + $0xa0] sm:$0xff] }
 0xc95   : > { %v5632_v51 = vpack.c.bf16 %v5468_v49, %v5466_v35  ;;  %v9295_v49 = vld [vmem:[%s16143_s7 + $0xa0] ss:$8 sps:$4 sm:$0xff]  }
 0xc96   : > { %v9299_v35 = vld [vmem:[%s16143_s7 + $0x2a0] ss:$8 sps:$4 sm:$0xff]  }
 0xc97   : > { %v13631_v42 = vpop.permute.xlu1 %4176  ;;  %v13633_v62 = vpop.permute.xlu0 %4181 }
 0xc98   : > { %17554 = vst [vmem:[#allocation272_spill] sm:$0xff] %v13631_v42  ;;  %17555 = vst [vmem:[#allocation75_spill] sm:$0xff] %v13633_v62  ;;  %v17570_v42 = vld [vmem:[#allocation147_spill] sm:$0xff]  ;;  %v5460_v62 = vld [vmem:[%s10064_s16 + $0x70] sm:$0xff] }
 0xc9b   : > { %v13635_v9 = vpop.permute.xlu1 %4186  ;;  %v13637_v47 = vpop.permute.xlu0 %4191 }
 0xc9c   : > { %17556 = vst [vmem:[#allocation157_spill] sm:$0xff] %v13635_v9  ;;  %17557 = vst [vmem:[#allocation206_spill] sm:$0xff] %v13637_v47  ;;  %v14207_v47 = vld [vmem:[%s10064_s16 + $0x60] sm:$0xff] }
 0xc9f   : > { %v13639_v3 = vpop.permute.xlu1 %4196  ;;  %v13641_v10 = vpop.permute.xlu0 %4201 }
 0xca0   : > { %17558 = vst [vmem:[#allocation145_spill] sm:$0xff] %v13639_v3  ;;  %17559 = vst [vmem:[#allocation78_spill] sm:$0xff] %v13641_v10  ;;  %v17660_v10 = vld [vmem:[#allocation167_spill] sm:$0xff] }
 0xca3   : > { %v13643_v5 = vpop.permute.xlu1 %4206  ;;  %v13645_v14 = vpop.permute.xlu0 %4211 }
 0xca4   : > { %17560 = vst [vmem:[#allocation133_spill] sm:$0xff] %v13643_v5  ;;  %17561 = vst [vmem:[#allocation148_spill] sm:$0xff] %v13645_v14 }
 0xca7   : > { %v13647_v7 = vpop.permute.xlu1 %4216  ;;  %v13649_v25 = vpop.permute.xlu0 %4221 }
 0xca8   : > { %17562 = vst [vmem:[#allocation231_spill] sm:$0xff] %v13647_v7  ;;  %17563 = vst [vmem:[#allocation136_spill] sm:$0xff] %v13649_v25 }
 0xcab   : > { %v13651_v44 = vpop.permute.xlu1 %4226  ;;  %v4262_v53 = vpop.permute.xlu0 %4261 }
 0xcac   : > { %17564 = vst [vmem:[#allocation230_spill] sm:$0xff] %v13651_v44  ;;  %v4309_v13 = vmul.f32 %v17565_v20, %v4262_v53  ;;  %v17569_v44 = vld [vmem:[#allocation76_spill] sm:$0xff] }
 0xcae   : > { %4327 = vperm.xlu0 %9108, %v4309_v13  }
 0xcaf   : > { %v4264_v24 = vpop.permute.xlu1 %4263  ;;  %v4266_v31 = vpop.permute.xlu0 %4265 }
 0xcb0   : > { %v4310_v54 = vmul.f32 %v17566_v32, %v4264_v24  ;;  %v4311_v29 = vmul.f32 %v17567_v55, %v4266_v31  ;;  %v17571_v24 = vld [vmem:[#allocation150_spill] sm:$0xff] }
 0xcb2   : > { %4332 = vperm.xlu1 %9109, %v4310_v54   ;;  %v17572_v54 = vld [vmem:[#allocation222_spill] sm:$0xff] }
 0xcb3   : > { %v4268_v48 = vpop.permute.xlu1 %4267  ;;  %v4270_v63 = vpop.permute.xlu0 %4269 }
 0xcb4   : > { %v4312_v5 = vmul.f32 %v17568_v60, %v4268_v48  ;;  %v4313_v9 = vmul.f32 %v17569_v44, %v4270_v63  ;;  %v17576_v63 = vld [vmem:[#allocation193_spill] sm:$0xff] }
 0xcb6   : > { %4342 = vperm.xlu0 %9108, %v4312_v5   ;;  %4337 = vperm.xlu1 %9109, %v4311_v29   ;;  %v17573_v5 = vld [vmem:[#allocation229_spill] sm:$0xff]  ;;  %v17574_v29 = vld [vmem:[#allocation120_spill] sm:$0xff] }
 0xcb7   : > { %v4272_v7 = vpop.permute.xlu1 %4271  ;;  %v4274_v3 = vpop.permute.xlu0 %4273 }
 0xcb8   : > { %v4314_v53 = vmul.f32 %v17570_v42, %v4272_v7  ;;  %v4315_v32 = vmul.f32 %v17571_v24, %v4274_v3  ;;  %v17575_v7 = vld [vmem:[#allocation119_spill] sm:$0xff]  ;;  %v17578_v24 = vld [vmem:[#allocation270_spill] sm:$0xff] }
 0xcba   : > { %4352 = vperm.xlu0 %9108, %v4314_v53   ;;  %4347 = vperm.xlu1 %9109, %v4313_v9  }
 0xcbb   : > { %v4276_v20 = vpop.permute.xlu1 %4275  ;;  %v4278_v13 = vpop.permute.xlu0 %4277 }
 0xcbc   : > { %v4316_v16 = vmul.f32 %v17572_v54, %v4276_v20  ;;  %v4317_v55 = vmul.f32 %v17573_v5, %v4278_v13  ;;  %v17577_v20 = vld [vmem:[#allocation198_spill] sm:$0xff] }
 0xcbe   : > { %4362 = vperm.xlu0 %9108, %v4316_v16   ;;  %4357 = vperm.xlu1 %9109, %v4315_v32  }
 0xcbf   : > { %v4280_v31 = vpop.permute.xlu1 %4279  ;;  %v4282_v48 = vpop.permute.xlu0 %4281 }
 0xcc0   : > { %v4318_v60 = vmul.f32 %v17574_v29, %v4280_v31  ;;  %v4319_v9 = vmul.f32 %v17575_v7, %v4282_v48  ;;  %v17579_v31 = vld [vmem:[#allocation276_spill] sm:$0xff]  ;;  %v9849_v48 = vmov 3  }
 0xcc2   : > { %4372 = vperm.xlu0 %9108, %v4318_v60   ;;  %4367 = vperm.xlu1 %9109, %v4317_v55   ;;  %v17580_v55 = vld [vmem:[#allocation61_spill] sm:$0xff] }
 0xcc3   : > { %v4284_v44 = vpop.permute.xlu1 %4283  ;;  %v4286_v42 = vpop.permute.xlu0 %4285 }
 0xcc4   : > { %v4320_v53 = vmul.f32 %v17576_v63, %v4284_v44  ;;  %v4321_v16 = vmul.f32 %v17577_v20, %v4286_v42 }
 0xcc6   : > { %4382 = vperm.xlu0 %9108, %v4320_v53   ;;  %4377 = vperm.xlu1 %9109, %v4319_v9  }
 0xcc7   : > { %v4288_v3 = vpop.permute.xlu1 %4287  ;;  %v4290_v54 = vpop.permute.xlu0 %4289 }
 0xcc8   : > { %v4322_v32 = vmul.f32 %v17578_v24, %v4288_v3  ;;  %v4323_v5 = vmul.f32 %v17579_v31, %v4290_v54 }
 0xcca   : > { %4392 = vperm.xlu0 %9108, %v4322_v32   ;;  %4387 = vperm.xlu1 %9109, %v4321_v16  }
 0xccb   : > { %v4292_v13 = vpop.permute.xlu1 %4291 }
 0xccc   : > { %v4324_v29 = vmul.f32 %v17580_v55, %v4292_v13 }
 0xcce   : > { %4402 = vperm.xlu0 %9108, %v4324_v29   ;;  %4397 = vperm.xlu1 %9109, %v4323_v5  }
 0xcd2   : > { %4439 = vrot.lane.b32.xlu0 %v13410_v27, %s9841_s4  ;;  %4437 = vrot.lane.b32.xlu1 %v13506_v22, %s9841_s4 }
 0xcd3   : > { %9111 = vset.pattern.permute.xlu0 %v9849_v48  ;;  %9110 = vset.pattern.permute.xlu1 %v9849_v48  ;;  %v17596_v48 = vld [vmem:[#allocation226_spill] sm:$0xff] }
 0xcd6   : > { %4443 = vrot.lane.b32.xlu0 %v13430_v41, %s9841_s4  ;;  %4441 = vrot.lane.b32.xlu1 %v13420_v18, %s9841_s4 }
 0xcda   : > { %4447 = vrot.lane.b32.xlu0 %v13448_v36, %s9841_s4  ;;  %4445 = vrot.lane.b32.xlu1 %v13440_v38, %s9841_s4 }
 0xcde   : > { %4451 = vrot.lane.b32.xlu0 %v13463_v37, %s9841_s4  ;;  %4449 = vrot.lane.b32.xlu1 %v13457_v56, %s9841_s4 }
 0xce2   : > { %4455 = vrot.lane.b32.xlu0 %v13475_v0, %s9841_s4  ;;  %4453 = vrot.lane.b32.xlu1 %v13471_v26, %s9841_s4 }
 0xce6   : > { %4459 = vrot.lane.b32.xlu0 %v13484_v17, %s9841_s4  ;;  %4457 = vrot.lane.b32.xlu1 %v13482_v39, %s9841_s4 }
 0xcea   : > { %4463 = vrot.lane.b32.xlu0 %v13492_v61, %s9841_s4  ;;  %4461 = vrot.lane.b32.xlu1 %v13490_v21, %s9841_s4 }
 0xcee   : > { %4467 = vrot.lane.b32.xlu0 %v13500_v15, %s9841_s4  ;;  %4465 = vrot.lane.b32.xlu1 %v13498_v40, %s9841_s4  ;;  %s8829_s4 = sshll.u32 %s7078_s18, 4 }
 0xd2d   : > { %v13701_v60 = vpop.permute.xlu0 %4327 }
 0xd2e   : > { %17581 = vst [vmem:[#allocation215_spill] sm:$0xff] %v13701_v60 }
 0xd31   : > { %v13703_v44 = vpop.permute.xlu1 %4332 }
 0xd32   : > { %17582 = vst [vmem:[#allocation221_spill] sm:$0xff] %v13703_v44 }
 0xd35   : > { %v13705_v42 = vpop.permute.xlu1 %4337  ;;  %v13707_v7 = vpop.permute.xlu0 %4342 }
 0xd36   : > { %17583 = vst [vmem:[#allocation236_spill] sm:$0xff] %v13707_v7 }
 0xd39   : > { %v13709_v9 = vpop.permute.xlu1 %4347  ;;  %v13711_v63 = vpop.permute.xlu0 %4352 }
 0xd3a   : > { %17584 = vst [vmem:[#allocation208_spill] sm:$0xff] %v13709_v9  ;;  %17585 = vst [vmem:[#allocation122_spill] sm:$0xff] %v13711_v63  ;;  %v17597_v63 = vld [vmem:[#allocation77_spill] sm:$0xff]  ;;  %v14166_v9 = vld [vmem:[%s10064_s16 + $0x40] sm:$0xff] }
 0xd3d   : > { %v13713_v53 = vpop.permute.xlu1 %4357  ;;  %v13715_v3 = vpop.permute.xlu0 %4362 }
 0xd3e   : > { %17586 = vst [vmem:[#allocation135_spill] sm:$0xff] %v13713_v53  ;;  %17587 = vst [vmem:[#allocation227_spill] sm:$0xff] %v13715_v3  ;;  %v17632_v53 = vld [vmem:[#allocation89_spill] sm:$0xff] }
 0xd41   : > { %v13717_v20 = vpop.permute.xlu1 %4367  ;;  %v13719_v16 = vpop.permute.xlu0 %4372 }
 0xd42   : > { %17588 = vst [vmem:[#allocation121_spill] sm:$0xff] %v13717_v20  ;;  %17589 = vst [vmem:[#allocation138_spill] sm:$0xff] %v13719_v16 }
 0xd45   : > { %v13721_v24 = vpop.permute.xlu1 %4377  ;;  %v13723_v32 = vpop.permute.xlu0 %4382 }
 0xd46   : > { %17590 = vst [vmem:[#allocation205_spill] sm:$0xff] %v13721_v24  ;;  %17591 = vst [vmem:[#allocation216_spill] sm:$0xff] %v13723_v32 }
 0xd49   : > { %v13725_v54 = vpop.permute.xlu1 %4387  ;;  %v13727_v13 = vpop.permute.xlu0 %4392 }
 0xd4a   : > { %17592 = vst [vmem:[#allocation59_spill] sm:$0xff] %v13725_v54  ;;  %17593 = vst [vmem:[#allocation277_spill] sm:$0xff] %v13727_v13  ;;  %v17599_v13 = vld [vmem:[#allocation124_spill] sm:$0xff] }
 0xd4d   : > { %v13729_v31 = vpop.permute.xlu1 %4397  ;;  %v13731_v5 = vpop.permute.xlu0 %4402 }
 0xd4e   : > { %17594 = vst [vmem:[#allocation210_spill] sm:$0xff] %v13729_v31  ;;  %17595 = vst [vmem:[#allocation195_spill] sm:$0xff] %v13731_v5  ;;  %v17600_v31 = vld [vmem:[#allocation123_spill] sm:$0xff] }
 0xd51   : > { %v4438_v55 = vpop.permute.xlu1 %4437  ;;  %v4440_v29 = vpop.permute.xlu0 %4439 }
 0xd52   : > { %v4485_v3 = vmul.f32 %v17596_v48, %v4438_v55  ;;  %v4486_v7 = vmul.f32 %v17597_v63, %v4440_v29  ;;  %v17601_v55 = vld [vmem:[#allocation197_spill] sm:$0xff]  ;;  %v17602_v63 = vld [vmem:[#allocation202_spill] sm:$0xff] }
 0xd54   : > { %4503 = vperm.xlu1 %9110, %v4485_v3   ;;  %4508 = vperm.xlu0 %9111, %v4486_v7  }
 0xd55   : > { %v4442_v16 = vpop.permute.xlu1 %4441  ;;  %v4444_v44 = vpop.permute.xlu0 %4443 }
 0xd56   : > { %v4487_v32 = vmul.f32 %v17598_v45, %v4442_v16  ;;  %v4488_v25 = vmul.f32 %v17599_v13, %v4444_v44  ;;  %v17603_v45 = vld [vmem:[#allocation273_spill] sm:$0xff] }
 0xd57   : > { %v17606_v13 = vld [vmem:[#allocation153_spill] sm:$0xff] }
 0xd58   : > { %4513 = vperm.xlu1 %9110, %v4487_v32   ;;  %v17604_v32 = vld [vmem:[#allocation280_spill] sm:$0xff] }
 0xd59   : > { %v4446_v52 = vpop.permute.xlu1 %4445  ;;  %v4448_v60 = vpop.permute.xlu0 %4447 }
 0xd5a   : > { %v4489_v54 = vmul.f32 %v17600_v31, %v4446_v52  ;;  %v4490_v48 = vmul.f32 %v17601_v55, %v4448_v60  ;;  %v17607_v55 = vld [vmem:[#allocation156_spill] sm:$0xff] }
 0xd5c   : > { %4523 = vperm.xlu0 %9111, %v4489_v54   ;;  %4518 = vperm.xlu1 %9110, %v4488_v25   ;;  %v17605_v54 = vld [vmem:[#allocation62_spill] sm:$0xff] }
 0xd5d   : > { %v4450_v5 = vpop.permute.xlu1 %4449  ;;  %v4452_v24 = vpop.permute.xlu0 %4451 }
 0xd5e   : > { %v4491_v3 = vmul.f32 %v17602_v63, %v4450_v5  ;;  %v4492_v16 = vmul.f32 %v17603_v45, %v4452_v24  ;;  %v17608_v63 = vld [vmem:[#allocation228_spill] sm:$0xff]  ;;  %v17610_v45 = vld [vmem:[#allocation126_spill] sm:$0xff] }
 0xd60   : > { %4533 = vperm.xlu0 %9111, %v4491_v3   ;;  %4528 = vperm.xlu1 %9110, %v4490_v48  }
 0xd61   : > { %v4454_v7 = vpop.permute.xlu1 %4453  ;;  %v4456_v29 = vpop.permute.xlu0 %4455 }
 0xd62   : > { %v4493_v20 = vmul.f32 %v17604_v32, %v4454_v7  ;;  %v4494_v25 = vmul.f32 %v17605_v54, %v4456_v29  ;;  %v17609_v7 = vld [vmem:[#allocation234_spill] sm:$0xff]  ;;  %v17611_v29 = vld [vmem:[#allocation199_spill] sm:$0xff]  ;;  %v9850_v54 = vmov 4  }
 0xd64   : > { %4543 = vperm.xlu0 %9111, %v4493_v20   ;;  %4538 = vperm.xlu1 %9110, %v4492_v16  }
 0xd65   : > { %v4458_v44 = vpop.permute.xlu1 %4457  ;;  %v4460_v52 = vpop.permute.xlu0 %4459 }
 0xd66   : > { %v4495_v31 = vmul.f32 %v17606_v13, %v4458_v44  ;;  %v4496_v48 = vmul.f32 %v17607_v55, %v4460_v52 }
 0xd68   : > { %4553 = vperm.xlu0 %9111, %v4495_v31   ;;  %4548 = vperm.xlu1 %9110, %v4494_v25  }
 0xd69   : > { %v4462_v60 = vpop.permute.xlu1 %4461  ;;  %v4464_v5 = vpop.permute.xlu0 %4463 }
 0xd6a   : > { %v4497_v3 = vmul.f32 %v17608_v63, %v4462_v60  ;;  %v4498_v20 = vmul.f32 %v17609_v7, %v4464_v5 }
 0xd6c   : > { %4563 = vperm.xlu0 %9111, %v4497_v3   ;;  %4558 = vperm.xlu1 %9110, %v4496_v48  }
 0xd6d   : > { %v4466_v24 = vpop.permute.xlu1 %4465  ;;  %v4468_v32 = vpop.permute.xlu0 %4467 }
 0xd6e   : > { %v4499_v16 = vmul.f32 %v17610_v45, %v4466_v24  ;;  %v4500_v44 = vmul.f32 %v17611_v29, %v4468_v32 }
 0xd70   : > { %4573 = vperm.xlu0 %9111, %v4499_v16   ;;  %4568 = vperm.xlu1 %9110, %v4498_v20  }
 0xd74   : > { %4613 = vrot.lane.b32.xlu0 %v13506_v22, %s9842_s23  ;;  %4578 = vperm.xlu1 %9110, %v4500_v44   ;;  %v17627_v44 = vld [vmem:[#allocation84_spill] sm:$0xff] }
 0xd75   : > { %9112 = vset.pattern.permute.xlu0 %v9850_v54 }
 0xd78   : > { %4617 = vrot.lane.b32.xlu0 %v13420_v18, %s9842_s23  ;;  %4615 = vrot.lane.b32.xlu1 %v13410_v27, %s9842_s23 }
 0xd79   : > { %9113 = vset.pattern.permute.xlu1 %v9850_v54 }
 0xd7c   : > { %4621 = vrot.lane.b32.xlu0 %v13440_v38, %s9842_s23  ;;  %4619 = vrot.lane.b32.xlu1 %v13430_v41, %s9842_s23 }
 0xd80   : > { %4625 = vrot.lane.b32.xlu0 %v13457_v56, %s9842_s23  ;;  %4623 = vrot.lane.b32.xlu1 %v13448_v36, %s9842_s23 }
 0xd84   : > { %4629 = vrot.lane.b32.xlu0 %v13471_v26, %s9842_s23  ;;  %4627 = vrot.lane.b32.xlu1 %v13463_v37, %s9842_s23 }
 0xd88   : > { %4633 = vrot.lane.b32.xlu0 %v13482_v39, %s9842_s23  ;;  %4631 = vrot.lane.b32.xlu1 %v13475_v0, %s9842_s23 }
 0xd8c   : > { %4637 = vrot.lane.b32.xlu0 %v13490_v21, %s9842_s23  ;;  %4635 = vrot.lane.b32.xlu1 %v13484_v17, %s9842_s23 }
 0xd90   : > { %4641 = vrot.lane.b32.xlu0 %v13498_v40, %s9842_s23  ;;  %4639 = vrot.lane.b32.xlu1 %v13492_v61, %s9842_s23 }
 0xd94   : > { %4643 = vrot.lane.b32.xlu1 %v13500_v15, %s9842_s23  ;;  %s14550_s23 = scalar_lea.vmem [#allocation3], %s8829_s4 }
 0xdd3   : > { %v13781_v52 = vpop.permute.xlu1 %4503  ;;  %v13783_v25 = vpop.permute.xlu0 %4508 }
 0xdd4   : > { %17612 = vst [vmem:[#allocation137_spill] sm:$0xff] %v13781_v52  ;;  %17613 = vst [vmem:[#allocation118_spill] sm:$0xff] %v13783_v25 }
 0xdd7   : > { %v13785_v13 = vpop.permute.xlu1 %4513 }
 0xddb   : > { %v13787_v31 = vpop.permute.xlu1 %4518  ;;  %v13789_v60 = vpop.permute.xlu0 %4523 }
 0xddc   : > { %17614 = vst [vmem:[#allocation200_spill] sm:$0xff] %v13787_v31  ;;  %17615 = vst [vmem:[#allocation140_spill] sm:$0xff] %v13789_v60  ;;  %v17628_v31 = vld [vmem:[#allocation85_spill] sm:$0xff] }
 0xddf   : > { %v13791_v5 = vpop.permute.xlu1 %4528  ;;  %v13793_v55 = vpop.permute.xlu0 %4533 }
 0xde0   : > { %17616 = vst [vmem:[#allocation284_spill] sm:$0xff] %v13791_v5  ;;  %17617 = vst [vmem:[#allocation217_spill] sm:$0xff] %v13793_v55 }
 0xde3   : > { %v13795_v48 = vpop.permute.xlu1 %4538  ;;  %v13797_v63 = vpop.permute.xlu0 %4543 }
 0xde4   : > { %17618 = vst [vmem:[#allocation117_spill] sm:$0xff] %v13795_v48  ;;  %17619 = vst [vmem:[#allocation238_spill] sm:$0xff] %v13797_v63 }
 0xde7   : > { %v13799_v3 = vpop.permute.xlu1 %4548  ;;  %v13801_v24 = vpop.permute.xlu0 %4553 }
 0xde8   : > { %17620 = vst [vmem:[#allocation212_spill] sm:$0xff] %v13799_v3  ;;  %17621 = vst [vmem:[#allocation271_spill] sm:$0xff] %v13801_v24 }
 0xdeb   : > { %v13803_v7 = vpop.permute.xlu1 %4558  ;;  %v13805_v20 = vpop.permute.xlu0 %4563 }
 0xdec   : > { %17622 = vst [vmem:[#allocation139_spill] sm:$0xff] %v13803_v7  ;;  %17623 = vst [vmem:[#allocation191_spill] sm:$0xff] %v13805_v20  ;;  %v17629_v7 = vld [vmem:[#allocation86_spill] sm:$0xff]  ;;  %v17630_v20 = vld [vmem:[#allocation87_spill] sm:$0xff] }
 0xdef   : > { %v13807_v45 = vpop.permute.xlu1 %4568  ;;  %v13809_v16 = vpop.permute.xlu0 %4573 }
 0xdf0   : > { %17624 = vst [vmem:[#allocation278_spill] sm:$0xff] %v13807_v45  ;;  %17625 = vst [vmem:[#allocation141_spill] sm:$0xff] %v13809_v16 }
 0xdf3   : > { %v13811_v32 = vpop.permute.xlu1 %4578  ;;  %v4614_v29 = vpop.permute.xlu0 %4613 }
 0xdf4   : > { %17626 = vst [vmem:[#allocation283_spill] sm:$0xff] %v13811_v32  ;;  %v4661_v54 = vmul.f32 %v17627_v44, %v4614_v29  ;;  %v17631_v32 = vld [vmem:[#allocation88_spill] sm:$0xff] }
 0xdf6   : > { %4679 = vperm.xlu0 %9112, %v4661_v54  }
 0xdf7   : > { %v4616_v48 = vpop.permute.xlu1 %4615  ;;  %v4618_v5 = vpop.permute.xlu0 %4617 }
 0xdf8   : > { %v4662_v3 = vmul.f32 %v17628_v31, %v4616_v48  ;;  %v4663_v63 = vmul.f32 %v17629_v7, %v4618_v5  ;;  %v17633_v31 = vld [vmem:[#allocation90_spill] sm:$0xff]  ;;  %v17636_v7 = vld [vmem:[#allocation93_spill] sm:$0xff] }
 0xdfa   : > { %4684 = vperm.xlu1 %9113, %v4662_v3   ;;  %v17634_v3 = vld [vmem:[#allocation91_spill] sm:$0xff] }
 0xdfb   : > { %v4620_v25 = vpop.permute.xlu1 %4619  ;;  %v4622_v24 = vpop.permute.xlu0 %4621 }
 0xdfc   : > { %v4664_v52 = vmul.f32 %v17630_v20, %v4620_v25  ;;  %v4665_v55 = vmul.f32 %v17631_v32, %v4622_v24  ;;  %v17638_v32 = vld [vmem:[#allocation125_spill] sm:$0xff] }
 0xdfe   : > { %4694 = vperm.xlu0 %9112, %v4664_v52   ;;  %4689 = vperm.xlu1 %9113, %v4663_v63   ;;  %v17635_v52 = vld [vmem:[#allocation92_spill] sm:$0xff] }
 0xdff   : > { %v4624_v45 = vpop.permute.xlu1 %4623  ;;  %v4626_v16 = vpop.permute.xlu0 %4625 }
 0xe00   : > { %v4666_v29 = vmul.f32 %v17632_v53, %v4624_v45  ;;  %v4667_v48 = vmul.f32 %v17633_v31, %v4626_v16  ;;  %v17637_v45 = vld [vmem:[#allocation94_spill] sm:$0xff]  ;;  %v17640_v31 = vld [vmem:[#allocation128_spill] sm:$0xff] }
 0xe02   : > { %4704 = vperm.xlu0 %9112, %v4666_v29   ;;  %4699 = vperm.xlu1 %9113, %v4665_v55  }
 0xe03   : > { %v4628_v44 = vpop.permute.xlu1 %4627  ;;  %v4630_v54 = vpop.permute.xlu0 %4629 }
 0xe04   : > { %v4668_v60 = vmul.f32 %v17634_v3, %v4628_v44  ;;  %v4669_v63 = vmul.f32 %v17635_v52, %v4630_v54  ;;  %v17639_v44 = vld [vmem:[#allocation127_spill] sm:$0xff] }
 0xe06   : > { %4714 = vperm.xlu0 %9112, %v4668_v60   ;;  %4709 = vperm.xlu1 %9113, %v4667_v48  }
 0xe07   : > { %v4632_v5 = vpop.permute.xlu1 %4631  ;;  %v4634_v25 = vpop.permute.xlu0 %4633 }
 0xe08   : > { %v4670_v20 = vmul.f32 %v17636_v7, %v4632_v5  ;;  %v4671_v55 = vmul.f32 %v17637_v45, %v4634_v25  ;;  %v17641_v5 = vld [vmem:[#allocation130_spill] sm:$0xff]  ;;  %v9851_v25 = vmov 5  }
 0xe09   : > { %v9127_v45 = vld [vmem:[%s16143_s7 + $0x100] ss:$8 sps:$4 sm:$0xff]  }
 0xe0a   : > { %4724 = vperm.xlu0 %9112, %v4670_v20   ;;  %4719 = vperm.xlu1 %9113, %v4669_v63   ;;  %v17642_v63 = vld [vmem:[#allocation129_spill] sm:$0xff]  ;;  %v9122_v20 = vld [vmem:[%s16144_s8 + $0x4] ss:$8 sps:$4 sm:$0xff]  }
 0xe0b   : > { %v4636_v24 = vpop.permute.xlu1 %4635  ;;  %v4638_v53 = vpop.permute.xlu0 %4637  ;;  %5830 = vmatprep.subr.bf16.mxu1 %v9122_v20  ;;  %v9151_v20 = vld [vmem:[%s16143_s7 + $0x140] ss:$8 sps:$4 sm:$0xff]  }
 0xe0c   : > { %v4672_v29 = vmul.f32 %v17638_v32, %v4636_v24  ;;  %v4673_v60 = vmul.f32 %v17639_v44, %v4638_v53  ;;  %v9124_v24 = vld [vmem:[%s16143_s7 + $0x104] ss:$8 sps:$4 sm:$0xff]   ;;  %v9126_v53 = vld [vmem:[%s16144_s8] ss:$8 sps:$4 sm:$0xff]   ;;  %v9130_v32 = vld [vmem:[%s16143_s7 + $0x114] ss:$8 sps:$4 sm:$0xff]  }
 0xe0d   : > { %6776 = vmatprep.subr.bf16.mxu0 %v9124_v24  ;;  %5831 = vmatpush1.bf16.msra.mxu1 %v9126_v53  ;;  %v9134_v44 = vld [vmem:[%s16144_s8 + $0x24] ss:$8 sps:$4 sm:$0xff]   ;;  %v9152_v24 = vld [vmem:[%s16144_s8 + $0x54] ss:$8 sps:$4 sm:$0xff]  }
 0xe0e   : > { %4734 = vperm.xlu0 %9112, %v4672_v29   ;;  %4729 = vperm.xlu1 %9113, %v4671_v55   ;;  %v9128_v55 = vld [vmem:[%s16144_s8 + $0x14] ss:$8 sps:$4 sm:$0xff]   ;;  %v9132_v29 = vld [vmem:[%s16144_s8 + $0x10] ss:$8 sps:$4 sm:$0xff]  }
 0xe0f   : > { %v4640_v16 = vpop.permute.xlu1 %4639  ;;  %v4642_v3 = vpop.permute.xlu0 %4641  ;;  %6777 = vmatpush1.bf16.msra.mxu0 %v9127_v45  ;;  %5832 = vmatprep.subr.bf16.mxu1 %v9128_v55  ;;  %v9154_v53 = vld [vmem:[%s16143_s7 + $0x154] ss:$8 sps:$4 sm:$0xff]   ;;  %v9156_v45 = vld [vmem:[%s16144_s8 + $0x50] ss:$8 sps:$4 sm:$0xff]  }
 0xe10   : > { %v4674_v48 = vmul.f32 %v17640_v31, %v4640_v16  ;;  %v4675_v52 = vmul.f32 %v17641_v5, %v4642_v3  ;;  %v9133_v16 = vld [vmem:[%s16143_s7 + $0x110] ss:$8 sps:$4 sm:$0xff]   ;;  %6778 = vmatprep.subr.bf16.mxu0 %v9130_v32  ;;  %v9138_v31 = vld [vmem:[%s16144_s8 + $0x20] ss:$8 sps:$4 sm:$0xff]   ;;  %v9140_v3 = vld [vmem:[%s16144_s8 + $0x34] ss:$8 sps:$4 sm:$0xff]  }
 0xe11   : > { %5833 = vmatpush1.bf16.msra.mxu1 %v9132_v29  ;;  %v9144_v5 = vld [vmem:[%s16144_s8 + $0x30] ss:$8 sps:$4 sm:$0xff]   ;;  %v9158_v32 = vld [vmem:[%s16144_s8 + $0x64] ss:$8 sps:$4 sm:$0xff]  }
 0xe12   : > { %4744 = vperm.xlu0 %9112, %v4674_v48   ;;  %4739 = vperm.xlu1 %9113, %v4673_v60   ;;  %v9136_v60 = vld [vmem:[%s16143_s7 + $0x124] ss:$8 sps:$4 sm:$0xff]   ;;  %v9139_v48 = vld [vmem:[%s16143_s7 + $0x120] ss:$8 sps:$4 sm:$0xff]   ;;  %v9157_v55 = vld [vmem:[%s16143_s7 + $0x150] ss:$8 sps:$4 sm:$0xff]  }
 0xe13   : > { %v4644_v54 = vpop.permute.xlu1 %4643  ;;  %6779 = vmatpush1.bf16.msra.mxu0 %v9133_v16  ;;  %5834 = vmatprep.subr.bf16.mxu1 %v9134_v44  ;;  %v9160_v29 = vld [vmem:[%s16143_s7 + $0x164] ss:$8 sps:$4 sm:$0xff]   ;;  %v9162_v16 = vld [vmem:[%s16144_s8 + $0x60] ss:$8 sps:$4 sm:$0xff]  }
 0xe14   : > { %v4676_v7 = vmul.f32 %v17642_v63, %v4644_v54  ;;  %6780 = vmatprep.subr.bf16.mxu0 %v9136_v60  ;;  %v9142_v54 = vld [vmem:[%s16143_s7 + $0x134] ss:$8 sps:$4 sm:$0xff]   ;;  %v9146_v63 = vld [vmem:[%s16144_s8 + $0x44] ss:$8 sps:$4 sm:$0xff]   ;;  %v9163_v44 = vld [vmem:[%s16143_s7 + $0x160] ss:$8 sps:$4 sm:$0xff]  }
 0xe15   : > { %5835 = vmatpush1.bf16.msra.mxu1 %v9138_v31  ;;  %v9164_v60 = vld [vmem:[%s16144_s8 + $0x74] ss:$8 sps:$4 sm:$0xff]  }
 0xe16   : > { %4754 = vperm.xlu0 %9112, %v4676_v7   ;;  %4749 = vperm.xlu1 %9113, %v4675_v52   ;;  %v9145_v52 = vld [vmem:[%s16143_s7 + $0x130] ss:$8 sps:$4 sm:$0xff]   ;;  %v9148_v7 = vld [vmem:[%s16143_s7 + $0x144] ss:$8 sps:$4 sm:$0xff]   ;;  %v9166_v31 = vld [vmem:[%s16143_s7 + $0x174] ss:$8 sps:$4 sm:$0xff]  }
 0xe17   : > { %6781 = vmatpush1.bf16.msra.mxu0 %v9139_v48  ;;  %5836 = vmatprep.subr.bf16.mxu1 %v9140_v3  ;;  %v9168_v48 = vld [vmem:[%s16144_s8 + $0x70] ss:$8 sps:$4 sm:$0xff]  }
 0xe18   : > { %6782 = vmatprep.subr.bf16.mxu0 %v9142_v54  ;;  %v9169_v3 = vld [vmem:[%s16143_s7 + $0x170] ss:$8 sps:$4 sm:$0xff]   ;;  %v9170_v54 = vld [vmem:[%s16144_s8 + $0x84] ss:$8 sps:$4 sm:$0xff]  }
 0xe19   : > { %5837 = vmatpush1.bf16.msra.mxu1 %v9144_v5  ;;  %v9172_v5 = vld [vmem:[%s16143_s7 + $0x184] ss:$8 sps:$4 sm:$0xff]  }
 0xe1a   : > { %4791 = vrot.lane.b32.xlu0 %v13410_v27, %s9843_s25  ;;  %4789 = vrot.lane.b32.xlu1 %v13506_v22, %s9843_s25 }
 0xe1b   : > { %9115 = vset.pattern.permute.xlu0 %v9851_v25  ;;  %9114 = vset.pattern.permute.xlu1 %v9851_v25  ;;  %v9150_v25 = vld [vmem:[%s16144_s8 + $0x40] ss:$8 sps:$4 sm:$0xff]  }
 0xe1c   : > { %6783 = vmatpush1.bf16.msra.mxu0 %v9145_v52  ;;  %5838 = vmatprep.subr.bf16.mxu1 %v9146_v63  ;;  %v9174_v52 = vld [vmem:[%s16144_s8 + $0x80] ss:$8 sps:$4 sm:$0xff]  }
 0xe1d   : > { %6784 = vmatprep.subr.bf16.mxu0 %v9148_v7  ;;  %5839 = vmatpush1.bf16.msra.mxu1 %v9150_v25  ;;  %v9175_v63 = vld [vmem:[%s16143_s7 + $0x180] ss:$8 sps:$4 sm:$0xff]   ;;  %v9176_v7 = vld [vmem:[%s16144_s8 + $0x94] ss:$8 sps:$4 sm:$0xff]  }
 0xe1e   : > { %4795 = vrot.lane.b32.xlu0 %v13430_v41, %s9843_s25  ;;  %4793 = vrot.lane.b32.xlu1 %v13420_v18, %s9843_s25  ;;  %v9178_v25 = vld [vmem:[%s16143_s7 + $0x194] ss:$8 sps:$4 sm:$0xff]  }
 0xe1f   : > { %5840 = vmatprep.subr.bf16.mxu1 %v9152_v24  ;;  %v5449_v24 = vld [vmem:[%s10064_s16 + $0x18] sm:$0xff] }
 0xe20   : > { %6785 = vmatpush1.bf16.msra.mxu0 %v9151_v20  ;;  %v5447_v20 = vld [vmem:[%s10064_s16 + $0x8] sm:$0xff] }
 0xe21   : > { %6786 = vmatprep.subr.bf16.mxu0 %v9154_v53  ;;  %5841 = vmatpush1.bf16.msra.mxu1 %v9156_v45  ;;  %v5623_v53 = vpack.c.bf16 %v5449_v24, %v5447_v20  ;;  %v9220_v45 = vld [vmem:[%s10070_s0 + $0xc] ss:$24 sps:$4 sm:$0xff]   ;;  %v9199_v20 = vld [vmem:[%s16143_s7 + $0x1c0] ss:$8 sps:$4 sm:$0xff]   ;;  %v9200_v24 = vld [vmem:[%s16144_s8 + $0xd4] ss:$8 sps:$4 sm:$0xff]  }
 0xe22   : > { %4799 = vrot.lane.b32.xlu0 %v13448_v36, %s9843_s25  ;;  %4797 = vrot.lane.b32.xlu1 %v13440_v38, %s9843_s25 }
 0xe23   : > { %5842 = vmatprep.subr.bf16.mxu1 %v9158_v32  ;;  %v9181_v32 = vld [vmem:[%s16143_s7 + $0x190] ss:$8 sps:$4 sm:$0xff]   ;;  %5862 = vmatprep.mubr.bf16.mxu1 %v5623_v53  ;;  %v9202_v53 = vld [vmem:[%s16143_s7 + $0x1d4] ss:$8 sps:$4 sm:$0xff]  }
 0xe24   : > { %6787 = vmatpush1.bf16.msra.mxu0 %v9157_v55  ;;  %v9180_v55 = vld [vmem:[%s16144_s8 + $0x90] ss:$8 sps:$4 sm:$0xff]   ;;  %6808 = vmatprep.mubr.bf16.mxu0 %v9220_v45 }
 0xe25   : > { %6788 = vmatprep.subr.bf16.mxu0 %v9160_v29  ;;  %5843 = vmatpush1.bf16.msra.mxu1 %v9162_v16  ;;  %v9182_v29 = vld [vmem:[%s16144_s8 + $0xa4] ss:$8 sps:$4 sm:$0xff]  }
 0xe26   : > { %4803 = vrot.lane.b32.xlu0 %v13463_v37, %s9843_s25  ;;  %4801 = vrot.lane.b32.xlu1 %v13457_v56, %s9843_s25  ;;  %v9184_v16 = vld [vmem:[%s16143_s7 + $0x1a4] ss:$8 sps:$4 sm:$0xff]  }
 0xe27   : > { %5844 = vmatprep.subr.bf16.mxu1 %v9164_v60  ;;  %v9187_v60 = vld [vmem:[%s16143_s7 + $0x1a0] ss:$8 sps:$4 sm:$0xff]  }
 0xe28   : > { %6789 = vmatpush1.bf16.msra.mxu0 %v9163_v44  ;;  %v9186_v44 = vld [vmem:[%s16144_s8 + $0xa0] ss:$8 sps:$4 sm:$0xff]  }
 0xe29   : > { %6790 = vmatprep.subr.bf16.mxu0 %v9166_v31  ;;  %5845 = vmatpush1.bf16.msra.mxu1 %v9168_v48  ;;  %v9188_v31 = vld [vmem:[%s16144_s8 + $0xb4] ss:$8 sps:$4 sm:$0xff]  }
 0xe2a   : > { %4807 = vrot.lane.b32.xlu0 %v13475_v0, %s9843_s25  ;;  %4805 = vrot.lane.b32.xlu1 %v13471_v26, %s9843_s25  ;;  %v9190_v48 = vld [vmem:[%s16143_s7 + $0x1b4] ss:$8 sps:$4 sm:$0xff]  }
 0xe2b   : > { %5846 = vmatprep.subr.bf16.mxu1 %v9170_v54  ;;  %v9193_v54 = vld [vmem:[%s16143_s7 + $0x1b0] ss:$8 sps:$4 sm:$0xff]  }
 0xe2c   : > { %6791 = vmatpush1.bf16.msra.mxu0 %v9169_v3  ;;  %v9192_v3 = vld [vmem:[%s16144_s8 + $0xb0] ss:$8 sps:$4 sm:$0xff]  }
 0xe2d   : > { %6792 = vmatprep.subr.bf16.mxu0 %v9172_v5  ;;  %5847 = vmatpush1.bf16.msra.mxu1 %v9174_v52  ;;  %v9194_v5 = vld [vmem:[%s16144_s8 + $0xc4] ss:$8 sps:$4 sm:$0xff]  }
 0xe2e   : > { %4811 = vrot.lane.b32.xlu0 %v13484_v17, %s9843_s25  ;;  %4809 = vrot.lane.b32.xlu1 %v13482_v39, %s9843_s25  ;;  %v9196_v52 = vld [vmem:[%s16143_s7 + $0x1c4] ss:$8 sps:$4 sm:$0xff]  }
 0xe2f   : > { %5848 = vmatprep.subr.bf16.mxu1 %v9176_v7 }
 0xe30   : > { %6793 = vmatpush1.bf16.msra.mxu0 %v9175_v63 }
 0xe31   : > { %6794 = vmatprep.subr.bf16.mxu0 %v9178_v25  ;;  %5849 = vmatpush1.bf16.msra.mxu1 %v9180_v55  ;;  %v9198_v25 = vld [vmem:[%s16144_s8 + $0xc0] ss:$8 sps:$4 sm:$0xff]  }
 0xe32   : > { %4815 = vrot.lane.b32.xlu0 %v13492_v61, %s9843_s25  ;;  %4813 = vrot.lane.b32.xlu1 %v13490_v21, %s9843_s25 }
 0xe33   : > { %5850 = vmatprep.subr.bf16.mxu1 %v9182_v29  ;;  %v9205_v29 = vld [vmem:[%s16143_s7 + $0x1d0] ss:$8 sps:$4 sm:$0xff]  }
 0xe34   : > { %6795 = vmatpush1.bf16.msra.mxu0 %v9181_v32  ;;  %v9204_v32 = vld [vmem:[%s16144_s8 + $0xd0] ss:$8 sps:$4 sm:$0xff]  }
 0xe35   : > { %6796 = vmatprep.subr.bf16.mxu0 %v9184_v16  ;;  %5851 = vmatpush1.bf16.msra.mxu1 %v9186_v44  ;;  %v9206_v16 = vld [vmem:[%s16144_s8 + $0xe4] ss:$8 sps:$4 sm:$0xff]  }
 0xe36   : > { %4819 = vrot.lane.b32.xlu0 %v13500_v15, %s9843_s25  ;;  %4817 = vrot.lane.b32.xlu1 %v13498_v40, %s9843_s25  ;;  %v9208_v44 = vld [vmem:[%s16143_s7 + $0x1e4] ss:$8 sps:$4 sm:$0xff]  }
 0xe37   : > { %5852 = vmatprep.subr.bf16.mxu1 %v9188_v31 }
 0xe38   : > { %6797 = vmatpush1.bf16.msra.mxu0 %v9187_v60 }
 0xe39   : > { %6798 = vmatprep.subr.bf16.mxu0 %v9190_v48  ;;  %5853 = vmatpush1.bf16.msra.mxu1 %v9192_v3  ;;  %v9210_v48 = vld [vmem:[%s16144_s8 + $0xe0] ss:$8 sps:$4 sm:$0xff]  }
 0xe3a   : > { %5854 = vmatprep.subr.bf16.mxu1 %v9194_v5  ;;  %v9211_v3 = vld [vmem:[%s16143_s7 + $0x1e0] ss:$8 sps:$4 sm:$0xff]   ;;  %v9214_v5 = vld [vmem:[%s16143_s7 + $0x1f4] ss:$8 sps:$4 sm:$0xff]  }
 0xe3c   : > { %6799 = vmatpush1.bf16.msra.mxu0 %v9193_v54  ;;  %v9212_v54 = vld [vmem:[%s16144_s8 + $0xf4] ss:$8 sps:$4 sm:$0xff]  }
 0xe3d   : > { %6800 = vmatprep.subr.bf16.mxu0 %v9196_v52  ;;  %5855 = vmatpush1.bf16.msra.mxu1 %v9198_v25 }
 0xe3e   : > { %5856 = vmatprep.subr.bf16.mxu1 %v9200_v24  ;;  %v9217_v24 = vld [vmem:[%s16143_s7 + $0x1f0] ss:$8 sps:$4 sm:$0xff]  }
 0xe40   : > { %6801 = vmatpush1.bf16.msra.mxu0 %v9199_v20  ;;  %v9216_v20 = vld [vmem:[%s16144_s8 + $0xf0] ss:$8 sps:$4 sm:$0xff]  }
 0xe41   : > { %6802 = vmatprep.subr.bf16.mxu0 %v9202_v53  ;;  %5857 = vmatpush1.bf16.msra.mxu1 %v9204_v32  ;;  %v14073_v53 = vld [vmem:[%s10064_s16] sm:$0xff]  ;;  %v14076_v32 = vld [vmem:[%s10064_s16 + $0x10] sm:$0xff] }
 0xe42   : > { %5858 = vmatprep.subr.bf16.mxu1 %v9206_v16  ;;  %v9226_v16 = vld [vmem:[%s16143_s7 + $0x204] ss:$8 sps:$4 sm:$0xff]  }
 0xe44   : > { %6803 = vmatpush1.bf16.msra.mxu0 %v9205_v29  ;;  %v9223_v29 = vld [vmem:[%s16143_s7 + $0x4] ss:$8 sps:$4 sm:$0xff]  }
 0xe45   : > { %6804 = vmatprep.subr.bf16.mxu0 %v9208_v44  ;;  %5859 = vmatpush1.bf16.msra.mxu1 %v9210_v48 }
 0xe46   : > { %5860 = vmatprep.subr.bf16.mxu1 %v9212_v54  ;;  %v5453_v54 = vld [vmem:[%s10064_s16 + $0x38] sm:$0xff] }
 0xe48   : > { %6805 = vmatpush1.bf16.msra.mxu0 %v9211_v3  ;;  %v9218_v3 = vld [vmem:[%s10070_s0 + $0x8] ss:$24 sps:$4 sm:$0xff]  }
 0xe49   : > { %6806 = vmatprep.subr.bf16.mxu0 %v9214_v5  ;;  %5861 = vmatpush1.bf16.msra.mxu1 %v9216_v20  ;;  %v9221_v5 = vld [vmem:[%s16143_s7] ss:$8 sps:$4 sm:$0xff]   ;;  %v9232_v20 = vld [vmem:[%s16143_s7 + $0x214] ss:$8 sps:$4 sm:$0xff]  }
 0xe4a   : > { %6663 = vmatprep.subr.bf16.mxu1 %v9223_v29  ;;  %v9227_v29 = vld [vmem:[%s16143_s7 + $0x10] ss:$8 sps:$4 sm:$0xff]  }
 0xe4c   : > { %6807 = vmatpush1.bf16.msra.mxu0 %v9217_v24 }
 0xe4d   : > { %6889 = vmatprep.subr.bf16.mxu0 %v9226_v16  ;;  %v9230_v16 = vld [vmem:[%s16143_s7 + $0x210] ss:$8 sps:$4 sm:$0xff]  }
 0xe4f   : > { %6809 = vmatmul.mubr.bf16.vlgmr.msra.gmra.mrb[0].mxu0 %v9218_v3  ;;  %v9241_v3 = vld [vmem:[%s16143_s7 + $0x224] ss:$8 sps:$4 sm:$0xff]  }
 0xe75   : > { %v14014_v63 = vpop.permute.xlu0 %4679 }
 0xe76   : > { %17643 = vst [vmem:[#allocation80_spill] sm:$0xff] %v14014_v63  ;;  %v9233_v63 = vld [vmem:[%s10070_s0 + $0x3c] ss:$24 sps:$4 sm:$0xff]  }
 0xe77   : > { %6818 = vmatprep.mubr.bf16.mxu0 %v9233_v63  ;;  %v9244_v63 = vld [vmem:[%s16143_s7 + $0x34] ss:$8 sps:$4 sm:$0xff]  }
 0xe79   : > { %v14016_v7 = vpop.permute.xlu1 %4684 }
 0xe7a   : > { %17644 = vst [vmem:[#allocation218_spill] sm:$0xff] %v14016_v7 }
 0xe7d   : > { %v14030_v45 = vpop.permute.xlu1 %4689  ;;  %v14032_v55 = vpop.permute.xlu0 %4694 }
 0xe7e   : > { %17645 = vst [vmem:[#allocation79_spill] sm:$0xff] %v14032_v55  ;;  %v9224_v55 = vld [vmem:[%s16143_s7 + $0x200] ss:$8 sps:$4 sm:$0xff]  }
 0xe7f   : > { %6890 = vmatpush1.bf16.msra.mxu0 %v9224_v55 }
 0xe80   : > { %6891 = vmatprep.subr.bf16.mxu0 %v9232_v20  ;;  %v9239_v20 = vld [vmem:[%s16143_s7 + $0x220] ss:$8 sps:$4 sm:$0xff]  }
 0xe81   : > { %v14046_v60 = vpop.permute.xlu1 %4699  ;;  %v14048_v31 = vpop.permute.xlu0 %4704 }
 0xe82   : > { %17646 = vst [vmem:[#allocation214_spill] sm:$0xff] %v14046_v60  ;;  %17647 = vst [vmem:[#allocation63_spill] sm:$0xff] %v14048_v31  ;;  %v14092_v31 = vld [vmem:[%s10064_s16 + $0x28] sm:$0xff] }
 0xe83   : > { %6892 = vmatpush1.bf16.msra.mxu0 %v9230_v16  ;;  %v9248_v60 = vld [vmem:[%s10070_s0 + $0x6c] ss:$24 sps:$4 sm:$0xff]  }
 0xe84   : > { %6893 = vmatprep.subr.bf16.mxu0 %v9241_v3  ;;  %v9245_v3 = vld [vmem:[%s16143_s7 + $0x230] ss:$8 sps:$4 sm:$0xff]  }
 0xe85   : > { %v14062_v52 = vpop.permute.xlu1 %4709  ;;  %v14064_v25 = vpop.permute.xlu0 %4714 }
 0xe86   : > { %17648 = vst [vmem:[#allocation155_spill] sm:$0xff] %v14062_v52  ;;  %17649 = vst [vmem:[#allocation292_spill] sm:$0xff] %v14064_v25  ;;  %v5622_v25 = vpack.c.bf16 %v14076_v32, %v14073_v53  ;;  %v14120_v52 = vld [vmem:[%s10064_s16 + $0x20] sm:$0xff] }
 0xe87   : > { %6894 = vmatpush1.bf16.msra.mxu0 %v9239_v20  ;;  %v5455_v20 = vld [vmem:[%s10064_s16 + $0x48] sm:$0xff] }
 0xe88   : > { %5863 = vmatmul.mubr.bf16.vlgmr.msra.gmra.mrb[0].mxu1 %v5622_v25  ;;  %v9237_v25 = vld [vmem:[%s16143_s7 + $0x24] ss:$8 sps:$4 sm:$0xff]  }
 0xe89   : > { %v14084_v44 = vpop.permute.xlu1 %4719  ;;  %v14086_v48 = vpop.permute.xlu0 %4724  ;;  %6664 = vmatpush1.bf16.msra.mxu1 %v9221_v5 }
 0xe8a   : > { %17650 = vst [vmem:[#allocation149_spill] sm:$0xff] %v14084_v44  ;;  %17651 = vst [vmem:[#allocation151_spill] sm:$0xff] %v14086_v48  ;;  %v9229_v48 = vld [vmem:[%s16143_s7 + $0x14] ss:$8 sps:$4 sm:$0xff]   ;;  %v5625_v44 = vpack.c.bf16 %v5453_v54, %v14092_v31 }
 0xe8b   : > { %6665 = vmatprep.subr.bf16.mxu1 %v9229_v48  ;;  %v9235_v48 = vld [vmem:[%s16143_s7 + $0x20] ss:$8 sps:$4 sm:$0xff]  }
 0xe8c   : > { %5872 = vmatprep.mubr.bf16.mxu1 %v5625_v44  ;;  %v9247_v44 = vld [vmem:[%s16143_s7 + $0x234] ss:$8 sps:$4 sm:$0xff]  }
 0xe8d   : > { %v14107_v24 = vpop.permute.xlu1 %4729  ;;  %v14109_v7 = vpop.permute.xlu0 %4734  ;;  %6666 = vmatpush1.bf16.msra.mxu1 %v9227_v29  ;;  %6895 = vmatprep.subr.bf16.mxu0 %v9247_v44  ;;  %v14169_v44 = vld [vmem:[%s10064_s16 + $0x50] sm:$0xff] }
 0xe8e   : > { %17652 = vst [vmem:[#allocation159_spill] sm:$0xff] %v14107_v24  ;;  %17653 = vst [vmem:[#allocation285_spill] sm:$0xff] %v14109_v7  ;;  %v14123_v24 = vld [vmem:[%s10064_s16 + $0x30] sm:$0xff]  ;;  %6667 = vmatprep.subr.bf16.mxu1 %v9237_v25  ;;  %6896 = vmatpush1.bf16.msra.mxu0 %v9245_v3  ;;  %v17661_v3 = vld [vmem:[#allocation163_spill] sm:$0xff] }
 0xe8f   : > { %v5624_v5 = vpack.c.bf16 %v14123_v24, %v14120_v52  ;;  %v9238_v7 = vld [vmem:[%s10070_s0 + $0x38] ss:$24 sps:$4 sm:$0xff]  }
 0xe90   : > { %6819 = vmatmul.mubr.bf16.gmra.mrb[4].mxu0 %v9238_v7  ;;  %v9242_v25 = vld [vmem:[%s16143_s7 + $0x30] ss:$8 sps:$4 sm:$0xff]  }
 0xe91   : > { %v14131_v54 = vpop.permute.xlu1 %4739  ;;  %v14133_v55 = vpop.permute.xlu0 %4744  ;;  %5873 = vmatmul.mubr.bf16.gmra.mrb[4].mxu1 %v5624_v5  ;;  %6828 = vmatprep.mubr.bf16.mxu0 %v9248_v60 }
 0xe92   : > { %17654 = vst [vmem:[#allocation81_spill] sm:$0xff] %v14131_v54  ;;  %17655 = vst [vmem:[#allocation219_spill] sm:$0xff] %v14133_v55  ;;  %6668 = vmatpush1.bf16.msra.mxu1 %v9235_v48  ;;  %v17658_v55 = vld [vmem:[#allocation165_spill] sm:$0xff] }
 0xe93   : > { %6669 = vmatprep.subr.bf16.mxu1 %v9244_v63  ;;  %v5457_v54 = vld [vmem:[%s10064_s16 + $0x58] sm:$0xff] }
 0xe94   : > { %v5627_v63 = vpack.c.bf16 %v5457_v54, %v5455_v20  ;;  %v9254_v54 = vld [vmem:[%s16143_s7 + $0x240] ss:$8 sps:$4 sm:$0xff]   ;;  %v9257_v20 = vld [vmem:[%s16143_s7 + $0x50] ss:$8 sps:$4 sm:$0xff]  }
 0xe95   : > { %v14150_v29 = vpop.permute.xlu1 %4749  ;;  %v14152_v16 = vpop.permute.xlu0 %4754 }
 0xe96   : > { %17656 = vst [vmem:[#allocation82_spill] sm:$0xff] %v14150_v29  ;;  %17657 = vst [vmem:[#allocation232_spill] sm:$0xff] %v14152_v16  ;;  %v17659_v29 = vld [vmem:[#allocation161_spill] sm:$0xff]  ;;  %6670 = vmatpush1.bf16.msra.mxu1 %v9242_v25  ;;  %v9253_v25 = vld [vmem:[%s10070_s0 + $0x68] ss:$24 sps:$4 sm:$0xff]   ;;  %5882 = vmatprep.mubr.bf16.mxu1 %v5627_v63 }
 0xe97   : > { %v9262_v63 = vld [vmem:[%s16143_s7 + $0x254] ss:$8 sps:$4 sm:$0xff]  }
 0xe98   : > { %6829 = vmatmul.mubr.bf16.gmra.mrb[8].mxu0 %v9253_v25 }
 0xe99   : > { %v4790_v16 = vpop.permute.xlu1 %4789  ;;  %v4792_v5 = vpop.permute.xlu0 %4791 }
 0xe9a   : > { %v4837_v7 = vmul.f32 %v17658_v55, %v4790_v16  ;;  %v4838_v48 = vmul.f32 %v17659_v29, %v4792_v5  ;;  %v5626_v55 = vpack.c.bf16 %v14169_v44, %v14166_v9  ;;  %v9250_v29 = vld [vmem:[%s16143_s7 + $0x40] ss:$8 sps:$4 sm:$0xff]   ;;  %v9252_v16 = vld [vmem:[%s16143_s7 + $0x44] ss:$8 sps:$4 sm:$0xff]  }
 0xe9b   : > { %6671 = vmatprep.subr.bf16.mxu1 %v9252_v16  ;;  %v17663_v16 = vld [vmem:[#allocation164_spill] sm:$0xff] }
 0xe9c   : > { %4855 = vperm.xlu1 %9114, %v4837_v7   ;;  %4860 = vperm.xlu0 %9115, %v4838_v48   ;;  %v17662_v7 = vld [vmem:[#allocation169_spill] sm:$0xff] }
 0xe9d   : > { %v4794_v14 = vpop.permute.xlu1 %4793  ;;  %v4796_v43 = vpop.permute.xlu0 %4795  ;;  %5883 = vmatmul.mubr.bf16.gmra.mrb[8].mxu1 %v5626_v55 }
 0xe9e   : > { %v4839_v58 = vmul.f32 %v17660_v10, %v4794_v14  ;;  %v9256_v10 = vld [vmem:[%s16143_s7 + $0x244] ss:$8 sps:$4 sm:$0xff]   ;;  %v4840_v5 = vmul.f32 %v17661_v3, %v4796_v43  ;;  %6672 = vmatpush1.bf16.msra.mxu1 %v9250_v29  ;;  %v9260_v43 = vld [vmem:[%s16143_s7 + $0x250] ss:$8 sps:$4 sm:$0xff]  }
 0xe9f   : > { %6897 = vmatprep.subr.bf16.mxu0 %v9256_v10  ;;  %v5461_v3 = vld [vmem:[%s10064_s16 + $0x78] sm:$0xff] }
 0xea0   : > { %4865 = vperm.xlu1 %9114, %v4839_v58   ;;  %v9259_v58 = vld [vmem:[%s16143_s7 + $0x54] ss:$8 sps:$4 sm:$0xff]   ;;  %6898 = vmatpush1.bf16.msra.mxu0 %v9254_v54 }
 0xea1   : > { %v4798_v14 = vpop.permute.xlu1 %4797  ;;  %v4800_v60 = vpop.permute.xlu0 %4799  ;;  %6673 = vmatprep.subr.bf16.mxu1 %v9259_v58  ;;  %6899 = vmatprep.subr.bf16.mxu0 %v9262_v63  ;;  %v17664_v54 = vld [vmem:[#allocation170_spill] sm:$0xff] }
 0xea2   : > { %v4841_v48 = vmul.f32 %v17662_v7, %v4798_v14  ;;  %v4842_v25 = vmul.f32 %v17663_v16, %v4800_v60  ;;  %6674 = vmatpush1.bf16.msra.mxu1 %v9257_v20  ;;  %v5459_v14 = vld [vmem:[%s10064_s16 + $0x68] sm:$0xff]  ;;  %v9263_v7 = vld [vmem:[%s10070_s0 + $0x9c] ss:$24 sps:$4 sm:$0xff]   ;;  %v9268_v60 = vld [vmem:[%s10070_s0 + $0x98] ss:$24 sps:$4 sm:$0xff]  }
 0xea3   : > { %v5629_v33 = vpack.c.bf16 %v5461_v3, %v5459_v14  ;;  %6838 = vmatprep.mubr.bf16.mxu0 %v9263_v7  ;;  %v9265_v20 = vld [vmem:[%s16143_s7 + $0x60] ss:$8 sps:$4 sm:$0xff]   ;;  %v9272_v3 = vld [vmem:[%s16143_s7 + $0x70] ss:$8 sps:$4 sm:$0xff]  }
 0xea4   : > { %4875 = vperm.xlu0 %9115, %v4841_v48   ;;  %4870 = vperm.xlu1 %9114, %v4840_v5   ;;  %v5628_v5 = vpack.c.bf16 %v5460_v62, %v14207_v47  ;;  %v9267_v48 = vld [vmem:[%s16143_s7 + $0x64] ss:$8 sps:$4 sm:$0xff]   ;;  %v9275_v7 = vld [vmem:[%s16143_s7 + $0x270] ss:$8 sps:$4 sm:$0xff]  }
 0xea5   : > { %v4802_v55 = vpop.permute.xlu1 %4801  ;;  %v4804_v29 = vpop.permute.xlu0 %4803  ;;  %6900 = vmatpush1.bf16.msra.mxu0 %v9260_v43  ;;  %5892 = vmatprep.mubr.bf16.mxu1 %v5629_v33  ;;  %v9269_v43 = vld [vmem:[%s16143_s7 + $0x260] ss:$8 sps:$4 sm:$0xff]   ;;  %v9271_v62 = vld [vmem:[%s16143_s7 + $0x264] ss:$8 sps:$4 sm:$0xff]   ;;  %v9274_v33 = vld [vmem:[%s16143_s7 + $0x74] ss:$8 sps:$4 sm:$0xff]  }
 0xea6   : > { %v4843_v10 = vmul.f32 %v17664_v54, %v4802_v55  ;;  %v17665_v55 = vld [vmem:[#allocation166_spill] sm:$0xff]  ;;  %5893 = vmatmul.mubr.bf16.gmra.mrb[12].mxu1 %v5628_v5  ;;  %6675 = vmatprep.subr.bf16.mxu1 %v9267_v48  ;;  %v17667_v5 = vld [vmem:[#allocation168_spill] sm:$0xff] }
 0xea7   : > { %v4844_v16 = vmul.f32 %v17665_v55, %v4804_v29  ;;  %6839 = vmatmul.mubr.bf16.gmra.mrb[12].mxu0 %v9268_v60  ;;  %6901 = vmatprep.subr.bf16.mxu0 %v9271_v62  ;;  %v17668_v60 = vld [vmem:[#allocation172_spill] sm:$0xff]  ;;  %v5465_v55 = vld [vmem:[%s10064_s16 + $0x98] sm:$0xff] }
 0xea8   : > { %4885 = vperm.xlu0 %9115, %v4843_v10   ;;  %4880 = vperm.xlu1 %9114, %v4842_v25   ;;  %v17666_v25 = vld [vmem:[#allocation171_spill] sm:$0xff]  ;;  %v9277_v10 = vld [vmem:[%s16143_s7 + $0x274] ss:$8 sps:$4 sm:$0xff]  }
 0xea9   : > { %v4806_v58 = vpop.permute.xlu1 %4805  ;;  %v4808_v63 = vpop.permute.xlu0 %4807  ;;  %6676 = vmatpush1.bf16.msra.mxu1 %v9265_v20  ;;  %6902 = vmatpush1.bf16.msra.mxu0 %v9269_v43  ;;  %v5463_v62 = vld [vmem:[%s10064_s16 + $0x88] sm:$0xff]  ;;  %v14244_v43 = vld [vmem:[%s10064_s16 + $0x80] sm:$0xff] }
 0xeaa   : > { %v4845_v54 = vmul.f32 %v17666_v25, %v4806_v58  ;;  %v4846_v48 = vmul.f32 %v17667_v5, %v4808_v63  ;;  %6677 = vmatprep.subr.bf16.mxu1 %v9274_v33  ;;  %6903 = vmatprep.subr.bf16.mxu0 %v9277_v10  ;;  %v5631_v20 = vpack.c.bf16 %v5465_v55, %v5463_v62  ;;  %v5464_v25 = vld [vmem:[%s10064_s16 + $0x90] sm:$0xff]  ;;  %v9282_v63 = vld [vmem:[%s16143_s7 + $0x84] ss:$8 sps:$4 sm:$0xff]   ;;  %v9283_v33 = vld [vmem:[%s10070_s0 + $0xc8] ss:$24 sps:$4 sm:$0xff]  }
 0xeab   : > { %v9286_v10 = vld [vmem:[%s16143_s7 + $0x284] ss:$8 sps:$4 sm:$0xff]  }
 0xeac   : > { %4895 = vperm.xlu0 %9115, %v4845_v54   ;;  %4890 = vperm.xlu1 %9114, %v4844_v16   ;;  %v9278_v16 = vld [vmem:[%s10070_s0 + $0xcc] ss:$24 sps:$4 sm:$0xff]   ;;  %v5630_v54 = vpack.c.bf16 %v5464_v25, %v14244_v43  ;;  %v9290_v25 = vld [vmem:[%s16143_s7 + $0x290] ss:$8 sps:$4 sm:$0xff]  }
 0xead   : > { %v4810_v29 = vpop.permute.xlu1 %4809  ;;  %v4812_v14 = vpop.permute.xlu0 %4811  ;;  %6678 = vmatpush1.bf16.msra.mxu1 %v9272_v3  ;;  %6904 = vmatpush1.bf16.msra.mxu0 %v9275_v7  ;;  %v17670_v55 = vld [vmem:[#allocation207_spill] sm:$0xff]  ;;  %v9292_v7 = vld [vmem:[%s16143_s7 + $0x294] ss:$8 sps:$4 sm:$0xff]  }
 0xeae   : > { %v4847_v58 = vmul.f32 %v17668_v60, %v4810_v29  ;;  %v17669_v60 = vld [vmem:[#allocation201_spill] sm:$0xff]  ;;  %5902 = vmatprep.mubr.bf16.mxu1 %v5631_v20  ;;  %6848 = vmatprep.mubr.bf16.mxu0 %v9278_v16  ;;  %v9284_v3 = vld [vmem:[%s16143_s7 + $0x280] ss:$8 sps:$4 sm:$0xff]  }
 0xeaf   : > { %v4848_v62 = vmul.f32 %v17669_v60, %v4812_v14  ;;  %5903 = vmatmul.mubr.bf16.gmra.mrb[16].mxu1 %v5630_v54  ;;  %6679 = vmatprep.subr.bf16.mxu1 %v9282_v63  ;;  %v9289_v14 = vld [vmem:[%s16143_s7 + $0x94] ss:$8 sps:$4 sm:$0xff]   ;;  %v9287_v20 = vld [vmem:[%s16143_s7 + $0x90] ss:$8 sps:$4 sm:$0xff]  }
 0xeb0   : > { %4905 = vperm.xlu0 %9115, %v4847_v58   ;;  %4900 = vperm.xlu1 %9114, %v4846_v48   ;;  %v9280_v48 = vld [vmem:[%s16143_s7 + $0x80] ss:$8 sps:$4 sm:$0xff]   ;;  %v17671_v54 = vld [vmem:[#allocation209_spill] sm:$0xff] }
 0xeb1   : > { %v4814_v5 = vpop.permute.xlu1 %4813  ;;  %v4816_v29 = vpop.permute.xlu0 %4815  ;;  %6849 = vmatmul.mubr.bf16.gmra.mrb[16].mxu0 %v9283_v33  ;;  %6905 = vmatprep.subr.bf16.mxu0 %v9286_v10  ;;  %v9293_v33 = vld [vmem:[%s10070_s0 + $0xfc] ss:$24 sps:$4 sm:$0xff]  }
 0xeb2   : > { %v4849_v58 = vmul.f32 %v17670_v55, %v4814_v5  ;;  %v4850_v63 = vmul.f32 %v17671_v54, %v4816_v29  ;;  %v17672_v5 = vld [vmem:[#allocation211_spill] sm:$0xff]  ;;  %6680 = vmatpush1.bf16.msra.mxu1 %v9280_v48  ;;  %6906 = vmatpush1.bf16.msra.mxu0 %v9284_v3  ;;  %v5469_v55 = vld [vmem:[%s10064_s16 + $0xb8] sm:$0xff] }
 0xeb3   : > { %6681 = vmatprep.subr.bf16.mxu1 %v9289_v14  ;;  %6907 = vmatprep.subr.bf16.mxu0 %v9292_v7  ;;  %v9297_v29 = vld [vmem:[%s16143_s7 + $0xa4] ss:$8 sps:$4 sm:$0xff]   ;;  %v9298_v48 = vld [vmem:[%s10070_s0 + $0xf8] ss:$24 sps:$4 sm:$0xff]  }
 0xeb4   : > { %4915 = vperm.xlu0 %9115, %v4849_v58   ;;  %4910 = vperm.xlu1 %9114, %v4848_v62   ;;  %v5467_v62 = vld [vmem:[%s10064_s16 + $0xa8] sm:$0xff]  ;;  %v5473_v54 = vld [vmem:[%s10064_s16 + $0xd8] sm:$0xff] }
 0xeb5   : > { %v4818_v16 = vpop.permute.xlu1 %4817  ;;  %v4820_v58 = vpop.permute.xlu0 %4819  ;;  %v5633_v10 = vpack.c.bf16 %v5469_v55, %v5467_v62  ;;  %6858 = vmatprep.mubr.bf16.mxu0 %v9293_v33  ;;  %v9301_v3 = vld [vmem:[%s16143_s7 + $0x2a4] ss:$8 sps:$4 sm:$0xff]   ;;  %v9302_v62 = vld [vmem:[%s16143_s7 + $0xb0] ss:$8 sps:$4 sm:$0xff]  }
 0xeb6   : > { %v4851_v60 = vmul.f32 %v17672_v5, %v4818_v16  ;;  %v17673_v14 = vld [vmem:[#allocation204_spill] sm:$0xff]  ;;  %6682 = vmatpush1.bf16.msra.mxu1 %v9287_v20  ;;  %6908 = vmatpush1.bf16.msra.mxu0 %v9290_v25  ;;  %v5470_v5 = vld [vmem:[%s10064_s16 + $0xc0] sm:$0xff] }
 0xeb7   : > { %5912 = vmatprep.mubr.bf16.mxu1 %v5633_v10  ;;  %v4852_v7 = vmul.f32 %v17673_v14, %v4820_v58  ;;  %6683 = vmatprep.subr.bf16.mxu1 %v9297_v29  ;;  %v9304_v16 = vld [vmem:[%s16143_s7 + $0xb4] ss:$8 sps:$4 sm:$0xff]   ;;  %v5471_v25 = vld [vmem:[%s10064_s16 + $0xc8] sm:$0xff]  ;;  %v9305_v55 = vld [vmem:[%s16143_s7 + $0x2b0] ss:$8 sps:$4 sm:$0xff]  }
 0xeb8   : > { %4925 = vperm.xlu0 %9115, %v4851_v60   ;;  %4920 = vperm.xlu1 %9114, %v4850_v63   ;;  %v9307_v20 = vld [vmem:[%s16143_s7 + $0x2b4] ss:$8 sps:$4 sm:$0xff]   ;;  %v5635_v63 = vpack.c.bf16 %v5473_v54, %v5471_v25  ;;  %v9312_v58 = vld [vmem:[%s16143_s7 + $0xc4] ss:$8 sps:$4 sm:$0xff]   ;;  %v9313_v10 = vld [vmem:[%s10070_s0 + $0x128] ss:$24 sps:$4 sm:$0xff]  }
 0xeb9   : > { %5913 = vmatmul.mubr.bf16.gmra.mrb[20].mxu1 %v5632_v51  ;;  %6859 = vmatmul.mubr.bf16.gmra.mrb[20].mxu0 %v9298_v48  ;;  %v9308_v51 = vld [vmem:[%s10070_s0 + $0x12c] ss:$24 sps:$4 sm:$0xff]   ;;  %v5472_v60 = vld [vmem:[%s10064_s16 + $0xd0] sm:$0xff]  ;;  %v9310_v48 = vld [vmem:[%s16143_s7 + $0xc0] ss:$8 sps:$4 sm:$0xff]  }
 0xeba   : > { %6909 = vmatprep.subr.bf16.mxu0 %v9301_v3  ;;  %6684 = vmatpush1.bf16.msra.mxu1 %v9295_v49  ;;  %v5634_v33 = vpack.c.bf16 %v5472_v60, %v5470_v5  ;;  %v9316_v29 = vld [vmem:[%s16143_s7 + $0x2c4] ss:$8 sps:$4 sm:$0xff]   ;;  %v9314_v3 = vld [vmem:[%s16143_s7 + $0x2c0] ss:$8 sps:$4 sm:$0xff]   ;;  %v9319_v14 = vld [vmem:[%s16143_s7 + $0xd4] ss:$8 sps:$4 sm:$0xff]  }
 0xebb   : > { %6910 = vmatpush1.bf16.msra.mxu0 %v9299_v35  ;;  %6685 = vmatprep.subr.bf16.mxu1 %v9304_v16  ;;  %v5477_v49 = vld [vmem:[%s10064_s16 + $0xf8] sm:$0xff]  ;;  %v9852_v16 = vmov 6   ;;  %v5474_v54 = vld [vmem:[%s10064_s16 + $0xe0] sm:$0xff] }
 0xebc   : > { %4965 = vrot.lane.b32.xlu0 %v13506_v22, %s9844_s30  ;;  %4930 = vperm.xlu1 %9114, %v4852_v7   ;;  %v5475_v7 = vld [vmem:[%s10064_s16 + $0xe8] sm:$0xff]  ;;  %v9322_v35 = vld [vmem:[%s16143_s7 + $0x2d4] ss:$8 sps:$4 sm:$0xff]  }
 0xebd   : > { %6911 = vmatprep.subr.bf16.mxu0 %v9307_v20  ;;  %5922 = vmatprep.mubr.bf16.mxu1 %v5635_v63  ;;  %v9317_v20 = vld [vmem:[%s16143_s7 + $0xd0] ss:$8 sps:$4 sm:$0xff]   ;;  %v5637_v25 = vpack.c.bf16 %v5477_v49, %v5475_v7  ;;  %v9323_v5 = vld [vmem:[%s10070_s0 + $0x15c] ss:$24 sps:$4 sm:$0xff]  }
 0xebe   : > { %6868 = vmatprep.mubr.bf16.mxu0 %v9308_v51  ;;  %6686 = vmatpush1.bf16.msra.mxu1 %v9302_v62  ;;  %v5476_v63 = vld [vmem:[%s10064_s16 + $0xf0] sm:$0xff]  ;;  %v9327_v62 = vld [vmem:[%s16143_s7 + $0xe4] ss:$8 sps:$4 sm:$0xff]  }
 0xebf   : > { %6912 = vmatpush1.bf16.msra.mxu0 %v9305_v55  ;;  %6687 = vmatprep.subr.bf16.mxu1 %v9312_v58  ;;  %v9320_v51 = vld [vmem:[%s16143_s7 + $0x2d0] ss:$8 sps:$4 sm:$0xff]   ;;  %v5636_v60 = vpack.c.bf16 %v5476_v63, %v5474_v54  ;;  %v9325_v58 = vld [vmem:[%s16143_s7 + $0xe0] ss:$8 sps:$4 sm:$0xff]  }
 0xec0   : > { %4969 = vrot.lane.b32.xlu0 %v13420_v18, %s9844_s30  ;;  %4967 = vrot.lane.b32.xlu1 %v13410_v27, %s9844_s30  ;;  %v9328_v55 = vld [vmem:[%s10070_s0 + $0x158] ss:$24 sps:$4 sm:$0xff]  }
 0xec1   : > { %5923 = vmatmul.mubr.bf16.gmra.mrb[24].mxu1 %v5634_v33  ;;  %6869 = vmatmul.mubr.bf16.gmra.mrb[24].mxu0 %v9313_v10  ;;  %v9331_v33 = vld [vmem:[%s16143_s7 + $0x2e4] ss:$8 sps:$4 sm:$0xff]   ;;  %v9329_v10 = vld [vmem:[%s16143_s7 + $0x2e0] ss:$8 sps:$4 sm:$0xff]   ;;  %v9332_v7 = vld [vmem:[%s16143_s7 + $0xf0] ss:$8 sps:$4 sm:$0xff]  }
 0xec2   : > { %6913 = vmatprep.subr.bf16.mxu0 %v9316_v29  ;;  %9116 = vset.pattern.permute.xlu0 %v9852_v16  ;;  %v9334_v29 = vld [vmem:[%s16143_s7 + $0xf4] ss:$8 sps:$4 sm:$0xff]   ;;  %v9335_v49 = vld [vmem:[%s16143_s7 + $0x2f0] ss:$8 sps:$4 sm:$0xff]  }
 0xec3   : > { %6688 = vmatpush1.bf16.msra.mxu1 %v9310_v48  ;;  %6914 = vmatpush1.bf16.msra.mxu0 %v9314_v3  ;;  %v9337_v48 = vld [vmem:[%s16143_s7 + $0x2f4] ss:$8 sps:$4 sm:$0xff]   ;;  %v9348_v54 = vld [vmem:[%s10070_s0 + $0x30] ss:$24 sps:$4 sm:$0xff]   ;;  %v9349_v63 = vld [vmem:[%s10070_s0 + $0x40] ss:$24 sps:$4 sm:$0xff]  }
 0xec4   : > { %4973 = vrot.lane.b32.xlu0 %v13440_v38, %s9844_s30  ;;  %4971 = vrot.lane.b32.xlu1 %v13430_v41, %s9844_s30  ;;  %v9340_v3 = vld [vmem:[%s10070_s0 + $0x4] ss:$24 sps:$4 sm:$0xff]  }
 0xec5   : > { %6689 = vmatprep.subr.bf16.mxu1 %v9319_v14  ;;  %6915 = vmatprep.subr.bf16.mxu0 %v9322_v35  ;;  %v9343_v14 = vld [vmem:[%s10070_s0 + $0x14] ss:$24 sps:$4 sm:$0xff]   ;;  %v9338_v35 = vld [vmem:[%s10070_s0] ss:$24 sps:$4 sm:$0xff]  }
 0xec6   : > { %9117 = vset.pattern.permute.xlu1 %v9852_v16  ;;  %5932 = vmatprep.mubr.bf16.mxu1 %v5637_v25  ;;  %v9341_v16 = vld [vmem:[%s10070_s0 + $0x10] ss:$24 sps:$4 sm:$0xff]   ;;  %v9346_v25 = vld [vmem:[%s10070_s0 + $0x44] ss:$24 sps:$4 sm:$0xff]  }
 0xec7   : > { %6690 = vmatpush1.bf16.msra.mxu1 %v9317_v20  ;;  %6916 = vmatpush1.bf16.msra.mxu0 %v9320_v51  ;;  %v9344_v20 = vld [vmem:[%s10070_s0 + $0x34] ss:$24 sps:$4 sm:$0xff]   ;;  %v9350_v51 = vld [vmem:[%s10070_s0 + $0x64] ss:$24 sps:$4 sm:$0xff]  }
 0xec8   : > { %4977 = vrot.lane.b32.xlu0 %v13457_v56, %s9844_s30  ;;  %4975 = vrot.lane.b32.xlu1 %v13448_v36, %s9844_s30 }
 0xec9   : > { %6878 = vmatprep.mubr.bf16.mxu0 %v9323_v5  ;;  %5933 = vmatmul.mubr.bf16.gmra.mrb[28].mxu1 %v5636_v60  ;;  %v9352_v5 = vld [vmem:[%s10070_s0 + $0x74] ss:$24 sps:$4 sm:$0xff]   ;;  %v9354_v60 = vld [vmem:[%s10070_s0 + $0x60] ss:$24 sps:$4 sm:$0xff]  }
 0xeca   : > { %6691 = vmatprep.subr.bf16.mxu1 %v9327_v62  ;;  %6879 = vmatmul.mubr.bf16.gmra.mrb[28].mxu0 %v9328_v55  ;;  %v9355_v62 = vld [vmem:[%s10070_s0 + $0x70] ss:$24 sps:$4 sm:$0xff]   ;;  %v9356_v55 = vld [vmem:[%s10070_s0 + $0x94] ss:$24 sps:$4 sm:$0xff]  }
 0xecb   : > { %6917 = vmatprep.subr.bf16.mxu0 %v9331_v33  ;;  %6692 = vmatpush1.bf16.msra.mxu1 %v9325_v58  ;;  %v9358_v33 = vld [vmem:[%s10070_s0 + $0xa4] ss:$24 sps:$4 sm:$0xff]   ;;  %v9360_v58 = vld [vmem:[%s10070_s0 + $0x90] ss:$24 sps:$4 sm:$0xff]  }
 0xecc   : > { %4981 = vrot.lane.b32.xlu0 %v13471_v26, %s9844_s30  ;;  %4979 = vrot.lane.b32.xlu1 %v13463_v37, %s9844_s30 }
 0xecd   : > { %6918 = vmatpush1.bf16.msra.mxu0 %v9329_v10  ;;  %6693 = vmatprep.subr.bf16.mxu1 %v9334_v29  ;;  %v9361_v10 = vld [vmem:[%s10070_s0 + $0xa0] ss:$24 sps:$4 sm:$0xff]   ;;  %v9362_v29 = vld [vmem:[%s10070_s0 + $0xc4] ss:$24 sps:$4 sm:$0xff]  }
 0xece   : > { %6919 = vmatprep.subr.bf16.mxu0 %v9337_v48  ;;  %6695 = vmatprep.mubr.bf16.mxu1 %v9340_v3  ;;  %v9364_v48 = vld [vmem:[%s10070_s0 + $0xd4] ss:$24 sps:$4 sm:$0xff]   ;;  %v9366_v3 = vld [vmem:[%s10070_s0 + $0xc0] ss:$24 sps:$4 sm:$0xff]  }
 0xecf   : > { %6921 = vmatprep.mubr.bf16.mxu0 %v9343_v14  ;;  %6694 = vmatpush1.bf16.msra.mxu1 %v9332_v7  ;;  %v9367_v14 = vld [vmem:[%s10070_s0 + $0xd0] ss:$24 sps:$4 sm:$0xff]   ;;  %v9368_v7 = vld [vmem:[%s10070_s0 + $0xf4] ss:$24 sps:$4 sm:$0xff]  }
 0xed0   : > { %4985 = vrot.lane.b32.xlu0 %v13482_v39, %s9844_s30  ;;  %4983 = vrot.lane.b32.xlu1 %v13475_v0, %s9844_s30 }
 0xed1   : > { %6920 = vmatpush1.bf16.msra.mxu0 %v9335_v49  ;;  %v9370_v49 = vld [vmem:[%s10070_s0 + $0x104] ss:$24 sps:$4 sm:$0xff]  }
 0xed2   : > { %6696 = vmatmul.mubr.bf16.vlgmr.msra.gmra.mrb[0].mxu1 %v9338_v35  ;;  %v9372_v35 = vld [vmem:[%s10070_s0 + $0xf0] ss:$24 sps:$4 sm:$0xff]  }
 0xed3   : > { %6705 = vmatprep.mubr.bf16.mxu1 %v9344_v20  ;;  %v9374_v20 = vld [vmem:[%s10070_s0 + $0x124] ss:$24 sps:$4 sm:$0xff]  }
 0xed4   : > { %4989 = vrot.lane.b32.xlu0 %v13490_v21, %s9844_s30  ;;  %4987 = vrot.lane.b32.xlu1 %v13484_v17, %s9844_s30 }
 0xed5   : > { %6922 = vmatmul.mubr.bf16.vlgmr.msra.gmra.mrb[0].mxu0 %v9341_v16  ;;  %v9373_v16 = vld [vmem:[%s10070_s0 + $0x100] ss:$24 sps:$4 sm:$0xff]  }
 0xed6   : > { %6931 = vmatprep.mubr.bf16.mxu0 %v9346_v25  ;;  %v9376_v25 = vld [vmem:[%s10070_s0 + $0x134] ss:$24 sps:$4 sm:$0xff]  }
 0xed8   : > { %4993 = vrot.lane.b32.xlu0 %v13498_v40, %s9844_s30  ;;  %4991 = vrot.lane.b32.xlu1 %v13492_v61, %s9844_s30 }
 0xeda   : > { %6706 = vmatmul.mubr.bf16.gmra.mrb[4].mxu1 %v9348_v54  ;;  %v9378_v54 = vld [vmem:[%s10070_s0 + $0x120] ss:$24 sps:$4 sm:$0xff]  }
 0xedb   : > { %6715 = vmatprep.mubr.bf16.mxu1 %v9350_v51  ;;  %v9380_v51 = vld [vmem:[%s10070_s0 + $0x154] ss:$24 sps:$4 sm:$0xff]  }
 0xedc   : > { %4995 = vrot.lane.b32.xlu1 %v13500_v15, %s9844_s30 }
 0xedd   : > { %6932 = vmatmul.mubr.bf16.gmra.mrb[4].mxu0 %v9349_v63  ;;  %v9379_v63 = vld [vmem:[%s10070_s0 + $0x130] ss:$24 sps:$4 sm:$0xff]  }
 0xede   : > { %6941 = vmatprep.mubr.bf16.mxu0 %v9352_v5  ;;  %v9382_v5 = vld [vmem:[%s10070_s0 + $0x164] ss:$24 sps:$4 sm:$0xff]  }
 0xee2   : > { %6716 = vmatmul.mubr.bf16.gmra.mrb[8].mxu1 %v9354_v60  ;;  %v9384_v60 = vld [vmem:[%s10070_s0 + $0x150] ss:$24 sps:$4 sm:$0xff]  }
 0xee3   : > { %6725 = vmatprep.mubr.bf16.mxu1 %v9356_v55 }
 0xee5   : > { %6942 = vmatmul.mubr.bf16.gmra.mrb[8].mxu0 %v9355_v62  ;;  %v9385_v62 = vld [vmem:[%s10070_s0 + $0x160] ss:$24 sps:$4 sm:$0xff]   ;;  %s17705_s0 = smov 7  }
 0xee6   : > { %6951 = vmatprep.mubr.bf16.mxu0 %v9358_v33 }
 0xeea   : > { %6726 = vmatmul.mubr.bf16.gmra.mrb[12].mxu1 %v9360_v58 }
 0xeeb   : > { %6735 = vmatprep.mubr.bf16.mxu1 %v9362_v29 }
 0xeed   : > { %6952 = vmatmul.mubr.bf16.gmra.mrb[12].mxu0 %v9361_v10 }
 0xeee   : > { %6961 = vmatprep.mubr.bf16.mxu0 %v9364_v48 }
 0xef2   : > { %6736 = vmatmul.mubr.bf16.gmra.mrb[16].mxu1 %v9366_v3 }
 0xef3   : > { %6745 = vmatprep.mubr.bf16.mxu1 %v9368_v7 }
 0xef5   : > { %6962 = vmatmul.mubr.bf16.gmra.mrb[16].mxu0 %v9367_v14 }
 0xef6   : > { %6971 = vmatprep.mubr.bf16.mxu0 %v9370_v49 }
 0xefa   : > { %6746 = vmatmul.mubr.bf16.gmra.mrb[20].mxu1 %v9372_v35 }
 0xefb   : > { %6755 = vmatprep.mubr.bf16.mxu1 %v9374_v20 }
 0xefd   : > { %6972 = vmatmul.mubr.bf16.gmra.mrb[20].mxu0 %v9373_v16 }
 0xefe   : > { %6981 = vmatprep.mubr.bf16.mxu0 %v9376_v25 }
 0xf02   : > { %6756 = vmatmul.mubr.bf16.gmra.mrb[24].mxu1 %v9378_v54 }
 0xf03   : > { %6765 = vmatprep.mubr.bf16.mxu1 %v9380_v51 }
 0xf05   : > { %6982 = vmatmul.mubr.bf16.gmra.mrb[24].mxu0 %v9379_v63 }
 0xf06   : > { %6991 = vmatprep.mubr.bf16.mxu0 %v9382_v5  ;;  %v17689_v5 = vld [vmem:[#allocation235_spill] sm:$0xff] }
 0xf0a   : > { %6766 = vmatmul.mubr.bf16.gmra.mrb[28].mxu1 %v9384_v60 }
 0xf0d   : > { %6992 = vmatmul.mubr.bf16.gmra.mrb[28].mxu0 %v9385_v62 }
 0xf1b   : > { %v14432_v55 = vpop.permute.xlu1 %4855  ;;  %v14434_v33 = vpop.permute.xlu0 %4860 }
 0xf1c   : > { %17674 = vst [vmem:[#allocation154_spill] sm:$0xff] %v14432_v55  ;;  %17675 = vst [vmem:[#allocation160_spill] sm:$0xff] %v14434_v33 }
 0xf1f   : > { %v14436_v58 = vpop.permute.xlu1 %4865 }
 0xf23   : > { %v14438_v10 = vpop.permute.xlu1 %4870  ;;  %v14440_v29 = vpop.permute.xlu0 %4875 }
 0xf24   : > { %17676 = vst [vmem:[#allocation286_spill] sm:$0xff] %v14438_v10  ;;  %17677 = vst [vmem:[#allocation203_spill] sm:$0xff] %v14440_v29 }
 0xf27   : > { %v14442_v48 = vpop.permute.xlu1 %4880  ;;  %v14444_v3 = vpop.permute.xlu0 %4885 }
 0xf28   : > { %17678 = vst [vmem:[#allocation162_spill] sm:$0xff] %v14442_v48  ;;  %17679 = vst [vmem:[#allocation293_spill] sm:$0xff] %v14444_v3  ;;  %v17690_v48 = vld [vmem:[#allocation246_spill] sm:$0xff]  ;;  %v17694_v3 = vld [vmem:[#allocation248_spill] sm:$0xff] }
 0xf2b   : > { %v14446_v14 = vpop.permute.xlu1 %4890  ;;  %v14448_v7 = vpop.permute.xlu0 %4895 }
 0xf2c   : > { %17680 = vst [vmem:[#allocation83_spill] sm:$0xff] %v14446_v14  ;;  %17681 = vst [vmem:[#allocation240_spill] sm:$0xff] %v14448_v7 }
 0xf2f   : > { %v14450_v49 = vpop.permute.xlu1 %4900  ;;  %v14452_v35 = vpop.permute.xlu0 %4905 }
 0xf30   : > { %17682 = vst [vmem:[#allocation242_spill] sm:$0xff] %v14450_v49  ;;  %17683 = vst [vmem:[#allocation132_spill] sm:$0xff] %v14452_v35 }
 0xf33   : > { %v14454_v16 = vpop.permute.xlu1 %4910  ;;  %v14456_v20 = vpop.permute.xlu0 %4915 }
 0xf34   : > { %17684 = vst [vmem:[#allocation158_spill] sm:$0xff] %v14454_v16  ;;  %17685 = vst [vmem:[#allocation287_spill] sm:$0xff] %v14456_v20  ;;  %v17691_v16 = vld [vmem:[#allocation237_spill] sm:$0xff]  ;;  %v17692_v20 = vld [vmem:[#allocation247_spill] sm:$0xff] }
 0xf37   : > { %v14458_v25 = vpop.permute.xlu1 %4920  ;;  %v14460_v54 = vpop.permute.xlu0 %4925 }
 0xf38   : > { %17686 = vst [vmem:[#allocation294_spill] sm:$0xff] %v14458_v25  ;;  %17687 = vst [vmem:[#allocation213_spill] sm:$0xff] %v14460_v54 }
 0xf3b   : > { %v14462_v63 = vpop.permute.xlu1 %4930  ;;  %v4966_v51 = vpop.permute.xlu0 %4965 }
 0xf3c   : > { %17688 = vst [vmem:[#allocation244_spill] sm:$0xff] %v14462_v63  ;;  %v5013_v60 = vmul.f32 %v17689_v5, %v4966_v51  ;;  %v17693_v63 = vld [vmem:[#allocation239_spill] sm:$0xff] }
 0xf3e   : > { %5031 = vperm.xlu0 %9116, %v5013_v60  }
 0xf3f   : > { %v4968_v62 = vpop.permute.xlu1 %4967  ;;  %v4970_v14 = vpop.permute.xlu0 %4969 }
 0xf40   : > { %v5014_v49 = vmul.f32 %v17690_v48, %v4968_v62  ;;  %v5015_v35 = vmul.f32 %v17691_v16, %v4970_v14  ;;  %v17695_v48 = vld [vmem:[#allocation241_spill] sm:$0xff]  ;;  %v17698_v16 = vld [vmem:[#allocation250_spill] sm:$0xff] }
 0xf41   : > { %v17696_v62 = vld [vmem:[#allocation249_spill] sm:$0xff] }
 0xf42   : > { %5036 = vperm.xlu1 %9117, %v5014_v49  }
 0xf43   : > { %v4972_v10 = vpop.permute.xlu1 %4971  ;;  %v4974_v33 = vpop.permute.xlu0 %4973 }
 0xf44   : > { %v5016_v7 = vmul.f32 %v17692_v20, %v4972_v10  ;;  %v5017_v55 = vmul.f32 %v17693_v63, %v4974_v33  ;;  %v17700_v63 = vld [vmem:[#allocation252_spill] sm:$0xff] }
 0xf46   : > { %5046 = vperm.xlu0 %9116, %v5016_v7   ;;  %5041 = vperm.xlu1 %9117, %v5015_v35   ;;  %v17697_v7 = vld [vmem:[#allocation243_spill] sm:$0xff] }
 0xf47   : > { %v4976_v25 = vpop.permute.xlu1 %4975  ;;  %v4978_v54 = vpop.permute.xlu0 %4977 }
 0xf48   : > { %v5018_v51 = vmul.f32 %v17694_v3, %v4976_v25  ;;  %v5019_v49 = vmul.f32 %v17695_v48, %v4978_v54  ;;  %v17699_v25 = vld [vmem:[#allocation245_spill] sm:$0xff]  ;;  %v17702_v48 = vld [vmem:[#allocation288_spill] sm:$0xff] }
 0xf4a   : > { %5056 = vperm.xlu0 %9116, %v5018_v51   ;;  %5051 = vperm.xlu1 %9117, %v5017_v55  }
 0xf4b   : > { %v4980_v5 = vpop.permute.xlu1 %4979  ;;  %v4982_v60 = vpop.permute.xlu0 %4981 }
 0xf4c   : > { %v5020_v29 = vmul.f32 %v17696_v62, %v4980_v5  ;;  %v5021_v35 = vmul.f32 %v17697_v7, %v4982_v60  ;;  %v17701_v5 = vld [vmem:[#allocation279_spill] sm:$0xff] }
 0xf4e   : > { %5066 = vperm.xlu0 %9116, %v5020_v29   ;;  %5061 = vperm.xlu1 %9117, %v5019_v49  }
 0xf4f   : > { %v4984_v14 = vpop.permute.xlu1 %4983  ;;  %v4986_v10 = vpop.permute.xlu0 %4985 }
 0xf50   : > { %v5022_v20 = vmul.f32 %v17698_v16, %v4984_v14  ;;  %v5023_v55 = vmul.f32 %v17699_v25, %v4986_v10  ;;  %v17703_v14 = vld [vmem:[#allocation290_spill] sm:$0xff]  ;;  %v9853_v10 = vmov 7   ;;  %v17709_v25 = vld [vmem:[#allocation96_spill] sm:$0xff] }
 0xf52   : > { %5076 = vperm.xlu0 %9116, %v5022_v20   ;;  %5071 = vperm.xlu1 %9117, %v5021_v35   ;;  %v17704_v35 = vld [vmem:[#allocation282_spill] sm:$0xff] }
 0xf53   : > { %v4988_v33 = vpop.permute.xlu1 %4987  ;;  %v4990_v3 = vpop.permute.xlu0 %4989 }
 0xf54   : > { %v5024_v51 = vmul.f32 %v17700_v63, %v4988_v33  ;;  %v5025_v29 = vmul.f32 %v17701_v5, %v4990_v3 }
 0xf56   : > { %5086 = vperm.xlu0 %9116, %v5024_v51   ;;  %5081 = vperm.xlu1 %9117, %v5023_v55  }
 0xf57   : > { %v4992_v54 = vpop.permute.xlu1 %4991  ;;  %v4994_v62 = vpop.permute.xlu0 %4993 }
 0xf58   : > { %v5026_v49 = vmul.f32 %v17702_v48, %v4992_v54  ;;  %v5027_v7 = vmul.f32 %v17703_v14, %v4994_v62  ;;  %v17711_v54 = vld [vmem:[#allocation15_spill] sm:$0xff] }
 0xf59   : > { %v7010_v48 = vsub.s32 1, %v17711_v54 }
 0xf5a   : > { %5096 = vperm.xlu0 %9116, %v5026_v49   ;;  %5091 = vperm.xlu1 %9117, %v5025_v29   ;;  %v17712_v49 = vunpack.c.h.bf16 %v17709_v25 }
 0xf5b   : > { %v4996_v60 = vpop.permute.xlu1 %4995 }
 0xf5c   : > { %v5028_v16 = vmul.f32 %v17704_v35, %v4996_v60  ;;  %v4583_v62 = vmul.f32 %v13785_v13, %v17712_v49  ;;  %v17713_v35 = vld [vmem:[#allocation174_spill] sm:$0xff] }
 0xf5e   : > { %5106 = vperm.xlu0 %9116, %v5028_v16   ;;  %5101 = vperm.xlu1 %9117, %v5027_v7   ;;  %v17714_v16 = vunpack.c.l.bf16 %v17713_v35 }
 0xf62   : > { %5143 = vrot.lane.b32.xlu0 %v13410_v27, %s17705_s0  ;;  %5141 = vrot.lane.b32.xlu1 %v13506_v22, %s17705_s0 }
 0xf63   : > { %9119 = vset.pattern.permute.xlu0 %v9853_v10  ;;  %9118 = vset.pattern.permute.xlu1 %v9853_v10  ;;  %v4759_v10 = vmul.f32 %v14030_v45, %v17714_v16  ;;  %v9723_v45 = vld [vmem:[%s10064_s16 + $0x8] sm:$0xff] }
 0xf66   : > { %5147 = vrot.lane.b32.xlu0 %v13430_v41, %s17705_s0  ;;  %5145 = vrot.lane.b32.xlu1 %v13420_v18, %s17705_s0  ;;  %v17706_v18 = vld [vmem:[#allocation35_spill] sm:$0xff] }
 0xf6a   : > { %5151 = vrot.lane.b32.xlu0 %v13448_v36, %s17705_s0  ;;  %5149 = vrot.lane.b32.xlu1 %v13440_v38, %s17705_s0  ;;  %v17707_v38 = vunpack.c.l.bf16 %v17706_v18 }
 0xf6e   : > { %5155 = vrot.lane.b32.xlu0 %v13463_v37, %s17705_s0  ;;  %5153 = vrot.lane.b32.xlu1 %v13457_v56, %s17705_s0  ;;  %v4039_v56 = vmul.f32 %v13560_v57, %v17707_v38  ;;  %v7006_v57 = vsub.s32 0, %v17711_v54 }
 0xf72   : > { %5159 = vrot.lane.b32.xlu0 %v13475_v0, %s17705_s0  ;;  %5157 = vrot.lane.b32.xlu1 %v13471_v26, %s17705_s0  ;;  %v9722_v26 = vld [vmem:[%s10042_s28 + $0x10] sm:$0xff] }
 0xf73   : > { %v3927_v20 = vmul.f32 %v9722_v26, %v13544_v6 }
 0xf75   : > { %v4055_v3 = vadd.f32 %v4039_v56, %v3927_v20 }
 0xf76   : > { %5163 = vrot.lane.b32.xlu0 %v13484_v17, %s17705_s0  ;;  %5161 = vrot.lane.b32.xlu1 %v13482_v39, %s17705_s0  ;;  %v17708_v39 = vunpack.c.h.bf16 %v17706_v18 }
 0xf78   : > { %v4231_v33 = vmul.f32 %v13625_v30, %v17708_v39 }
 0xf7a   : > { %5167 = vrot.lane.b32.xlu0 %v13492_v61, %s17705_s0  ;;  %5165 = vrot.lane.b32.xlu1 %v13490_v21, %s17705_s0  ;;  %v17710_v21 = vunpack.c.l.bf16 %v17709_v25  ;;  %v4247_v30 = vadd.f32 %v4231_v33, %v4055_v3  ;;  %v17716_v33 = vunpack.c.h.bf16 %v17713_v35 }
 0xf7c   : > { %v4407_v55 = vmul.f32 %v13705_v42, %v17710_v21  ;;  %v4935_v3 = vmul.f32 %v14436_v58, %v17716_v33  ;;  %v9724_v33 = vld [vmem:[%s10064_s16 + $0x18] sm:$0xff] }
 0xf7e   : > { %5171 = vrot.lane.b32.xlu0 %v13500_v15, %s17705_s0  ;;  %5169 = vrot.lane.b32.xlu1 %v13498_v40, %s17705_s0  ;;  %v7002_v40 = vld [vmem:[%s16145_s9] sm:$0x3]  ;;  %v4423_v7 = vadd.f32 %v4407_v55, %v4247_v30 }
 0xf7f   : > { %v14532_v42 = vrot.slane %v7002_v40, %v7006_v57  ;;  %v14534_v14 = vrot.slane %v7002_v40, %v7010_v48  ;;  %v17718_v48 = vld [vmem:[#allocation16_spill] sm:$0xff] }
 0xf80   : > { %v4599_v39 = vadd.f32 %v4583_v62, %v4423_v7 }
 0xfa5   : > { %v6697_v63 = vpop.f32.mrb[0].mxu1 }
 0xfa6   : > { %v6699_v6 = vpop.f32.mrb[1].mxu1 }
 0xfa7   : > { %v6701_v56 = vpop.f32.mrb[2].mxu1 }
 0xfa8   : > { %v6923_v51 = vpop.f32.mrb[0].mxu0  ;;  %v6703_v20 = vpop.f32.mrb[3].mxu1 }
 0xfa9   : > { %v8943_v5 = vadd.f32 %v6923_v51, %v6697_v63  ;;  %v6925_v29 = vpop.f32.mrb[1].mxu0 }
 0xfaa   : > { %v8944_v60 = vadd.f32 %v6925_v29, %v6699_v6  ;;  %v6927_v13 = vpop.f32.mrb[2].mxu0  ;;  %v4775_v6 = vadd.f32 %v4759_v10, %v4599_v39 }
 0xfab   : > { %v7014_v38 = vadd.f32 %v8943_v5, %v14532_v42  ;;  %v8945_v21 = vadd.f32 %v6927_v13, %v6701_v56  ;;  %v6929_v55 = vpop.f32.mrb[3].mxu0 }
 0xfac   : > { %v7015_v26 = vadd.f32 %v8944_v60, %v14534_v14  ;;  %v8946_v40 = vadd.f32 %v6929_v55, %v6703_v20  ;;  %v4951_v10 = vadd.f32 %v4935_v3, %v4775_v6 }
 0xfad   : > { %v7046_v25 = vadd.f32 %v7014_v38, %v14073_v53  ;;  %v6707_v63 = vpop.f32.mrb[4].mxu1  ;;  %v7016_v53 = vadd.f32 %v8945_v21, %v14532_v42 }
 0xfae   : > { %v7047_v51 = vadd.f32 %v9723_v45, %v7015_v26  ;;  %v6709_v5 = vpop.f32.mrb[5].mxu1  ;;  %v7017_v60 = vadd.f32 %v8946_v40, %v14534_v14 }
 0xfaf   : > { %7083 = vst [vmem:[%s14550_s23] sm:$0xff] %v7046_v25  ;;  %v7115_v58 = vmul.f32 %v17718_v48, %v7046_v25  ;;  %v6711_v35 = vpop.f32.mrb[6].mxu1  ;;  %v7048_v38 = vadd.f32 %v7016_v53, %v14076_v32  ;;  %v17720_v32 = vld [vmem:[#allocation17_spill] sm:$0xff] }
 0xfb0   : > { %v6933_v57 = vpop.f32.mrb[4].mxu0  ;;  %7084 = vst [vmem:[%s14550_s23 + $0x8] sm:$0xff] %v7047_v51  ;;  %v7116_v62 = vmul.f32 %v17718_v48, %v7047_v51  ;;  %v6713_v13 = vpop.f32.mrb[7].mxu1  ;;  %v7049_v21 = vadd.f32 %v9724_v33, %v7017_v60  ;;  %v17721_v53 = vld [vmem:[#allocation253_spill] sm:$0xff] }
 0xfb1   : > { %v8947_v30 = vadd.f32 %v6933_v57, %v6707_v63  ;;  %v6935_v49 = vpop.f32.mrb[5].mxu0  ;;  %v7215_v39 = vmul.f32 %v7115_v58, %v7046_v25  ;;  %7085 = vst [vmem:[%s14550_s23 + $0x10] sm:$0xff] %v7048_v38  ;;  %v7117_v3 = vmul.f32 %v17720_v32, %v7048_v38 }
 0xfb2   : > { %v8948_v7 = vadd.f32 %v6935_v49, %v6709_v5  ;;  %v6937_v16 = vpop.f32.mrb[6].mxu0  ;;  %v7216_v60 = vmul.f32 %v7116_v62, %v7047_v51  ;;  %7086 = vst [vmem:[%s14550_s23 + $0x18] sm:$0xff] %v7049_v21 }
 0xfb3   : > { %v7018_v56 = vadd.f32 %v8947_v30, %v14532_v42  ;;  %v8949_v26 = vadd.f32 %v6937_v16, %v6711_v35  ;;  %v6939_v20 = vpop.f32.mrb[7].mxu0  ;;  %v17722_v30 = vunpack.c.l.bf16 %v17721_v53  ;;  %v7217_v33 = vmul.f32 %v7117_v3, %v7048_v38 }
 0xfb4   : > { %v7019_v55 = vadd.f32 %v8948_v7, %v14534_v14  ;;  %v8950_v63 = vadd.f32 %v6939_v20, %v6713_v13  ;;  %v7118_v7 = vmul.f32 %v17720_v32, %v7049_v21  ;;  %v7148_v20 = vadd.f32 %v7117_v3, %v7115_v58 }
 0xfb5   : > { %v6717_v45 = vpop.f32.mrb[8].mxu1  ;;  %v7050_v6 = vadd.f32 %v7018_v56, %v14120_v52  ;;  %v7020_v48 = vadd.f32 %v8949_v26, %v14532_v42  ;;  %v7247_v38 = vadd.f32 %v7217_v33, %v7215_v39 }
 0xfb6   : > { %v7051_v35 = vadd.f32 %v7019_v55, %v14092_v31  ;;  %v6719_v16 = vpop.f32.mrb[9].mxu1  ;;  %v7169_v51 = vadd.f32 %v7118_v7, %v7116_v62 }
 0xfb7   : > { %7087 = vst [vmem:[%s14550_s23 + $0x20] sm:$0xff] %v7050_v6  ;;  %v7052_v56 = vadd.f32 %v7020_v48, %v14123_v24  ;;  %v6721_v26 = vpop.f32.mrb[10].mxu1  ;;  %v17727_v24 = vld [vmem:[#allocation19_spill] sm:$0xff] }
 0xfb8   : > { %v6943_v40 = vpop.f32.mrb[8].mxu0  ;;  %7088 = vst [vmem:[%s14550_s23 + $0x28] sm:$0xff] %v7051_v35  ;;  %v6723_v31 = vpop.f32.mrb[11].mxu1 }
 0xfb9   : > { %v8951_v25 = vadd.f32 %v6943_v40, %v6717_v45  ;;  %v6945_v13 = vpop.f32.mrb[9].mxu0  ;;  %7089 = vst [vmem:[%s14550_s23 + $0x30] sm:$0xff] %v7052_v56  ;;  %v7121_v48 = vmul.f32 %v17727_v24, %v7052_v56 }
 0xfba   : > { %v6947_v45 = vpop.f32.mrb[10].mxu0 }
 0xfbb   : > { %v6949_v55 = vpop.f32.mrb[11].mxu0  ;;  %v7022_v39 = vadd.f32 %v8951_v25, %v14532_v42 }
 0xfbd   : > { %v14539_v18 = vpop.permute.xlu0 %5031 }
 0xfbe   : > { %17715 = vst [vmem:[#allocation291_spill] sm:$0xff] %v14539_v18 }
 0xfc0   : > { %v6953_v62 = vpop.f32.mrb[12].mxu0 }
 0xfc1   : > { %v14548_v29 = vpop.permute.xlu1 %5036  ;;  %v6955_v4 = vpop.f32.mrb[13].mxu0 }
 0xfc2   : > { %17717 = vst [vmem:[#allocation289_spill] sm:$0xff] %v14548_v29  ;;  %v14590_v33 = vpop.f32.mrb[14].mxu0 }
 0xfc3   : > { %v14600_v25 = vpop.f32.mrb[15].mxu0 }
 0xfc5   : > { %v5042_v57 = vpop.permute.xlu1 %5041  ;;  %v14562_v5 = vpop.permute.xlu0 %5046 }
 0xfc6   : > { %17719 = vst [vmem:[#allocation70_spill] sm:$0xff] %v14562_v5  ;;  %v5111_v49 = vmul.f32 %v5042_v57, %v17722_v30  ;;  %v17723_v5 = vld [vmem:[#allocation18_spill] sm:$0xff]  ;;  %v7218_v57 = vmul.f32 %v7118_v7, %v7049_v21 }
 0xfc7   : > { %v7119_v52 = vmul.f32 %v17723_v5, %v7050_v6  ;;  %v7120_v32 = vmul.f32 %v17723_v5, %v7051_v35 }
 0xfc8   : > { %v14576_v40 = vadd.f32 %v5111_v49, %v4951_v10  ;;  %v7268_v18 = vadd.f32 %v7218_v57, %v7216_v60  ;;  %v6727_v49 = vpop.f32.mrb[12].mxu1 }
 0xfc9   : > { %v14580_v30 = vpop.permute.xlu1 %5051  ;;  %v14582_v58 = vpop.permute.xlu0 %5056  ;;  %v7149_v3 = vadd.f32 %v7148_v20, %v7119_v52  ;;  %v7219_v29 = vmul.f32 %v7119_v52, %v7050_v6  ;;  %v7170_v10 = vadd.f32 %v7169_v51, %v7120_v32  ;;  %v7220_v7 = vmul.f32 %v7120_v32, %v7051_v35  ;;  %v9725_v51 = vld [vmem:[%s10064_s16 + $0x38] sm:$0xff] }
 0xfca   : > { %17724 = vst [vmem:[#allocation69_spill] sm:$0xff] %v14576_v40  ;;  %17725 = vst [vmem:[#allocation144_spill] sm:$0xff] %v14580_v30  ;;  %v7221_v40 = vmul.f32 %v7121_v48, %v7052_v56  ;;  %v6729_v53 = vpop.f32.mrb[13].mxu1  ;;  %v7021_v30 = vadd.f32 %v8950_v63, %v14534_v14  ;;  %v8952_v20 = vadd.f32 %v6945_v13, %v6719_v16 }
 0xfcb   : > { %17726 = vst [vmem:[#allocation223_spill] sm:$0xff] %v14582_v58  ;;  %v7248_v21 = vadd.f32 %v7247_v38, %v7219_v29  ;;  %v7150_v5 = vadd.f32 %v7149_v3, %v7121_v48  ;;  %v14588_v6 = vpop.f32.mrb[14].mxu1  ;;  %v7269_v29 = vadd.f32 %v7268_v18, %v7220_v7  ;;  %v8953_v56 = vadd.f32 %v6947_v45, %v6721_v26  ;;  %v14606_v48 = vpop.f32.mrb[16].mxu0  ;;  %v17730_v26 = vld [vmem:[#allocation20_spill] sm:$0xff] }
 0xfcc   : > { %v7053_v57 = vadd.f32 %v9725_v51, %v7021_v30  ;;  %v7054_v63 = vadd.f32 %v7022_v39, %v14166_v9  ;;  %v14598_v32 = vpop.f32.mrb[15].mxu1  ;;  %v7023_v16 = vadd.f32 %v8952_v20, %v14534_v14  ;;  %v8954_v38 = vadd.f32 %v6949_v55, %v6723_v31  ;;  %v14614_v30 = vpop.f32.mrb[17].mxu0  ;;  %v9726_v55 = vld [vmem:[%s10064_s16 + $0x48] sm:$0xff] }
 0xfcd   : > { %v14592_v60 = vpop.permute.xlu1 %5061  ;;  %v14594_v52 = vpop.permute.xlu0 %5066  ;;  %v7249_v35 = vadd.f32 %v7248_v21, %v7221_v40  ;;  %v7024_v13 = vadd.f32 %v8953_v56, %v14532_v42  ;;  %v8955_v45 = vadd.f32 %v6953_v62, %v6727_v49  ;;  %v8956_v20 = vadd.f32 %v6955_v4, %v6729_v53  ;;  %v9727_v53 = vld [vmem:[%s10064_s16 + $0x58] sm:$0xff] }
 0xfce   : > { %17728 = vst [vmem:[#allocation71_spill] sm:$0xff] %v14592_v60  ;;  %17729 = vst [vmem:[#allocation114_spill] sm:$0xff] %v14594_v52  ;;  %v14604_v3 = vpop.f32.mrb[16].mxu1  ;;  %v7122_v18 = vmul.f32 %v17727_v24, %v7053_v57  ;;  %v7123_v9 = vmul.f32 %v17730_v26, %v7054_v63  ;;  %v7055_v7 = vadd.f32 %v9726_v55, %v7023_v16  ;;  %v14625_v51 = vpop.f32.mrb[18].mxu0 }
 0xfcf   : > { %7090 = vst [vmem:[%s14550_s23 + $0x38] sm:$0xff] %v7053_v57  ;;  %7091 = vst [vmem:[%s14550_s23 + $0x40] sm:$0xff] %v7054_v63  ;;  %v14612_v40 = vpop.f32.mrb[17].mxu1  ;;  %v7056_v39 = vadd.f32 %v7024_v13, %v14169_v44  ;;  %v7025_v24 = vadd.f32 %v8954_v38, %v14534_v14  ;;  %v14633_v13 = vpop.f32.mrb[19].mxu0 }
 0xfd0   : > { %v7171_v56 = vadd.f32 %v7170_v10, %v7122_v18  ;;  %v7222_v49 = vmul.f32 %v7122_v18, %v7053_v57  ;;  %v14623_v62 = vpop.f32.mrb[18].mxu1  ;;  %v7151_v52 = vadd.f32 %v7150_v5, %v7123_v9  ;;  %v7223_v58 = vmul.f32 %v7123_v9, %v7054_v63  ;;  %7092 = vst [vmem:[%s14550_s23 + $0x48] sm:$0xff] %v7055_v7  ;;  %v14639_v5 = vpop.f32.mrb[20].mxu0 }
 0xfd1   : > { %v14616_v21 = vpop.permute.xlu1 %5071  ;;  %v14618_v31 = vpop.permute.xlu0 %5076  ;;  %7093 = vst [vmem:[%s14550_s23 + $0x50] sm:$0xff] %v7056_v39  ;;  %v7057_v10 = vadd.f32 %v9727_v53, %v7025_v24  ;;  %v7026_v57 = vadd.f32 %v8955_v45, %v14532_v42 }
 0xfd2   : > { %17731 = vst [vmem:[#allocation113_spill] sm:$0xff] %v14616_v21  ;;  %17732 = vst [vmem:[#allocation192_spill] sm:$0xff] %v14618_v31  ;;  %v7124_v21 = vmul.f32 %v17730_v26, %v7055_v7  ;;  %v17733_v31 = vld [vmem:[#allocation21_spill] sm:$0xff]  ;;  %v14631_v44 = vpop.f32.mrb[19].mxu1  ;;  %v7270_v4 = vadd.f32 %v7269_v29, %v7222_v49  ;;  %v7250_v26 = vadd.f32 %v7249_v35, %v7223_v58  ;;  %v14649_v45 = vpop.f32.mrb[21].mxu0 }
 0xfd3   : > { %v7125_v16 = vmul.f32 %v17733_v31, %v7056_v39  ;;  %v14637_v38 = vpop.f32.mrb[20].mxu1  ;;  %7094 = vst [vmem:[%s14550_s23 + $0x58] sm:$0xff] %v7057_v10  ;;  %v7126_v29 = vmul.f32 %v17733_v31, %v7057_v10  ;;  %v7058_v53 = vadd.f32 %v7026_v57, %v14207_v47  ;;  %v14655_v58 = vpop.f32.mrb[22].mxu0  ;;  %v17738_v47 = vld [vmem:[#allocation22_spill] sm:$0xff]  ;;  %v8957_v57 = vadd.f32 %v14590_v33, %v14588_v6 }
 0xfd4   : > { %v7172_v9 = vadd.f32 %v7171_v56, %v7124_v21  ;;  %v7224_v55 = vmul.f32 %v7124_v21, %v7055_v7  ;;  %v14647_v24 = vpop.f32.mrb[21].mxu1  ;;  %v14659_v31 = vpop.f32.mrb[23].mxu0 }
 0xfd5   : > { %v14641_v63 = vpop.permute.xlu1 %5081  ;;  %v14643_v18 = vpop.permute.xlu0 %5086  ;;  %v7152_v60 = vadd.f32 %v7151_v52, %v7125_v16  ;;  %v7225_v1 = vmul.f32 %v7125_v16, %v7056_v39  ;;  %v7226_v21 = vmul.f32 %v7126_v29, %v7057_v10  ;;  %7095 = vst [vmem:[%s14550_s23 + $0x60] sm:$0xff] %v7058_v53  ;;  %v7127_v16 = vmul.f32 %v17738_v47, %v7058_v53 }
 0xfd6   : > { %17734 = vst [vmem:[#allocation72_spill] sm:$0xff] %v14641_v63  ;;  %17735 = vst [vmem:[#allocation73_spill] sm:$0xff] %v14643_v18  ;;  %v7271_v49 = vadd.f32 %v7270_v4, %v7224_v55  ;;  %v7027_v63 = vadd.f32 %v8956_v20, %v14534_v14  ;;  %v14653_v18 = vpop.f32.mrb[22].mxu1  ;;  %v7173_v35 = vadd.f32 %v7172_v9, %v7126_v29  ;;  %v9728_v20 = vld [vmem:[%s10064_s16 + $0x68] sm:$0xff] }
 0xfd7   : > { %v7251_v52 = vadd.f32 %v7250_v26, %v7225_v1  ;;  %v14657_v7 = vpop.f32.mrb[23].mxu1  ;;  %v8958_v10 = vadd.f32 %v14600_v25, %v14598_v32  ;;  %v7153_v55 = vadd.f32 %v7152_v60, %v7127_v16  ;;  %v7227_v29 = vmul.f32 %v7127_v16, %v7058_v53 }
 0xfd8   : > { %v7059_v4 = vadd.f32 %v9728_v20, %v7027_v63  ;;  %v7272_v1 = vadd.f32 %v7271_v49, %v7226_v21  ;;  %v14672_v26 = vpop.f32.mrb[24].mxu1  ;;  %v14674_v9 = vpop.f32.mrb[24].mxu0  ;;  %v7028_v63 = vadd.f32 %v8957_v57, %v14532_v42  ;;  %v8959_v32 = vadd.f32 %v14606_v48, %v14604_v3 }
 0xfd9   : > { %v14661_v39 = vpop.permute.xlu1 %5091  ;;  %v14663_v56 = vpop.permute.xlu0 %5096  ;;  %v7029_v33 = vadd.f32 %v8958_v10, %v14534_v14  ;;  %v8960_v60 = vadd.f32 %v14614_v30, %v14612_v40  ;;  %v9729_v10 = vld [vmem:[%s10064_s16 + $0x70] sm:$0xff] }
 0xfda   : > { %17736 = vst [vmem:[#allocation143_spill] sm:$0xff] %v14661_v39  ;;  %17737 = vst [vmem:[#allocation146_spill] sm:$0xff] %v14663_v56  ;;  %v7128_v56 = vmul.f32 %v17738_v47, %v7059_v4  ;;  %v14679_v20 = vpop.f32.mrb[25].mxu1  ;;  %v14681_v6 = vpop.f32.mrb[25].mxu0  ;;  %v7252_v47 = vadd.f32 %v7251_v52, %v7227_v29  ;;  %v7060_v39 = vadd.f32 %v9729_v10, %v7028_v63 }
 0xfdb   : > { %7096 = vst [vmem:[%s14550_s23 + $0x68] sm:$0xff] %v7059_v4  ;;  %v14688_v25 = vpop.f32.mrb[26].mxu1  ;;  %v14690_v49 = vpop.f32.mrb[26].mxu0  ;;  %v7061_v3 = vadd.f32 %v9730_v46, %v7029_v33  ;;  %v7030_v48 = vadd.f32 %v8959_v32, %v14532_v42  ;;  %v7031_v52 = vadd.f32 %v8960_v60, %v14534_v14  ;;  %v9731_v33 = vld [vmem:[%s10064_s16 + $0x88] sm:$0xff] }
 0xfdc   : > { %v7174_v16 = vadd.f32 %v7173_v35, %v7128_v56  ;;  %v7228_v57 = vmul.f32 %v7128_v56, %v7059_v4  ;;  %v14699_v40 = vpop.f32.mrb[27].mxu1  ;;  %v14701_v30 = vpop.f32.mrb[27].mxu0  ;;  %7097 = vst [vmem:[%s14550_s23 + $0x70] sm:$0xff] %v7060_v39 }
 0xfdd   : > { %v14692_v53 = vpop.permute.xlu1 %5101  ;;  %v14694_v21 = vpop.permute.xlu0 %5106  ;;  %7098 = vst [vmem:[%s14550_s23 + $0x78] sm:$0xff] %v7061_v3  ;;  %v7062_v56 = vadd.f32 %v7030_v48, %v14244_v43  ;;  %v7063_v32 = vadd.f32 %v9731_v33, %v7031_v52 }
 0xfde   : > { %17739 = vst [vmem:[#allocation225_spill] sm:$0xff] %v14692_v53  ;;  %17740 = vst [vmem:[#allocation74_spill] sm:$0xff] %v14694_v21  ;;  %v7273_v23 = vadd.f32 %v7272_v1, %v7228_v57  ;;  %v17741_v53 = vld [vmem:[#allocation23_spill] sm:$0xff]  ;;  %v8961_v1 = vadd.f32 %v14625_v51, %v14623_v62  ;;  %v8962_v51 = vadd.f32 %v14633_v13, %v14631_v44 }
 0xfdf   : > { %v7129_v2 = vmul.f32 %v17741_v53, %v7060_v39  ;;  %v7130_v35 = vmul.f32 %v17741_v53, %v7061_v3  ;;  %7099 = vst [vmem:[%s14550_s23 + $0x80] sm:$0xff] %v7062_v56  ;;  %v14715_v53 = vpop.f32.mrb[28].mxu1  ;;  %7100 = vst [vmem:[%s14550_s23 + $0x88] sm:$0xff] %v7063_v32 }
 0xfe0   : > { %v14717_v43 = vpop.f32.mrb[28].mxu0  ;;  %v14723_v62 = vpop.f32.mrb[29].mxu1  ;;  %v7033_v44 = vadd.f32 %v8962_v51, %v14534_v14 }
 0xfe1   : > { %v5142_v4 = vpop.permute.xlu1 %5141  ;;  %v5144_v46 = vpop.permute.xlu0 %5143  ;;  %v7154_v29 = vadd.f32 %v7153_v55, %v7129_v2  ;;  %v7229_v63 = vmul.f32 %v7129_v2, %v7060_v39  ;;  %v7175_v60 = vadd.f32 %v7174_v16, %v7130_v35  ;;  %v7230_v21 = vmul.f32 %v7130_v35, %v7061_v3 }
 0xfe2   : > { %v5189_v57 = vmul.f32 %v13101_v59, %v5142_v4  ;;  %v5190_v10 = vmul.f32 %v13107_v12, %v5144_v46  ;;  %v7131_v55 = vmul.f32 %v17742_v11, %v7062_v56  ;;  %v7132_v2 = vmul.f32 %v17742_v11, %v7063_v32  ;;  %v14725_v59 = vpop.f32.mrb[29].mxu0  ;;  %v14731_v16 = vpop.f32.mrb[30].mxu1 }
 0xfe3   : > { %v7253_v48 = vadd.f32 %v7252_v47, %v7229_v63  ;;  %v7032_v39 = vadd.f32 %v8961_v1, %v14532_v42  ;;  %v7274_v12 = vadd.f32 %v7273_v23, %v7230_v21  ;;  %v8963_v47 = vadd.f32 %v14639_v5, %v14637_v38  ;;  %v14733_v3 = vpop.f32.mrb[30].mxu0  ;;  %v9732_v21 = vld [vmem:[%s10064_s16 + $0x90] sm:$0xff]  ;;  %v14738_v13 = vpop.f32.mrb[31].mxu1 }
 0xfe4   : > { %5207 = vperm.xlu1 %9118, %v5189_v57   ;;  %5212 = vperm.xlu0 %9119, %v5190_v10   ;;  %v7155_v35 = vadd.f32 %v7154_v29, %v7131_v55  ;;  %v7231_v4 = vmul.f32 %v7131_v55, %v7062_v56  ;;  %v7176_v46 = vadd.f32 %v7175_v60, %v7132_v2  ;;  %v14740_v38 = vpop.f32.mrb[31].mxu0  ;;  %v17743_v29 = vld [vmem:[#allocation25_spill] sm:$0xff] }
 0xfe5   : > { %v5146_v11 = vpop.permute.xlu1 %5145  ;;  %v5148_v52 = vpop.permute.xlu0 %5147  ;;  %v7232_v63 = vmul.f32 %v7132_v2, %v7063_v32  ;;  %v7064_v33 = vadd.f32 %v9732_v21, %v7032_v39  ;;  %v7034_v57 = vadd.f32 %v8963_v47, %v14532_v42  ;;  %v8964_v56 = vadd.f32 %v14649_v45, %v14647_v24  ;;  %v9733_v32 = vld [vmem:[%s10064_s16 + $0x98] sm:$0xff]  ;;  %v9734_v2 = vld [vmem:[%s10064_s16 + $0xa0] sm:$0xff]  ;;  %v9735_v21 = vld [vmem:[%s10064_s16 + $0xa8] sm:$0xff] }
 0xfe6   : > { %v5191_v23 = vmul.f32 %v13109_v28, %v5146_v11  ;;  %v7254_v5 = vadd.f32 %v7253_v48, %v7231_v4  ;;  %v7065_v10 = vadd.f32 %v9733_v32, %v7033_v44  ;;  %v8965_v60 = vadd.f32 %v14655_v58, %v14653_v18  ;;  %v17744_v47 = vld [vmem:[#allocation295_spill] sm:$0xff]  ;;  %v17745_v58 = vld [vmem:[#allocation26_spill] sm:$0xff]  ;;  %v17747_v32 = vld [vmem:[#allocation296_spill] sm:$0xff] }
 0xfe7   : > { %v7275_v1 = vadd.f32 %v7274_v12, %v7232_v63  ;;  %7101 = vst [vmem:[%s14550_s23 + $0x90] sm:$0xff] %v7064_v33  ;;  %v7133_v28 = vmul.f32 %v17743_v29, %v7064_v33  ;;  %v7066_v39 = vadd.f32 %v9734_v2, %v7034_v57  ;;  %v7035_v12 = vadd.f32 %v8964_v56, %v14534_v14 }
 0xfe8   : > { %5217 = vperm.xlu1 %9118, %v5191_v23   ;;  %v8966_v24 = vadd.f32 %v14659_v31, %v14657_v7  ;;  %v8967_v45 = vadd.f32 %v14674_v9, %v14672_v26  ;;  %v5192_v51 = vmul.f32 %v13117_v50, %v5148_v52  ;;  %7102 = vst [vmem:[%s14550_s23 + $0x98] sm:$0xff] %v7065_v10 }
 0xfe9   : > { %v5150_v55 = vpop.permute.xlu1 %5149  ;;  %v5152_v48 = vpop.permute.xlu0 %5151  ;;  %v7156_v4 = vadd.f32 %v7155_v35, %v7133_v28  ;;  %v7233_v63 = vmul.f32 %v7133_v28, %v7064_v33  ;;  %v7134_v18 = vmul.f32 %v17743_v29, %v7065_v10  ;;  %7103 = vst [vmem:[%s14550_s23 + $0xa0] sm:$0xff] %v7066_v39  ;;  %v7135_v23 = vmul.f32 %v17745_v58, %v7066_v39  ;;  %v17746_v29 = vld [vmem:[#allocation298_spill] sm:$0xff] }
 0xfea   : > { %v5193_v11 = vmul.f32 %v17744_v47, %v5150_v55  ;;  %v7067_v44 = vadd.f32 %v9735_v21, %v7035_v12  ;;  %v7036_v7 = vadd.f32 %v8965_v60, %v14532_v42  ;;  %v7037_v50 = vadd.f32 %v8966_v24, %v14534_v14  ;;  %v9736_v55 = vld [vmem:[%s10064_s16 + $0xb0] sm:$0xff] }
 0xfeb   : > { %v7255_v31 = vadd.f32 %v7254_v5, %v7233_v63  ;;  %v7038_v26 = vadd.f32 %v8967_v45, %v14532_v42  ;;  %v7177_v35 = vadd.f32 %v7176_v46, %v7134_v18  ;;  %v7234_v33 = vmul.f32 %v7134_v18, %v7065_v10  ;;  %v9737_v45 = vld [vmem:[%s10064_s16 + $0xb8] sm:$0xff]  ;;  %v9738_v46 = vld [vmem:[%s10064_s16 + $0xc0] sm:$0xff] }
 0xfec   : > { %5227 = vperm.xlu0 %9119, %v5193_v11   ;;  %5222 = vperm.xlu1 %9118, %v5192_v51   ;;  %v7157_v57 = vadd.f32 %v7156_v4, %v7135_v23  ;;  %v7235_v56 = vmul.f32 %v7135_v23, %v7066_v39  ;;  %7104 = vst [vmem:[%s14550_s23 + $0xa8] sm:$0xff] %v7067_v44 }
 0xfed   : > { %v5154_v9 = vpop.permute.xlu1 %5153  ;;  %v5156_v52 = vpop.permute.xlu0 %5155  ;;  %v5194_v28 = vmul.f32 %v17746_v29, %v5152_v48  ;;  %v7136_v5 = vmul.f32 %v17745_v58, %v7067_v44  ;;  %v7068_v2 = vadd.f32 %v9736_v55, %v7036_v7  ;;  %v7276_v12 = vadd.f32 %v7275_v1, %v7234_v33  ;;  %v17748_v48 = vld [vmem:[#allocation27_spill] sm:$0xff]  ;;  %v17749_v1 = vld [vmem:[#allocation28_spill] sm:$0xff] }
 0xfee   : > { %v5195_v60 = vmul.f32 %v17747_v32, %v5154_v9  ;;  %v7256_v24 = vadd.f32 %v7255_v31, %v7235_v56  ;;  %v7069_v51 = vadd.f32 %v9737_v45, %v7037_v50  ;;  %v7070_v10 = vadd.f32 %v9738_v46, %v7038_v26  ;;  %v17750_v7 = vld [vmem:[#allocation299_spill] sm:$0xff]  ;;  %v9740_v46 = vld [vmem:[%s10064_s16 + $0xd0] sm:$0xff] }
 0xfef   : > { %v7178_v39 = vadd.f32 %v7177_v35, %v7136_v5  ;;  %v7236_v47 = vmul.f32 %v7136_v5, %v7067_v44  ;;  %7105 = vst [vmem:[%s14550_s23 + $0xb0] sm:$0xff] %v7068_v2  ;;  %v7137_v11 = vmul.f32 %v17748_v48, %v7068_v2  ;;  %v8968_v23 = vadd.f32 %v14681_v6, %v14679_v20  ;;  %v17751_v44 = vld [vmem:[#allocation297_spill] sm:$0xff]  ;;  %v17752_v5 = vld [vmem:[#allocation300_spill] sm:$0xff] }
 0xff0   : > { %5237 = vperm.xlu0 %9119, %v5195_v60   ;;  %5232 = vperm.xlu1 %9118, %v5194_v28   ;;  %7106 = vst [vmem:[%s14550_s23 + $0xb8] sm:$0xff] %v7069_v51  ;;  %v7138_v18 = vmul.f32 %v17748_v48, %v7069_v51  ;;  %7107 = vst [vmem:[%s14550_s23 + $0xc0] sm:$0xff] %v7070_v10  ;;  %v7139_v58 = vmul.f32 %v17749_v1, %v7070_v10  ;;  %v9739_v45 = vld [vmem:[%s10064_s16 + $0xc8] sm:$0xff] }
 0xff1   : > { %v5158_v4 = vpop.permute.xlu1 %5157  ;;  %v5160_v63 = vpop.permute.xlu0 %5159  ;;  %v8969_v21 = vadd.f32 %v14690_v49, %v14688_v25  ;;  %v5196_v31 = vmul.f32 %v17750_v7, %v5156_v52  ;;  %v7277_v26 = vadd.f32 %v7276_v12, %v7236_v47  ;;  %v7158_v9 = vadd.f32 %v7157_v57, %v7137_v11  ;;  %v17756_v7 = vld [vmem:[#allocation304_spill] sm:$0xff] }
 0xff2   : > { %v5197_v50 = vmul.f32 %v17751_v44, %v5158_v4  ;;  %v7237_v35 = vmul.f32 %v7137_v11, %v7068_v2  ;;  %v7179_v33 = vadd.f32 %v7178_v39, %v7138_v18  ;;  %v7238_v56 = vmul.f32 %v7138_v18, %v7069_v51  ;;  %v17753_v2 = vld [vmem:[#allocation302_spill] sm:$0xff] }
 0xff3   : > { %v7239_v29 = vmul.f32 %v7139_v58, %v7070_v10  ;;  %v7159_v28 = vadd.f32 %v7158_v9, %v7139_v58  ;;  %v7039_v20 = vadd.f32 %v8968_v23, %v14534_v14  ;;  %v7040_v6 = vadd.f32 %v8969_v21, %v14532_v42  ;;  %v9742_v58 = vld [vmem:[%s10064_s16 + $0xe0] sm:$0xff] }
 0xff4   : > { %5247 = vperm.xlu0 %9119, %v5197_v50   ;;  %5242 = vperm.xlu1 %9118, %v5196_v31   ;;  %v7257_v52 = vadd.f32 %v7256_v24, %v7237_v35  ;;  %v7278_v32 = vadd.f32 %v7277_v26, %v7238_v56  ;;  %v8970_v57 = vadd.f32 %v14701_v30, %v14699_v40  ;;  %v17757_v9 = vld [vmem:[#allocation30_spill] sm:$0xff] }
 0xff5   : > { %v5162_v25 = vpop.permute.xlu1 %5161  ;;  %v5164_v49 = vpop.permute.xlu0 %5163  ;;  %v8971_v60 = vadd.f32 %v14717_v43, %v14715_v53  ;;  %v5198_v55 = vmul.f32 %v17752_v5, %v5160_v63  ;;  %v7071_v51 = vadd.f32 %v9739_v45, %v7039_v20  ;;  %v7072_v10 = vadd.f32 %v9740_v46, %v7040_v6  ;;  %v17754_v53 = vld [vmem:[#allocation29_spill] sm:$0xff] }
 0xff6   : > { %v5199_v12 = vmul.f32 %v17753_v2, %v5162_v25  ;;  %v7258_v24 = vadd.f32 %v7257_v52, %v7239_v29  ;;  %v7041_v39 = vadd.f32 %v8970_v57, %v14534_v14  ;;  %v8972_v40 = vadd.f32 %v14725_v59, %v14723_v62  ;;  %v9741_v63 = vld [vmem:[%s10064_s16 + $0xd8] sm:$0xff] }
 0xff7   : > { %v7042_v47 = vadd.f32 %v8971_v60, %v14532_v42  ;;  %7108 = vst [vmem:[%s14550_s23 + $0xc8] sm:$0xff] %v7071_v51  ;;  %v7140_v30 = vmul.f32 %v17749_v1, %v7071_v51  ;;  %7109 = vst [vmem:[%s14550_s23 + $0xd0] sm:$0xff] %v7072_v10  ;;  %v7141_v43 = vmul.f32 %v17754_v53, %v7072_v10  ;;  %v17755_v1 = vld [vmem:[#allocation303_spill] sm:$0xff]  ;;  %v17759_v57 = vld [vmem:[#allocation306_spill] sm:$0xff] }
 0xff8   : > { %5257 = vperm.xlu0 %9119, %v5199_v12   ;;  %5252 = vperm.xlu1 %9118, %v5198_v55   ;;  %v8973_v48 = vadd.f32 %v14733_v3, %v14731_v16  ;;  %v7073_v18 = vadd.f32 %v9741_v63, %v7041_v39  ;;  %v7043_v62 = vadd.f32 %v8972_v40, %v14534_v14  ;;  %v9744_v12 = vld [vmem:[%s10064_s16 + $0xf0] sm:$0xff]  ;;  %v17760_v39 = vld [vmem:[#allocation31_spill] sm:$0xff]  ;;  %v9745_v40 = vld [vmem:[%s10064_s16 + $0xf8] sm:$0xff] }
 0xff9   : > { %v5166_v11 = vpop.permute.xlu1 %5165  ;;  %v5168_v4 = vpop.permute.xlu0 %5167  ;;  %v7074_v23 = vadd.f32 %v9742_v58, %v7042_v47  ;;  %v8974_v59 = vadd.f32 %v14740_v38, %v14738_v13  ;;  %v5200_v21 = vmul.f32 %v17755_v1, %v5164_v49  ;;  %v7180_v44 = vadd.f32 %v7179_v33, %v7140_v30  ;;  %v9743_v13 = vld [vmem:[%s10064_s16 + $0xe8] sm:$0xff]  ;;  %v17758_v49 = vld [vmem:[#allocation305_spill] sm:$0xff] }
 0xffa   : > { %v5201_v31 = vmul.f32 %v17756_v7, %v5166_v11  ;;  %v7240_v50 = vmul.f32 %v7140_v30, %v7071_v51  ;;  %v7160_v16 = vadd.f32 %v7159_v28, %v7141_v43  ;;  %v7241_v3 = vmul.f32 %v7141_v43, %v7072_v10  ;;  %7110 = vst [vmem:[%s14550_s23 + $0xd8] sm:$0xff] %v7073_v18  ;;  %v1014_v51 = vld [vmem:[%s10057_s22 + $0x8] sm:$0xff]  ;;  %v17764_v7 = vld [vmem:[#allocation53_spill] sm:$0xff] }
 0xffb   : > { %v7142_v26 = vmul.f32 %v17754_v53, %v7073_v18  ;;  %7111 = vst [vmem:[%s14550_s23 + $0xe0] sm:$0xff] %v7074_v23  ;;  %v7143_v35 = vmul.f32 %v17757_v9, %v7074_v23  ;;  %v7075_v38 = vadd.f32 %v9743_v13, %v7043_v62  ;;  %v7044_v29 = vadd.f32 %v8973_v48, %v14532_v42  ;;  %v17761_v53 = vld [vmem:[#allocation307_spill] sm:$0xff]  ;;  %v17762_v48 = vld [vmem:[#allocation49_spill] sm:$0xff] }
 0xffc   : > { %5267 = vperm.xlu0 %9119, %v5201_v31   ;;  %5262 = vperm.xlu1 %9118, %v5200_v21   ;;  %v7279_v56 = vadd.f32 %v7278_v32, %v7240_v50  ;;  %v7259_v33 = vadd.f32 %v7258_v24, %v7241_v3  ;;  %v5202_v52 = vmul.f32 %v17758_v49, %v5168_v4  ;;  %vm5318_vm1 = vcmp.gt.f32.partialorder %v1014_v51, 0.0 }
 0xffd   : > { %v5170_v20 = vpop.permute.xlu1 %5169  ;;  %v7181_v28 = vadd.f32 %v7180_v44, %v7142_v26  ;;  %v7242_v6 = vmul.f32 %v7142_v26, %v7073_v18  ;;  %v7161_v25 = vadd.f32 %v7160_v16, %v7143_v35  ;;  %v7243_v5 = vmul.f32 %v7143_v35, %v7074_v23  ;;  %7112 = vst [vmem:[%s14550_s23 + $0xe8] sm:$0xff] %v7075_v38  ;;  %v5172_v55 = vpop.permute.xlu0 %5171  ;;  %v1017_v44 = vld [vmem:[%s10057_s22 + $0x20] sm:$0xff] }
 0xffe   : > { %v5203_v60 = vmul.f32 %v17759_v57, %v5170_v20  ;;  %v7144_v32 = vmul.f32 %v17757_v9, %v7075_v38  ;;  %v7076_v42 = vadd.f32 %v9744_v12, %v7044_v29  ;;  %v7045_v45 = vadd.f32 %v8974_v59, %v14534_v14  ;;  %v1015_v14 = vld [vmem:[%s10057_s22 + $0x10] sm:$0xff]  ;;  %v17765_v20 = vld [vmem:[#allocation55_spill] sm:$0xff] }
 0xfff   : > { %v7280_v2 = vadd.f32 %v7279_v56, %v7242_v6  ;;  %v7260_v46 = vadd.f32 %v7259_v33, %v7243_v5  ;;  %v5204_v43 = vmul.f32 %v17761_v53, %v5172_v55  ;;  %v3829_v11 = vmul.f32 %v13506_v22, %v17762_v48  ;;  %v1019_v6 = vld [vmem:[%s10057_s22 + $0x30] sm:$0xff]  ;;  %v17767_v48 = vld [vmem:[#allocation51_spill] sm:$0xff] }
0x1000   : > { %5277 = vperm.xlu0 %9119, %v5203_v60   ;;  %5272 = vperm.xlu1 %9118, %v5202_v52   ;;  %v7182_v10 = vadd.f32 %v7181_v28, %v7144_v32  ;;  %v7244_v24 = vmul.f32 %v7144_v32, %v7075_v38  ;;  %7113 = vst [vmem:[%s14550_s23 + $0xf0] sm:$0xff] %v7076_v42  ;;  %v17763_v23 = vmov 0   ;;  %vm5319_vm2 = vcmp.gt.f32.partialorder %v1015_v14, 0.0  ;;  %v17766_v12 = vld [vmem:[#allocation57_spill] sm:$0xff] }
0x1001   : > { %v7145_v47 = vmul.f32 %v17760_v39, %v7076_v42  ;;  %v7077_v30 = vadd.f32 %v9745_v40, %v7045_v45  ;;  %v3832_v22 = vmul.f32 %v13430_v41, %v17764_v7  ;;  %v5334_v31 = vsel %vm5318_vm1, 1, %v17763_v23 }
0x1002   : > { %v7281_v4 = vadd.f32 %v7280_v2, %v7244_v24  ;;  %v9854_v9 = vmov 1966171168   ;;  %v3834_v33 = vmul.f32 %v13448_v36, %v17765_v20  ;;  %v5335_v28 = vsel %vm5319_vm2, 1, %v17763_v23 }
0x1003   : > { %v7162_v63 = vadd.f32 %v7161_v25, %v7145_v47  ;;  %v7245_v18 = vmul.f32 %v7145_v47, %v7076_v42  ;;  %7114 = vst [vmem:[%s14550_s23 + $0xf8] sm:$0xff] %v7077_v30  ;;  %v7146_v58 = vmul.f32 %v17760_v39, %v7077_v30  ;;  %v7194_v35 = vunpack.c.l.s4 %v9854_v9  ;;  %v1021_v39 = vld [vmem:[%s10057_s22 + $0x40] sm:$0xff] }
0x1004   : > { %9120 = vset.pattern.permute.xlu0 %v17763_v23  ;;  %5282 = vperm.xlu1 %9118, %v5204_v43   ;;  %vm5321_vm3 = vcmp.gt.f32.partialorder %v1017_v44, 0.0  ;;  %v3836_v42 = vmul.f32 %v13463_v37, %v17766_v12  ;;  %vm5323_vm4 = vcmp.gt.f32.partialorder %v1019_v6, 0.0  ;;  %vm5325_vm5 = vcmp.gt.f32.partialorder %v1021_v39, 0.0  ;;  %v7214_v44 = vld [vmem:[#allocation6] sm:$0x3]  ;;  %v1026_v39 = vld [vmem:[%s10057_s22 + $0x68] sm:$0xff] }
0x1005   : > { %3847 = vperm.xlu0 %9120, %v3829_v11   ;;  %v7163_v62 = vrot.slane %v7162_v63, 4  ;;  %v7261_v59 = vadd.f32 %v7260_v46, %v7245_v18  ;;  %v7183_v1 = vadd.f32 %v7182_v10, %v7146_v58  ;;  %v7246_v21 = vmul.f32 %v7146_v58, %v7077_v30  ;;  %v17773_v6 = vld [vmem:[#allocation66_spill] sm:$0xff] }
0x1006   : > { %v7195_v60 = vunpack.c.0.s8 %v7194_v35  ;;  %v5337_v45 = vsel %vm5321_vm3, 1, %v17763_v23  ;;  %v5339_v43 = vsel %vm5323_vm4, 1, %v17763_v23  ;;  %v3838_v11 = vmul.f32 %v13475_v0, %v17767_v48  ;;  %v1013_v12 = vld [vmem:[%s10057_s22] sm:$0xff] }
0x1007   : > { %v7164_v50 = vadd.f32 %v7163_v62, %v7162_v63  ;;  %v7262_v16 = vrot.slane %v7261_v59, 4  ;;  %v7184_v3 = vrot.slane %v7183_v1, 4  ;;  %v7282_v26 = vadd.f32 %v7281_v4, %v7246_v21  ;;  %v1023_v63 = vld [vmem:[%s10057_s22 + $0x50] sm:$0xff] }
0x1008   : > { %9121 = vset.pattern.permute.xlu1 %v17763_v23  ;;  %v7198_v30 = vsub.s32 %v7195_v60, %v17711_v54  ;;  %v5341_v62 = vsel %vm5325_vm5, 1, %v17763_v23  ;;  %vm5327_vm6 = vcmp.gt.f32.partialorder %v1023_v63, 0.0  ;;  %vm5317_vm10 = vcmp.gt.f32.partialorder %v1013_v12, 0.0 }
0x1009   : > { %3862 = vperm.xlu0 %9120, %v3832_v22   ;;  %5353 = vperm.xlu1 %9121, %v5334_v31   ;;  %v7165_v56 = vrot.slane %v7164_v50, 2  ;;  %v7263_v13 = vadd.f32 %v7262_v16, %v7261_v59  ;;  %v7185_v38 = vadd.f32 %v7184_v3, %v7183_v1  ;;  %v7283_v29 = vrot.slane %v7282_v26, 4  ;;  %v7147_v59 = vld [vmem:[#allocation5] sm:$0x3]  ;;  %v17768_v1 = vld [vmem:[#allocation48_spill] sm:$0xff] }
0x100a   : > { %v3840_v54 = vmul.f32 %v13484_v17, %v17768_v1  ;;  %v1025_v22 = vld [vmem:[%s10057_s22 + $0x60] sm:$0xff]  ;;  %v17769_v31 = vlaneseq  ;;  %v5343_v3 = vsel %vm5327_vm6, 1, %v17763_v23  ;;  %vm5330_vm0 = vcmp.gt.f32.partialorder %v1026_v39, 0.0 }
0x100b   : > { %v7166_v25 = vadd.f32 %v7165_v56, %v7164_v50  ;;  %v7264_v49 = vrot.slane %v7263_v13, 2  ;;  %v7186_v52 = vrot.slane %v7185_v38, 2  ;;  %v7284_v57 = vadd.f32 %v7283_v29, %v7282_v26  ;;  %v17770_v26 = vld [vmem:[#allocation50_spill] sm:$0xff]  ;;  %v1027_v56 = vld [vmem:[%s10057_s22 + $0x70] sm:$0xff] }
0x100c   : > { %vm7211_vm7 = vcmp.lt.s32.totalorder %v17769_v31, 256  ;;  %v3842_v9 = vmul.f32 %v13492_v61, %v17770_v26  ;;  %vm5329_vm8 = vcmp.gt.f32.partialorder %v1025_v22, 0.0  ;;  %vm5331_vm9 = vcmp.gt.f32.partialorder %v1027_v56, 0.0  ;;  %v17782_v31 = vld [vmem:[#allocation39_spill] sm:$0xff]  ;;  %v14937_v26 = vld [vmem:[%s10042_s28 + $0x30] sm:$0xff] }
0x100d   : > { %3872 = vperm.xlu0 %9120, %v3834_v33   ;;  %5356 = vperm.xlu1 %9121, %v5335_v28   ;;  %v7167_v5 = vrot.slane %v7166_v25, 1  ;;  %v7265_v32 = vadd.f32 %v7264_v49, %v7263_v13  ;;  %v7187_v55 = vadd.f32 %v7186_v52, %v7185_v38  ;;  %v7285_v2 = vrot.slane %v7284_v57, 2  ;;  %v17771_v38 = vld [vmem:[#allocation52_spill] sm:$0xff]  ;;  %v17772_v33 = vld [vmem:[#allocation301_spill] sm:$0xff] }
0x100e   : > { %v5345_v13 = vsel %vm5329_vm8, 1, %v17763_v23  ;;  %v3844_v29 = vmul.f32 %v13500_v15, %v17771_v38  ;;  %v5347_v20 = vsel %vm5331_vm9, 1, %v17763_v23  ;;  %v3942_v28 = vmul.f32 %v13410_v27, %v17772_v33  ;;  %v17774_v49 = vld [vmem:[#allocation68_spill] sm:$0xff]  ;;  %v17785_v56 = vld [vmem:[#allocation41_spill] sm:$0xff]  ;;  %v17787_v38 = vld [vmem:[#allocation275_spill] sm:$0xff] }
0x100f   : > { %v7168_v51 = vadd.f32 %v7167_v5, %v7166_v25  ;;  %v7266_v46 = vrot.slane %v7265_v32, 1  ;;  %v7188_v10 = vrot.slane %v7187_v55, 1  ;;  %v7286_v24 = vadd.f32 %v7285_v2, %v7284_v57  ;;  %v17775_v57 = vld [vmem:[#allocation67_spill] sm:$0xff]  ;;  %v17776_v5 = vld [vmem:[#allocation220_spill] sm:$0xff] }
0x1010   : > { %v3944_v25 = vmul.f32 %v13430_v41, %v17773_v6  ;;  %v3946_v52 = vmul.f32 %v13448_v36, %v17774_v49  ;;  %v3948_v60 = vmul.f32 %v13463_v37, %v17775_v57  ;;  %v17777_v27 = vld [vmem:[#allocation268_spill] sm:$0xff]  ;;  %v17779_v36 = vld [vmem:[#allocation111_spill] sm:$0xff]  ;;  %v1016_v37 = vld [vmem:[%s10057_s22 + $0x18] sm:$0xff] }
0x1011   : > { %3882 = vperm.xlu0 %9120, %v3836_v42   ;;  %5362 = vperm.xlu1 %9121, %v5337_v45   ;;  %v7267_v47 = vadd.f32 %v7266_v46, %v7265_v32  ;;  %v7189_v40 = vadd.f32 %v7188_v10, %v7187_v55  ;;  %v7287_v53 = vrot.slane %v7286_v24, 1  ;;  %v3950_v32 = vmul.f32 %v13475_v0, %v17776_v5  ;;  %v17778_v41 = vld [vmem:[#allocation64_spill] sm:$0xff]  ;;  %v1024_v10 = vld [vmem:[%s10057_s22 + $0x58] sm:$0xff]  ;;  %v17795_v5 = vld [vmem:[#allocation131_spill] sm:$0xff] }
0x1012   : > { %v3952_v55 = vmul.f32 %v13484_v17, %v17777_v27  ;;  %v3954_v2 = vmul.f32 %v13492_v61, %v17778_v41  ;;  %v3956_v42 = vmul.f32 %v13500_v15, %v17779_v36  ;;  %v5333_v0 = vsel %vm5317_vm10, 1, %v17763_v23  ;;  %v1018_v45 = vld [vmem:[%s10057_s22 + $0x28] sm:$0xff]  ;;  %v1020_v61 = vld [vmem:[%s10057_s22 + $0x38] sm:$0xff] }
0x1013   : > { %v7192_v4 = vcombine.low %v7168_v51, %v7189_v40  ;;  %v7288_v14 = vadd.f32 %v7287_v53, %v7286_v24  ;;  %vm5320_vm11 = vcmp.gt.f32.partialorder %v1016_v37, 0.0  ;;  %vm5322_vm12 = vcmp.gt.f32.partialorder %v1018_v45, 0.0  ;;  %v1022_v15 = vld [vmem:[%s10057_s22 + $0x48] sm:$0xff]  ;;  %v1028_v40 = vld [vmem:[%s10057_s22 + $0x78] sm:$0xff]  ;;  %s15088_s22 = scalar_lea.vmem [#allocation2], %s10000_s27 }
0x1014   : > { %v5336_v17 = vsel %vm5320_vm11, 1, %v17763_v23  ;;  %v5338_v51 = vsel %vm5322_vm12, 1, %v17763_v23  ;;  %vm5324_vm13 = vcmp.gt.f32.partialorder %v1020_v61, 0.0  ;;  %vm5326_vm14 = vcmp.gt.f32.partialorder %v1022_v15, 0.0  ;;  %v17790_v33 = vld [vmem:[#allocation152_spill] sm:$0xff]  ;;  %v17792_v49 = vld [vmem:[#allocation142_spill] sm:$0xff] }
0x1015   : > { %3892 = vperm.xlu0 %9120, %v3838_v11   ;;  %5368 = vperm.xlu1 %9121, %v5339_v43   ;;  %v7199_v18 = vrot.slane %v7192_v4, %v7198_v30  ;;  %v7291_v58 = vcombine.low %v7267_v47, %v7288_v14  ;;  %v5340_v46 = vsel %vm5324_vm13, 1, %v17763_v23  ;;  %v5342_v24 = vsel %vm5326_vm14, 1, %v17763_v23  ;;  %v17791_v6 = vld [vmem:[#allocation56_spill] sm:$0xff]  ;;  %v17793_v57 = vld [vmem:[#allocation45_spill] sm:$0xff]  ;;  %v17796_v27 = vld [vmem:[#allocation47_spill] sm:$0xff] }
0x1016   : > { %vm5328_vm15 = vcmp.gt.f32.partialorder %v1024_v10, 0.0  ;;  %vm5332_vm1 = vcmp.gt.f32.partialorder %v1028_v40, 0.0  ;;  %v17798_v41 = vld [vmem:[#allocation224_spill] sm:$0xff]  ;;  %v17799_v37 = vld [vmem:[#allocation58_spill] sm:$0xff]  ;;  %v17803_v15 = vld [vmem:[#allocation75_spill] sm:$0xff]  ;;  %v17804_v10 = vunpack.c.h.bf16 %v17785_v56 }
0x1017   : > { %v7206_v21 = vrot.slane %v7199_v18, %v7198_v30  ;;  %v7298_v7 = vrot.slane %v7291_v58, %v7198_v30  ;;  %v5344_v47 = vsel %vm5328_vm15, 1, %v17763_v23  ;;  %v5348_v53 = vsel %vm5332_vm1, 1, %v17763_v23  ;;  %v17806_v40 = vld [vmem:[#allocation112_spill] sm:$0xff] }
0x1019   : > { %3902 = vperm.xlu0 %9120, %v3840_v54   ;;  %5374 = vperm.xlu1 %9121, %v5341_v62   ;;  %v7208_v50 = vadd.f32 %v7206_v21, %v7147_v59  ;;  %v7305_v16 = vrot.slane %v7298_v7, %v7198_v30  ;;  %v5346_v30 = vsel %vm5330_vm0, 1, %v17763_v23  ;;  %v17780_v21 = vld [vmem:[#allocation37_spill] sm:$0xff] }
0x101a   : > { %v17781_v7 = vunpack.c.l.bf16 %v17780_v21  ;;  %v17800_v45 = vunpack.c.h.bf16 %v17780_v21 }
0x101b   : > { %7213 = vst.msk [vmem:[#allocation5] sm:$0x3] %vm7211_vm7, %v7208_v50  ;;  %v7307_v35 = vadd.f32 %v7305_v16, %v7214_v44  ;;  %v17783_v44 = vunpack.c.l.bf16 %v17782_v31  ;;  %v14932_v16 = vld [vmem:[%s10042_s28 + $0x20] sm:$0xff] }
0x101c   : > { %v4041_v22 = vmul.f32 %v13562_v19, %v17781_v7 }
0x101d   : > { %3912 = vperm.xlu0 %9120, %v3842_v9   ;;  %5380 = vperm.xlu1 %9121, %v5343_v3   ;;  %7308 = vst.msk [vmem:[#allocation6] sm:$0x3] %vm7211_vm7, %v7307_v35  ;;  %v4043_v50 = vmul.f32 %v13564_v8, %v17783_v44  ;;  %v3929_v3 = vmul.f32 %v14932_v16, %v13546_v34  ;;  %v17784_v9 = vld [vmem:[#allocation65_spill] sm:$0xff]  ;;  %v14948_v8 = vld [vmem:[%s10042_s28 + $0x40] sm:$0xff] }
0x101e   : > { %v3931_v35 = vmul.f32 %v14937_v26, %v17784_v9  ;;  %v14953_v34 = vld [vmem:[%s10042_s28 + $0x50] sm:$0xff]  ;;  %v17809_v44 = vld [vmem:[#allocation190_spill] sm:$0xff] }
0x101f   : > { %v4057_v21 = vadd.f32 %v4041_v22, %v3929_v3  ;;  %v17817_v22 = vunpack.c.h.bf16 %v17793_v57 }
0x1021   : > { %3922 = vperm.xlu0 %9120, %v3844_v29   ;;  %5386 = vperm.xlu1 %9121, %v5345_v13   ;;  %v17786_v13 = vunpack.c.l.bf16 %v17785_v56  ;;  %v17788_v29 = vld [vmem:[#allocation43_spill] sm:$0xff] }
0x1023   : > { %v4045_v19 = vmul.f32 %v17787_v38, %v17786_v13  ;;  %v4059_v13 = vadd.f32 %v4043_v50, %v3931_v35  ;;  %v17818_v50 = vld [vmem:[#allocation148_spill] sm:$0xff] }
0x1024   : > { %v4241_v3 = vmul.f32 %v17818_v50, %v17817_v22  ;;  %v17836_v50 = vunpack.c.h.bf16 %v17796_v27 }
0x1025   : > { %3964 = vperm.xlu0 %9120, %v3942_v28   ;;  %5392 = vperm.xlu1 %9121, %v5347_v20   ;;  %v17789_v20 = vunpack.c.l.bf16 %v17788_v29 }
0x1027   : > { %v4047_v28 = vmul.f32 %v17790_v33, %v17789_v20  ;;  %v17811_v33 = vld [vmem:[#allocation78_spill] sm:$0xff] }
0x1029   : > { %3974 = vperm.xlu0 %9120, %v3944_v25   ;;  %v3933_v25 = vmul.f32 %v14948_v8, %v17791_v6  ;;  %v17812_v6 = vld [vmem:[#allocation99_spill] sm:$0xff] }
0x102b   : > { %v4061_v38 = vadd.f32 %v4045_v19, %v3933_v25  ;;  %v17819_v25 = vunpack.c.h.bf16 %v17812_v6 }
0x102d   : > { %3984 = vperm.xlu0 %9120, %v3946_v52   ;;  %v3935_v52 = vmul.f32 %v14953_v34, %v17792_v49  ;;  %v17813_v49 = vunpack.c.l.bf16 %v17812_v6 }
0x102f   : > { %v4063_v20 = vadd.f32 %v4047_v28, %v3935_v52  ;;  %v17820_v52 = vld [vmem:[#allocation140_spill] sm:$0xff] }
0x1031   : > { %3994 = vperm.xlu0 %9120, %v3948_v60   ;;  %v17794_v60 = vunpack.c.l.bf16 %v17793_v57 }
0x1035   : > { %4004 = vperm.xlu0 %9120, %v3950_v32   ;;  %v4049_v32 = vmul.f32 %v17795_v5, %v17794_v60  ;;  %v17814_v60 = vld [vmem:[#allocation208_spill] sm:$0xff] }
0x1036   : > { %v4409_v5 = vmul.f32 %v17814_v60, %v17813_v49  ;;  %v17833_v49 = vld [vmem:[#allocation176_spill] sm:$0xff] }
0x1037   : > { %v17834_v60 = vunpack.c.l.bf16 %v17833_v49 }
0x1039   : > { %4014 = vperm.xlu0 %9120, %v3952_v55   ;;  %v17797_v55 = vunpack.c.l.bf16 %v17796_v27 }
0x103d   : > { %4024 = vperm.xlu0 %9120, %v3954_v2   ;;  %v4051_v2 = vmul.f32 %v17798_v41, %v17797_v55 }
0x1041   : > { %4034 = vperm.xlu0 %9120, %v3956_v42   ;;  %v14968_v42 = vld [vmem:[%s10042_s28 + $0x60] sm:$0xff] }
0x1045   : > { %5350 = vperm.xlu0 %9120, %v5333_v0   ;;  %v3937_v0 = vmul.f32 %v14968_v42, %v17799_v37 }
0x1047   : > { %v4065_v55 = vadd.f32 %v4049_v32, %v3937_v0 }
0x1049   : > { %5359 = vperm.xlu0 %9120, %v5336_v17   ;;  %v17801_v17 = vld [vmem:[#allocation281_spill] sm:$0xff]  ;;  %v4257_v22 = vadd.f32 %v4241_v3, %v4065_v55 }
0x104a   : > { %v4233_v61 = vmul.f32 %v17801_v17, %v17800_v45  ;;  %v17816_v45 = vld [vmem:[#allocation134_spill] sm:$0xff]  ;;  %v17845_v55 = vld [vmem:[#allocation253_spill] sm:$0xff] }
0x104b   : > { %v17846_v3 = vunpack.c.h.bf16 %v17845_v55 }
0x104c   : > { %v4249_v19 = vadd.f32 %v4233_v61, %v4057_v21  ;;  %v15018_v61 = vld [vmem:[%s10042_s28] sm:$0xff] }
0x104d   : > { %5365 = vperm.xlu0 %9120, %v5338_v51   ;;  %v17802_v51 = vunpack.c.h.bf16 %v17782_v31  ;;  %v17810_v31 = vunpack.c.h.bf16 %v17788_v29 }
0x104e   : > { %v4425_v21 = vadd.f32 %v4409_v5, %v4249_v19  ;;  %v17842_v19 = vld [vmem:[#allocation215_spill] sm:$0xff] }
0x104f   : > { %v4239_v56 = vmul.f32 %v17811_v33, %v17810_v31  ;;  %v17832_v33 = vld [vmem:[#allocation59_spill] sm:$0xff] }
0x1051   : > { %5371 = vperm.xlu0 %9120, %v5340_v46   ;;  %v4235_v46 = vmul.f32 %v17803_v15, %v17802_v51  ;;  %v4585_v51 = vmul.f32 %v17820_v52, %v17819_v25  ;;  %v17823_v15 = vld [vmem:[#allocation135_spill] sm:$0xff]  ;;  %v17837_v25 = vld [vmem:[#allocation136_spill] sm:$0xff] }
0x1052   : > { %v15030_v52 = vmul.f32 %v17837_v25, %v17836_v50 }
0x1053   : > { %v4251_v29 = vadd.f32 %v4235_v46, %v4059_v13  ;;  %v17830_v13 = vld [vmem:[#allocation107_spill] sm:$0xff] }
0x1055   : > { %5377 = vperm.xlu0 %9120, %v5342_v24   ;;  %v17805_v24 = vld [vmem:[#allocation206_spill] sm:$0xff] }
0x1056   : > { %v4237_v39 = vmul.f32 %v17805_v24, %v17804_v10  ;;  %v17824_v24 = vld [vmem:[#allocation103_spill] sm:$0xff] }
0x1058   : > { %v4253_v28 = vadd.f32 %v4237_v39, %v4061_v38  ;;  %v4255_v39 = vadd.f32 %v4239_v56, %v4063_v20  ;;  %v17831_v38 = vunpack.c.l.bf16 %v17830_v13  ;;  %v17840_v56 = vld [vmem:[#allocation95_spill] sm:$0xff] }
0x1059   : > { %5383 = vperm.xlu0 %9120, %v5344_v47   ;;  %v14982_v47 = vld [vmem:[%s10042_s28 + $0x70] sm:$0xff]  ;;  %v17841_v5 = vunpack.c.l.bf16 %v17840_v56 }
0x105a   : > { %v4417_v6 = vmul.f32 %v17832_v33, %v17831_v38 }
0x105c   : > { %v15048_v50 = vadd.f32 %v4417_v6, %v4257_v22 }
0x105d   : > { %5389 = vperm.xlu0 %9120, %v5346_v30   ;;  %v3939_v30 = vmul.f32 %v14982_v47, %v17806_v40  ;;  %v17825_v40 = vunpack.c.l.bf16 %v17824_v24 }
0x105f   : > { %v14995_v41 = vadd.f32 %v4051_v2, %v3939_v30  ;;  %v17821_v2 = vld [vmem:[#allocation101_spill] sm:$0xff] }
0x1060   : > { %v17822_v0 = vunpack.c.l.bf16 %v17821_v2  ;;  %v17826_v30 = vld [vmem:[#allocation121_spill] sm:$0xff] }
0x1061   : > { %5395 = vperm.xlu0 %9120, %v5348_v53   ;;  %v17807_v53 = vld [vmem:[#allocation33_spill] sm:$0xff]  ;;  %v4413_v57 = vmul.f32 %v17826_v30, %v17825_v40  ;;  %v4405_v40 = vmul.f32 %v17842_v19, %v17841_v5  ;;  %v4601_v30 = vadd.f32 %v4585_v51, %v4425_v21  ;;  %v17852_v19 = vld [vmem:[#allocation144_spill] sm:$0xff] }
0x1062   : > { %v17808_v7 = vunpack.c.l.bf16 %v17807_v53  ;;  %v17815_v37 = vunpack.c.h.bf16 %v17807_v53  ;;  %v4411_v10 = vmul.f32 %v17823_v15, %v17822_v0  ;;  %v17827_v53 = vld [vmem:[#allocation105_spill] sm:$0xff]  ;;  %v17838_v0 = vunpack.c.h.bf16 %v17821_v2 }
0x1063   : > { %v14899_v43 = vpop.permute.xlu1 %5207  ;;  %v14901_v48 = vpop.permute.xlu0 %5212  ;;  %v17839_v15 = vld [vmem:[#allocation217_spill] sm:$0xff] }
0x1064   : > { %v4037_v9 = vmul.f32 %v17809_v44, %v17808_v7  ;;  %v4229_v17 = vmul.f32 %v17816_v45, %v17815_v37  ;;  %v17828_v7 = vunpack.c.l.bf16 %v17827_v53  ;;  %v17829_v44 = vld [vmem:[#allocation205_spill] sm:$0xff]  ;;  %v17835_v37 = vld [vmem:[#allocation214_spill] sm:$0xff]  ;;  %v4427_v2 = vadd.f32 %v4411_v10, %v4251_v29 }
0x1065   : > { %v4761_v45 = vmul.f32 %v17835_v37, %v17834_v60  ;;  %v4429_v37 = vadd.f32 %v4413_v57, %v4253_v28  ;;  %v17847_v51 = vld [vmem:[#allocation177_spill] sm:$0xff]  ;;  %v17855_v29 = vunpack.c.h.bf16 %v17824_v24  ;;  %v17856_v28 = vld [vmem:[#allocation238_spill] sm:$0xff] }
0x1066   : > { %v4415_v31 = vmul.f32 %v17829_v44, %v17828_v7  ;;  %v17843_v7 = vunpack.c.h.bf16 %v17833_v49  ;;  %v17844_v44 = vld [vmem:[#allocation203_spill] sm:$0xff]  ;;  %v17848_v21 = vunpack.c.l.bf16 %v17847_v51  ;;  %v17861_v24 = vld [vmem:[#allocation173_spill] sm:$0xff] }
0x1067   : > { %v14903_v11 = vpop.permute.xlu1 %5217  ;;  %v4777_v25 = vadd.f32 %v4761_v45, %v4601_v30  ;;  %v17849_v49 = vld [vmem:[#allocation155_spill] sm:$0xff]  ;;  %v17859_v45 = vld [vmem:[#allocation69_spill] sm:$0xff] }
0x1068   : > { %v4937_v38 = vmul.f32 %v17844_v44, %v17843_v7  ;;  %v5287_v27 = vmul.f32 %v14903_v11, %v17846_v3  ;;  %v17853_v11 = vunpack.c.h.bf16 %v17840_v56  ;;  %v17854_v44 = vld [vmem:[#allocation137_spill] sm:$0xff] }
0x106a   : > { %v4581_v55 = vmul.f32 %v17854_v44, %v17853_v11  ;;  %v4953_v57 = vadd.f32 %v4937_v38, %v4777_v25  ;;  %v5303_v22 = vadd.f32 %v5287_v27, %v17859_v45  ;;  %v17869_v11 = vld [vmem:[#allocation71_spill] sm:$0xff]  ;;  %v9753_v44 = vld [vmem:[%s10042_s28 + $0x10] sm:$0xff] }
0x106b   : > { %v14905_v4 = vpop.permute.xlu1 %5222  ;;  %v14907_v14 = vpop.permute.xlu0 %5227 }
0x106f   : > { %v14909_v63 = vpop.permute.xlu1 %5232  ;;  %v14911_v18 = vpop.permute.xlu0 %5237 }
0x1073   : > { %v14913_v58 = vpop.permute.xlu1 %5242  ;;  %v14915_v23 = vpop.permute.xlu0 %5247 }
0x1077   : > { %v14917_v62 = vpop.permute.xlu1 %5252  ;;  %v14919_v59 = vpop.permute.xlu0 %5257 }
0x107b   : > { %v14921_v1 = vpop.permute.xlu1 %5262  ;;  %v14923_v54 = vpop.permute.xlu0 %5267 }
0x107f   : > { %v14963_v12 = vpop.permute.xlu1 %5272  ;;  %v14965_v36 = vpop.permute.xlu0 %5277 }
0x1083   : > { %v15003_v35 = vpop.permute.xlu1 %5282 }
0x1084   : > { %v3848_v32 = vpop.permute.xlu0 %3847 }
0x1085   : > { %v3925_v46 = vmul.f32 %v15018_v61, %v3848_v32  ;;  %v4587_v32 = vmul.f32 %v17839_v15, %v17838_v0  ;;  %v4763_v0 = vmul.f32 %v17849_v49, %v17848_v21  ;;  %v17850_v15 = vld [vmem:[#allocation255_spill] sm:$0xff]  ;;  %v17863_v21 = vld [vmem:[#allocation80_spill] sm:$0xff] }
0x1086   : > { %v17851_v5 = vunpack.c.l.bf16 %v17850_v15 }
0x1087   : > { %v4053_v20 = vadd.f32 %v4037_v9, %v3925_v46  ;;  %v4431_v9 = vadd.f32 %v4415_v31, %v4255_v39  ;;  %v4603_v3 = vadd.f32 %v4587_v32, %v4427_v2  ;;  %v17857_v31 = vunpack.c.h.bf16 %v17847_v51  ;;  %v17858_v39 = vld [vmem:[#allocation293_spill] sm:$0xff] }
0x1088   : > { %v15044_v33 = vpop.permute.xlu1 %5353  ;;  %v15046_v60 = vpop.permute.xlu0 %3862  ;;  %v5113_v7 = vmul.f32 %v17852_v19, %v17851_v5  ;;  %v17862_v2 = vunpack.c.l.bf16 %v17861_v24  ;;  %v17867_v19 = vld [vmem:[#allocation256_spill] sm:$0xff] }
0x1089   : > { %v4245_v46 = vadd.f32 %v4229_v17, %v4053_v20  ;;  %v4589_v17 = vmul.f32 %v17856_v28, %v17855_v29  ;;  %v4939_v6 = vmul.f32 %v17858_v39, %v17857_v31  ;;  %v17860_v20 = vunpack.c.h.bf16 %v17850_v15  ;;  %v17871_v39 = vld [vmem:[#allocation271_spill] sm:$0xff] }
0x108a   : > { %v4757_v49 = vmul.f32 %v17863_v21, %v17862_v2  ;;  %v4779_v5 = vadd.f32 %v4763_v0, %v4603_v3  ;;  %v5129_v27 = vadd.f32 %v5113_v7, %v4953_v57  ;;  %v17868_v15 = vunpack.c.l.bf16 %v17867_v19  ;;  %v17873_v2 = vld [vmem:[#allocation154_spill] sm:$0xff] }
0x108b   : > { %v4421_v10 = vadd.f32 %v4405_v40, %v4245_v46  ;;  %v5289_v56 = vmul.f32 %v14907_v14, %v17860_v20  ;;  %v17864_v40 = vld [vmem:[#allocation179_spill] sm:$0xff]  ;;  %v17866_v46 = vld [vmem:[#allocation149_spill] sm:$0xff]  ;;  %v4605_v28 = vadd.f32 %v4589_v17, %v4429_v37  ;;  %v17870_v31 = vunpack.c.h.bf16 %v17827_v53 }
0x108c   : > { %v5357_v30 = vpop.permute.xlu1 %5356  ;;  %v15069_v32 = vpop.permute.xlu0 %3872  ;;  %v17865_v38 = vunpack.c.l.bf16 %v17864_v40  ;;  %v5115_v14 = vmul.f32 %v17869_v11, %v17868_v15  ;;  %v17872_v20 = vunpack.c.h.bf16 %v17861_v24  ;;  %v4955_v0 = vadd.f32 %v4939_v6, %v4779_v5  ;;  %v17882_v5 = vld [vmem:[#allocation159_spill] sm:$0xff] }
0x108d   : > { %v4597_v51 = vadd.f32 %v4581_v55, %v4421_v10  ;;  %vm5399_vm2 = vcmp.eq.s32.totalorder %v5357_v30, 1  ;;  %v4591_v45 = vmul.f32 %v17871_v39, %v17870_v31  ;;  %v17874_v7 = vunpack.c.h.bf16 %v17864_v40  ;;  %v17875_v55 = vld [vmem:[#allocation240_spill] sm:$0xff]  ;;  %v17877_v30 = vld [vmem:[#allocation251_spill] sm:$0xff] }
0x108e   : > { %v4765_v25 = vmul.f32 %v17866_v46, %v17865_v38  ;;  %v5415_v29 = vsel %vm5399_vm2, %v5303_v22, %v9753_v44  ;;  %v4933_v21 = vmul.f32 %v17873_v2, %v17872_v20  ;;  %v5305_v37 = vadd.f32 %v5289_v56, %v5129_v27  ;;  %v17883_v56 = vld [vmem:[#allocation257_spill] sm:$0xff] }
0x108f   : > { %v4773_v38 = vadd.f32 %v4757_v49, %v4597_v51  ;;  %5432 = vst [vmem:[%s15088_s22 + $0x10] sm:$0xff] %v5415_v29  ;;  %v4941_v3 = vmul.f32 %v17875_v55, %v17874_v7  ;;  %v17876_v53 = vunpack.c.h.bf16 %v17867_v19  ;;  %v17878_v24 = vunpack.c.l.bf16 %v17877_v30  ;;  %v17879_v49 = vld [vmem:[#allocation291_spill] sm:$0xff]  ;;  %v17880_v51 = vld [vmem:[#allocation181_spill] sm:$0xff] }
0x1090   : > { %v5363_v10 = vpop.permute.xlu1 %5362  ;;  %v15097_v57 = vpop.permute.xlu0 %3882  ;;  %v4781_v22 = vadd.f32 %v4765_v25, %v4605_v28  ;;  %v17881_v40 = vunpack.c.l.bf16 %v17880_v51  ;;  %v5131_v11 = vadd.f32 %v5115_v14, %v4955_v0  ;;  %v17884_v27 = vunpack.c.l.bf16 %v17883_v56  ;;  %v17885_v19 = vld [vmem:[#allocation113_spill] sm:$0xff]  ;;  %v17887_v28 = vld [vmem:[#allocation191_spill] sm:$0xff] }
0x1091   : > { %v5291_v17 = vmul.f32 %v14911_v18, %v17876_v53  ;;  %v5109_v46 = vmul.f32 %v17879_v49, %v17878_v24  ;;  %vm5401_vm3 = vcmp.eq.s32.totalorder %v5363_v10, 1  ;;  %v4949_v6 = vadd.f32 %v4933_v21, %v4773_v38  ;;  %v17890_v38 = vld [vmem:[#allocation132_spill] sm:$0xff]  ;;  %v17892_v55 = vld [vmem:[#allocation109_spill] sm:$0xff]  ;;  %v17894_v53 = vld [vmem:[#allocation210_spill] sm:$0xff] }
0x1092   : > { %v4767_v15 = vmul.f32 %v17882_v5, %v17881_v40  ;;  %v5117_v44 = vmul.f32 %v17885_v19, %v17884_v27  ;;  %v5417_v18 = vsel %vm5401_vm3, %v5305_v37, %v14932_v16  ;;  %v4607_v29 = vadd.f32 %v4591_v45, %v4431_v9  ;;  %v17895_v10 = vld [vmem:[#allocation183_spill] sm:$0xff]  ;;  %v17902_v27 = vld [vmem:[#allocation141_spill] sm:$0xff] }
0x1093   : > { %v17886_v25 = vunpack.c.h.bf16 %v17830_v13  ;;  %v17888_v39 = vunpack.c.h.bf16 %v17877_v30  ;;  %5434 = vst [vmem:[%s15088_s22 + $0x20] sm:$0xff] %v5417_v18  ;;  %v5125_v2 = vadd.f32 %v5109_v46, %v4949_v6  ;;  %v4957_v21 = vadd.f32 %v4941_v3, %v4781_v22  ;;  %v17897_v3 = vld [vmem:[#allocation81_spill] sm:$0xff]  ;;  %v17898_v46 = vld [vmem:[#allocation258_spill] sm:$0xff] }
0x1094   : > { %v17889_v14 = vunpack.c.h.bf16 %v17880_v51  ;;  %v5307_v7 = vadd.f32 %v5291_v17, %v5131_v11  ;;  %v17891_v16 = vunpack.c.h.bf16 %v17883_v56  ;;  %v5369_v13 = vpop.permute.xlu1 %5368  ;;  %v15122_v45 = vpop.permute.xlu0 %3892  ;;  %v17893_v37 = vunpack.c.l.bf16 %v17892_v55  ;;  %v17900_v51 = vld [vmem:[#allocation72_spill] sm:$0xff] }
0x1095   : > { %v4593_v31 = vmul.f32 %v17887_v28, %v17886_v25  ;;  %v5285_v20 = vmul.f32 %v14899_v43, %v17888_v39  ;;  %v17896_v30 = vunpack.c.l.bf16 %v17895_v10  ;;  %vm5403_vm4 = vcmp.eq.s32.totalorder %v5369_v13, 1 }
0x1096   : > { %v4943_v0 = vmul.f32 %v17890_v38, %v17889_v14  ;;  %v5293_v9 = vmul.f32 %v14915_v23, %v17891_v16  ;;  %v4419_v43 = vmul.f32 %v17894_v53, %v17893_v37  ;;  %v4783_v49 = vadd.f32 %v4767_v15, %v4607_v29  ;;  %v17909_v38 = vld [vmem:[#allocation259_spill] sm:$0xff]  ;;  %v17913_v37 = vld [vmem:[#allocation213_spill] sm:$0xff] }
0x1097   : > { %v4769_v22 = vmul.f32 %v17897_v3, %v17896_v30  ;;  %v15130_v24 = vadd.f32 %v5285_v20, %v5125_v2  ;;  %v5133_v17 = vadd.f32 %v5117_v44, %v4957_v21  ;;  %v17899_v6 = vunpack.c.l.bf16 %v17898_v46  ;;  %v17904_v44 = vld [vmem:[#allocation287_spill] sm:$0xff]  ;;  %v17908_v2 = vld [vmem:[#allocation82_spill] sm:$0xff] }
0x1098   : > { %v5419_v40 = vsel %vm5403_vm4, %v5307_v7, %v14937_v26  ;;  %v4259_v5 = vadd.f32 %v15030_v52, %v14995_v41  ;;  %v4609_v11 = vadd.f32 %v4593_v31, %v15048_v50  ;;  %v17901_v56 = vunpack.c.h.bf16 %v17892_v55  ;;  %v5375_v39 = vpop.permute.xlu1 %5374  ;;  %v15149_v41 = vpop.permute.xlu0 %3902  ;;  %v17906_v31 = vld [vmem:[#allocation185_spill] sm:$0xff]  ;;  %v17911_v7 = vld [vmem:[#allocation143_spill] sm:$0xff] }
0x1099   : > { %v5119_v23 = vmul.f32 %v17900_v51, %v17899_v6  ;;  %5436 = vst [vmem:[%s15088_s22 + $0x30] sm:$0xff] %v5419_v40  ;;  %v4959_v18 = vadd.f32 %v4943_v0, %v4783_v49  ;;  %v17903_v15 = vunpack.c.h.bf16 %v17895_v10  ;;  %v5309_v25 = vadd.f32 %v5293_v9, %v5133_v17  ;;  %v17917_v6 = vld [vmem:[#allocation225_spill] sm:$0xff] }
0x109a   : > { %v4595_v19 = vmul.f32 %v17902_v27, %v17901_v56  ;;  %v17905_v28 = vunpack.c.h.bf16 %v17898_v46  ;;  %v4435_v52 = vadd.f32 %v4419_v43, %v4259_v5  ;;  %v4785_v50 = vadd.f32 %v4769_v22, %v4609_v11 }
0x109b   : > { %v4945_v29 = vmul.f32 %v17904_v44, %v17903_v15  ;;  %vm5405_vm5 = vcmp.eq.s32.totalorder %v5375_v39, 1  ;;  %v17907_v20 = vunpack.c.l.bf16 %v17906_v31  ;;  %v5135_v14 = vadd.f32 %v5119_v23, %v4959_v18 }
0x109c   : > { %v5295_v26 = vmul.f32 %v14919_v59, %v17905_v28  ;;  %v17910_v0 = vunpack.c.l.bf16 %v17909_v38  ;;  %v5421_v9 = vsel %vm5405_vm5, %v5309_v25, %v14948_v8  ;;  %v4611_v13 = vadd.f32 %v4595_v19, %v4435_v52  ;;  %v5381_v3 = vpop.permute.xlu1 %5380  ;;  %v15165_v22 = vpop.permute.xlu0 %3912  ;;  %v17915_v8 = vld [vmem:[#allocation261_spill] sm:$0xff]  ;;  %v17919_v25 = vld [vmem:[#allocation54_spill] sm:$0xff] }
0x109d   : > { %v4771_v21 = vmul.f32 %v17908_v2, %v17907_v20  ;;  %5438 = vst [vmem:[%s15088_s22 + $0x40] sm:$0xff] %v5421_v9  ;;  %v4961_v59 = vadd.f32 %v4945_v29, %v4785_v50  ;;  %v17912_v55 = vunpack.c.h.bf16 %v17906_v31  ;;  %v17914_v10 = vunpack.c.h.bf16 %v17909_v38  ;;  %v15180_v29 = vld [vmem:[%s10042_s28 + $0x8] sm:$0xff]  ;;  %v17923_v31 = vld [vmem:[#allocation189_spill] sm:$0xff] }
0x109e   : > { %v5121_v16 = vmul.f32 %v17911_v7, %v17910_v0  ;;  %v5311_v43 = vadd.f32 %v5295_v26, %v5135_v14  ;;  %vm5407_vm6 = vcmp.eq.s32.totalorder %v5381_v3, 1  ;;  %v17916_v46 = vunpack.c.l.bf16 %v17915_v8  ;;  %v17926_v38 = vld [vmem:[#allocation221_spill] sm:$0xff] }
0x109f   : > { %v4947_v53 = vmul.f32 %v17913_v37, %v17912_v55  ;;  %v5297_v30 = vmul.f32 %v14923_v54, %v17914_v10  ;;  %v4787_v49 = vadd.f32 %v4771_v21, %v4611_v13  ;;  %v17918_v11 = vunpack.c.h.bf16 %v17915_v8  ;;  %v17924_v21 = vld [vmem:[#allocation98_spill] sm:$0xff] }
0x10a0   : > { %v5137_v17 = vadd.f32 %v5121_v16, %v4961_v59  ;;  %v5123_v51 = vmul.f32 %v17917_v6, %v17916_v46  ;;  %v5423_v23 = vsel %vm5407_vm6, %v5311_v43, %v14953_v34  ;;  %v5387_v56 = vpop.permute.xlu1 %5386  ;;  %v15175_v27 = vpop.permute.xlu0 %3922  ;;  %v3926_v28 = vmul.f32 %v15180_v29, %v17919_v25  ;;  %v15195_v7 = vld [vmem:[%s10042_s28 + $0x18] sm:$0xff]  ;;  %v17931_v43 = vld [vmem:[#allocation36_spill] sm:$0xff] }
0x10a1   : > { %5440 = vst [vmem:[%s15088_s22 + $0x50] sm:$0xff] %v5423_v23  ;;  %v4963_v40 = vadd.f32 %v4947_v53, %v4787_v49  ;;  %v5299_v54 = vmul.f32 %v14965_v36, %v17918_v11  ;;  %vm5409_vm7 = vcmp.eq.s32.totalorder %v5387_v56, 1  ;;  %v17920_v36 = vld [vmem:[#allocation32_spill] sm:$0xff]  ;;  %v17925_v14 = vunpack.c.l.bf16 %v17924_v21  ;;  %v17927_v13 = vld [vmem:[#allocation34_spill] sm:$0xff]  ;;  %v17938_v23 = vld [vmem:[#allocation157_spill] sm:$0xff] }
0x10a2   : > { %v5313_v5 = vadd.f32 %v5297_v30, %v5137_v17  ;;  %v17921_v26 = vunpack.c.l.bf16 %v17920_v36  ;;  %v17922_v50 = vunpack.c.h.bf16 %v17920_v36  ;;  %v3928_v16 = vmul.f32 %v15195_v7, %v15046_v60  ;;  %v17930_v37 = vld [vmem:[#allocation194_spill] sm:$0xff]  ;;  %v17933_v30 = vld [vmem:[#allocation272_spill] sm:$0xff] }
0x10a3   : > { %v5139_v19 = vadd.f32 %v5123_v51, %v4963_v40  ;;  %v4406_v0 = vmul.f32 %v17926_v38, %v17925_v14  ;;  %v17929_v55 = vunpack.c.h.bf16 %v17927_v13  ;;  %v17932_v10 = vunpack.c.h.bf16 %v17931_v43  ;;  %v17935_v17 = vld [vmem:[#allocation118_spill] sm:$0xff]  ;;  %v17951_v14 = vld [vmem:[#allocation133_spill] sm:$0xff] }
0x10a4   : > { %v5425_v18 = vsel %vm5409_vm7, %v5313_v5, %v14968_v42  ;;  %v5393_v44 = vpop.permute.xlu1 %5392  ;;  %v3965_v34 = vpop.permute.xlu0 %3964  ;;  %v4230_v20 = vmul.f32 %v17923_v31, %v17922_v50  ;;  %v17934_v49 = vunpack.c.h.bf16 %v17924_v21  ;;  %v17936_v51 = vld [vmem:[#allocation38_spill] sm:$0xff]  ;;  %v17939_v5 = vld [vmem:[#allocation40_spill] sm:$0xff]  ;;  %vm5398_vm9 = vcmp.eq.s32.totalorder %v15044_v33, 1 }
0x10a5   : > { %5442 = vst [vmem:[%s15088_s22 + $0x60] sm:$0xff] %v5425_v18  ;;  %v5315_v15 = vadd.f32 %v5299_v54, %v5139_v19  ;;  %vm5411_vm8 = vcmp.eq.s32.totalorder %v5393_v44, 1  ;;  %v4038_v39 = vmul.f32 %v3965_v34, %v17921_v26  ;;  %v4232_v53 = vmul.f32 %v17930_v37, %v17929_v55  ;;  %v17941_v54 = vld [vmem:[#allocation145_spill] sm:$0xff]  ;;  %v17945_v34 = vld [vmem:[#allocation178_spill] sm:$0xff] }
0x10a6   : > { %v4234_v3 = vmul.f32 %v17933_v30, %v17932_v10  ;;  %v4582_v8 = vmul.f32 %v17935_v17, %v17934_v49  ;;  %v17937_v60 = vunpack.c.h.bf16 %v17936_v51  ;;  %v17940_v11 = vunpack.c.h.bf16 %v17939_v5  ;;  %v17942_v19 = vld [vmem:[#allocation97_spill] sm:$0xff]  ;;  %v17957_v55 = vld [vmem:[#allocation122_spill] sm:$0xff]  ;;  %v17961_v30 = vld [vmem:[#allocation160_spill] sm:$0xff] }
0x10a7   : > { %v5427_v52 = vsel %vm5411_vm8, %v5315_v15, %v14982_v47  ;;  %v4054_v42 = vadd.f32 %v4038_v39, %v3926_v28  ;;  %v17928_v47 = vunpack.c.l.bf16 %v17927_v13  ;;  %v17943_v18 = vunpack.c.l.bf16 %v17942_v19  ;;  %v17944_v15 = vld [vmem:[#allocation236_spill] sm:$0xff]  ;;  %v17947_v28 = vld [vmem:[#allocation218_spill] sm:$0xff] }
0x10a8   : > { %5444 = vst [vmem:[%s15088_s22 + $0x70] sm:$0xff] %v5427_v52  ;;  %v3975_v2 = vpop.permute.xlu0 %3974  ;;  %v4236_v40 = vmul.f32 %v17938_v23, %v17937_v60  ;;  %v4238_v56 = vmul.f32 %v17941_v54, %v17940_v11  ;;  %v17946_v25 = vunpack.c.l.bf16 %v17945_v34  ;;  %v15223_v39 = vld [vmem:[%s10042_s28 + $0x28] sm:$0xff] }
0x10a9   : > { %v4246_v9 = vadd.f32 %v4230_v20, %v4054_v42  ;;  %v4040_v59 = vmul.f32 %v3975_v2, %v17928_v47  ;;  %v4408_v44 = vmul.f32 %v17944_v15, %v17943_v18  ;;  %v3930_v52 = vmul.f32 %v15223_v39, %v15069_v32  ;;  %v17949_v2 = vld [vmem:[#allocation42_spill] sm:$0xff]  ;;  %v17955_v47 = vld [vmem:[#allocation100_spill] sm:$0xff]  ;;  %v17964_v23 = vld [vmem:[#allocation227_spill] sm:$0xff] }
0x10aa   : > { %v4758_v36 = vmul.f32 %v17947_v28, %v17946_v25  ;;  %v17948_v20 = vunpack.c.l.bf16 %v17931_v43  ;;  %v17950_v21 = vunpack.c.h.bf16 %v17949_v2  ;;  %v17958_v32 = vunpack.c.h.bf16 %v17942_v19  ;;  %v17965_v54 = vld [vmem:[#allocation175_spill] sm:$0xff]  ;;  %v17968_v28 = vld [vmem:[#allocation260_spill] sm:$0xff]  ;;  %v17970_v19 = vld [vmem:[#allocation289_spill] sm:$0xff] }
0x10ab   : > { %v4422_v46 = vadd.f32 %v4406_v0, %v4246_v9  ;;  %v4056_v6 = vadd.f32 %v4040_v59, %v3928_v16  ;;  %v17952_v0 = vld [vmem:[#allocation44_spill] sm:$0xff]  ;;  %v17954_v9 = vld [vmem:[#allocation231_spill] sm:$0xff]  ;;  %v17956_v59 = vunpack.c.l.bf16 %v17955_v47  ;;  %v17960_v43 = vunpack.c.h.bf16 %v17945_v34 }
0x10ac   : > { %v3985_v26 = vpop.permute.xlu0 %3984  ;;  %v15232_v38 = vmul.f32 %v17951_v14, %v17950_v21  ;;  %v17953_v16 = vunpack.c.h.bf16 %v17952_v0  ;;  %v17966_v18 = vunpack.c.l.bf16 %v17965_v54  ;;  %v17967_v15 = vld [vmem:[#allocation79_spill] sm:$0xff]  ;;  %v15258_v21 = vld [vmem:[%s10042_s28 + $0x38] sm:$0xff]  ;;  %v17972_v14 = vld [vmem:[#allocation104_spill] sm:$0xff] }
0x10ad   : > { %v4598_v50 = vadd.f32 %v4582_v8, %v4422_v46  ;;  %v4248_v31 = vadd.f32 %v4232_v53, %v4056_v6  ;;  %v4042_v42 = vmul.f32 %v3985_v26, %v17948_v20  ;;  %v4410_v37 = vmul.f32 %v17957_v55, %v17956_v59  ;;  %v17959_v53 = vld [vmem:[#allocation200_spill] sm:$0xff]  ;;  %v17962_v6 = vld [vmem:[#allocation102_spill] sm:$0xff] }
0x10ae   : > { %v15237_v13 = vmul.f32 %v17954_v9, %v17953_v16  ;;  %v4584_v10 = vmul.f32 %v17959_v53, %v17958_v32  ;;  %v4934_v49 = vmul.f32 %v17961_v30, %v17960_v43  ;;  %v17963_v60 = vunpack.c.l.bf16 %v17962_v6  ;;  %v17974_v9 = vld [vmem:[#allocation138_spill] sm:$0xff]  ;;  %v17976_v32 = vld [vmem:[#allocation284_spill] sm:$0xff]  ;;  %v17978_v30 = vld [vmem:[#allocation117_spill] sm:$0xff] }
0x10af   : > { %v4774_v17 = vadd.f32 %v4758_v36, %v4598_v50  ;;  %v4424_v8 = vadd.f32 %v4408_v44, %v4248_v31  ;;  %v4058_v46 = vadd.f32 %v4042_v42, %v3930_v52  ;;  %v4760_v25 = vmul.f32 %v17967_v15, %v17966_v18  ;;  %v17984_v15 = vld [vmem:[#allocation286_spill] sm:$0xff] }
0x10b0   : > { %v4412_v11 = vmul.f32 %v17964_v23, %v17963_v60  ;;  %v17969_v26 = vunpack.c.l.bf16 %v17968_v28  ;;  %v3932_v34 = vmul.f32 %v15258_v21, %v15097_v57  ;;  %v3995_v36 = vpop.permute.xlu0 %3994  ;;  %v17971_v31 = vunpack.c.l.bf16 %v17936_v51  ;;  %v17982_v23 = vld [vmem:[#allocation63_spill] sm:$0xff] }
0x10b1   : > { %v4950_v44 = vadd.f32 %v4934_v49, %v4774_v17  ;;  %v4600_v52 = vadd.f32 %v4584_v10, %v4424_v8  ;;  %v4250_v50 = vadd.f32 %v4234_v3, %v4058_v46  ;;  %v17973_v16 = vunpack.c.l.bf16 %v17972_v14  ;;  %v17980_v8 = vld [vmem:[#allocation180_spill] sm:$0xff] }
0x10b2   : > { %v5110_v20 = vmul.f32 %v17970_v19, %v17969_v26  ;;  %v4044_v42 = vmul.f32 %v3995_v36, %v17971_v31  ;;  %v17975_v55 = vunpack.c.h.bf16 %v17955_v47  ;;  %v17977_v43 = vunpack.c.h.bf16 %v17962_v6  ;;  %v15284_v6 = vld [vmem:[%s10042_s28 + $0x48] sm:$0xff]  ;;  %v17986_v36 = vld [vmem:[#allocation182_spill] sm:$0xff] }
0x10b3   : > { %v4414_v59 = vmul.f32 %v17974_v9, %v17973_v16  ;;  %v17979_v60 = vunpack.c.h.bf16 %v17968_v28  ;;  %v4776_v49 = vadd.f32 %v4760_v25, %v4600_v52  ;;  %v4426_v51 = vadd.f32 %v4410_v37, %v4250_v50  ;;  %v17990_v50 = vld [vmem:[#allocation162_spill] sm:$0xff] }
0x10b4   : > { %v4586_v53 = vmul.f32 %v17976_v32, %v17975_v55  ;;  %v4588_v57 = vmul.f32 %v17978_v30, %v17977_v43  ;;  %v5126_v3 = vadd.f32 %v5110_v20, %v4950_v44  ;;  %v4060_v17 = vadd.f32 %v4044_v42, %v3932_v34  ;;  %v17988_v44 = vld [vmem:[#allocation292_spill] sm:$0xff]  ;;  %v17991_v42 = vld [vmem:[#allocation254_spill] sm:$0xff] }
0x10b5   : > { %v5286_v10 = vmul.f32 %v14901_v48, %v17979_v60  ;;  %v17981_v46 = vunpack.c.l.bf16 %v17980_v8  ;;  %v17983_v47 = vunpack.c.h.bf16 %v17965_v54  ;;  %v3934_v28 = vmul.f32 %v15284_v6, %v15122_v45  ;;  %v4005_v48 = vpop.permute.xlu0 %4004  ;;  %v17993_v45 = vld [vmem:[#allocation70_spill] sm:$0xff]  ;;  %v17996_v60 = vld [vmem:[#allocation223_spill] sm:$0xff] }
0x10b6   : > { %v4602_v37 = vadd.f32 %v4586_v53, %v4426_v51  ;;  %v4252_v19 = vadd.f32 %v4236_v40, %v4060_v17  ;;  %v17985_v20 = vunpack.c.l.bf16 %v17939_v5  ;;  %v17987_v54 = vunpack.c.l.bf16 %v17986_v36  ;;  %v17994_v5 = vld [vmem:[#allocation262_spill] sm:$0xff] }
0x10b7   : > { %v4762_v18 = vmul.f32 %v17982_v23, %v17981_v46  ;;  %v4936_v26 = vmul.f32 %v17984_v15, %v17983_v47  ;;  %v5302_v25 = vadd.f32 %v5286_v10, %v5126_v3  ;;  %v17989_v33 = vunpack.c.h.bf16 %v17980_v8  ;;  %v15307_v17 = vld [vmem:[%s10042_s28 + $0x58] sm:$0xff] }
0x10b8   : > { %v4046_v34 = vmul.f32 %v4005_v48, %v17985_v20  ;;  %v4764_v52 = vmul.f32 %v17988_v44, %v17987_v54  ;;  %v17992_v16 = vunpack.c.l.bf16 %v17991_v42  ;;  %v4428_v40 = vadd.f32 %v4412_v11, %v4252_v19  ;;  %v17999_v15 = vld [vmem:[#allocation106_spill] sm:$0xff]  ;;  %v18005_v54 = vld [vmem:[#allocation108_spill] sm:$0xff] }
0x10b9   : > { %v4938_v31 = vmul.f32 %v17990_v50, %v17989_v33  ;;  %v4952_v55 = vadd.f32 %v4936_v26, %v4776_v49  ;;  %v5414_v32 = vsel %vm5398_vm9, %v5302_v25, %v15180_v29  ;;  %v4778_v53 = vadd.f32 %v4762_v18, %v4602_v37  ;;  %v4015_v49 = vpop.permute.xlu0 %4014  ;;  %v18003_v25 = vld [vmem:[#allocation212_spill] sm:$0xff]  ;;  %v18007_v33 = vld [vmem:[#allocation277_spill] sm:$0xff] }
0x10ba   : > { %v5112_v9 = vmul.f32 %v17993_v45, %v17992_v16  ;;  %v4062_v43 = vadd.f32 %v4046_v34, %v3934_v28  ;;  %v17995_v30 = vunpack.c.l.bf16 %v17994_v5  ;;  %v17997_v3 = vunpack.c.h.bf16 %v17991_v42  ;;  %5431 = vst [vmem:[%s15088_s22 + $0x8] sm:$0xff] %v5414_v32  ;;  %v18001_v28 = vld [vmem:[#allocation216_spill] sm:$0xff]  ;;  %v18010_v16 = vld [vmem:[#allocation151_spill] sm:$0xff] }
0x10bb   : > { %v3936_v8 = vmul.f32 %v15307_v17, %v15149_v41  ;;  %v4604_v29 = vadd.f32 %v4588_v57, %v4428_v40  ;;  %v17998_v23 = vunpack.c.l.bf16 %v17949_v2  ;;  %v4954_v47 = vadd.f32 %v4938_v31, %v4778_v53  ;;  %v18008_v31 = vld [vmem:[#allocation184_spill] sm:$0xff] }
0x10bc   : > { %v5114_v10 = vmul.f32 %v17996_v60, %v17995_v30  ;;  %v5288_v51 = vmul.f32 %v14905_v4, %v17997_v3  ;;  %v5128_v46 = vadd.f32 %v5112_v9, %v4952_v55  ;;  %v4254_v11 = vadd.f32 %v4238_v56, %v4062_v43  ;;  %v18012_v9 = vld [vmem:[#allocation83_spill] sm:$0xff] }
0x10bd   : > { %v4048_v18 = vmul.f32 %v4015_v49, %v17998_v23  ;;  %v18000_v26 = vunpack.c.l.bf16 %v17999_v15  ;;  %v18002_v4 = vunpack.c.h.bf16 %v17972_v14  ;;  %v18004_v41 = vunpack.c.h.bf16 %v17994_v5  ;;  %v15335_v32 = vld [vmem:[%s10042_s28 + $0x68] sm:$0xff]  ;;  %v18023_v23 = vld [vmem:[#allocation242_spill] sm:$0xff] }
0x10be   : > { %v15323_v20 = vadd.f32 %v5288_v51, %v5128_v46  ;;  %v4780_v57 = vadd.f32 %v4764_v52, %v4604_v29  ;;  %v4430_v56 = vadd.f32 %v4414_v59, %v4254_v11  ;;  %v5130_v2 = vadd.f32 %v5114_v10, %v4954_v47  ;;  %v4025_v59 = vpop.permute.xlu0 %4024  ;;  %v18016_v10 = vld [vmem:[#allocation186_spill] sm:$0xff]  ;;  %v18018_v51 = vld [vmem:[#allocation285_spill] sm:$0xff]  ;;  %v18019_v49 = vld [vmem:[#allocation263_spill] sm:$0xff] }
0x10bf   : > { %v4416_v48 = vmul.f32 %v18001_v28, %v18000_v26  ;;  %v4590_v37 = vmul.f32 %v18003_v25, %v18002_v4  ;;  %v5290_v19 = vmul.f32 %v14909_v63, %v18004_v41  ;;  %v4064_v34 = vadd.f32 %v4048_v18, %v3936_v8  ;;  %v18021_v46 = vld [vmem:[#allocation114_spill] sm:$0xff]  ;;  %v18024_v28 = vld [vmem:[#allocation264_spill] sm:$0xff] }
0x10c0   : > { %v18006_v44 = vunpack.c.l.bf16 %v18005_v54  ;;  %v18009_v42 = vunpack.c.l.bf16 %v18008_v31  ;;  %v18011_v45 = vunpack.c.h.bf16 %v17986_v36  ;;  %v3938_v63 = vmul.f32 %v15335_v32, %v15165_v22  ;;  %v18015_v36 = vld [vmem:[#allocation139_spill] sm:$0xff]  ;;  %v18026_v4 = vld [vmem:[#allocation192_spill] sm:$0xff] }
0x10c1   : > { %v4606_v52 = vadd.f32 %v4590_v37, %v4430_v56  ;;  %v4256_v53 = vadd.f32 %v15232_v38, %v4064_v34  ;;  %v18013_v40 = vunpack.c.l.bf16 %v17952_v0  ;;  %v15342_v5 = vadd.f32 %v5290_v19, %v5130_v2  ;;  %v15363_v19 = vld [vmem:[%s10042_s28 + $0x78] sm:$0xff] }
0x10c2   : > { %v4418_v50 = vmul.f32 %v18007_v33, %v18006_v44  ;;  %v4766_v14 = vmul.f32 %v18010_v16, %v18009_v42  ;;  %v4940_v55 = vmul.f32 %v18012_v9, %v18011_v45  ;;  %v18014_v30 = vunpack.c.h.bf16 %v17999_v15  ;;  %v4035_v56 = vpop.permute.xlu0 %4034  ;;  %v18033_v9 = vld [vmem:[#allocation278_spill] sm:$0xff] }
0x10c3   : > { %v4050_v43 = vmul.f32 %v4025_v59, %v18013_v40  ;;  %v18017_v3 = vunpack.c.l.bf16 %v18016_v10  ;;  %v18020_v22 = vunpack.c.l.bf16 %v18019_v49  ;;  %v18022_v38 = vunpack.c.h.bf16 %v18008_v31 }
0x10c4   : > { %v4592_v60 = vmul.f32 %v18015_v36, %v18014_v30  ;;  %v4956_v11 = vadd.f32 %v4940_v55, %v4780_v57  ;;  %v4782_v18 = vadd.f32 %v4766_v14, %v4606_v52  ;;  %v4432_v47 = vadd.f32 %v4416_v48, %v4256_v53  ;;  %v18028_v48 = vld [vmem:[#allocation46_spill] sm:$0xff]  ;;  %v18037_v36 = vld [vmem:[#allocation195_spill] sm:$0xff] }
0x10c5   : > { %v4768_v8 = vmul.f32 %v18018_v51, %v18017_v3  ;;  %v5116_v29 = vmul.f32 %v18021_v46, %v18020_v22  ;;  %v4942_v0 = vmul.f32 %v18023_v23, %v18022_v38  ;;  %v4066_v26 = vadd.f32 %v4050_v43, %v3938_v63  ;;  %v18031_v14 = vld [vmem:[#allocation230_spill] sm:$0xff]  ;;  %v18038_v3 = vld [vmem:[#allocation187_spill] sm:$0xff] }
0x10c6   : > { %v18025_v15 = vunpack.c.l.bf16 %v18024_v28  ;;  %v18027_v37 = vunpack.c.h.bf16 %v18019_v49  ;;  %v3940_v57 = vmul.f32 %v15363_v19, %v15175_v27  ;;  %v4608_v2 = vadd.f32 %v4592_v60, %v4432_v47  ;;  %v18035_v43 = vld [vmem:[#allocation110_spill] sm:$0xff]  ;;  %v18040_v49 = vld [vmem:[#allocation219_spill] sm:$0xff] }
0x10c7   : > { %v5132_v34 = vadd.f32 %v5116_v29, %v4956_v11  ;;  %v4258_v44 = vadd.f32 %v15237_v13, %v4066_v26  ;;  %v18029_v33 = vunpack.c.l.bf16 %v18028_v48  ;;  %v4958_v42 = vadd.f32 %v4942_v0, %v4782_v18  ;;  %v18042_v46 = vld [vmem:[#allocation158_spill] sm:$0xff]  ;;  %v5351_v11 = vpop.permute.xlu0 %5350  ;;  %v18045_v0 = vld [vmem:[#allocation73_spill] sm:$0xff] }
0x10c8   : > { %v5118_v25 = vmul.f32 %v18026_v4, %v18025_v15  ;;  %v5292_v41 = vmul.f32 %v14913_v58, %v18027_v37  ;;  %v18030_v16 = vunpack.c.h.bf16 %v18028_v48  ;;  %v18032_v58 = vunpack.c.h.bf16 %v18005_v54  ;;  %v18047_v15 = vld [vmem:[#allocation283_spill] sm:$0xff] }
0x10c9   : > { %v4052_v31 = vmul.f32 %v4035_v56, %v18029_v33  ;;  %v18034_v63 = vunpack.c.h.bf16 %v18024_v28  ;;  %v4784_v52 = vadd.f32 %v4768_v8, %v4608_v2  ;;  %v4434_v53 = vadd.f32 %v4418_v50, %v4258_v44  ;;  %v18043_v8 = vld [vmem:[#allocation265_spill] sm:$0xff]  ;;  %v18050_v56 = vld [vmem:[#allocation188_spill] sm:$0xff] }
0x10ca   : > { %v4244_v45 = vmul.f32 %v18031_v14, %v18030_v16  ;;  %v4594_v55 = vmul.f32 %v18033_v9, %v18032_v58  ;;  %v5308_v59 = vadd.f32 %v5292_v41, %v5132_v34  ;;  %v5134_v40 = vadd.f32 %v5118_v25, %v4958_v42  ;;  %v18049_v25 = vld [vmem:[#allocation294_spill] sm:$0xff]  ;;  %v18052_v2 = vld [vmem:[#allocation232_spill] sm:$0xff] }
0x10cb   : > { %v5294_v27 = vmul.f32 %v14917_v62, %v18034_v63  ;;  %v4068_v13 = vadd.f32 %v4052_v31, %v3940_v57  ;;  %v18036_v30 = vunpack.c.l.bf16 %v18035_v43  ;;  %v18039_v51 = vunpack.c.l.bf16 %v18038_v3  ;;  %v18054_v31 = vld [vmem:[#allocation266_spill] sm:$0xff] }
0x10cc   : > { %v18041_v22 = vunpack.c.h.bf16 %v18016_v10  ;;  %v4610_v62 = vadd.f32 %v4594_v55, %v4434_v53  ;;  %vm5397_vm10 = vcmp.eq.s32.totalorder %v5351_v11, 1  ;;  %v18044_v23 = vunpack.c.l.bf16 %v18043_v8  ;;  %v18056_v16 = vld [vmem:[#allocation146_spill] sm:$0xff] }
0x10cd   : > { %v4420_v60 = vmul.f32 %v18037_v36, %v18036_v30  ;;  %v4770_v54 = vmul.f32 %v18040_v49, %v18039_v51  ;;  %v4260_v38 = vadd.f32 %v4244_v45, %v4068_v13  ;;  %v5310_v50 = vadd.f32 %v5294_v27, %v5134_v40  ;;  %v18058_v27 = vld [vmem:[#allocation244_spill] sm:$0xff]  ;;  %v18060_v30 = vld [vmem:[#allocation267_spill] sm:$0xff] }
0x10ce   : > { %v4944_v29 = vmul.f32 %v18042_v46, %v18041_v22  ;;  %v5120_v18 = vmul.f32 %v18045_v0, %v18044_v23  ;;  %v5413_v47 = vsel %vm5397_vm10, %v15130_v24, %v15018_v61  ;;  %v18046_v28 = vunpack.c.h.bf16 %v18035_v43  ;;  %v5360_v24 = vpop.permute.xlu0 %5359 }
0x10cf   : > { %v18048_v10 = vunpack.c.h.bf16 %v18038_v3  ;;  %v4786_v41 = vadd.f32 %v4770_v54, %v4610_v62  ;;  %v4436_v57 = vadd.f32 %v4420_v60, %v4260_v38  ;;  %5430 = vst [vmem:[%s15088_s22] sm:$0xff] %v5413_v47  ;;  %v18051_v34 = vunpack.c.l.bf16 %v18050_v56  ;;  %v18062_v60 = vld [vmem:[#allocation74_spill] sm:$0xff] }
0x10d0   : > { %v4960_v26 = vadd.f32 %v4944_v29, %v4784_v52  ;;  %v4596_v4 = vmul.f32 %v18047_v15, %v18046_v28  ;;  %v18053_v48 = vunpack.c.h.bf16 %v18043_v8  ;;  %v18055_v42 = vunpack.c.l.bf16 %v18054_v31 }
0x10d1   : > { %v4946_v37 = vmul.f32 %v18049_v25, %v18048_v10  ;;  %v4772_v44 = vmul.f32 %v18052_v2, %v18051_v34  ;;  %vm5400_vm11 = vcmp.eq.s32.totalorder %v5360_v24, 1  ;;  %v18057_v63 = vunpack.c.h.bf16 %v18050_v56 }
0x10d2   : > { %v5296_v61 = vmul.f32 %v14921_v1, %v18053_v48  ;;  %v5136_v33 = vadd.f32 %v5120_v18, %v4960_v26  ;;  %v5122_v14 = vmul.f32 %v18056_v16, %v18055_v42  ;;  %v4612_v45 = vadd.f32 %v4596_v4, %v4436_v57  ;;  %v5366_v43 = vpop.permute.xlu0 %5365 }
0x10d3   : > { %v4962_v58 = vadd.f32 %v4946_v37, %v4786_v41  ;;  %v5416_v9 = vsel %vm5400_vm11, %v15323_v20, %v15195_v7  ;;  %v4948_v52 = vmul.f32 %v18058_v27, %v18057_v63  ;;  %v18059_v1 = vunpack.c.h.bf16 %v18054_v31 }
0x10d4   : > { %v5312_v55 = vadd.f32 %v5296_v61, %v5136_v33  ;;  %v4788_v13 = vadd.f32 %v4772_v44, %v4612_v45  ;;  %5433 = vst [vmem:[%s15088_s22 + $0x18] sm:$0xff] %v5416_v9  ;;  %v18061_v36 = vunpack.c.l.bf16 %v18060_v30  ;;  %vm5402_vm12 = vcmp.eq.s32.totalorder %v5366_v43, 1 }
0x10d5   : > { %v5298_v53 = vmul.f32 %v14963_v12, %v18059_v1  ;;  %v5138_v40 = vadd.f32 %v5122_v14, %v4962_v58  ;;  %v5418_v51 = vsel %vm5402_vm12, %v15342_v5, %v15223_v39  ;;  %v18063_v49 = vunpack.c.h.bf16 %v18060_v30 }
0x10d6   : > { %v5124_v3 = vmul.f32 %v18062_v60, %v18061_v36  ;;  %v4964_v20 = vadd.f32 %v4948_v52, %v4788_v13  ;;  %5435 = vst [vmem:[%s15088_s22 + $0x28] sm:$0xff] %v5418_v51  ;;  %v5372_v22 = vpop.permute.xlu0 %5371 }
0x10d7   : > { %v5314_v7 = vadd.f32 %v5298_v53, %v5138_v40  ;;  %v5300_v12 = vmul.f32 %v15003_v35, %v18063_v49  ;;  %vm5404_vm13 = vcmp.eq.s32.totalorder %v5372_v22, 1 }
0x10d8   : > { %v5140_v54 = vadd.f32 %v5124_v3, %v4964_v20  ;;  %v5420_v29 = vsel %vm5404_vm13, %v5308_v59, %v15258_v21 }
0x10d9   : > { %5437 = vst [vmem:[%s15088_s22 + $0x38] sm:$0xff] %v5420_v29 }
0x10da   : > { %v5316_v46 = vadd.f32 %v5300_v12, %v5140_v54  ;;  %v5378_v11 = vpop.permute.xlu0 %5377 }
0x10db   : > { %vm5406_vm14 = vcmp.eq.s32.totalorder %v5378_v11, 1 }
0x10dc   : > { %v5422_v62 = vsel %vm5406_vm14, %v5310_v50, %v15284_v6 }
0x10dd   : > { %5439 = vst [vmem:[%s15088_s22 + $0x48] sm:$0xff] %v5422_v62 }
0x10de   : > { %v5384_v39 = vpop.permute.xlu0 %5383 }
0x10df   : > { %vm5408_vm15 = vcmp.eq.s32.totalorder %v5384_v39, 1 }
0x10e0   : > { %v5424_v5 = vsel %vm5408_vm15, %v5312_v55, %v15307_v17 }
0x10e1   : > { %5441 = vst [vmem:[%s15088_s22 + $0x58] sm:$0xff] %v5424_v5 }
0x10e2   : > { %v5390_v35 = vpop.permute.xlu0 %5389 }
0x10e3   : > { %vm5410_vm0 = vcmp.eq.s32.totalorder %v5390_v35, 1 }
0x10e4   : > { %v5426_v38 = vsel %vm5410_vm0, %v5314_v7, %v15335_v32 }
0x10e5   : > { %5443 = vst [vmem:[%s15088_s22 + $0x68] sm:$0xff] %v5426_v38 }
0x10e6   : > { %v5396_v8 = vpop.permute.xlu0 %5395 }
0x10e7   : > { %vm5412_vm1 = vcmp.eq.s32.totalorder %v5396_v8, 1 }
0x10e8   : > { %v5428_v21 = vsel %vm5412_vm1, %v5316_v46, %v15363_v19 }
0x10e9   : > { %5445 = vst [vmem:[%s15088_s22 + $0x78] sm:$0xff] %v5428_v21 }
0x10ea PF: > { %p8791_p12 = scmp.ne.s32.totalorder %s9816_s24, 1 }
0x10eb   : > { %v9762_v6 = vld [vmem:[%s16149_s13 + $0x40] sm:$0xff] (!%p8791_p12)   ;;  %v9765_v19 = vld [vmem:[%s16149_s13 + $0x48] sm:$0xff] (!%p8791_p12)   ;;  %v9768_v23 = vld [vmem:[%s16149_s13 + $0x50] sm:$0xff] (!%p8791_p12)   ;;  %s15511_s4 = scalar_lea.vmem (!%p8791_p12), [#allocation2], %s10000_s27  ;;  %s7320_s23 = sshra.s32 (!%p8791_p12), %s10000_s27, 3 }
0x10ec   : > { %7312 = sbr.rel (%p8791_p12) target bundleno = 4682 (0x124a), region = 112  ;;  %v9763_v17 = vld [vmem:[%s16149_s13] sm:$0xff] (!%p8791_p12)   ;;  %8831 = vmatprep.subr.bf16.mxu0 (!%p8791_p12), %v9762_v6  ;;  %v9766_v59 = vld [vmem:[%s16149_s13 + $0x8] sm:$0xff] (!%p8791_p12)   ;;  %v9769_v0 = vld [vmem:[%s16149_s13 + $0x10] sm:$0xff] (!%p8791_p12)   ;;  %s8830_s22 = sshll.u32 (!%p8791_p12), %s7320_s23, 4 }
0x10ed   : > { %v9764_v32 = vld [vmem:[%s16148_s12] sm:$0xff] (!%p8791_p12)   ;;  %8832 = vmatpush3.bf16.msra.mxu0 (!%p8791_p12), %v9763_v17  ;;  %v9767_v50 = vld [vmem:[%s16148_s12 + $0x8] sm:$0xff] (!%p8791_p12)   ;;  %v9770_v18 = vld [vmem:[%s16148_s12 + $0x10] sm:$0xff] (!%p8791_p12)   ;;  %s15546_s28 = scalar_lea.vmem (!%p8791_p12), [#allocation3], %s8830_s22  ;;  %s18065_s2 = sld [smem:[#allocation313_spill]] (!%p8791_p12) }
0x10ee   : > { %8911 = vmatprep.subr.bf16.mxu1 (!%p8791_p12), %v9764_v32  ;;  %8833 = vmatprep.subr.bf16.mxu0 (!%p8791_p12), %v9765_v19  ;;  %v9771_v47 = vld [vmem:[%s16149_s13 + $0x58] sm:$0xff] (!%p8791_p12)   ;;  %v9774_v15 = vld [vmem:[%s16149_s13 + $0x60] sm:$0xff] (!%p8791_p12)   ;;  %v9777_v25 = vld [vmem:[%s16149_s13 + $0x68] sm:$0xff] (!%p8791_p12)   ;;  %s15820_s29 = scalar_lea.vmem (!%p8791_p12), [#allocation4], %s10000_s27 }
0x10ef   : > { %8912 = vmatpush3.bf16.msra.mxu1 (!%p8791_p12), %v9764_v32  ;;  %v9772_v26 = vld [vmem:[%s16149_s13 + $0x18] sm:$0xff] (!%p8791_p12)   ;;  %v9776_v4 = vld [vmem:[%s16148_s12 + $0x20] sm:$0xff] (!%p8791_p12)   ;;  %v9779_v37 = vld [vmem:[%s16148_s12 + $0x28] sm:$0xff] (!%p8791_p12)  }
0x10f0   : > { %8913 = vmatprep.subr.bf16.mxu1 (!%p8791_p12), %v9767_v50  ;;  %v9773_v28 = vld [vmem:[%s16148_s12 + $0x18] sm:$0xff] (!%p8791_p12)   ;;  %v9775_v10 = vld [vmem:[%s16149_s13 + $0x20] sm:$0xff] (!%p8791_p12)   ;;  %v9778_v41 = vld [vmem:[%s16149_s13 + $0x28] sm:$0xff] (!%p8791_p12)  }
0x10f1   : > { %8834 = vmatpush3.bf16.msra.mxu0 (!%p8791_p12), %v9766_v59  ;;  %v9780_v57 = vld [vmem:[%s16149_s13 + $0x70] sm:$0xff] (!%p8791_p12)   ;;  %v9783_v2 = vld [vmem:[%s16149_s13 + $0x78] sm:$0xff] (!%p8791_p12)   ;;  %v7313_v44 = vld [vmem:[#allocation5] sm:$0x3] (!%p8791_p12) }
0x10f2   : > { %8835 = vmatprep.subr.bf16.mxu0 (!%p8791_p12), %v9768_v23  ;;  %v9782_v56 = vld [vmem:[%s16148_s12 + $0x30] sm:$0xff] (!%p8791_p12)   ;;  %v7315_v48 = vld [vmem:[#allocation6] sm:$0x3] (!%p8791_p12)  ;;  %v7314_v61 = vmul.f32 (!%p8791_p12), 0.005, %v7313_v44  ;;  %v9785_v33 = vld [vmem:[%s16148_s12 + $0x38] sm:$0xff] (!%p8791_p12)  }
0x10f3   : > { %8914 = vmatpush3.bf16.msra.mxu1 %v9767_v50  ;;  %v9781_v34 = vld [vmem:[%s16149_s13 + $0x30] sm:$0xff]   ;;  %v7316_v24 = vmul.f32 0.005, %v7315_v48  ;;  %v9784_v31 = vld [vmem:[%s16149_s13 + $0x38] sm:$0xff]   ;;  %v15514_v16 = vld [vmem:[%s15511_s4] sm:$0xff] }
0x10f4   : > { %8915 = vmatprep.subr.bf16.mxu1 %v9770_v18  ;;  %v7317_v42 = vmul.f32 %v7314_v61, %v7314_v61  ;;  %v15517_v14 = vld [vmem:[%s15511_s4 + $0x8] sm:$0xff]  ;;  %v15523_v9 = vld [vmem:[%s15511_s4 + $0x10] sm:$0xff]  ;;  %v15526_v55 = vld [vmem:[%s15511_s4 + $0x18] sm:$0xff] }
0x10f5   : > { %8836 = vmatpush3.bf16.msra.mxu0 %v9769_v0  ;;  %v7582_v45 = vpack.c.bf16 %v15517_v14, %v15514_v16  ;;  %v15529_v27 = vld [vmem:[%s15511_s4 + $0x20] sm:$0xff]  ;;  %v15532_v52 = vld [vmem:[%s15511_s4 + $0x28] sm:$0xff]  ;;  %v7583_v1 = vpack.c.bf16 %v15526_v55, %v15523_v9  ;;  %v15541_v36 = vld [vmem:[%s15511_s4 + $0x30] sm:$0xff] }
0x10f6   : > { %8837 = vmatprep.subr.bf16.mxu0 %v9771_v47  ;;  %v7318_v58 = vsub.f32 %v7316_v24, %v7317_v42  ;;  %v7584_v13 = vpack.c.bf16 %v15532_v52, %v15529_v27  ;;  %v18064_v40 = vld [vmem:[#allocation15_spill] sm:$0xff]  ;;  %v15544_v60 = vld [vmem:[%s15511_s4 + $0x38] sm:$0xff]  ;;  %v7445_v54 = vld [vmem:[%s16146_s10] sm:$0x3] }
0x10f7   : > { %8916 = vmatpush3.bf16.msra.mxu1 %v9770_v18  ;;  %8927 = vmatprep.mubr.bf16.mxu1 %v7582_v45  ;;  %v7360_v43 = vsub.s32 0, %v18064_v40  ;;  %v7364_v30 = vsub.s32 1, %v18064_v40  ;;  %v7326_v3 = vld [vmem:[%s15546_s28 + $0x8] sm:$0xff]  ;;  %v7328_v7 = vld [vmem:[%s15546_s28 + $0x18] sm:$0xff]  ;;  %v7325_v20 = vld [vmem:[%s15546_s28] sm:$0xff]  ;;  %v7585_v5 = vpack.c.bf16 %v15544_v60, %v15541_v36 }
0x10f8   : > { %8917 = vmatprep.subr.bf16.mxu1 %v9773_v28  ;;  %v7319_v63 = vmax.f32 %v7318_v58, 0.0  ;;  %v15552_v51 = vld [vmem:[%s15511_s4 + $0x40] sm:$0xff]  ;;  %v15555_v49 = vld [vmem:[%s15511_s4 + $0x48] sm:$0xff]  ;;  %v7327_v46 = vld [vmem:[%s15546_s28 + $0x10] sm:$0xff] }
0x10f9   : > { %8838 = vmatpush3.bf16.msra.mxu0 %v9772_v26  ;;  %v15557_v12 = vrot.slane %v7314_v61, %v7364_v30  ;;  %v7489_v22 = vld [vmem:[%s16147_s11] sm:$0x3]  ;;  %v15566_v29 = vrot.slane %v7314_v61, %v7360_v43  ;;  %v7330_v11 = vld [vmem:[%s15546_s28 + $0x28] sm:$0xff]  ;;  %v7332_v62 = vld [vmem:[%s15546_s28 + $0x38] sm:$0xff]  ;;  %v7586_v21 = vpack.c.bf16 %v15555_v49, %v15552_v51  ;;  %v15582_v6 = vrot.slane %v7445_v54, %v7360_v43 }
0x10fa   : > { %8839 = vmatprep.subr.bf16.mxu0 %v9774_v15  ;;  %v7400_v53 = vadd.f32 1e-05, %v7319_v63  ;;  %v7329_v39 = vld [vmem:[%s15546_s28 + $0x20] sm:$0xff]  ;;  %v7331_v35 = vld [vmem:[%s15546_s28 + $0x30] sm:$0xff]  ;;  %v15575_v38 = vld [vmem:[%s15546_s28 + $0x48] sm:$0xff]  ;;  %v15584_v17 = vrot.slane %v7445_v54, %v7364_v30  ;;  %v15586_v32 = vrot.slane %v7489_v22, %v7360_v43  ;;  %v15599_v18 = vrot.slane %v7489_v22, %v7364_v30 }
0x10fb   : > { %8918 = vmatpush3.bf16.msra.mxu1 %v9773_v28  ;;  %v15578_v8 = vld [vmem:[%s15546_s28 + $0x58] sm:$0xff]  ;;  %v15589_v19 = vld [vmem:[%s15546_s28 + $0x40] sm:$0xff]  ;;  %v15592_v59 = vld [vmem:[%s15546_s28 + $0x50] sm:$0xff]  ;;  %v7369_v23 = vsub.f32 %v7326_v3, %v15557_v12  ;;  %v7371_v0 = vsub.f32 %v7328_v7, %v15557_v12  ;;  %v7368_v47 = vsub.f32 %v7325_v20, %v15566_v29  ;;  %v7377_v44 = vsub.f32 %v15575_v38, %v15557_v12 }
0x10fc   : > { %8919 = vmatprep.subr.bf16.mxu1 %v9776_v4  ;;  %9786 = vrsqrt.f32 %v7400_v53  ;;  %v15595_v50 = vld [vmem:[%s15546_s28 + $0x68] sm:$0xff]  ;;  %v15603_v26 = vld [vmem:[%s15546_s28 + $0x78] sm:$0xff]  ;;  %v15606_v28 = vld [vmem:[%s15546_s28 + $0x60] sm:$0xff]  ;;  %v7379_v48 = vsub.f32 %v15578_v8, %v15557_v12  ;;  %v7376_v61 = vsub.f32 %v15589_v19, %v15566_v29 }
0x10fd   : > { %8840 = vmatpush3.bf16.msra.mxu0 %v9775_v10  ;;  %v15609_v15 = vld [vmem:[%s15511_s4 + $0x50] sm:$0xff]  ;;  %v7373_v10 = vsub.f32 %v7330_v11, %v15557_v12  ;;  %v7381_v42 = vsub.f32 %v15595_v50, %v15557_v12  ;;  %v7383_v45 = vsub.f32 %v15603_v26, %v15557_v12  ;;  %v7380_v58 = vsub.f32 %v15606_v28, %v15566_v29 }
0x10fe   : > { %8841 = vmatprep.subr.bf16.mxu0 %v9777_v25  ;;  %v7375_v25 = vsub.f32 %v7332_v62, %v15557_v12  ;;  %v7339_v62 = vld [vmem:[%s15546_s28 + $0x70] sm:$0xff] }
0x10ff   : > { %8920 = vmatpush3.bf16.msra.mxu1 %v9776_v4  ;;  %v7370_v4 = vsub.f32 %v7327_v46, %v15566_v29 }
0x1100   : > { %8921 = vmatprep.subr.bf16.mxu1 %v9779_v37 }
0x1101   : > { %8842 = vmatpush3.bf16.msra.mxu0 %v9778_v41  ;;  %v15616_v41 = vld [vmem:[%s15511_s4 + $0x58] sm:$0xff] }
0x1102   : > { %8843 = vmatprep.subr.bf16.mxu0 %v9780_v57  ;;  %v15619_v57 = vld [vmem:[%s15511_s4 + $0x60] sm:$0xff]  ;;  %v7587_v63 = vpack.c.bf16 %v15616_v41, %v15609_v15 }
0x1103   : > { %8922 = vmatpush3.bf16.msra.mxu1 %v9779_v37  ;;  %v7372_v37 = vsub.f32 %v7329_v39, %v15566_v29  ;;  %v15661_v39 = vld [vmem:[%s15546_s28 + $0x88] sm:$0xff] }
0x1104   : > { %8923 = vmatprep.subr.bf16.mxu1 %v9782_v56  ;;  %v7385_v26 = vsub.f32 %v15661_v39, %v15557_v12 }
0x1105   : > { %8844 = vmatpush3.bf16.msra.mxu0 %v9781_v34 }
0x1106   : > { %8845 = vmatprep.subr.bf16.mxu0 %v9783_v2  ;;  %v9787_v34 = vpop.eup %9786  ;;  %v7374_v2 = vsub.f32 %v7331_v35, %v15566_v29 }
0x1107   : > { %8924 = vmatpush3.bf16.msra.mxu1 %v9782_v56  ;;  %v15622_v56 = vld [vmem:[%s15511_s4 + $0x68] sm:$0xff]  ;;  %v15631_v24 = vrot.slane %v9787_v34, %v7364_v30 }
0x1108   : > { %8925 = vmatprep.subr.bf16.mxu1 %v9785_v33 }
0x1109   : > { %8846 = vmatpush3.bf16.msra.mxu0 %v9784_v31  ;;  %v7378_v31 = vsub.f32 %v15592_v59, %v15566_v29  ;;  %v7414_v53 = vmul.f32 %v15631_v24, %v7369_v23  ;;  %v7418_v30 = vmul.f32 %v15631_v24, %v7373_v10  ;;  %v7420_v3 = vmul.f32 %v15631_v24, %v7375_v25 }
0x110a   : > { %v7428_v39 = vmul.f32 %v15631_v24, %v7383_v45 }
0x110b   : > { %8926 = vmatpush3.bf16.msra.mxu1 %v9785_v33  ;;  %v15633_v33 = vrot.slane %v9787_v34, %v7360_v43  ;;  %v7458_v54 = vmul.f32 %v15584_v17, %v7414_v53  ;;  %v7464_v35 = vmul.f32 %v15584_v17, %v7420_v3  ;;  %v15677_v34 = vld [vmem:[%s15511_s4 + $0x70] sm:$0xff]  ;;  %v7422_v3 = vmul.f32 %v15631_v24, %v7377_v44  ;;  %v7344_v44 = vld [vmem:[%s15546_s28 + $0x98] sm:$0xff] }
0x110d   : > { %v7413_v40 = vmul.f32 %v15633_v33, %v7368_v47  ;;  %v7415_v43 = vmul.f32 %v15633_v33, %v7370_v4  ;;  %v7417_v7 = vmul.f32 %v15633_v33, %v7372_v37  ;;  %v7419_v20 = vmul.f32 %v15633_v33, %v7374_v2  ;;  %v15680_v2 = vld [vmem:[%s15511_s4 + $0x78] sm:$0xff] }
0x110e   : > { %8928 = vmatmul.mubr.bf16.vlgmr.msra.gmra.mrb[0].mxu1 %v7583_v1  ;;  %v7588_v1 = vpack.c.bf16 %v15622_v56, %v15619_v57  ;;  %v7382_v47 = vsub.f32 %v7339_v62, %v15566_v29  ;;  %v7426_v62 = vmul.f32 %v15631_v24, %v7381_v42  ;;  %v7472_v42 = vmul.f32 %v15584_v17, %v7428_v39 }
0x110f   : > { %8931 = vmatprep.mubr.bf16.mxu1 %v7584_v13  ;;  %v7416_v13 = vmul.f32 %v15631_v24, %v7371_v0  ;;  %v7457_v46 = vmul.f32 %v15582_v6, %v7413_v40  ;;  %v7459_v11 = vmul.f32 %v15582_v6, %v7415_v43  ;;  %v7461_v38 = vmul.f32 %v15582_v6, %v7417_v7 }
0x1110   : > { %v7463_v8 = vmul.f32 %v15582_v6, %v7419_v20  ;;  %v7508_v0 = vadd.f32 %v15599_v18, %v7464_v35  ;;  %v7421_v20 = vmul.f32 %v15633_v33, %v7376_v61  ;;  %v7425_v45 = vmul.f32 %v15633_v33, %v7380_v58 }
0x1111   : > { %v7460_v22 = vmul.f32 %v15584_v17, %v7416_v13  ;;  %v7501_v59 = vadd.f32 %v15586_v32, %v7457_v46  ;;  %v7503_v50 = vadd.f32 %v15586_v32, %v7459_v11  ;;  %v7505_v13 = vadd.f32 %v15586_v32, %v7461_v38 }
0x1112   : > { %v7507_v40 = vadd.f32 %v15586_v32, %v7463_v8  ;;  %v7466_v46 = vmul.f32 %v15584_v17, %v7422_v3  ;;  %v7465_v61 = vmul.f32 %v15582_v6, %v7421_v20  ;;  %v7470_v8 = vmul.f32 %v15584_v17, %v7426_v62 }
0x1113   : > { %v7504_v19 = vadd.f32 %v15599_v18, %v7460_v22  ;;  %v7533_v25 = vmax.f32 %v7501_v59, 0.0  ;;  %v7535_v37 = vmax.f32 %v7503_v50, 0.0  ;;  %v7589_v22 = vpack.c.bf16 %v15680_v2, %v15677_v34 }
0x1114   : > { %v7510_v35 = vadd.f32 %v15599_v18, %v7466_v46  ;;  %v7514_v28 = vadd.f32 %v15599_v18, %v7470_v8  ;;  %v7430_v58 = vmul.f32 %v15631_v24, %v7385_v26 }
0x1115   : > { %v7536_v10 = vmax.f32 %v7504_v19, 0.0  ;;  %v7387_v19 = vsub.f32 %v7344_v44, %v15557_v12 }
0x1116   : > { %8932 = vmatmul.mubr.bf16.gmra.mrb[4].mxu1 %v7585_v5  ;;  %v7462_v5 = vmul.f32 %v15584_v17, %v7418_v30  ;;  %v7606_v30 = vpack.c.bf16 %v7535_v37, %v7533_v25  ;;  %v7542_v59 = vmax.f32 %v7510_v35, 0.0  ;;  %v7516_v37 = vadd.f32 %v15599_v18, %v7472_v42  ;;  %v7345_v35 = vld [vmem:[%s15546_s28 + $0xa0] sm:$0xff] }
0x1117   : > { %8935 = vmatprep.mubr.bf16.mxu1 %v7586_v21  ;;  %v7502_v21 = vadd.f32 %v15599_v18, %v7458_v54  ;;  %v7423_v54 = vmul.f32 %v15633_v33, %v7378_v31  ;;  %v7474_v46 = vmul.f32 %v15584_v17, %v7430_v58 }
0x1118   : > { %v7506_v23 = vadd.f32 %v15599_v18, %v7462_v5  ;;  %v7539_v5 = vmax.f32 %v7507_v40, 0.0 }
0x1119   : > { %v7534_v4 = vmax.f32 %v7502_v21, 0.0  ;;  %v7467_v31 = vmul.f32 %v15582_v6, %v7423_v54  ;;  %v7427_v21 = vmul.f32 %v15633_v33, %v7382_v47  ;;  %v7346_v47 = vld [vmem:[%s15546_s28 + $0xa8] sm:$0xff]  ;;  %v7546_v54 = vmax.f32 %v7514_v28, 0.0 }
0x111a   : > { %v7538_v53 = vmax.f32 %v7506_v23, 0.0  ;;  %v7509_v23 = vadd.f32 %v15586_v32, %v7465_v61  ;;  %v7389_v26 = vsub.f32 %v7346_v47, %v15557_v12  ;;  %v7518_v42 = vadd.f32 %v15599_v18, %v7474_v46  ;;  %v7354_v46 = vld [vmem:[%s15546_s28 + $0xe8] sm:$0xff] }
0x111b   : > { %v7607_v43 = vpack.c.bf16 %v7536_v10, %v7534_v4  ;;  %v7341_v10 = vld [vmem:[%s15546_s28 + $0x80] sm:$0xff]  ;;  %v7471_v3 = vmul.f32 %v15582_v6, %v7427_v21  ;;  %v7350_v21 = vld [vmem:[%s15546_s28 + $0xc8] sm:$0xff] }
0x111c   : > { %v7541_v40 = vmax.f32 %v7509_v23, 0.0  ;;  %v7434_v61 = vmul.f32 %v15631_v24, %v7389_v26  ;;  %v7388_v23 = vsub.f32 %v7345_v35, %v15566_v29  ;;  %v7351_v26 = vld [vmem:[%s15546_s28 + $0xd0] sm:$0xff] }
0x111d   : > { %7782 = vmatprep.mubr.bf16.mxu0 %v7607_v43  ;;  %v7515_v44 = vadd.f32 %v15586_v32, %v7471_v3 }
0x111e   : > { %8936 = vmatmul.mubr.bf16.gmra.mrb[8].mxu1 %v7587_v63  ;;  %v7540_v63 = vmax.f32 %v7508_v0, 0.0  ;;  %7783 = vmatmul.mubr.bf16.vlgmr.msra.gmra.mrb[0].mxu0 %v7606_v30  ;;  %v7511_v0 = vadd.f32 %v15586_v32, %v7467_v31  ;;  %v7469_v30 = vmul.f32 %v15582_v6, %v7425_v45 }
0x111f   : > { %8939 = vmatprep.mubr.bf16.mxu1 %v7588_v1  ;;  %v7424_v1 = vmul.f32 %v15631_v24, %v7379_v48  ;;  %v7537_v48 = vmax.f32 %v7505_v13, 0.0  ;;  %v7432_v13 = vmul.f32 %v15631_v24, %v7387_v19  ;;  %v7352_v19 = vld [vmem:[%s15546_s28 + $0xd8] sm:$0xff] }
0x1120   : > { %v7609_v7 = vpack.c.bf16 %v7540_v63, %v7538_v53  ;;  %v7343_v53 = vld [vmem:[%s15546_s28 + $0x90] sm:$0xff]  ;;  %v7348_v63 = vld [vmem:[%s15546_s28 + $0xb8] sm:$0xff]  ;;  %v7543_v43 = vmax.f32 %v7511_v0, 0.0  ;;  %v7513_v39 = vadd.f32 %v15586_v32, %v7469_v30  ;;  %v7395_v47 = vsub.f32 %v7352_v19, %v15557_v12 }
0x1121   : > { %v7468_v11 = vmul.f32 %v15584_v17, %v7424_v1  ;;  %v7608_v4 = vpack.c.bf16 %v7539_v5, %v7537_v48  ;;  %v7384_v1 = vsub.f32 %v7341_v10, %v15566_v29  ;;  %v7391_v20 = vsub.f32 %v7348_v63, %v15557_v12 }
0x1122   : > { %7790 = vmatprep.mubr.bf16.mxu0 %v7609_v7  ;;  %v7386_v7 = vsub.f32 %v7343_v53, %v15566_v29  ;;  %v7610_v62 = vpack.c.bf16 %v7543_v43, %v7541_v40  ;;  %v7393_v53 = vsub.f32 %v7350_v21, %v15557_v12 }
0x1123   : > { %v7512_v38 = vadd.f32 %v15599_v18, %v7468_v11  ;;  %v7476_v11 = vmul.f32 %v15584_v17, %v7432_v13  ;;  %v7429_v48 = vmul.f32 %v15633_v33, %v7384_v1  ;;  %v7436_v31 = vmul.f32 %v15631_v24, %v7391_v20 }
0x1124   : > { %v7431_v5 = vmul.f32 %v15633_v33, %v7386_v7  ;;  %v7433_v13 = vmul.f32 %v15633_v33, %v7388_v23  ;;  %v7349_v7 = vld [vmem:[%s15546_s28 + $0xc0] sm:$0xff] }
0x1125   : > { %v7544_v50 = vmax.f32 %v7512_v38, 0.0  ;;  %v7347_v38 = vld [vmem:[%s15546_s28 + $0xb0] sm:$0xff]  ;;  %v7520_v45 = vadd.f32 %v15599_v18, %v7476_v11  ;;  %v7480_v28 = vmul.f32 %v15584_v17, %v7436_v31  ;;  %v7356_v11 = vld [vmem:[%s15546_s28 + $0xf8] sm:$0xff] }
0x1126   : > { %8940 = vmatmul.mubr.bf16.gmra.mrb[12].mxu1 %v7589_v22  ;;  %7791 = vmatmul.mubr.bf16.gmra.mrb[4].mxu0 %v7608_v4  ;;  %v7548_v22 = vmax.f32 %v7516_v37, 0.0  ;;  %v7390_v0 = vsub.f32 %v7347_v38, %v15566_v29  ;;  %v7473_v4 = vmul.f32 %v15582_v6, %v7429_v48  ;;  %v7475_v10 = vmul.f32 %v15582_v6, %v7431_v5 }
0x1127   : > { %v7611_v25 = vpack.c.bf16 %v7544_v50, %v7542_v59  ;;  %v7545_v59 = vmax.f32 %v7513_v39, 0.0  ;;  %v7547_v50 = vmax.f32 %v7515_v44, 0.0  ;;  %v7550_v37 = vmax.f32 %v7518_v42, 0.0 }
0x1128   : > { %v7613_v8 = vpack.c.bf16 %v7548_v22, %v7546_v54  ;;  %v7552_v58 = vmax.f32 %v7520_v45, 0.0  ;;  %v7435_v40 = vmul.f32 %v15633_v33, %v7390_v0  ;;  %v7517_v43 = vadd.f32 %v15586_v32, %v7473_v4 }
0x1129   : > { %7798 = vmatprep.mubr.bf16.mxu0 %v7611_v25  ;;  %v7478_v25 = vmul.f32 %v15584_v17, %v7434_v61  ;;  %v7612_v63 = vpack.c.bf16 %v7547_v50, %v7545_v59  ;;  %v7519_v30 = vadd.f32 %v15586_v32, %v7475_v10  ;;  %v7524_v1 = vadd.f32 %v15599_v18, %v7480_v28 }
0x112a   : > { %v7615_v20 = vpack.c.bf16 %v7552_v58, %v7550_v37  ;;  %v7438_v54 = vmul.f32 %v15631_v24, %v7393_v53  ;;  %v7440_v22 = vmul.f32 %v15631_v24, %v7395_v47  ;;  %v7479_v39 = vmul.f32 %v15582_v6, %v7435_v40  ;;  %v7353_v37 = vld [vmem:[%s15546_s28 + $0xe0] sm:$0xff] }
0x112b   : > { %v7522_v3 = vadd.f32 %v15599_v18, %v7478_v25  ;;  %v7392_v44 = vsub.f32 %v7349_v7, %v15566_v29  ;;  %v7394_v48 = vsub.f32 %v7351_v26, %v15566_v29  ;;  %v7549_v5 = vmax.f32 %v7517_v43, 0.0 }
0x112c   : > { %v7551_v61 = vmax.f32 %v7519_v30, 0.0  ;;  %v7556_v35 = vmax.f32 %v7524_v1, 0.0  ;;  %v7482_v38 = vmul.f32 %v15584_v17, %v7438_v54  ;;  %v7397_v42 = vsub.f32 %v7354_v46, %v15557_v12 }
0x112d   : > { %v7554_v31 = vmax.f32 %v7522_v3, 0.0  ;;  %v7399_v45 = vsub.f32 %v7356_v11, %v15557_v12  ;;  %v7523_v19 = vadd.f32 %v15586_v32, %v7479_v39  ;;  %v7437_v23 = vmul.f32 %v15633_v33, %v7392_v44  ;;  %v7355_v12 = vld [vmem:[%s15546_s28 + $0xf0] sm:$0xff] }
0x112e   : > { %7799 = vmatmul.mubr.bf16.gmra.mrb[8].mxu0 %v7610_v62  ;;  %v7477_v62 = vmul.f32 %v15582_v6, %v7433_v13  ;;  %v7614_v59 = vpack.c.bf16 %v7551_v61, %v7549_v5  ;;  %v7439_v0 = vmul.f32 %v15633_v33, %v7394_v48  ;;  %v7526_v4 = vadd.f32 %v15599_v18, %v7482_v38 }
0x112f   : > { %7806 = vmatprep.mubr.bf16.mxu0 %v7613_v8  ;;  %v7484_v8 = vmul.f32 %v15584_v17, %v7440_v22  ;;  %v7617_v50 = vpack.c.bf16 %v7556_v35, %v7554_v31  ;;  %v7442_v25 = vmul.f32 %v15631_v24, %v7397_v42  ;;  %v7444_v28 = vmul.f32 %v15631_v24, %v7399_v45 }
0x1130   : > { %v7521_v21 = vadd.f32 %v15586_v32, %v7477_v62  ;;  %v7555_v53 = vmax.f32 %v7523_v19, 0.0  ;;  %v7481_v47 = vmul.f32 %v15582_v6, %v7437_v23  ;;  %v7396_v13 = vsub.f32 %v7353_v37, %v15566_v29 }
0x1131   : > { %v7528_v10 = vadd.f32 %v15599_v18, %v7484_v8  ;;  %v7398_v40 = vsub.f32 %v7355_v12, %v15566_v29  ;;  %v7558_v43 = vmax.f32 %v7526_v4, 0.0  ;;  %v7486_v3 = vmul.f32 %v15584_v17, %v7442_v25 }
0x1132   : > { %v7553_v58 = vmax.f32 %v7521_v21, 0.0  ;;  %v7488_v24 = vmul.f32 %v15584_v17, %v7444_v28  ;;  %v7525_v7 = vadd.f32 %v15586_v32, %v7481_v47 }
0x1133   : > { %v7560_v30 = vmax.f32 %v7528_v10, 0.0  ;;  %v7443_v54 = vmul.f32 %v15633_v33, %v7398_v40  ;;  %v7530_v46 = vadd.f32 %v15599_v18, %v7486_v3 }
0x1134   : > { %v7616_v1 = vpack.c.bf16 %v7555_v53, %v7553_v58  ;;  %v7532_v29 = vadd.f32 %v15599_v18, %v7488_v24  ;;  %v7557_v11 = vmax.f32 %v7525_v7, 0.0  ;;  %v15808_v53 = vld [vmem:[%s18065_s2] ss:$0 sm:$0xff] }
0x1135   : > { %v7619_v22 = vpack.c.bf16 %v7560_v30, %v7558_v43  ;;  %v7487_v17 = vmul.f32 %v15582_v6, %v7443_v54  ;;  %v7562_v44 = vmax.f32 %v7530_v46, 0.0 }
0x1136   : > { %7807 = vmatmul.mubr.bf16.gmra.mrb[12].mxu0 %v7612_v63  ;;  %v7483_v63 = vmul.f32 %v15582_v6, %v7439_v0  ;;  %v7564_v48 = vmax.f32 %v7532_v29, 0.0 }
0x1137   : > { %7814 = vmatprep.mubr.bf16.mxu0 %v7615_v20  ;;  %v7441_v20 = vmul.f32 %v15633_v33, %v7396_v13  ;;  %v7531_v33 = vadd.f32 %v15586_v32, %v7487_v17 }
0x1138   : > { %v7527_v26 = vadd.f32 %v15586_v32, %v7483_v63  ;;  %v7621_v31 = vpack.c.bf16 %v7564_v48, %v7562_v44 }
0x1139   : > { %v7485_v39 = vmul.f32 %v15582_v6, %v7441_v20  ;;  %v7563_v38 = vmax.f32 %v7531_v33, 0.0  ;;  %v18066_v20 = vld [vmem:[#allocation16_spill] sm:$0xff] }
0x113a   : > { %v7559_v62 = vmax.f32 %v7527_v26, 0.0 }
0x113b   : > { %v7529_v61 = vadd.f32 %v15586_v32, %v7485_v39 }
0x113c   : > { %v7618_v5 = vpack.c.bf16 %v7559_v62, %v7557_v11  ;;  %v18067_v62 = vld [vmem:[#allocation17_spill] sm:$0xff] }
0x113d   : > { %v7561_v35 = vmax.f32 %v7529_v61, 0.0 }
0x113e   : > { %7815 = vmatmul.mubr.bf16.gmra.mrb[16].mxu0 %v7614_v59 }
0x113f   : > { %7822 = vmatprep.mubr.bf16.mxu0 %v7617_v50  ;;  %v7620_v18 = vpack.c.bf16 %v7563_v38, %v7561_v35 }
0x1146   : > { %7823 = vmatmul.mubr.bf16.gmra.mrb[20].mxu0 %v7616_v1 }
0x1147   : > { %7830 = vmatprep.mubr.bf16.mxu0 %v7619_v22 }
0x114e   : > { %7831 = vmatmul.mubr.bf16.gmra.mrb[24].mxu0 %v7618_v5 }
0x114f   : > { %7838 = vmatprep.mubr.bf16.mxu0 %v7621_v31 }
0x1156   : > { %7839 = vmatmul.mubr.bf16.gmra.mrb[28].mxu0 %v7620_v18 }
0x11e1   : > { %v8929_v8 = vpop.f32.mrb[0].mxu1 }
0x11e2   : > { %v7929_v42 = vpop.f32.mrb[1].mxu1 }
0x11e3   : > { %v8930_v45 = vpop.f32.mrb[2].mxu1 }
0x11e4   : > { %v7932_v21 = vpop.f32.mrb[3].mxu1 }
0x11e9   : > { %v15791_v6 = vpop.f32.mrb[4].mxu1 }
0x11ea   : > { %v7945_v19 = vpop.f32.mrb[5].mxu1 }
0x11eb   : > { %v15793_v59 = vpop.f32.mrb[6].mxu1 }
0x11ec   : > { %v7948_v50 = vpop.f32.mrb[7].mxu1 }
0x11f1   : > { %v15795_v23 = vpop.f32.mrb[8].mxu1  ;;  %v8847_v10 = vpop.f32.mrb[0].mxu0 }
0x11f2   : > { %v15797_v32 = vpop.f32.mrb[9].mxu1  ;;  %v8848_v25 = vpop.f32.mrb[1].mxu0 }
0x11f3   : > { %v15799_v0 = vpop.f32.mrb[10].mxu1  ;;  %v8849_v28 = vadd.f32 %v8848_v25, %v8847_v10  ;;  %v8850_v37 = vpop.f32.mrb[2].mxu0 }
0x11f4   : > { %v15801_v4 = vpop.f32.mrb[11].mxu1  ;;  %v8851_v58 = vpop.f32.mrb[3].mxu0 }
0x11f5   : > { %v8852_v63 = vadd.f32 %v8851_v58, %v8850_v37  ;;  %v7930_v13 = vadd.f32 %v8849_v28, %v7929_v42  ;;  %v18068_v42 = vld [vmem:[#allocation18_spill] sm:$0xff] }
0x11f7   : > { %v7999_v30 = vadd.f32 %v15808_v53, %v7930_v13  ;;  %v7933_v3 = vadd.f32 %v8852_v63, %v7932_v21  ;;  %v18069_v63 = vld [vmem:[#allocation19_spill] sm:$0xff] }
0x11f9   : > { %v15803_v12 = vpop.f32.mrb[12].mxu1  ;;  %v8015_v24 = vadd.f32 %v7999_v30, %v15514_v16  ;;  %v8000_v1 = vadd.f32 %v15808_v53, %v7933_v3  ;;  %v8853_v7 = vpop.f32.mrb[4].mxu0 }
0x11fa   : > { %v15810_v47 = vpop.f32.mrb[13].mxu1  ;;  %v8854_v26 = vpop.f32.mrb[5].mxu0 }
0x11fb   : > { %v15812_v40 = vpop.f32.mrb[14].mxu1  ;;  %8032 = vst [vmem:[%s15820_s29] sm:$0xff] %v8015_v24  ;;  %v8048_v54 = vmul.f32 %v18066_v20, %v8015_v24  ;;  %v8016_v22 = vadd.f32 %v8000_v1, %v15517_v14  ;;  %v8855_v46 = vadd.f32 %v8854_v26, %v8853_v7  ;;  %v8856_v29 = vpop.f32.mrb[6].mxu0 }
0x11fc   : > { %v15814_v43 = vpop.f32.mrb[15].mxu1  ;;  %v8857_v11 = vpop.f32.mrb[7].mxu0 }
0x11fd   : > { %8033 = vst [vmem:[%s15820_s29 + $0x8] sm:$0xff] %v8016_v22  ;;  %v8049_v16 = vmul.f32 %v18067_v62, %v8016_v22  ;;  %v7938_v39 = vadd.f32 %v8929_v8, %v8855_v46  ;;  %v8858_v17 = vadd.f32 %v8857_v11, %v8856_v29  ;;  %v8089_v44 = vmul.f32 %v8048_v54, %v8015_v24 }
0x11ff   : > { %v8065_v48 = vadd.f32 %v8049_v16, %v8048_v54  ;;  %v8090_v5 = vmul.f32 %v8049_v16, %v8016_v22  ;;  %v8001_v61 = vadd.f32 %v15808_v53, %v7938_v39  ;;  %v7941_v33 = vadd.f32 %v8930_v45, %v8858_v17  ;;  %v18071_v39 = vld [vmem:[#allocation21_spill] sm:$0xff] }
0x1201   : > { %v8105_v31 = vadd.f32 %v8090_v5, %v8089_v44  ;;  %v8017_v35 = vadd.f32 %v8001_v61, %v15523_v9  ;;  %v8002_v14 = vadd.f32 %v15808_v53, %v7941_v33  ;;  %v8859_v38 = vpop.f32.mrb[8].mxu0 }
0x1202   : > { %v8860_v18 = vpop.f32.mrb[9].mxu0 }
0x1203   : > { %8034 = vst [vmem:[%s15820_s29 + $0x10] sm:$0xff] %v8017_v35  ;;  %v8050_v21 = vmul.f32 %v18068_v42, %v8017_v35  ;;  %v8018_v8 = vadd.f32 %v8002_v14, %v15526_v55  ;;  %v8861_v10 = vadd.f32 %v8860_v18, %v8859_v38  ;;  %v8862_v25 = vpop.f32.mrb[10].mxu0 }
0x1204   : > { %v8863_v28 = vpop.f32.mrb[11].mxu0 }
0x1205   : > { %v8066_v37 = vadd.f32 %v8065_v48, %v8050_v21  ;;  %v8091_v58 = vmul.f32 %v8050_v21, %v8017_v35  ;;  %8035 = vst [vmem:[%s15820_s29 + $0x18] sm:$0xff] %v8018_v8  ;;  %v8051_v45 = vmul.f32 %v18069_v63, %v8018_v8  ;;  %v8864_v13 = vadd.f32 %v8863_v28, %v8862_v25 }
0x1206   : > { %v7946_v9 = vadd.f32 %v8861_v10, %v7945_v19  ;;  %v18070_v19 = vld [vmem:[#allocation20_spill] sm:$0xff] }
0x1207   : > { %v8106_v30 = vadd.f32 %v8105_v31, %v8091_v58  ;;  %v8092_v3 = vmul.f32 %v8051_v45, %v8018_v8  ;;  %v8067_v24 = vadd.f32 %v8066_v37, %v8051_v45  ;;  %v7949_v1 = vadd.f32 %v8864_v13, %v7948_v50  ;;  %v18073_v58 = vld [vmem:[#allocation23_spill] sm:$0xff] }
0x1208   : > { %v8003_v7 = vadd.f32 %v15808_v53, %v7946_v9 }
0x1209   : > { %v8107_v26 = vadd.f32 %v8106_v30, %v8092_v3  ;;  %v8004_v55 = vadd.f32 %v15808_v53, %v7949_v1  ;;  %v8865_v20 = vpop.f32.mrb[12].mxu0 }
0x120a   : > { %v8019_v54 = vadd.f32 %v8003_v7, %v15529_v27  ;;  %v8866_v22 = vpop.f32.mrb[13].mxu0 }
0x120b   : > { %v8020_v46 = vadd.f32 %v8004_v55, %v15532_v52  ;;  %v8867_v29 = vadd.f32 %v8866_v22, %v8865_v20  ;;  %v8868_v11 = vpop.f32.mrb[14].mxu0 }
0x120c   : > { %8036 = vst [vmem:[%s15820_s29 + $0x20] sm:$0xff] %v8019_v54  ;;  %v8052_v62 = vmul.f32 %v18070_v19, %v8019_v54  ;;  %v8869_v16 = vpop.f32.mrb[15].mxu0 }
0x120d   : > { %8037 = vst [vmem:[%s15820_s29 + $0x28] sm:$0xff] %v8020_v46  ;;  %v8053_v50 = vmul.f32 %v18071_v39, %v8020_v46  ;;  %v7954_v17 = vadd.f32 %v15791_v6, %v8867_v29  ;;  %v8870_v44 = vadd.f32 %v8869_v16, %v8868_v11  ;;  %v18072_v6 = vld [vmem:[#allocation22_spill] sm:$0xff]  ;;  %v18075_v11 = vld [vmem:[#allocation25_spill] sm:$0xff] }
0x120e   : > { %v8068_v48 = vadd.f32 %v8067_v24, %v8052_v62  ;;  %v8093_v5 = vmul.f32 %v8052_v62, %v8019_v54 }
0x120f   : > { %v8094_v61 = vmul.f32 %v8053_v50, %v8020_v46  ;;  %v8005_v27 = vadd.f32 %v15808_v53, %v7954_v17  ;;  %v7957_v52 = vadd.f32 %v15793_v59, %v8870_v44 }
0x1210   : > { %v8108_v33 = vadd.f32 %v8107_v26, %v8093_v5  ;;  %v8069_v31 = vadd.f32 %v8068_v48, %v8053_v50 }
0x1211   : > { %v8021_v35 = vadd.f32 %v8005_v27, %v15541_v36  ;;  %v8006_v14 = vadd.f32 %v15808_v53, %v7957_v52  ;;  %v8871_v38 = vpop.f32.mrb[16].mxu0 }
0x1212   : > { %v8109_v18 = vadd.f32 %v8108_v33, %v8094_v61  ;;  %v8872_v42 = vpop.f32.mrb[17].mxu0 }
0x1213   : > { %8038 = vst [vmem:[%s15820_s29 + $0x30] sm:$0xff] %v8021_v35  ;;  %v8054_v21 = vmul.f32 %v18072_v6, %v8021_v35  ;;  %v8022_v8 = vadd.f32 %v8006_v14, %v15544_v60  ;;  %v8873_v10 = vadd.f32 %v8872_v42, %v8871_v38  ;;  %v8874_v25 = vpop.f32.mrb[18].mxu0  ;;  %v18077_v42 = vld [vmem:[#allocation27_spill] sm:$0xff] }
0x1214   : > { %v8875_v28 = vpop.f32.mrb[19].mxu0 }
0x1215   : > { %v8070_v37 = vadd.f32 %v8069_v31, %v8054_v21  ;;  %v8095_v59 = vmul.f32 %v8054_v21, %v8021_v35  ;;  %8039 = vst [vmem:[%s15820_s29 + $0x38] sm:$0xff] %v8022_v8  ;;  %v8055_v63 = vmul.f32 %v18073_v58, %v8022_v8  ;;  %v8876_v36 = vadd.f32 %v8875_v28, %v8874_v25 }
0x1216   : > { %v7962_v45 = vadd.f32 %v8873_v10, %v15797_v32  ;;  %v18074_v32 = vld [vmem:[#allocation24_spill] sm:$0xff] }
0x1217   : > { %v8110_v13 = vadd.f32 %v8109_v18, %v8095_v59  ;;  %v8096_v9 = vmul.f32 %v8055_v63, %v8022_v8  ;;  %v8071_v30 = vadd.f32 %v8070_v37, %v8055_v63  ;;  %v7965_v3 = vadd.f32 %v8876_v36, %v15801_v4 }
0x1218   : > { %v8007_v60 = vadd.f32 %v15808_v53, %v7962_v45 }
0x1219   : > { %v8111_v24 = vadd.f32 %v8110_v13, %v8096_v9  ;;  %v8008_v1 = vadd.f32 %v15808_v53, %v7965_v3  ;;  %v8877_v7 = vpop.f32.mrb[20].mxu0 }
0x121a   : > { %v8023_v26 = vadd.f32 %v8007_v60, %v15552_v51  ;;  %v8878_v55 = vpop.f32.mrb[21].mxu0 }
0x121b   : > { %v8024_v20 = vadd.f32 %v8008_v1, %v15555_v49  ;;  %v8879_v54 = vadd.f32 %v8878_v55, %v8877_v7  ;;  %v8880_v22 = vpop.f32.mrb[22].mxu0 }
0x121c   : > { %8040 = vst [vmem:[%s15820_s29 + $0x40] sm:$0xff] %v8023_v26  ;;  %v8056_v46 = vmul.f32 %v18074_v32, %v8023_v26  ;;  %v8881_v29 = vpop.f32.mrb[23].mxu0 }
0x121d   : > { %8041 = vst [vmem:[%s15820_s29 + $0x48] sm:$0xff] %v8024_v20  ;;  %v8057_v4 = vmul.f32 %v18075_v11, %v8024_v20  ;;  %v7970_v19 = vadd.f32 %v15795_v23, %v8879_v54  ;;  %v8882_v62 = vadd.f32 %v8881_v29, %v8880_v22  ;;  %v18076_v23 = vld [vmem:[#allocation26_spill] sm:$0xff] }
0x121e   : > { %v8072_v16 = vadd.f32 %v8071_v30, %v8056_v46  ;;  %v8097_v39 = vmul.f32 %v8056_v46, %v8023_v26  ;;  %v18080_v29 = vld [vmem:[#allocation30_spill] sm:$0xff] }
0x121f   : > { %v8098_v50 = vmul.f32 %v8057_v4, %v8024_v20  ;;  %v8009_v51 = vadd.f32 %v15808_v53, %v7970_v19  ;;  %v7973_v49 = vadd.f32 %v15799_v0, %v8882_v62  ;;  %v18081_v62 = vld [vmem:[#allocation31_spill] sm:$0xff] }
0x1220   : > { %v8112_v17 = vadd.f32 %v8111_v24, %v8097_v39  ;;  %v8073_v44 = vadd.f32 %v8072_v16, %v8057_v4 }
0x1221   : > { %v8025_v48 = vadd.f32 %v8009_v51, %v15609_v15  ;;  %v8010_v5 = vadd.f32 %v15808_v53, %v7973_v49  ;;  %v8883_v61 = vpop.f32.mrb[24].mxu0 }
0x1222   : > { %v8113_v27 = vadd.f32 %v8112_v17, %v8098_v50  ;;  %v8884_v52 = vpop.f32.mrb[25].mxu0 }
0x1223   : > { %8042 = vst [vmem:[%s15820_s29 + $0x50] sm:$0xff] %v8025_v48  ;;  %v8058_v33 = vmul.f32 %v18076_v23, %v8025_v48  ;;  %v8026_v31 = vadd.f32 %v8010_v5, %v15616_v41  ;;  %v8885_v35 = vadd.f32 %v8884_v52, %v8883_v61  ;;  %v8886_v14 = vpop.f32.mrb[26].mxu0  ;;  %v8064_v52 = vld [vmem:[#allocation7] sm:$0x1] }
0x1224   : > { %v8887_v38 = vpop.f32.mrb[27].mxu0 }
0x1225   : > { %v8074_v18 = vadd.f32 %v8073_v44, %v8058_v33  ;;  %v8099_v0 = vmul.f32 %v8058_v33, %v8025_v48  ;;  %8043 = vst [vmem:[%s15820_s29 + $0x58] sm:$0xff] %v8026_v31  ;;  %v8059_v6 = vmul.f32 %v18077_v42, %v8026_v31  ;;  %v8888_v15 = vadd.f32 %v8887_v38, %v8886_v14  ;;  %v8088_v33 = vld [vmem:[#allocation8] sm:$0x1] }
0x1226   : > { %v7978_v21 = vadd.f32 %v8885_v35, %v15810_v47  ;;  %v18078_v47 = vld [vmem:[#allocation28_spill] sm:$0xff] }
0x1227   : > { %v8114_v8 = vadd.f32 %v8113_v27, %v8099_v0  ;;  %v8100_v10 = vmul.f32 %v8059_v6, %v8026_v31  ;;  %v8075_v25 = vadd.f32 %v8074_v18, %v8059_v6  ;;  %v7981_v28 = vadd.f32 %v8888_v15, %v15814_v43  ;;  %v18079_v43 = vld [vmem:[#allocation29_spill] sm:$0xff] }
0x1228   : > { %v8011_v41 = vadd.f32 %v15808_v53, %v7978_v21 }
0x1229   : > { %v8115_v37 = vadd.f32 %v8114_v8, %v8100_v10  ;;  %v8012_v59 = vadd.f32 %v15808_v53, %v7981_v28  ;;  %v8889_v58 = vpop.f32.mrb[28].mxu0 }
0x122a   : > { %v8027_v63 = vadd.f32 %v8011_v41, %v15619_v57  ;;  %v8890_v36 = vpop.f32.mrb[29].mxu0 }
0x122b   : > { %v8028_v45 = vadd.f32 %v8012_v59, %v15622_v56  ;;  %v8891_v13 = vadd.f32 %v8890_v36, %v8889_v58  ;;  %v8892_v9 = vpop.f32.mrb[30].mxu0 }
0x122c   : > { %8044 = vst [vmem:[%s15820_s29 + $0x60] sm:$0xff] %v8027_v63  ;;  %v8060_v30 = vmul.f32 %v18078_v47, %v8027_v63  ;;  %v8893_v3 = vpop.f32.mrb[31].mxu0 }
0x122d   : > { %8045 = vst [vmem:[%s15820_s29 + $0x68] sm:$0xff] %v8028_v45  ;;  %v8061_v60 = vmul.f32 %v18079_v43, %v8028_v45  ;;  %v7986_v24 = vadd.f32 %v15803_v12, %v8891_v13  ;;  %v8894_v1 = vadd.f32 %v8893_v3, %v8892_v9 }
0x122e   : > { %v8076_v7 = vadd.f32 %v8075_v25, %v8060_v30  ;;  %v8101_v26 = vmul.f32 %v8060_v30, %v8027_v63 }
0x122f   : > { %v8102_v57 = vmul.f32 %v8061_v60, %v8028_v45  ;;  %v8013_v55 = vadd.f32 %v15808_v53, %v7986_v24  ;;  %v7989_v56 = vadd.f32 %v15812_v40, %v8894_v1 }
0x1230   : > { %v8116_v20 = vadd.f32 %v8115_v37, %v8101_v26  ;;  %v8077_v54 = vadd.f32 %v8076_v7, %v8061_v60 }
0x1231   : > { %v8029_v22 = vadd.f32 %v8013_v55, %v15677_v34  ;;  %v8014_v32 = vadd.f32 %v15808_v53, %v7989_v56 }
0x1232   : > { %v8117_v46 = vadd.f32 %v8116_v20, %v8102_v57 }
0x1233   : > { %8046 = vst [vmem:[%s15820_s29 + $0x70] sm:$0xff] %v8029_v22  ;;  %v8062_v11 = vmul.f32 %v18080_v29, %v8029_v22  ;;  %v8030_v12 = vadd.f32 %v8014_v32, %v15680_v2 }
0x1235   : > { %v8078_v4 = vadd.f32 %v8077_v54, %v8062_v11  ;;  %v8103_v19 = vmul.f32 %v8062_v11, %v8029_v22  ;;  %8047 = vst [vmem:[%s15820_s29 + $0x78] sm:$0xff] %v8030_v12  ;;  %v8063_v16 = vmul.f32 %v18081_v62, %v8030_v12 }
0x1237   : > { %v8118_v39 = vadd.f32 %v8117_v46, %v8103_v19  ;;  %v8079_v50 = vadd.f32 %v8078_v4, %v8063_v16  ;;  %v8104_v40 = vmul.f32 %v8063_v16, %v8030_v12 }
0x1239   : > { %v8080_v51 = vrot.slane %v8079_v50, 4  ;;  %v8119_v49 = vadd.f32 %v8118_v39, %v8104_v40 }
0x123b   : > { %v8081_v17 = vadd.f32 %v8080_v51, %v8079_v50  ;;  %v8120_v34 = vrot.slane %v8119_v49, 4 }
0x123d   : > { %v8082_v44 = vrot.slane %v8081_v17, 2  ;;  %v8121_v53 = vadd.f32 %v8120_v34, %v8119_v49 }
0x123f   : > { %v8083_v48 = vadd.f32 %v8082_v44, %v8081_v17  ;;  %v8122_v5 = vrot.slane %v8121_v53, 2 }
0x1241   : > { %v8084_v61 = vrot.slane %v8083_v48, 1  ;;  %v8123_v27 = vadd.f32 %v8122_v5, %v8121_v53 }
0x1243   : > { %v8085_v2 = vadd.f32 %v8084_v61, %v8083_v48  ;;  %v8124_v23 = vrot.slane %v8123_v27, 1 }
0x1245   : > { %v8086_v31 = vadd.f32 %v8085_v2, %v8064_v52  ;;  %v8125_v35 = vadd.f32 %v8124_v23, %v8123_v27 }
0x1247   : > { %8087 = vst [vmem:[#allocation7] sm:$0x1] %v8086_v31  ;;  %v8126_v14 = vadd.f32 %v8125_v35, %v8088_v33 }
0x1249   : > { %8127 = vst [vmem:[#allocation8] sm:$0x1] %v8126_v14 }
0x124a PF: > { %p8819_p13 = scmp.ne.s32.totalorder %s9816_s24, 2 }
0x124b   : > { %v18082_v10 = vld [vmem:[#allocation15_spill] sm:$0xff] (!%p8819_p13)  ;;  %s15896_s24 = scalar_lea.vmem (!%p8819_p13), [#allocation4], %s10000_s27  ;;  %v8289_v41 = vld [vmem:[%s10075_s1 + $0x10] sm:$0xff] (!%p8819_p13)  ;;  %s18083_s30 = sld [smem:[#allocation317_spill]] (!%p8819_p13)  ;;  %v8290_v45 = vld [vmem:[%s10075_s1 + $0x18] sm:$0xff] (!%p8819_p13)  ;;  %vm8397_vm2 = vcmask (!%p8819_p13), 7168  }
0x124c   : > { %8131 = sbr.rel (%p8819_p13) target bundleno = 4895 (0x131f), region = 116  ;;  %v8159_v25 = vsub.s32 (!%p8819_p13), 0, %v18082_v10  ;;  %v8142_v28 = vld [vmem:[%s15896_s24 + $0x10] sm:$0xff] (!%p8819_p13)  ;;  %v8140_v59 = vld [vmem:[%s15896_s24] sm:$0xff] (!%p8819_p13)  ;;  %v8143_v36 = vld [vmem:[%s15896_s24 + $0x18] sm:$0xff] (!%p8819_p13)  ;;  %s18084_s18 = sld [smem:[#allocation314_spill]] (!%p8819_p13) }
0x124d   : > { %v8287_v63 = vld [vmem:[%s10075_s1] sm:$0xff] (!%p8819_p13)  ;;  %v8141_v13 = vld [vmem:[%s15896_s24 + $0x8] sm:$0xff] (!%p8819_p13)  ;;  %v8147_v1 = vld [vmem:[%s15896_s24 + $0x38] sm:$0xff] (!%p8819_p13)  ;;  %s18085_s22 = sld [smem:[#allocation315_spill]] (!%p8819_p13)  ;;  %s18086_s25 = sld [smem:[#allocation316_spill]] (!%p8819_p13) }
0x124e   : > { %v8132_v38 = vld [vmem:[#allocation7] sm:$0x1] (!%p8819_p13)  ;;  %v8288_v9 = vld [vmem:[%s10075_s1 + $0x8] sm:$0xff] (!%p8819_p13)  ;;  %v8294_v7 = vld [vmem:[%s10075_s1 + $0x38] sm:$0xff] (!%p8819_p13) }
0x124f   : > { %v8133_v0 = vmul.f32 (!%p8819_p13), 0.005, %v8132_v38  ;;  %v8145_v47 = vld [vmem:[%s15896_s24 + $0x28] sm:$0xff] (!%p8819_p13)  ;;  %v8144_v3 = vld [vmem:[%s15896_s24 + $0x20] sm:$0xff] (!%p8819_p13)  ;;  %v8146_v26 = vld [vmem:[%s15896_s24 + $0x30] sm:$0xff] (!%p8819_p13) }
0x1250   : > { %v8134_v18 = vld [vmem:[#allocation8] sm:$0x1] (!%p8819_p13)  ;;  %v8292_v30 = vld [vmem:[%s10075_s1 + $0x28] sm:$0xff] (!%p8819_p13)  ;;  %v8293_v54 = vld [vmem:[%s10075_s1 + $0x30] sm:$0xff] (!%p8819_p13) }
0x1251   : > { %v8135_v42 = vmul.f32 (!%p8819_p13), 0.005, %v8134_v18  ;;  %v8136_v6 = vmul.f32 (!%p8819_p13), %v8133_v0, %v8133_v0  ;;  %v15903_v37 = vld [vmem:[%s18083_s30] ss:$0 sm:$0xff] (!%p8819_p13)  ;;  %v15906_v58 = vrot.slane (!%p8819_p13), %v8133_v0, %v8159_v25  ;;  %v15934_v22 = vld [vmem:[%s15896_s24 + $0x48] sm:$0xff] (!%p8819_p13)  ;;  %v15948_v4 = vld [vmem:[%s15896_s24 + $0x58] sm:$0xff] (!%p8819_p13) }
0x1252   : > { %v8291_v43 = vld [vmem:[%s10075_s1 + $0x20] sm:$0xff] (!%p8819_p13)  ;;  %v15918_v60 = vmul.f32 (!%p8819_p13), %v15903_v37, %v8289_v41  ;;  %v15921_v24 = vmul.f32 (!%p8819_p13), %v15903_v37, %v8287_v63  ;;  %v15930_v20 = vmul.f32 (!%p8819_p13), %v15903_v37, %v8290_v45  ;;  %v15941_v29 = vmul.f32 (!%p8819_p13), %v15903_v37, %v8288_v9  ;;  %v15951_v19 = vld [vmem:[%s15896_s24 + $0x50] sm:$0xff] (!%p8819_p13)  ;;  %v15954_v62 = vld [vmem:[%s15896_s24 + $0x68] sm:$0xff] (!%p8819_p13) }
0x1253   : > { %v8137_v15 = vsub.f32 %v8135_v42, %v8136_v6  ;;  %v8164_v57 = vsub.f32 %v8142_v28, %v15906_v58  ;;  %v8162_v55 = vsub.f32 %v8140_v59, %v15906_v58  ;;  %v8165_v56 = vsub.f32 %v8143_v36, %v15906_v58  ;;  %v15937_v32 = vld [vmem:[%s15896_s24 + $0x40] sm:$0xff] }
0x1254   : > { %v8163_v46 = vsub.f32 %v8141_v13, %v15906_v58  ;;  %v8167_v11 = vsub.f32 %v8145_v47, %v15906_v58  ;;  %v15945_v12 = vmul.f32 %v15903_v37, %v8292_v30  ;;  %v8166_v39 = vsub.f32 %v8144_v3, %v15906_v58  ;;  %v15975_v53 = vld [vmem:[%s18084_s18] ss:$0 sm:$0xff] }
0x1255   : > { %v8138_v21 = vmax.f32 %v8137_v15, 0.0  ;;  %v15958_v50 = vmul.f32 %v15903_v37, %v8291_v43  ;;  %v8169_v40 = vsub.f32 %v8147_v1, %v15906_v58  ;;  %v8168_v51 = vsub.f32 %v8146_v26, %v15906_v58  ;;  %v15992_v31 = vld [vmem:[%s18085_s22] ss:$0 sm:$0xff]  ;;  %v8155_v26 = vld [vmem:[%s15896_s24 + $0x78] sm:$0xff] }
0x1256   : > { %v15965_v17 = vmul.f32 %v15903_v37, %v8294_v7  ;;  %v15968_v34 = vmul.f32 %v15903_v37, %v8293_v54  ;;  %v8171_v44 = vsub.f32 %v15934_v22, %v15906_v58  ;;  %v8170_v48 = vsub.f32 %v15937_v32, %v15906_v58  ;;  %v16013_v36 = vld [vmem:[%s18086_s25] ss:$0 sm:$0xff]  ;;  %v8154_v22 = vld [vmem:[%s15896_s24 + $0x70] sm:$0xff] }
0x1257   : > { %v8178_v8 = vadd.f32 1e-05, %v8138_v21  ;;  %v8173_v5 = vsub.f32 %v15948_v4, %v15906_v58  ;;  %v8172_v61 = vsub.f32 %v15951_v19, %v15906_v58  ;;  %v8175_v27 = vsub.f32 %v15954_v62, %v15906_v58  ;;  %v8152_v7 = vld [vmem:[%s15896_s24 + $0x60] sm:$0xff] }
0x1259   : > { %9788 = vrsqrt.f32 %v8178_v8 }
0x1263   : > { %v9789_v16 = vpop.eup %9788 }
0x1264   : > { %v15962_v49 = vrot.slane %v9789_v16, %v8159_v25  ;;  %v8174_v16 = vsub.f32 %v8152_v7, %v15906_v58 }
0x1266   : > { %v8188_v52 = vmul.f32 %v15962_v49, %v8164_v57  ;;  %v8186_v2 = vmul.f32 %v15962_v49, %v8162_v55  ;;  %v8189_v23 = vmul.f32 %v15962_v49, %v8165_v56  ;;  %v8187_v33 = vmul.f32 %v15962_v49, %v8163_v46 }
0x1267   : > { %v8191_v35 = vmul.f32 %v15962_v49, %v8167_v11  ;;  %v8190_v14 = vmul.f32 %v15962_v49, %v8166_v39  ;;  %v8193_v38 = vmul.f32 %v15962_v49, %v8169_v40  ;;  %v8192_v18 = vmul.f32 %v15962_v49, %v8168_v51 }
0x1268   : > { %v8211_v0 = vmul.f32 %v15975_v53, %v8188_v52  ;;  %v8209_v42 = vmul.f32 %v15975_v53, %v8186_v2  ;;  %v8212_v6 = vmul.f32 %v15975_v53, %v8189_v23  ;;  %v8210_v15 = vmul.f32 %v15975_v53, %v8187_v33 }
0x1269   : > { %v8214_v21 = vmul.f32 %v15975_v53, %v8191_v35  ;;  %v8213_v8 = vmul.f32 %v15975_v53, %v8190_v14  ;;  %v8216_v10 = vmul.f32 %v15975_v53, %v8193_v38  ;;  %v8215_v25 = vmul.f32 %v15975_v53, %v8192_v18 }
0x126a   : > { %v8234_v28 = vadd.f32 %v15992_v31, %v8211_v0  ;;  %v8232_v41 = vadd.f32 %v15992_v31, %v8209_v42  ;;  %v8235_v59 = vadd.f32 %v15992_v31, %v8212_v6  ;;  %v8233_v63 = vadd.f32 %v15992_v31, %v8210_v15  ;;  %v8296_v0 = vld [vmem:[%s10075_s1 + $0x48] sm:$0xff]  ;;  %v8295_v6 = vld [vmem:[%s10075_s1 + $0x40] sm:$0xff] }
0x126b   : > { %v8237_v45 = vadd.f32 %v15992_v31, %v8214_v21  ;;  %v8236_v13 = vadd.f32 %v15992_v31, %v8213_v8  ;;  %v8239_v9 = vadd.f32 %v15992_v31, %v8216_v10  ;;  %v8238_v47 = vadd.f32 %v15992_v31, %v8215_v25 }
0x126c   : > { %v8250_v30 = vmax.f32 %v8234_v28, 0.0  ;;  %v8248_v3 = vmax.f32 %v8232_v41, 0.0  ;;  %v8251_v43 = vmax.f32 %v8235_v59, 0.0  ;;  %v8249_v1 = vmax.f32 %v8233_v63, 0.0 }
0x126d   : > { %v8253_v57 = vmax.f32 %v8237_v45, 0.0  ;;  %v8252_v55 = vmax.f32 %v8236_v13, 0.0  ;;  %v8255_v56 = vmax.f32 %v8239_v9, 0.0  ;;  %v8254_v54 = vmax.f32 %v8238_v47, 0.0  ;;  %v8298_v9 = vld [vmem:[%s10075_s1 + $0x58] sm:$0xff] }
0x126e   : > { %v8273_v32 = vmul.f32 %v16013_v36, %v8250_v30  ;;  %v8271_v46 = vmul.f32 %v16013_v36, %v8248_v3  ;;  %v8274_v11 = vmul.f32 %v16013_v36, %v8251_v43  ;;  %v8272_v4 = vmul.f32 %v16013_v36, %v8249_v1  ;;  %v8297_v30 = vld [vmem:[%s10075_s1 + $0x50] sm:$0xff] }
0x126f   : > { %v8276_v19 = vmul.f32 %v16013_v36, %v8253_v57  ;;  %v8275_v62 = vmul.f32 %v16013_v36, %v8252_v55  ;;  %v8177_v39 = vsub.f32 %v8155_v26, %v15906_v58  ;;  %v8278_v52 = vmul.f32 %v16013_v36, %v8255_v56 }
0x1270   : > { %v8328_v40 = vadd.f32 %v15918_v60, %v8273_v32  ;;  %v8326_v51 = vadd.f32 %v15921_v24, %v8271_v46  ;;  %v8176_v2 = vsub.f32 %v8154_v22, %v15906_v58  ;;  %v8329_v23 = vadd.f32 %v15930_v20, %v8274_v11  ;;  %v8300_v46 = vld [vmem:[%s10075_s1 + $0x68] sm:$0xff] }
0x1271   : > { %v8327_v33 = vadd.f32 %v15941_v29, %v8272_v4  ;;  %v8331_v35 = vadd.f32 %v15945_v12, %v8276_v19  ;;  %v8277_v14 = vmul.f32 %v16013_v36, %v8254_v54  ;;  %v8195_v60 = vmul.f32 %v15962_v49, %v8171_v44 }
0x1272   : > { %8346 = vadd.xlane.f32.xlu1 %v8328_v40  ;;  %8342 = vadd.xlane.f32.xlu0 %v8326_v51  ;;  %v8194_v24 = vmul.f32 %v15962_v49, %v8170_v48  ;;  %v8197_v38 = vmul.f32 %v15962_v49, %v8173_v5  ;;  %v8330_v18 = vadd.f32 %v15958_v50, %v8275_v62 }
0x1273   : > { %v8196_v58 = vmul.f32 %v15962_v49, %v8172_v61  ;;  %v8199_v20 = vmul.f32 %v15962_v49, %v8175_v27  ;;  %v8198_v29 = vmul.f32 %v15962_v49, %v8174_v16  ;;  %v8218_v12 = vmul.f32 %v15975_v53, %v8195_v60 }
0x1274   : > { %v8217_v42 = vmul.f32 %v15975_v53, %v8194_v24  ;;  %v8220_v44 = vmul.f32 %v15975_v53, %v8197_v38  ;;  %v8201_v48 = vmul.f32 %v15962_v49, %v8177_v39  ;;  %v8200_v27 = vmul.f32 %v15962_v49, %v8176_v2  ;;  %v8302_v2 = vld [vmem:[%s10075_s1 + $0x78] sm:$0xff] }
0x1275   : > { %v8219_v5 = vmul.f32 %v15975_v53, %v8196_v58  ;;  %v8222_v50 = vmul.f32 %v15975_v53, %v8199_v20  ;;  %v8221_v61 = vmul.f32 %v15975_v53, %v8198_v29  ;;  %v8241_v15 = vadd.f32 %v15992_v31, %v8218_v12  ;;  %v8824_v20 = vld [vmem:[#allocation9] ss:$0 sm:$0xff] }
0x1276   : > { %8348 = vadd.xlane.f32.xlu1 %v8329_v23  ;;  %8344 = vadd.xlane.f32.xlu0 %v8327_v33  ;;  %v8240_v21 = vadd.f32 %v15992_v31, %v8217_v42  ;;  %v8243_v8 = vadd.f32 %v15992_v31, %v8220_v44  ;;  %v8333_v10 = vadd.f32 %v15965_v17, %v8278_v52  ;;  %v8301_v33 = vld [vmem:[%s10075_s1 + $0x70] sm:$0xff] }
0x1277   : > { %v8319_v25 = vmul.f32 %v15903_v37, %v8296_v0  ;;  %v8318_v28 = vmul.f32 %v15903_v37, %v8295_v6  ;;  %v8242_v41 = vadd.f32 %v15992_v31, %v8219_v5  ;;  %v8332_v59 = vadd.f32 %v15968_v34, %v8277_v14 }
0x1278   : > { %v8257_v49 = vmax.f32 %v8241_v15, 0.0  ;;  %v8256_v63 = vmax.f32 %v8240_v21, 0.0  ;;  %v8224_v45 = vmul.f32 %v15975_v53, %v8201_v48  ;;  %v8259_v13 = vmax.f32 %v8243_v8, 0.0 }
0x1279   : > { %v8258_v47 = vmax.f32 %v8242_v41, 0.0  ;;  %v8245_v3 = vadd.f32 %v15992_v31, %v8222_v50  ;;  %v8244_v17 = vadd.f32 %v15992_v31, %v8221_v61  ;;  %v8223_v1 = vmul.f32 %v15975_v53, %v8200_v27  ;;  %v8299_v53 = vld [vmem:[%s10075_s1 + $0x60] sm:$0xff] }
0x127a   : > { %8352 = vadd.xlane.f32.xlu1 %v8331_v35  ;;  %8350 = vadd.xlane.f32.xlu0 %v8330_v18  ;;  %v8280_v43 = vmul.f32 %v16013_v36, %v8257_v49  ;;  %v8279_v34 = vmul.f32 %v16013_v36, %v8256_v63  ;;  %v8321_v7 = vmul.f32 %v15903_v37, %v8298_v9 }
0x127b   : > { %v8320_v26 = vmul.f32 %v15903_v37, %v8297_v30  ;;  %v8282_v57 = vmul.f32 %v16013_v36, %v8259_v13  ;;  %v8281_v55 = vmul.f32 %v16013_v36, %v8258_v47  ;;  %v8261_v56 = vmax.f32 %v8245_v3, 0.0 }
0x127c   : > { %v8247_v54 = vadd.f32 %v15992_v31, %v8224_v45  ;;  %v8335_v22 = vadd.f32 %v8319_v25, %v8280_v43  ;;  %v8334_v32 = vadd.f32 %v8318_v28, %v8279_v34  ;;  %v8260_v11 = vmax.f32 %v8244_v17, 0.0 }
0x127d   : > { %v8246_v4 = vadd.f32 %v15992_v31, %v8223_v1  ;;  %v8284_v19 = vmul.f32 %v16013_v36, %v8261_v56  ;;  %v8323_v62 = vmul.f32 %v15903_v37, %v8300_v46  ;;  %v8322_v16 = vmul.f32 %v15903_v37, %v8299_v53 }
0x127e   : > { %8356 = vadd.xlane.f32.xlu1 %v8333_v10  ;;  %8354 = vadd.xlane.f32.xlu0 %v8332_v59  ;;  %v8263_v39 = vmax.f32 %v8247_v54, 0.0  ;;  %v8337_v40 = vadd.f32 %v8321_v7, %v8282_v57  ;;  %v8336_v51 = vadd.f32 %v8320_v26, %v8281_v55  ;;  %v8283_v52 = vmul.f32 %v16013_v36, %v8260_v11 }
0x127f   : > { %v8262_v23 = vmax.f32 %v8246_v4, 0.0  ;;  %v8325_v31 = vmul.f32 %v15903_v37, %v8302_v2  ;;  %v8324_v14 = vmul.f32 %v15903_v37, %v8301_v33  ;;  %v8339_v60 = vadd.f32 %v8323_v62, %v8284_v19 }
0x1280   : > { %v8286_v35 = vmul.f32 %v16013_v36, %v8263_v39  ;;  %v8338_v24 = vadd.f32 %v8322_v16, %v8283_v52 }
0x1281   : > { %v8285_v38 = vmul.f32 %v16013_v36, %v8262_v23 }
0x1282   : > { %8360 = vadd.xlane.f32.xlu1 %v8335_v22  ;;  %8358 = vadd.xlane.f32.xlu0 %v8334_v32  ;;  %v8341_v18 = vadd.f32 %v8325_v31, %v8286_v35 }
0x1283   : > { %v8340_v58 = vadd.f32 %v8324_v14, %v8285_v38 }
0x1286   : > { %8364 = vadd.xlane.f32.xlu1 %v8337_v40  ;;  %8362 = vadd.xlane.f32.xlu0 %v8336_v51 }
0x128a   : > { %8368 = vadd.xlane.f32.xlu1 %v8339_v60  ;;  %8366 = vadd.xlane.f32.xlu0 %v8338_v24 }
0x128e   : > { %8372 = vadd.xlane.f32.xlu1 %v8341_v18  ;;  %8370 = vadd.xlane.f32.xlu0 %v8340_v58 }
0x12ff   : > { %v8347_v29 = vpop.xlane.xlu1 %8346  ;;  %v8343_v37 = vpop.xlane.xlu0 %8342 }
0x1300   : > { %v8383_v12 = vadd.f32 %v8824_v20, %v8347_v29  ;;  %v8381_v0 = vadd.f32 %v8824_v20, %v8343_v37 }
0x1302   : > { %8400 = vst.msk [vmem:[%s10080_s26 + $0x10] sm:$0xff] %vm8397_vm2, %v8383_v12  ;;  %8398 = vst.msk [vmem:[%s10080_s26] sm:$0xff] %vm8397_vm2, %v8381_v0 }
0x1303   : > { %v8349_v36 = vpop.xlane.xlu1 %8348  ;;  %v8345_v42 = vpop.xlane.xlu0 %8344 }
0x1304   : > { %v8384_v6 = vadd.f32 %v8824_v20, %v8349_v36  ;;  %v8382_v44 = vadd.f32 %v8824_v20, %v8345_v42 }
0x1306   : > { %8401 = vst.msk [vmem:[%s10080_s26 + $0x18] sm:$0xff] %vm8397_vm2, %v8384_v6  ;;  %8399 = vst.msk [vmem:[%s10080_s26 + $0x8] sm:$0xff] %vm8397_vm2, %v8382_v44 }
0x1307   : > { %v8353_v48 = vpop.xlane.xlu1 %8352  ;;  %v8351_v5 = vpop.xlane.xlu0 %8350 }
0x1308   : > { %v8386_v50 = vadd.f32 %v8824_v20, %v8353_v48  ;;  %v8385_v61 = vadd.f32 %v8824_v20, %v8351_v5 }
0x130a   : > { %8403 = vst.msk [vmem:[%s10080_s26 + $0x28] sm:$0xff] %vm8397_vm2, %v8386_v50  ;;  %8402 = vst.msk [vmem:[%s10080_s26 + $0x20] sm:$0xff] %vm8397_vm2, %v8385_v61 }
0x130b   : > { %v8357_v27 = vpop.xlane.xlu1 %8356  ;;  %v8355_v15 = vpop.xlane.xlu0 %8354 }
0x130c   : > { %v8388_v21 = vadd.f32 %v8824_v20, %v8357_v27  ;;  %v8387_v8 = vadd.f32 %v8824_v20, %v8355_v15 }
0x130e   : > { %8405 = vst.msk [vmem:[%s10080_s26 + $0x38] sm:$0xff] %vm8397_vm2, %v8388_v21  ;;  %8404 = vst.msk [vmem:[%s10080_s26 + $0x30] sm:$0xff] %vm8397_vm2, %v8387_v8 }
0x130f   : > { %v8361_v10 = vpop.xlane.xlu1 %8360  ;;  %v8359_v25 = vpop.xlane.xlu0 %8358 }
0x1310   : > { %v8390_v28 = vadd.f32 %v8824_v20, %v8361_v10  ;;  %v8389_v41 = vadd.f32 %v8824_v20, %v8359_v25 }
0x1312   : > { %8407 = vst.msk [vmem:[%s10080_s26 + $0x48] sm:$0xff] %vm8397_vm2, %v8390_v28  ;;  %8406 = vst.msk [vmem:[%s10080_s26 + $0x40] sm:$0xff] %vm8397_vm2, %v8389_v41 }
0x1313   : > { %v8365_v59 = vpop.xlane.xlu1 %8364  ;;  %v8363_v49 = vpop.xlane.xlu0 %8362 }
0x1314   : > { %v8392_v63 = vadd.f32 %v8824_v20, %v8365_v59  ;;  %v8391_v45 = vadd.f32 %v8824_v20, %v8363_v49 }
0x1316   : > { %8409 = vst.msk [vmem:[%s10080_s26 + $0x58] sm:$0xff] %vm8397_vm2, %v8392_v63  ;;  %8408 = vst.msk [vmem:[%s10080_s26 + $0x50] sm:$0xff] %vm8397_vm2, %v8391_v45 }
0x1317   : > { %v8369_v13 = vpop.xlane.xlu1 %8368  ;;  %v8367_v9 = vpop.xlane.xlu0 %8366 }
0x1318   : > { %v8394_v47 = vadd.f32 %v8824_v20, %v8369_v13  ;;  %v8393_v30 = vadd.f32 %v8824_v20, %v8367_v9 }
0x131a   : > { %8411 = vst.msk [vmem:[%s10080_s26 + $0x68] sm:$0xff] %vm8397_vm2, %v8394_v47  ;;  %8410 = vst.msk [vmem:[%s10080_s26 + $0x60] sm:$0xff] %vm8397_vm2, %v8393_v30 }
0x131b   : > { %v8373_v3 = vpop.xlane.xlu1 %8372  ;;  %v8371_v17 = vpop.xlane.xlu0 %8370 }
0x131c   : > { %v8396_v43 = vadd.f32 %v8824_v20, %v8373_v3  ;;  %v8395_v34 = vadd.f32 %v8824_v20, %v8371_v17 }
0x131e   : > { %8413 = vst.msk [vmem:[%s10080_s26 + $0x78] sm:$0xff] %vm8397_vm2, %v8396_v43  ;;  %8412 = vst.msk [vmem:[%s10080_s26 + $0x70] sm:$0xff] %vm8397_vm2, %v8395_v34 }
0x131f PF: > { %s18087_s1 = sld [smem:[#allocation12_spill]]  ;;  %s18088_s23 = sld [smem:[#allocation10_spill]] }
0x1320   : > { %s18089_s24 = sld [smem:[#allocation11_spill]]  ;;  %s18090_s2 = sld [smem:[#allocation13_spill]] }
0x1321   : > { %s18091_s25 = sld [smem:[#allocation14_spill]] }
0x1325   : > { %s32_s3 = sadd.s32 1, %s18087_s1  }
0x1326   : > { %p29_p0 = scmp.ge.s32.totalorder %s32_s3, 8  }
0x1328   :  { %31 = sbr.rel (!%p29_p0) target bundleno = 11 (0xb), region = 170 }

</bundles_post_ra>
